<compile_context>
chip_gen: v7x
topology: tpu7x:2x2x1
jax: 0.10.0
libtpu: 0.0.40
codegen_flags: <defaults>
</compile_context>

<pallas_src>
import numpy as np
import jax
import jax.numpy as jnp
from jax import lax
from jax.experimental import pallas as pl
from jax.experimental.pallas import tpu as pltpu


# ----------------------------- fused Pallas kernel --------------------------

def _lenet_fused_kernel(x_ref, w1_ref, b1_ref, w2_ref, b2_ref,
                        wf1_ref, bf1_ref, wf2_ref, bf2_ref,
                        wf3_ref, bf3_ref, out_ref):
    f32 = jnp.float32
    bf16 = jnp.bfloat16

    x = x_ref[...].astype(bf16)                               # (TB, 784)

    # conv1 + bias + ReLU: one matmul; output lanes = 4 pool quadrants of
    # 896 (= 7*128) lanes each (864 used = 12*12 spatial * 6 ch, 32 zero-pad).
    y1 = jnp.dot(x, w1_ref[...], preferred_element_type=f32) + b1_ref[...]
    y1 = jnp.maximum(y1, 0.0)
    # 2x2 max-pool #1 = max over the four 128-aligned quadrant slices.
    p1 = jnp.maximum(jnp.maximum(y1[:, 0:896], y1[:, 896:1792]),
                     jnp.maximum(y1[:, 1792:2688], y1[:, 2688:3584]))

    # conv2 + bias + ReLU: one matmul; output lanes = 4 quadrants of 256
    # (= 4*4 spatial * 16 ch) lanes each.
    y2 = jnp.dot(p1.astype(bf16), w2_ref[...],
                 preferred_element_type=f32) + b2_ref[...]
    y2 = jnp.maximum(y2, 0.0)
    # 2x2 max-pool #2.
    p2 = jnp.maximum(jnp.maximum(y2[:, 0:256], y2[:, 256:512]),
                     jnp.maximum(y2[:, 512:768], y2[:, 768:1024]))

    # fc1 (+ NCHW flatten permutation folded into wf1) + ReLU.
    h1 = jnp.dot(p2.astype(bf16), wf1_ref[...],
                 preferred_element_type=f32) + bf1_ref[...]
    h1 = jnp.maximum(h1, 0.0)

    # fc2 + ReLU (output zero-padded 84 -> 128 lanes).
    h2 = jnp.dot(h1.astype(bf16), wf2_ref[...],
                 preferred_element_type=f32) + bf2_ref[...]
    h2 = jnp.maximum(h2, 0.0)

    # fc3 (output zero-padded num_classes -> 128 lanes; wrapper slices back).
    # TODO(synk): training-mode dropout (F.dropout defaults to training=True in
    # the reference module) is not applied; add pltpu.prng_seed /
    # pltpu.prng_random_bits masking if train-time parity is needed.
    out_ref[...] = jnp.dot(h2.astype(bf16), wf3_ref[...],
                           preferred_element_type=f32) + bf3_ref[...]


# ----------------------------- parameters -----------------------------------

def init_params(key, num_classes=10):
    ks = jax.random.split(key, 5)
    std = 0.15  # matches LeNet._init_weights for Linear; used for convs too
    return {
        "conv1_w": std * jax.random.normal(ks[0], (6, 1, 5, 5), jnp.float32),
        "conv1_b": jnp.zeros((6,), jnp.float32),
        "conv2_w": std * jax.random.normal(ks[1], (16, 6, 5, 5), jnp.float32),
        "conv2_b": jnp.zeros((16,), jnp.float32),
        "fc1_w": std * jax.random.normal(ks[2], (128, 256), jnp.float32),
        "fc1_b": jnp.zeros((128,), jnp.float32),
        "fc2_w": std * jax.random.normal(ks[3], (84, 128), jnp.float32),
        "fc2_b": jnp.zeros((84,), jnp.float32),
        "fc3_w": std * jax.random.normal(ks[4], (num_classes, 84), jnp.float32),
        "fc3_b": jnp.zeros((num_classes,), jnp.float32),
    }


def prepare_params(params):
    """One-time preprocessing into batch-tile-independent kernel operands."""
    f32 = np.float32
    num_classes = int(params["fc3_w"].shape[0])
    assert num_classes <= 128

    w1 = np.asarray(params["conv1_w"], f32)     # (6, 1, 5, 5)
    b1v = np.asarray(params["conv1_b"], f32)    # (6,)
    w2 = np.asarray(params["conv2_w"], f32)     # (16, 6, 5, 5)
    b2v = np.asarray(params["conv2_b"], f32)    # (16,)

    # conv1 -> dense locally-connected matmul (784 -> 3584).
    # Output lane = q*896 + (hh*12 + wh)*6 + co, q = hp*2 + wp is the 2x2-pool
    # quadrant (oh = 2*hh + hp, ow = 2*wh + wp).  Each 864-lane quadrant is
    # zero-padded to 896 = 7*128 so pool slices stay 128-lane aligned.
    Q1 = 896
    W1 = np.zeros((784, 4 * Q1), f32)
    B1 = np.zeros((1, 4 * Q1), f32)
    for hp in range(2):
        for wp in range(2):
            q = hp * 2 + wp
            for hh in range(12):
                for wh in range(12):
                    oh, ow = 2 * hh + hp, 2 * wh + wp
                    c0 = q * Q1 + (hh * 12 + wh) * 6
                    B1[0, c0:c0 + 6] = b1v
                    for ki in range(5):
                        for kj in range(5):
                            W1[(oh + ki) * 28 + (ow + kj), c0:c0 + 6] = \
                                w1[:, 0, ki, kj]

    # conv2 -> dense locally-connected matmul (896 -> 1024).
    # Input lane = (ih*12 + iw)*6 + ci (pool1 output layout, pad rows zero);
    # output lane = q2*256 + (hh*4 + wh)*16 + co, q2 = pool2 quadrant.
    W2 = np.zeros((Q1, 1024), f32)
    B2 = np.zeros((1, 1024), f32)
    for hp in range(2):
        for wp in range(2):
            q2 = hp * 2 + wp
            for hh in range(4):
                for wh in range(4):
                    oh, ow = 2 * hh + hp, 2 * wh + wp
                    c0 = q2 * 256 + (hh * 4 + wh) * 16
                    B2[0, c0:c0 + 16] = b2v
                    for ki in range(5):
                        for kj in range(5):
                            r0 = ((oh + ki) * 12 + (ow + kj)) * 6
                            W2[r0:r0 + 6, c0:c0 + 16] = w2[:, :, ki, kj].T

    # fc1: fold the PyTorch NCHW flatten (feature = c*16 + h*4 + w) into the
    # weights; our pool2 lane order is (h*4 + w)*16 + c.
    fc1_w = np.asarray(params["fc1_w"], f32)    # (128, 256)
    WF1 = np.zeros((256, 128), f32)
    for c in range(16):
        for h in range(4):
            for w in range(4):
                WF1[(h * 4 + w) * 16 + c, :] = fc1_w[:, c * 16 + h * 4 + w]
    BF1 = np.asarray(params["fc1_b"], f32).reshape(1, 128)

    # fc2 / fc3: transpose, zero-pad the output dim to 128 lanes.
    WF2 = np.zeros((128, 128), f32)
    WF2[:, :84] = np.asarray(params["fc2_w"], f32).T
    BF2 = np.zeros((1, 128), f32)
    BF2[0, :84] = np.asarray(params["fc2_b"], f32)
    WF3 = np.zeros((128, 128), f32)
    WF3[:84, :num_classes] = np.asarray(params["fc3_w"], f32).T
    BF3 = np.zeros((1, 128), f32)
    BF3[0, :num_classes] = np.asarray(params["fc3_b"], f32)

    bf16 = jnp.bfloat16
    return {
        "num_classes": num_classes,
        "w1": jnp.asarray(W1, bf16), "b1": jnp.asarray(B1),
        "w2": jnp.asarray(W2, bf16), "b2": jnp.asarray(B2),
        "wf1": jnp.asarray(WF1, bf16), "bf1": jnp.asarray(BF1),
        "wf2": jnp.asarray(WF2, bf16), "bf2": jnp.asarray(BF2),
        "wf3": jnp.asarray(WF3, bf16), "bf3": jnp.asarray(BF3),
    }


# ----------------------------- forward wrapper -------------------------------

def _full_spec(arr):
    nd = arr.ndim
    return pl.BlockSpec(arr.shape, lambda i, _nd=nd: (0,) * _nd)


def lenet_forward(x_nchw, prep, tile_b=None):
    """x_nchw: (B, 1, 28, 28) float32 — same convention as the PyTorch module."""
    nc = prep["num_classes"]
    B = x_nchw.shape[0]
    assert x_nchw.shape[1:] == (1, 28, 28)
    x = x_nchw.reshape(B, 28 * 28).astype(jnp.float32)   # lane-dense input rows

    bp8 = ((B + 7) // 8) * 8
    if tile_b is None:
        tile_b = min(128, bp8)
        # Keep >=2 grid steps when the batch allows it: the single "parallel"
        # grid axis is what shards work across v7x's two TensorCores.
        if bp8 // tile_b < 2 and bp8 >= 16:
            tile_b = ((bp8 // 2 + 7) // 8) * 8
    bpad = ((B + tile_b - 1) // tile_b) * tile_b
    if bpad != B:
        x = jnp.pad(x, ((0, bpad - B), (0, 0)))

    weights = [prep[k] for k in ("w1", "b1", "w2", "b2", "wf1", "bf1",
                                 "wf2", "bf2", "wf3", "bf3")]
    out = pl.pallas_call(
        _lenet_fused_kernel,
        out_shape=jax.ShapeDtypeStruct((bpad, 128), jnp.float32),
        grid=(bpad // tile_b,),
        in_specs=[pl.BlockSpec((tile_b, 28 * 28), lambda i: (i, 0))]
                 + [_full_spec(w) for w in weights],
        out_specs=pl.BlockSpec((tile_b, 128), lambda i: (i, 0)),
        compiler_params=pltpu.CompilerParams(
            dimension_semantics=("parallel",),
            vmem_limit_bytes=48 * 1024 * 1024),
    )(x, *weights)
    return out[:B, :nc]


# ----------------------------- pure-JAX reference ----------------------------

def _lenet_reference(x_nchw, params):
    dn = ("NCHW", "OIHW", "NCHW")
    y = lax.conv_general_dilated(x_nchw, params["conv1_w"], (1, 1), "VALID",
                                 dimension_numbers=dn)
    y = jax.nn.relu(y + params["conv1_b"][None, :, None, None])
    y = lax.reduce_window(y, -jnp.inf, lax.max, (1, 1, 2, 2), (1, 1, 2, 2), "VALID")
    y = lax.conv_general_dilated(y, params["conv2_w"], (1, 1), "VALID",
                                 dimension_numbers=dn)
    y = jax.nn.relu(y + params["conv2_b"][None, :, None, None])
    y = lax.reduce_window(y, -jnp.inf, lax.max, (1, 1, 2, 2), (1, 1, 2, 2), "VALID")
    y = y.reshape(y.shape[0], -1)
    y = jax.nn.relu(y @ params["fc1_w"].T + params["fc1_b"])
    y = jax.nn.relu(y @ params["fc2_w"].T + params["fc2_b"])
    return y @ params["fc3_w"].T + params["fc3_b"]


if __name__ == "__main__":
    key = jax.random.PRNGKey(0)
    kx, kp = jax.random.split(key)
    # fc1 expects 256 = 16*4*4 input features, which fixes the input to 28x28.
    x = jax.random.normal(kx, (2, 1, 28, 28), jnp.float32)
    params = init_params(kp)
    prep = prepare_params(params)

    fwd = jax.jit(lambda inp: lenet_forward(inp, prep))
    out = jax.block_until_ready(fwd(x))
    assert out.shape == (2, 10) and out.dtype == jnp.float32

    ref = jax.block_until_ready(_lenet_reference(x, params))
    np.testing.assert_allclose(np.asarray(out), np.asarray(ref),
                               rtol=5e-2, atol=5e-2)
    print("KERNEL_OK")
</pallas_src>

<mosaic_0001>
module attributes {stable_mosaic.version = 11 : i64} {
  func.func @_lenet_fused_kernel(%arg0: i32, %arg1: memref<8x784xf32, #tpu.memory_space<vmem>>, %arg2: memref<784x3584xbf16, #tpu.memory_space<vmem>>, %arg3: memref<1x3584xf32, #tpu.memory_space<vmem>>, %arg4: memref<896x1024xbf16, #tpu.memory_space<vmem>>, %arg5: memref<1x1024xf32, #tpu.memory_space<vmem>>, %arg6: memref<256x128xbf16, #tpu.memory_space<vmem>>, %arg7: memref<1x128xf32, #tpu.memory_space<vmem>>, %arg8: memref<128x128xbf16, #tpu.memory_space<vmem>>, %arg9: memref<1x128xf32, #tpu.memory_space<vmem>>, %arg10: memref<128x128xbf16, #tpu.memory_space<vmem>>, %arg11: memref<1x128xf32, #tpu.memory_space<vmem>>, %arg12: memref<8x128xf32, #tpu.memory_space<vmem>>) attributes {dimension_semantics = [#tpu.dimension_semantics<parallel>], iteration_bounds = array<i64: 1>, scalar_prefetch = 0 : i64, scratch_operands = 0 : i64, tpu.core_type = #tpu.core_type<tc>, window_params = [{transform_indices = @transform_0, window_bounds = array<i64: 8, 784>}, {pipeline_mode = #tpu.pipeline_mode<synchronous>, transform_indices = @transform_1, window_bounds = array<i64: 784, 3584>}, {pipeline_mode = #tpu.pipeline_mode<synchronous>, transform_indices = @transform_2, window_bounds = array<i64: 1, 3584>}, {pipeline_mode = #tpu.pipeline_mode<synchronous>, transform_indices = @transform_3, window_bounds = array<i64: 896, 1024>}, {pipeline_mode = #tpu.pipeline_mode<synchronous>, transform_indices = @transform_4, window_bounds = array<i64: 1, 1024>}, {pipeline_mode = #tpu.pipeline_mode<synchronous>, transform_indices = @transform_5, window_bounds = array<i64: 256, 128>}, {pipeline_mode = #tpu.pipeline_mode<synchronous>, transform_indices = @transform_6, window_bounds = array<i64: 1, 128>}, {pipeline_mode = #tpu.pipeline_mode<synchronous>, transform_indices = @transform_7, window_bounds = array<i64: 128, 128>}, {pipeline_mode = #tpu.pipeline_mode<synchronous>, transform_indices = @transform_8, window_bounds = array<i64: 1, 128>}, {pipeline_mode = #tpu.pipeline_mode<synchronous>, transform_indices = @transform_9, window_bounds = array<i64: 128, 128>}, {pipeline_mode = #tpu.pipeline_mode<synchronous>, transform_indices = @transform_10, window_bounds = array<i64: 1, 128>}, {transform_indices = @transform_11, window_bounds = array<i64: 8, 128>}]} {
    %c0 = arith.constant 0 : index
    %c0_0 = arith.constant 0 : index
    %0 = vector.load %arg1[%c0, %c0_0] : memref<8x784xf32, #tpu.memory_space<vmem>>, vector<8x784xf32>
    %1 = arith.truncf %0 : vector<8x784xf32> to vector<8x784xbf16>
    %c0_1 = arith.constant 0 : index
    %c0_2 = arith.constant 0 : index
    %2 = vector.load %arg2[%c0_1, %c0_2] : memref<784x3584xbf16, #tpu.memory_space<vmem>>, vector<784x3584xbf16>
    %cst = arith.constant dense<0.000000e+00> : vector<8x3584xf32>
    %3 = tpu.matmul %1, %2, %cst {dimension_numbers = #tpu.dot_dimension_numbers<[1], [0], [0], [1], [0, 0, 1, 1], [], []>} : vector<8x784xbf16>, vector<784x3584xbf16>, vector<8x3584xf32> -> vector<8x3584xf32>
    %c0_3 = arith.constant 0 : index
    %c0_4 = arith.constant 0 : index
    %4 = vector.load %arg3[%c0_3, %c0_4] : memref<1x3584xf32, #tpu.memory_space<vmem>>, vector<1x3584xf32>
    %5 = vector.broadcast %4 : vector<1x3584xf32> to vector<8x3584xf32>
    %6 = arith.addf %3, %5 : vector<8x3584xf32>
    %cst_5 = arith.constant 0.000000e+00 : f32
    %7 = vector.broadcast %cst_5 : f32 to vector<8x3584xf32>
    %8 = arith.maximumf %6, %7 : vector<8x3584xf32>
    %9 = vector.extract_strided_slice %8 {offsets = [0, 0], sizes = [8, 896], strides = [1, 1]} : vector<8x3584xf32> to vector<8x896xf32>
    %10 = vector.extract_strided_slice %8 {offsets = [0, 896], sizes = [8, 896], strides = [1, 1]} : vector<8x3584xf32> to vector<8x896xf32>
    %11 = arith.maximumf %9, %10 : vector<8x896xf32>
    %12 = vector.extract_strided_slice %8 {offsets = [0, 1792], sizes = [8, 896], strides = [1, 1]} : vector<8x3584xf32> to vector<8x896xf32>
    %13 = vector.extract_strided_slice %8 {offsets = [0, 2688], sizes = [8, 896], strides = [1, 1]} : vector<8x3584xf32> to vector<8x896xf32>
    %14 = arith.maximumf %12, %13 : vector<8x896xf32>
    %15 = arith.maximumf %11, %14 : vector<8x896xf32>
    %16 = arith.truncf %15 : vector<8x896xf32> to vector<8x896xbf16>
    %c0_6 = arith.constant 0 : index
    %c0_7 = arith.constant 0 : index
    %17 = vector.load %arg4[%c0_6, %c0_7] : memref<896x1024xbf16, #tpu.memory_space<vmem>>, vector<896x1024xbf16>
    %cst_8 = arith.constant dense<0.000000e+00> : vector<8x1024xf32>
    %18 = tpu.matmul %16, %17, %cst_8 {dimension_numbers = #tpu.dot_dimension_numbers<[1], [0], [0], [1], [0, 0, 1, 1], [], []>} : vector<8x896xbf16>, vector<896x1024xbf16>, vector<8x1024xf32> -> vector<8x1024xf32>
    %c0_9 = arith.constant 0 : index
    %c0_10 = arith.constant 0 : index
    %19 = vector.load %arg5[%c0_9, %c0_10] : memref<1x1024xf32, #tpu.memory_space<vmem>>, vector<1x1024xf32>
    %20 = vector.broadcast %19 : vector<1x1024xf32> to vector<8x1024xf32>
    %21 = arith.addf %18, %20 : vector<8x1024xf32>
    %cst_11 = arith.constant 0.000000e+00 : f32
    %22 = vector.broadcast %cst_11 : f32 to vector<8x1024xf32>
    %23 = arith.maximumf %21, %22 : vector<8x1024xf32>
    %24 = vector.extract_strided_slice %23 {offsets = [0, 0], sizes = [8, 256], strides = [1, 1]} : vector<8x1024xf32> to vector<8x256xf32>
    %25 = vector.extract_strided_slice %23 {offsets = [0, 256], sizes = [8, 256], strides = [1, 1]} : vector<8x1024xf32> to vector<8x256xf32>
    %26 = arith.maximumf %24, %25 : vector<8x256xf32>
    %27 = vector.extract_strided_slice %23 {offsets = [0, 512], sizes = [8, 256], strides = [1, 1]} : vector<8x1024xf32> to vector<8x256xf32>
    %28 = vector.extract_strided_slice %23 {offsets = [0, 768], sizes = [8, 256], strides = [1, 1]} : vector<8x1024xf32> to vector<8x256xf32>
    %29 = arith.maximumf %27, %28 : vector<8x256xf32>
    %30 = arith.maximumf %26, %29 : vector<8x256xf32>
    %31 = arith.truncf %30 : vector<8x256xf32> to vector<8x256xbf16>
    %c0_12 = arith.constant 0 : index
    %c0_13 = arith.constant 0 : index
    %32 = vector.load %arg6[%c0_12, %c0_13] : memref<256x128xbf16, #tpu.memory_space<vmem>>, vector<256x128xbf16>
    %cst_14 = arith.constant dense<0.000000e+00> : vector<8x128xf32>
    %33 = tpu.matmul %31, %32, %cst_14 {dimension_numbers = #tpu.dot_dimension_numbers<[1], [0], [0], [1], [0, 0, 1, 1], [], []>} : vector<8x256xbf16>, vector<256x128xbf16>, vector<8x128xf32> -> vector<8x128xf32>
    %c0_15 = arith.constant 0 : index
    %c0_16 = arith.constant 0 : index
    %34 = vector.load %arg7[%c0_15, %c0_16] : memref<1x128xf32, #tpu.memory_space<vmem>>, vector<1x128xf32>
    %35 = vector.broadcast %34 : vector<1x128xf32> to vector<8x128xf32>
    %36 = arith.addf %33, %35 : vector<8x128xf32>
    %cst_17 = arith.constant 0.000000e+00 : f32
    %37 = vector.broadcast %cst_17 : f32 to vector<8x128xf32>
    %38 = arith.maximumf %36, %37 : vector<8x128xf32>
    %39 = arith.truncf %38 : vector<8x128xf32> to vector<8x128xbf16>
    %c0_18 = arith.constant 0 : index
    %c0_19 = arith.constant 0 : index
    %40 = vector.load %arg8[%c0_18, %c0_19] : memref<128x128xbf16, #tpu.memory_space<vmem>>, vector<128x128xbf16>
    %cst_20 = arith.constant dense<0.000000e+00> : vector<8x128xf32>
    %41 = tpu.matmul %39, %40, %cst_20 {dimension_numbers = #tpu.dot_dimension_numbers<[1], [0], [0], [1], [0, 0, 1, 1], [], []>} : vector<8x128xbf16>, vector<128x128xbf16>, vector<8x128xf32> -> vector<8x128xf32>
    %c0_21 = arith.constant 0 : index
    %c0_22 = arith.constant 0 : index
    %42 = vector.load %arg9[%c0_21, %c0_22] : memref<1x128xf32, #tpu.memory_space<vmem>>, vector<1x128xf32>
    %43 = vector.broadcast %42 : vector<1x128xf32> to vector<8x128xf32>
    %44 = arith.addf %41, %43 : vector<8x128xf32>
    %cst_23 = arith.constant 0.000000e+00 : f32
    %45 = vector.broadcast %cst_23 : f32 to vector<8x128xf32>
    %46 = arith.maximumf %44, %45 : vector<8x128xf32>
    %47 = arith.truncf %46 : vector<8x128xf32> to vector<8x128xbf16>
    %c0_24 = arith.constant 0 : index
    %c0_25 = arith.constant 0 : index
    %48 = vector.load %arg10[%c0_24, %c0_25] : memref<128x128xbf16, #tpu.memory_space<vmem>>, vector<128x128xbf16>
    %cst_26 = arith.constant dense<0.000000e+00> : vector<8x128xf32>
    %49 = tpu.matmul %47, %48, %cst_26 {dimension_numbers = #tpu.dot_dimension_numbers<[1], [0], [0], [1], [0, 0, 1, 1], [], []>} : vector<8x128xbf16>, vector<128x128xbf16>, vector<8x128xf32> -> vector<8x128xf32>
    %c0_27 = arith.constant 0 : index
    %c0_28 = arith.constant 0 : index
    %50 = vector.load %arg11[%c0_27, %c0_28] : memref<1x128xf32, #tpu.memory_space<vmem>>, vector<1x128xf32>
    %51 = vector.broadcast %50 : vector<1x128xf32> to vector<8x128xf32>
    %52 = arith.addf %49, %51 : vector<8x128xf32>
    %c0_29 = arith.constant 0 : index
    %c0_30 = arith.constant 0 : index
    %53 = vector.load %arg12[%c0_29, %c0_30] : memref<8x128xf32, #tpu.memory_space<vmem>>, vector<8x128xf32>
    tpu.vector_store %arg12[%c0_29, %c0_30], %52 {strides = array<i32>} : memref<8x128xf32, #tpu.memory_space<vmem>>, vector<8x128xf32>,
    return
  }
  func.func @transform_0(%arg0: i32) -> (i32, i32) {
    %c0_i32 = arith.constant 0 : i32
    %c0_i32_0 = arith.constant 0 : i32
    return %arg0, %c0_i32 : i32, i32
  }
  func.func @transform_1(%arg0: i32) -> (i32, i32) {
    %c0_i32 = arith.constant 0 : i32
    %c0_i32_0 = arith.constant 0 : i32
    %c0_i32_1 = arith.constant 0 : i32
    return %c0_i32, %c0_i32_0 : i32, i32
  }
  func.func @transform_2(%arg0: i32) -> (i32, i32) {
    %c0_i32 = arith.constant 0 : i32
    %c0_i32_0 = arith.constant 0 : i32
    %c0_i32_1 = arith.constant 0 : i32
    return %c0_i32, %c0_i32_0 : i32, i32
  }
  func.func @transform_3(%arg0: i32) -> (i32, i32) {
    %c0_i32 = arith.constant 0 : i32
    %c0_i32_0 = arith.constant 0 : i32
    %c0_i32_1 = arith.constant 0 : i32
    return %c0_i32, %c0_i32_0 : i32, i32
  }
  func.func @transform_4(%arg0: i32) -> (i32, i32) {
    %c0_i32 = arith.constant 0 : i32
    %c0_i32_0 = arith.constant 0 : i32
    %c0_i32_1 = arith.constant 0 : i32
    return %c0_i32, %c0_i32_0 : i32, i32
  }
  func.func @transform_5(%arg0: i32) -> (i32, i32) {
    %c0_i32 = arith.constant 0 : i32
    %c0_i32_0 = arith.constant 0 : i32
    %c0_i32_1 = arith.constant 0 : i32
    return %c0_i32, %c0_i32_0 : i32, i32
  }
  func.func @transform_6(%arg0: i32) -> (i32, i32) {
    %c0_i32 = arith.constant 0 : i32
    %c0_i32_0 = arith.constant 0 : i32
    %c0_i32_1 = arith.constant 0 : i32
    return %c0_i32, %c0_i32_0 : i32, i32
  }
  func.func @transform_7(%arg0: i32) -> (i32, i32) {
    %c0_i32 = arith.constant 0 : i32
    %c0_i32_0 = arith.constant 0 : i32
    %c0_i32_1 = arith.constant 0 : i32
    return %c0_i32, %c0_i32_0 : i32, i32
  }
  func.func @transform_8(%arg0: i32) -> (i32, i32) {
    %c0_i32 = arith.constant 0 : i32
    %c0_i32_0 = arith.constant 0 : i32
    %c0_i32_1 = arith.constant 0 : i32
    return %c0_i32, %c0_i32_0 : i32, i32
  }
  func.func @transform_9(%arg0: i32) -> (i32, i32) {
    %c0_i32 = arith.constant 0 : i32
    %c0_i32_0 = arith.constant 0 : i32
    %c0_i32_1 = arith.constant 0 : i32
    return %c0_i32, %c0_i32_0 : i32, i32
  }
  func.func @transform_10(%arg0: i32) -> (i32, i32) {
    %c0_i32 = arith.constant 0 : i32
    %c0_i32_0 = arith.constant 0 : i32
    %c0_i32_1 = arith.constant 0 : i32
    return %c0_i32, %c0_i32_0 : i32, i32
  }
  func.func @transform_11(%arg0: i32) -> (i32, i32) {
    %c0_i32 = arith.constant 0 : i32
    %c0_i32_0 = arith.constant 0 : i32
    return %arg0, %c0_i32 : i32, i32
  }
}

</mosaic_0001>

<bundles_post_ra>
// kernel: _lambda_.1
= control target key start
LH: loop header
LB: loop body
LE: loop exit
PB: predicated region body
PF: predicated region fallthrough
CT: control target
= control target key end

     0   :  { %v18891_v1 = vmov 0   ;;  %vm8433_vm0 = vcmask 130048   ;;  %vm18893_vm1 = vmmov 0   ;;  %s24990_s1 = inlined_call_operand.vmem [shape: bf16[784,3584], index: 1, kind: input, shape index: {}]   ;;  %s24991_s0 = inlined_call_operand.vmem [shape: f32[8,784], index: 0, kind: input, shape index: {}]   ;;  %s24992_s2 = inlined_call_operand.vmem [shape: f32[1,3584], index: 2, kind: input, shape index: {}]   ;;  %s24993_s3 = inlined_call_operand.vmem [shape: bf16[896,1024], index: 3, kind: input, shape index: {}]   ;;  %s24994_s5 = inlined_call_operand.vmem [shape: bf16[256,128], index: 5, kind: input, shape index: {}]   ;;  %s24995_s4 = inlined_call_operand.vmem [shape: f32[1,1024], index: 4, kind: input, shape index: {}]   ;;  %s24996_s7 = inlined_call_operand.vmem [shape: bf16[128,128], index: 7, kind: input, shape index: {}]   ;;  %s24997_s9 = inlined_call_operand.vmem [shape: bf16[128,128], index: 9, kind: input, shape index: {}]   ;;  %s24998_s6 = inlined_call_operand.vmem [shape: f32[1,128], index: 6, kind: input, shape index: {}, may-alias: {6,8,10}]   ;;  %s24999_s8 = inlined_call_operand.vmem [shape: f32[1,128], index: 8, kind: input, shape index: {}, may-alias: {6,8,10}]   ;;  %s25000_s10 = inlined_call_operand.vmem [shape: f32[1,128], index: 10, kind: input, shape index: {}, may-alias: {6,8,10}]   ;;  %s25001_s11 = inlined_call_operand.vmem [shape: f32[8,128], index: 11, kind: output, shape index: {}]  }
   0x1   :  { %v16797_v0 = vld [vmem:[%s24990_s1 + $0x4] ss:$112 sps:$4 sm:$0xff]   ;;  %8592 = vmatprep.mubr.bf16.mxu1 %v18891_v1  ;;  %v16801_v3 = vld [vmem:[%s24990_s1] ss:$112 sps:$4 sm:$0xff]   ;;  %v16805_v6 = vld [vmem:[%s24990_s1 + $0x8] ss:$112 sps:$4 sm:$0xff]  }
   0x2   :  { %v16799_v2 = vld [vmem:[%s24990_s1 + $0x2a04] ss:$112 sps:$4 sm:$0xff]   ;;  %8437 = vmatprep.subr.bf16.mxu0 %v16797_v0  ;;  %v16802_v4 = vld [vmem:[%s24990_s1 + $0x2a00] ss:$112 sps:$4 sm:$0xff]   ;;  %v16807_v7 = vld [vmem:[%s24990_s1 + $0xc] ss:$112 sps:$4 sm:$0xff]  }
   0x3   :  { %8560 = vmatprep.subr.bf16.mxu1 %v16799_v2  ;;  %v16803_v5 = vld [vmem:[%s24990_s1 + $0xe4] ss:$112 sps:$4 sm:$0xff]   ;;  %8438 = vmatpush1.bf16.msra.mxu0 %v16801_v3  ;;  %v16808_v8 = vld [vmem:[%s24990_s1 + $0xe0] ss:$112 sps:$4 sm:$0xff]   ;;  %v16811_v12 = vld [vmem:[%s24990_s1 + $0xe8] ss:$112 sps:$4 sm:$0xff]  }
   0x4   :  { %8561 = vmatpush1.bf16.msra.mxu1 %v16802_v4  ;;  %8439 = vmatprep.subr.bf16.mxu0 %v16803_v5  ;;  %v45_v9 = vld [vmem:[%s24991_s0 + $0x30] sm:$0xff]  ;;  %v16813_v13 = vld [vmem:[%s24990_s1 + $0xec] ss:$112 sps:$4 sm:$0xff]   ;;  %v16817_v18 = vld [vmem:[%s24990_s1 + $0x1c8] ss:$112 sps:$4 sm:$0xff]  }
   0x5   :  { %8601 = vmatprep.subr.bf16.mxu1 %v16807_v7  ;;  %v18982_v10 = vpack.c.bf16 %v45_v9, %v45_v9  ;;  %v16809_v11 = vld [vmem:[%s24990_s1 + $0x1c4] ss:$112 sps:$4 sm:$0xff]   ;;  %v16814_v14 = vld [vmem:[%s24990_s1 + $0x1c0] ss:$112 sps:$4 sm:$0xff]   ;;  %v16819_v16 = vld [vmem:[%s24990_s1 + $0x1cc] ss:$112 sps:$4 sm:$0xff]  }
   0x6   :  { %v16815_v15 = vld [vmem:[%s24990_s1 + $0x2a4] ss:$112 sps:$4 sm:$0xff]   ;;  %v16820_v17 = vld [vmem:[%s24990_s1 + $0x2a0] ss:$112 sps:$4 sm:$0xff]   ;;  %v16825_v20 = vld [vmem:[%s24990_s1 + $0x2ac] ss:$112 sps:$4 sm:$0xff]  }
   0x7   :  { %8440 = vmatpush1.bf16.msra.mxu0 %v16808_v8  ;;  %15969 = vmatmul.mubr.msk.bf16.vlgmr.msra.gmra.mrb[0].mxu1 %vm8433_vm0, %v18982_v10  ;;  %v16821_v19 = vld [vmem:[%s24990_s1 + $0x384] ss:$112 sps:$4 sm:$0xff]   ;;  %v16823_v21 = vld [vmem:[%s24990_s1 + $0x2a8] ss:$112 sps:$4 sm:$0xff]   ;;  %v16826_v22 = vld [vmem:[%s24990_s1 + $0x380] ss:$112 sps:$4 sm:$0xff]  }
   0x8   :  { %8602 = vmatpush1.bf16.msra.mxu1 %v16805_v6  ;;  %8441 = vmatprep.subr.bf16.mxu0 %v16809_v11  ;;  %v16827_v23 = vld [vmem:[%s24990_s1 + $0x464] ss:$112 sps:$4 sm:$0xff]   ;;  %v16831_v24 = vld [vmem:[%s24990_s1 + $0x38c] ss:$112 sps:$4 sm:$0xff]   ;;  %v16832_v25 = vld [vmem:[%s24990_s1 + $0x460] ss:$112 sps:$4 sm:$0xff]  }
   0x9   :  { %8603 = vmatprep.subr.bf16.mxu1 %v16813_v13  ;;  %v16829_v26 = vld [vmem:[%s24990_s1 + $0x388] ss:$112 sps:$4 sm:$0xff]   ;;  %v16833_v27 = vld [vmem:[%s24990_s1 + $0x544] ss:$112 sps:$4 sm:$0xff]   ;;  %v16837_v28 = vld [vmem:[%s24990_s1 + $0x46c] ss:$112 sps:$4 sm:$0xff]  }
   0xa   :  { %v16835_v29 = vld [vmem:[%s24990_s1 + $0x468] ss:$112 sps:$4 sm:$0xff]   ;;  %v16838_v30 = vld [vmem:[%s24990_s1 + $0x540] ss:$112 sps:$4 sm:$0xff]   ;;  %v16839_v31 = vld [vmem:[%s24990_s1 + $0x624] ss:$112 sps:$4 sm:$0xff]  }
   0xb   :  { %8442 = vmatpush1.bf16.msra.mxu0 %v16814_v14  ;;  %v16843_v32 = vld [vmem:[%s24990_s1 + $0x54c] ss:$112 sps:$4 sm:$0xff]   ;;  %v16844_v33 = vld [vmem:[%s24990_s1 + $0x620] ss:$112 sps:$4 sm:$0xff]   ;;  %v16841_v34 = vld [vmem:[%s24990_s1 + $0x548] ss:$112 sps:$4 sm:$0xff]  }
   0xc   :  { %8604 = vmatpush1.bf16.msra.mxu1 %v16811_v12  ;;  %8443 = vmatprep.subr.bf16.mxu0 %v16815_v15  ;;  %v16845_v35 = vld [vmem:[%s24990_s1 + $0x704] ss:$112 sps:$4 sm:$0xff]   ;;  %v16849_v36 = vld [vmem:[%s24990_s1 + $0x62c] ss:$112 sps:$4 sm:$0xff]   ;;  %v16847_v37 = vld [vmem:[%s24990_s1 + $0x628] ss:$112 sps:$4 sm:$0xff]  }
   0xd   :  { %8605 = vmatprep.subr.bf16.mxu1 %v16819_v16  ;;  %v16850_v38 = vld [vmem:[%s24990_s1 + $0x700] ss:$112 sps:$4 sm:$0xff]   ;;  %v16851_v39 = vld [vmem:[%s24990_s1 + $0x7e4] ss:$112 sps:$4 sm:$0xff]   ;;  %v16855_v40 = vld [vmem:[%s24990_s1 + $0x70c] ss:$112 sps:$4 sm:$0xff]  }
   0xe   :  { %v16856_v41 = vld [vmem:[%s24990_s1 + $0x7e0] ss:$112 sps:$4 sm:$0xff]   ;;  %v16853_v42 = vld [vmem:[%s24990_s1 + $0x708] ss:$112 sps:$4 sm:$0xff]   ;;  %v16857_v43 = vld [vmem:[%s24990_s1 + $0x8c4] ss:$112 sps:$4 sm:$0xff]  }
   0xf   :  { %8444 = vmatpush1.bf16.msra.mxu0 %v16820_v17  ;;  %v16861_v44 = vld [vmem:[%s24990_s1 + $0x7ec] ss:$112 sps:$4 sm:$0xff]   ;;  %v16859_v45 = vld [vmem:[%s24990_s1 + $0x7e8] ss:$112 sps:$4 sm:$0xff]   ;;  %v16862_v46 = vld [vmem:[%s24990_s1 + $0x8c0] ss:$112 sps:$4 sm:$0xff]  }
  0x10   :  { %8606 = vmatpush1.bf16.msra.mxu1 %v16817_v18  ;;  %8445 = vmatprep.subr.bf16.mxu0 %v16821_v19  ;;  %v16863_v47 = vld [vmem:[%s24990_s1 + $0x9a4] ss:$112 sps:$4 sm:$0xff]   ;;  %v16867_v48 = vld [vmem:[%s24990_s1 + $0x8cc] ss:$112 sps:$4 sm:$0xff]   ;;  %v16868_v50 = vld [vmem:[%s24990_s1 + $0x9a0] ss:$112 sps:$4 sm:$0xff]  }
  0x11   :  { %8607 = vmatprep.subr.bf16.mxu1 %v16825_v20  ;;  %v40_v49 = vld [vmem:[%s24991_s0 + $0x8] sm:$0xff]  ;;  %v16869_v53 = vld [vmem:[%s24990_s1 + $0xa84] ss:$112 sps:$4 sm:$0xff]   ;;  %v16874_v56 = vld [vmem:[%s24990_s1 + $0xa80] ss:$112 sps:$4 sm:$0xff]  }
  0x12   :  { %v19106_v51 = vpack.c.bf16 %v40_v49, %v40_v49  ;;  %v16865_v52 = vld [vmem:[%s24990_s1 + $0x8c8] ss:$112 sps:$4 sm:$0xff]   ;;  %v16873_v54 = vld [vmem:[%s24990_s1 + $0x9ac] ss:$112 sps:$4 sm:$0xff]   ;;  %v16875_v57 = vld [vmem:[%s24990_s1 + $0xb64] ss:$112 sps:$4 sm:$0xff]  }
  0x13   :  { %8446 = vmatpush1.bf16.msra.mxu0 %v16826_v22  ;;  %v16871_v55 = vld [vmem:[%s24990_s1 + $0x9a8] ss:$112 sps:$4 sm:$0xff]   ;;  %v16879_v58 = vld [vmem:[%s24990_s1 + $0xa8c] ss:$112 sps:$4 sm:$0xff]   ;;  %v16880_v60 = vld [vmem:[%s24990_s1 + $0xb60] ss:$112 sps:$4 sm:$0xff]  }
  0x14   :  { %8608 = vmatpush1.bf16.msra.mxu1 %v16823_v21  ;;  %8447 = vmatprep.subr.bf16.mxu0 %v16827_v23  ;;  %v16877_v59 = vld [vmem:[%s24990_s1 + $0xa88] ss:$112 sps:$4 sm:$0xff]   ;;  %v16881_v61 = vld [vmem:[%s24990_s1 + $0xc44] ss:$112 sps:$4 sm:$0xff]   ;;  %v16885_v62 = vld [vmem:[%s24990_s1 + $0xb6c] ss:$112 sps:$4 sm:$0xff]  }
  0x15   :  { %8609 = vmatprep.subr.bf16.mxu1 %v16831_v24  ;;  %8469 = vmatprep.mubr.bf16.mxu0 %v19106_v51  ;;  %v16883_v63 = vld [vmem:[%s24990_s1 + $0xb68] ss:$112 sps:$4 sm:$0xff]   ;;  %v16886_v0 = vld [vmem:[%s24990_s1 + $0xc40] ss:$112 sps:$4 sm:$0xff]   ;;  %v16887_v2 = vld [vmem:[%s24990_s1 + $0xd24] ss:$112 sps:$4 sm:$0xff]  }
  0x16   :  { %8633 = vmatprep.mubr.bf16.mxu1 %v19106_v51  ;;  %v16891_v3 = vld [vmem:[%s24990_s1 + $0xc4c] ss:$112 sps:$4 sm:$0xff]   ;;  %v16889_v4 = vld [vmem:[%s24990_s1 + $0xc48] ss:$112 sps:$4 sm:$0xff]   ;;  %v16892_v5 = vld [vmem:[%s24990_s1 + $0xd20] ss:$112 sps:$4 sm:$0xff]  }
  0x17   :  { %8448 = vmatpush1.bf16.msra.mxu0 %v16832_v25  ;;  %v39_v6 = vld [vmem:[%s24991_s0] sm:$0xff]  ;;  %v16898_v8 = vld [vmem:[%s24990_s1 + $0xd2c] ss:$112 sps:$4 sm:$0xff]   ;;  %v16896_v12 = vld [vmem:[%s24990_s1 + $0xd28] ss:$112 sps:$4 sm:$0xff]  }
  0x18   :  { %8610 = vmatpush1.bf16.msra.mxu1 %v16829_v26  ;;  %8449 = vmatprep.subr.bf16.mxu0 %v16833_v27  ;;  %v16895_v7 = vld [vmem:[%s24990_s1 + $0xe04] ss:$112 sps:$4 sm:$0xff]   ;;  %v19170_v9 = vpack.c.bf16 %v39_v6, %v39_v6  ;;  %v16893_v11 = vld [vmem:[%s24990_s1 + $0xe00] ss:$112 sps:$4 sm:$0xff]   ;;  %v16904_v14 = vld [vmem:[%s24990_s1 + $0xe0c] ss:$112 sps:$4 sm:$0xff]  }
  0x19   :  { %8611 = vmatprep.subr.bf16.mxu1 %v16837_v28  ;;  %v16901_v13 = vld [vmem:[%s24990_s1 + $0xee4] ss:$112 sps:$4 sm:$0xff]   ;;  %v16899_v15 = vld [vmem:[%s24990_s1 + $0xee0] ss:$112 sps:$4 sm:$0xff]   ;;  %v16902_v16 = vld [vmem:[%s24990_s1 + $0xe08] ss:$112 sps:$4 sm:$0xff]  }
  0x1a   :  { %v16907_v17 = vld [vmem:[%s24990_s1 + $0xfc4] ss:$112 sps:$4 sm:$0xff]   ;;  %v16910_v18 = vld [vmem:[%s24990_s1 + $0xeec] ss:$112 sps:$4 sm:$0xff]   ;;  %v16905_v19 = vld [vmem:[%s24990_s1 + $0xfc0] ss:$112 sps:$4 sm:$0xff]  }
  0x1b   :  { %8450 = vmatpush1.bf16.msra.mxu0 %v16838_v30  ;;  %v16908_v20 = vld [vmem:[%s24990_s1 + $0xee8] ss:$112 sps:$4 sm:$0xff]   ;;  %v16913_v21 = vld [vmem:[%s24990_s1 + $0x10a4] ss:$112 sps:$4 sm:$0xff]   ;;  %v16916_v22 = vld [vmem:[%s24990_s1 + $0xfcc] ss:$112 sps:$4 sm:$0xff]  }
  0x1c   :  { %8612 = vmatpush1.bf16.msra.mxu1 %v16835_v29  ;;  %8451 = vmatprep.subr.bf16.mxu0 %v16839_v31  ;;  %v16911_v23 = vld [vmem:[%s24990_s1 + $0x10a0] ss:$112 sps:$4 sm:$0xff]   ;;  %v16914_v24 = vld [vmem:[%s24990_s1 + $0xfc8] ss:$112 sps:$4 sm:$0xff]   ;;  %v16919_v25 = vld [vmem:[%s24990_s1 + $0x1184] ss:$112 sps:$4 sm:$0xff]  }
  0x1d   :  { %8613 = vmatprep.subr.bf16.mxu1 %v16843_v32  ;;  %v16922_v26 = vld [vmem:[%s24990_s1 + $0x10ac] ss:$112 sps:$4 sm:$0xff]   ;;  %v16917_v27 = vld [vmem:[%s24990_s1 + $0x1180] ss:$112 sps:$4 sm:$0xff]   ;;  %v16920_v28 = vld [vmem:[%s24990_s1 + $0x10a8] ss:$112 sps:$4 sm:$0xff]  }
  0x1e   :  { %v16925_v29 = vld [vmem:[%s24990_s1 + $0x1264] ss:$112 sps:$4 sm:$0xff]   ;;  %v16928_v30 = vld [vmem:[%s24990_s1 + $0x118c] ss:$112 sps:$4 sm:$0xff]   ;;  %v16923_v31 = vld [vmem:[%s24990_s1 + $0x1260] ss:$112 sps:$4 sm:$0xff]  }
  0x1f   :  { %8452 = vmatpush1.bf16.msra.mxu0 %v16844_v33  ;;  %v16926_v32 = vld [vmem:[%s24990_s1 + $0x1188] ss:$112 sps:$4 sm:$0xff]   ;;  %v16931_v33 = vld [vmem:[%s24990_s1 + $0x1344] ss:$112 sps:$4 sm:$0xff]   ;;  %v16947_v49 = vld [vmem:[%s24990_s1 + $0x15e0] ss:$112 sps:$4 sm:$0xff]  }
  0x20   :  { %8614 = vmatpush1.bf16.msra.mxu1 %v16841_v34  ;;  %8453 = vmatprep.subr.bf16.mxu0 %v16845_v35  ;;  %v16934_v34 = vld [vmem:[%s24990_s1 + $0x126c] ss:$112 sps:$4 sm:$0xff]  }
  0x21   :  { %8615 = vmatprep.subr.bf16.mxu1 %v16849_v36  ;;  %v42_v35 = vld [vmem:[%s24991_s0 + $0x18] sm:$0xff] }
  0x22   :  { %v19249_v36 = vpack.c.bf16 %v42_v35, %v42_v35  ;;  %v16982_v6 = vld [vmem:[%s24990_s1 + $0x196c] ss:$112 sps:$4 sm:$0xff]   ;;  %v17015_v35 = vld [vmem:[%s24990_s1 + $0x1f84] ss:$112 sps:$4 sm:$0xff]  }
  0x23   :  { %8454 = vmatpush1.bf16.msra.mxu0 %v16850_v38  ;;  %v16932_v38 = vld [vmem:[%s24990_s1 + $0x1268] ss:$112 sps:$4 sm:$0xff]  }
  0x24   :  { %8616 = vmatpush1.bf16.msra.mxu1 %v16847_v37  ;;  %8455 = vmatprep.subr.bf16.mxu0 %v16851_v39  ;;  %v16929_v37 = vld [vmem:[%s24990_s1 + $0x1340] ss:$112 sps:$4 sm:$0xff]   ;;  %v16937_v39 = vld [vmem:[%s24990_s1 + $0x1424] ss:$112 sps:$4 sm:$0xff]  }
  0x25   :  { %8617 = vmatprep.subr.bf16.mxu1 %v16855_v40  ;;  %v16940_v40 = vld [vmem:[%s24990_s1 + $0x134c] ss:$112 sps:$4 sm:$0xff]  }
  0x27   :  { %8456 = vmatpush1.bf16.msra.mxu0 %v16856_v41  ;;  %v16935_v41 = vld [vmem:[%s24990_s1 + $0x1420] ss:$112 sps:$4 sm:$0xff]  }
  0x28   :  { %8618 = vmatpush1.bf16.msra.mxu1 %v16853_v42  ;;  %8457 = vmatprep.subr.bf16.mxu0 %v16857_v43  ;;  %v16938_v42 = vld [vmem:[%s24990_s1 + $0x1348] ss:$112 sps:$4 sm:$0xff]   ;;  %v16943_v43 = vld [vmem:[%s24990_s1 + $0x1504] ss:$112 sps:$4 sm:$0xff]  }
  0x29   :  { %8619 = vmatprep.subr.bf16.mxu1 %v16861_v44  ;;  %v16946_v44 = vld [vmem:[%s24990_s1 + $0x142c] ss:$112 sps:$4 sm:$0xff]  }
  0x2b   :  { %8458 = vmatpush1.bf16.msra.mxu0 %v16862_v46  ;;  %v16944_v46 = vld [vmem:[%s24990_s1 + $0x1428] ss:$112 sps:$4 sm:$0xff]  }
  0x2c   :  { %8620 = vmatpush1.bf16.msra.mxu1 %v16859_v45  ;;  %8459 = vmatprep.subr.bf16.mxu0 %v16863_v47  ;;  %v16941_v45 = vld [vmem:[%s24990_s1 + $0x1500] ss:$112 sps:$4 sm:$0xff]   ;;  %v16949_v47 = vld [vmem:[%s24990_s1 + $0x15e4] ss:$112 sps:$4 sm:$0xff]  }
  0x2d   :  { %8621 = vmatprep.subr.bf16.mxu1 %v16867_v48  ;;  %v16952_v48 = vld [vmem:[%s24990_s1 + $0x150c] ss:$112 sps:$4 sm:$0xff]  }
  0x2f   :  { %8460 = vmatpush1.bf16.msra.mxu0 %v16868_v50  ;;  %v16950_v50 = vld [vmem:[%s24990_s1 + $0x1508] ss:$112 sps:$4 sm:$0xff]  }
  0x30   :  { %8622 = vmatpush1.bf16.msra.mxu1 %v16865_v52  ;;  %8461 = vmatprep.subr.bf16.mxu0 %v16869_v53  ;;  %v16955_v52 = vld [vmem:[%s24990_s1 + $0x16c4] ss:$112 sps:$4 sm:$0xff]   ;;  %v16958_v53 = vld [vmem:[%s24990_s1 + $0x15ec] ss:$112 sps:$4 sm:$0xff]  }
  0x31   :  { %8623 = vmatprep.subr.bf16.mxu1 %v16873_v54  ;;  %v16953_v54 = vld [vmem:[%s24990_s1 + $0x16c0] ss:$112 sps:$4 sm:$0xff]  }
  0x33   :  { %8462 = vmatpush1.bf16.msra.mxu0 %v16874_v56  ;;  %v16961_v56 = vld [vmem:[%s24990_s1 + $0x17a4] ss:$112 sps:$4 sm:$0xff]  }
  0x34   :  { %8624 = vmatpush1.bf16.msra.mxu1 %v16871_v55  ;;  %8463 = vmatprep.subr.bf16.mxu0 %v16875_v57  ;;  %v16956_v55 = vld [vmem:[%s24990_s1 + $0x15e8] ss:$112 sps:$4 sm:$0xff]   ;;  %v16964_v57 = vld [vmem:[%s24990_s1 + $0x16cc] ss:$112 sps:$4 sm:$0xff]  }
  0x35   :  { %8625 = vmatprep.subr.bf16.mxu1 %v16879_v58  ;;  %v16959_v58 = vld [vmem:[%s24990_s1 + $0x17a0] ss:$112 sps:$4 sm:$0xff]  }
  0x37   :  { %8464 = vmatpush1.bf16.msra.mxu0 %v16880_v60  ;;  %v16967_v60 = vld [vmem:[%s24990_s1 + $0x1884] ss:$112 sps:$4 sm:$0xff]  }
  0x38   :  { %8626 = vmatpush1.bf16.msra.mxu1 %v16877_v59  ;;  %8465 = vmatprep.subr.bf16.mxu0 %v16881_v61  ;;  %v16962_v59 = vld [vmem:[%s24990_s1 + $0x16c8] ss:$112 sps:$4 sm:$0xff]   ;;  %v16970_v61 = vld [vmem:[%s24990_s1 + $0x17ac] ss:$112 sps:$4 sm:$0xff]  }
  0x39   :  { %8627 = vmatprep.subr.bf16.mxu1 %v16885_v62  ;;  %v16965_v62 = vld [vmem:[%s24990_s1 + $0x1880] ss:$112 sps:$4 sm:$0xff]  }
  0x3b   :  { %8466 = vmatpush1.bf16.msra.mxu0 %v16886_v0  ;;  %v16973_v0 = vld [vmem:[%s24990_s1 + $0x1964] ss:$112 sps:$4 sm:$0xff]  }
  0x3c   :  { %8628 = vmatpush1.bf16.msra.mxu1 %v16883_v63  ;;  %8467 = vmatprep.subr.bf16.mxu0 %v16887_v2  ;;  %v16968_v63 = vld [vmem:[%s24990_s1 + $0x17a8] ss:$112 sps:$4 sm:$0xff]   ;;  %v16976_v2 = vld [vmem:[%s24990_s1 + $0x188c] ss:$112 sps:$4 sm:$0xff]  }
  0x3d   :  { %8629 = vmatprep.subr.bf16.mxu1 %v16891_v3  ;;  %v16971_v3 = vld [vmem:[%s24990_s1 + $0x1960] ss:$112 sps:$4 sm:$0xff]  }
  0x3f   :  { %8468 = vmatpush1.bf16.msra.mxu0 %v16892_v5  ;;  %v16979_v5 = vld [vmem:[%s24990_s1 + $0x1a44] ss:$112 sps:$4 sm:$0xff]  }
  0x40   :  { %8630 = vmatpush1.bf16.msra.mxu1 %v16889_v4  ;;  %8478 = vmatprep.subr.bf16.mxu0 %v16895_v7  ;;  %v16974_v4 = vld [vmem:[%s24990_s1 + $0x1888] ss:$112 sps:$4 sm:$0xff]   ;;  %v16977_v7 = vld [vmem:[%s24990_s1 + $0x1a40] ss:$112 sps:$4 sm:$0xff]  }
  0x41   :  { %8631 = vmatprep.subr.bf16.mxu1 %v16898_v8  ;;  %v16980_v8 = vld [vmem:[%s24990_s1 + $0x1968] ss:$112 sps:$4 sm:$0xff]  }
  0x42   :  { %8470 = vmatmul.mubr.bf16.vlgmr.msra.gmra.mrb[0].mxu0 %v19170_v9 }
  0x43   :  { %8479 = vmatpush1.bf16.msra.mxu0 %v16893_v11  ;;  %8510 = vmatprep.mubr.bf16.mxu0 %v19249_v36  ;;  %v16985_v11 = vld [vmem:[%s24990_s1 + $0x1b24] ss:$112 sps:$4 sm:$0xff]  }
  0x44   :  { %8632 = vmatpush1.bf16.msra.mxu1 %v16896_v12  ;;  %8480 = vmatprep.subr.bf16.mxu0 %v16901_v13  ;;  %v16988_v12 = vld [vmem:[%s24990_s1 + $0x1a4c] ss:$112 sps:$4 sm:$0xff]   ;;  %v16983_v13 = vld [vmem:[%s24990_s1 + $0x1b20] ss:$112 sps:$4 sm:$0xff]  }
  0x45   :  { %8642 = vmatprep.subr.bf16.mxu1 %v16904_v14  ;;  %v41_v14 = vld [vmem:[%s24991_s0 + $0x10] sm:$0xff] }
  0x47   :  { %8481 = vmatpush1.bf16.msra.mxu0 %v16899_v15  ;;  %8634 = vmatmul.mubr.bf16.vlgmr.msra.gmra.mrb[4].mxu1 %v19170_v9  ;;  %v16986_v15 = vld [vmem:[%s24990_s1 + $0x1a48] ss:$112 sps:$4 sm:$0xff]  }
  0x48   :  { %8643 = vmatpush1.bf16.msra.mxu1 %v16902_v16  ;;  %8482 = vmatprep.subr.bf16.mxu0 %v16907_v17  ;;  %v16991_v16 = vld [vmem:[%s24990_s1 + $0x1c04] ss:$112 sps:$4 sm:$0xff]   ;;  %v16994_v17 = vld [vmem:[%s24990_s1 + $0x1b2c] ss:$112 sps:$4 sm:$0xff]  }
  0x49   :  { %8644 = vmatprep.subr.bf16.mxu1 %v16910_v18  ;;  %8674 = vmatprep.mubr.bf16.mxu1 %v19249_v36  ;;  %v19376_v18 = vpack.c.bf16 %v41_v14, %v41_v14  ;;  %v17067_v14 = vld [vmem:[%s24990_s1 + $0x2760] ss:$112 sps:$4 sm:$0xff]  }
  0x4b   :  { %8483 = vmatpush1.bf16.msra.mxu0 %v16905_v19  ;;  %v16989_v19 = vld [vmem:[%s24990_s1 + $0x1c00] ss:$112 sps:$4 sm:$0xff]  }
  0x4c   :  { %8645 = vmatpush1.bf16.msra.mxu1 %v16908_v20  ;;  %8484 = vmatprep.subr.bf16.mxu0 %v16913_v21  ;;  %v16992_v20 = vld [vmem:[%s24990_s1 + $0x1b28] ss:$112 sps:$4 sm:$0xff]   ;;  %v16997_v21 = vld [vmem:[%s24990_s1 + $0x1ce4] ss:$112 sps:$4 sm:$0xff]  }
  0x4d   :  { %8646 = vmatprep.subr.bf16.mxu1 %v16916_v22  ;;  %v44_v22 = vld [vmem:[%s24991_s0 + $0x28] sm:$0xff] }
  0x4f   :  { %8485 = vmatpush1.bf16.msra.mxu0 %v16911_v23  ;;  %v17000_v23 = vld [vmem:[%s24990_s1 + $0x1c0c] ss:$112 sps:$4 sm:$0xff]  }
  0x50   :  { %8647 = vmatpush1.bf16.msra.mxu1 %v16914_v24  ;;  %8486 = vmatprep.subr.bf16.mxu0 %v16919_v25  ;;  %v19393_v24 = vpack.c.bf16 %v44_v22, %v44_v22  ;;  %v16995_v25 = vld [vmem:[%s24990_s1 + $0x1ce0] ss:$112 sps:$4 sm:$0xff]   ;;  %v17084_v22 = vld [vmem:[%s24990_s1 + $0x284c] ss:$112 sps:$4 sm:$0xff]  }
  0x51   :  { %8648 = vmatprep.subr.bf16.mxu1 %v16922_v26  ;;  %v16998_v26 = vld [vmem:[%s24990_s1 + $0x1c08] ss:$112 sps:$4 sm:$0xff]  }
  0x53   :  { %8487 = vmatpush1.bf16.msra.mxu0 %v16917_v27  ;;  %v17003_v27 = vld [vmem:[%s24990_s1 + $0x1dc4] ss:$112 sps:$4 sm:$0xff]  }
  0x54   :  { %8649 = vmatpush1.bf16.msra.mxu1 %v16920_v28  ;;  %8488 = vmatprep.subr.bf16.mxu0 %v16925_v29  ;;  %v17006_v28 = vld [vmem:[%s24990_s1 + $0x1cec] ss:$112 sps:$4 sm:$0xff]   ;;  %v17001_v29 = vld [vmem:[%s24990_s1 + $0x1dc0] ss:$112 sps:$4 sm:$0xff]  }
  0x55   :  { %8650 = vmatprep.subr.bf16.mxu1 %v16928_v30  ;;  %v17004_v30 = vld [vmem:[%s24990_s1 + $0x1ce8] ss:$112 sps:$4 sm:$0xff]  }
  0x57   :  { %8489 = vmatpush1.bf16.msra.mxu0 %v16923_v31  ;;  %v17009_v31 = vld [vmem:[%s24990_s1 + $0x1ea4] ss:$112 sps:$4 sm:$0xff]  }
  0x58   :  { %8651 = vmatpush1.bf16.msra.mxu1 %v16926_v32  ;;  %8490 = vmatprep.subr.bf16.mxu0 %v16931_v33  ;;  %v17012_v32 = vld [vmem:[%s24990_s1 + $0x1dcc] ss:$112 sps:$4 sm:$0xff]   ;;  %v17007_v33 = vld [vmem:[%s24990_s1 + $0x1ea0] ss:$112 sps:$4 sm:$0xff]  }
  0x59   :  { %8652 = vmatprep.subr.bf16.mxu1 %v16934_v34  ;;  %v17010_v34 = vld [vmem:[%s24990_s1 + $0x1dc8] ss:$112 sps:$4 sm:$0xff]  }
  0x5b   :  { %8491 = vmatpush1.bf16.msra.mxu0 %v16929_v37  ;;  %v17018_v37 = vld [vmem:[%s24990_s1 + $0x1eac] ss:$112 sps:$4 sm:$0xff]  }
  0x5c   :  { %8653 = vmatpush1.bf16.msra.mxu1 %v16932_v38  ;;  %8492 = vmatprep.subr.bf16.mxu0 %v16937_v39  ;;  %v17013_v38 = vld [vmem:[%s24990_s1 + $0x1f80] ss:$112 sps:$4 sm:$0xff]   ;;  %v17016_v39 = vld [vmem:[%s24990_s1 + $0x1ea8] ss:$112 sps:$4 sm:$0xff]  }
  0x5d   :  { %8654 = vmatprep.subr.bf16.mxu1 %v16940_v40  ;;  %v17021_v40 = vld [vmem:[%s24990_s1 + $0x2064] ss:$112 sps:$4 sm:$0xff]  }
  0x5f   :  { %8493 = vmatpush1.bf16.msra.mxu0 %v16935_v41  ;;  %v17024_v41 = vld [vmem:[%s24990_s1 + $0x1f8c] ss:$112 sps:$4 sm:$0xff]  }
  0x60   :  { %8655 = vmatpush1.bf16.msra.mxu1 %v16938_v42  ;;  %8494 = vmatprep.subr.bf16.mxu0 %v16943_v43  ;;  %v17019_v42 = vld [vmem:[%s24990_s1 + $0x2060] ss:$112 sps:$4 sm:$0xff]   ;;  %v17022_v43 = vld [vmem:[%s24990_s1 + $0x1f88] ss:$112 sps:$4 sm:$0xff]  }
  0x61   :  { %8656 = vmatprep.subr.bf16.mxu1 %v16946_v44  ;;  %v17027_v44 = vld [vmem:[%s24990_s1 + $0x2144] ss:$112 sps:$4 sm:$0xff]  }
  0x63   :  { %8495 = vmatpush1.bf16.msra.mxu0 %v16941_v45  ;;  %v17030_v45 = vld [vmem:[%s24990_s1 + $0x206c] ss:$112 sps:$4 sm:$0xff]  }
  0x64   :  { %8657 = vmatpush1.bf16.msra.mxu1 %v16944_v46  ;;  %8496 = vmatprep.subr.bf16.mxu0 %v16949_v47  ;;  %v17025_v46 = vld [vmem:[%s24990_s1 + $0x2140] ss:$112 sps:$4 sm:$0xff]   ;;  %v17028_v47 = vld [vmem:[%s24990_s1 + $0x2068] ss:$112 sps:$4 sm:$0xff]  }
  0x65   :  { %8658 = vmatprep.subr.bf16.mxu1 %v16952_v48  ;;  %v17033_v48 = vld [vmem:[%s24990_s1 + $0x2224] ss:$112 sps:$4 sm:$0xff]  }
  0x67   :  { %8497 = vmatpush1.bf16.msra.mxu0 %v16947_v49  ;;  %v17036_v49 = vld [vmem:[%s24990_s1 + $0x214c] ss:$112 sps:$4 sm:$0xff]  }
  0x68   :  { %8659 = vmatpush1.bf16.msra.mxu1 %v16950_v50  ;;  %8498 = vmatprep.subr.bf16.mxu0 %v16955_v52  ;;  %v17031_v50 = vld [vmem:[%s24990_s1 + $0x2220] ss:$112 sps:$4 sm:$0xff]   ;;  %v17034_v52 = vld [vmem:[%s24990_s1 + $0x2148] ss:$112 sps:$4 sm:$0xff]  }
  0x69   :  { %8660 = vmatprep.subr.bf16.mxu1 %v16958_v53  ;;  %v17039_v53 = vld [vmem:[%s24990_s1 + $0x2304] ss:$112 sps:$4 sm:$0xff]  }
  0x6b   :  { %8499 = vmatpush1.bf16.msra.mxu0 %v16953_v54  ;;  %v17042_v54 = vld [vmem:[%s24990_s1 + $0x222c] ss:$112 sps:$4 sm:$0xff]  }
  0x6c   :  { %8661 = vmatpush1.bf16.msra.mxu1 %v16956_v55  ;;  %8500 = vmatprep.subr.bf16.mxu0 %v16961_v56  ;;  %v17037_v55 = vld [vmem:[%s24990_s1 + $0x2300] ss:$112 sps:$4 sm:$0xff]   ;;  %v17040_v56 = vld [vmem:[%s24990_s1 + $0x2228] ss:$112 sps:$4 sm:$0xff]  }
  0x6d   :  { %8662 = vmatprep.subr.bf16.mxu1 %v16964_v57  ;;  %v17045_v57 = vld [vmem:[%s24990_s1 + $0x23e4] ss:$112 sps:$4 sm:$0xff]  }
  0x6f   :  { %8501 = vmatpush1.bf16.msra.mxu0 %v16959_v58  ;;  %v17048_v58 = vld [vmem:[%s24990_s1 + $0x230c] ss:$112 sps:$4 sm:$0xff]  }
  0x70   :  { %8663 = vmatpush1.bf16.msra.mxu1 %v16962_v59  ;;  %8502 = vmatprep.subr.bf16.mxu0 %v16967_v60  ;;  %v17043_v59 = vld [vmem:[%s24990_s1 + $0x23e0] ss:$112 sps:$4 sm:$0xff]   ;;  %v17046_v60 = vld [vmem:[%s24990_s1 + $0x2308] ss:$112 sps:$4 sm:$0xff]  }
  0x71   :  { %8664 = vmatprep.subr.bf16.mxu1 %v16970_v61  ;;  %v17051_v61 = vld [vmem:[%s24990_s1 + $0x24c4] ss:$112 sps:$4 sm:$0xff]  }
  0x73   :  { %8503 = vmatpush1.bf16.msra.mxu0 %v16965_v62  ;;  %v17054_v62 = vld [vmem:[%s24990_s1 + $0x23ec] ss:$112 sps:$4 sm:$0xff]  }
  0x74   :  { %8665 = vmatpush1.bf16.msra.mxu1 %v16968_v63  ;;  %8504 = vmatprep.subr.bf16.mxu0 %v16973_v0  ;;  %v17049_v63 = vld [vmem:[%s24990_s1 + $0x24c0] ss:$112 sps:$4 sm:$0xff]   ;;  %v17052_v0 = vld [vmem:[%s24990_s1 + $0x23e8] ss:$112 sps:$4 sm:$0xff]  }
  0x75   :  { %8666 = vmatprep.subr.bf16.mxu1 %v16976_v2  ;;  %v17057_v2 = vld [vmem:[%s24990_s1 + $0x25a4] ss:$112 sps:$4 sm:$0xff]  }
  0x77   :  { %8505 = vmatpush1.bf16.msra.mxu0 %v16971_v3  ;;  %v17060_v3 = vld [vmem:[%s24990_s1 + $0x24cc] ss:$112 sps:$4 sm:$0xff]  }
  0x78   :  { %8667 = vmatpush1.bf16.msra.mxu1 %v16974_v4  ;;  %8506 = vmatprep.subr.bf16.mxu0 %v16979_v5  ;;  %v17055_v4 = vld [vmem:[%s24990_s1 + $0x25a0] ss:$112 sps:$4 sm:$0xff]   ;;  %v17058_v5 = vld [vmem:[%s24990_s1 + $0x24c8] ss:$112 sps:$4 sm:$0xff]  }
  0x79   :  { %8668 = vmatprep.subr.bf16.mxu1 %v16982_v6  ;;  %v17063_v6 = vld [vmem:[%s24990_s1 + $0x2684] ss:$112 sps:$4 sm:$0xff]  }
  0x7b   :  { %8507 = vmatpush1.bf16.msra.mxu0 %v16977_v7  ;;  %v17066_v7 = vld [vmem:[%s24990_s1 + $0x25ac] ss:$112 sps:$4 sm:$0xff]  }
  0x7c   :  { %8669 = vmatpush1.bf16.msra.mxu1 %v16980_v8  ;;  %8508 = vmatprep.subr.bf16.mxu0 %v16985_v11  ;;  %v17061_v8 = vld [vmem:[%s24990_s1 + $0x2680] ss:$112 sps:$4 sm:$0xff]   ;;  %v17064_v11 = vld [vmem:[%s24990_s1 + $0x25a8] ss:$112 sps:$4 sm:$0xff]  }
  0x7d   :  { %8670 = vmatprep.subr.bf16.mxu1 %v16988_v12  ;;  %v17069_v12 = vld [vmem:[%s24990_s1 + $0x2764] ss:$112 sps:$4 sm:$0xff]  }
  0x7f   :  { %8509 = vmatpush1.bf16.msra.mxu0 %v16983_v13  ;;  %v17072_v13 = vld [vmem:[%s24990_s1 + $0x268c] ss:$112 sps:$4 sm:$0xff]  }
  0x80   :  { %8671 = vmatpush1.bf16.msra.mxu1 %v16986_v15  ;;  %8519 = vmatprep.subr.bf16.mxu0 %v16991_v16  ;;  %v17070_v15 = vld [vmem:[%s24990_s1 + $0x2688] ss:$112 sps:$4 sm:$0xff]   ;;  %v17075_v16 = vld [vmem:[%s24990_s1 + $0x2844] ss:$112 sps:$4 sm:$0xff]  }
  0x81   :  { %8672 = vmatprep.subr.bf16.mxu1 %v16994_v17  ;;  %v17078_v17 = vld [vmem:[%s24990_s1 + $0x276c] ss:$112 sps:$4 sm:$0xff]  }
  0x82   :  { %8511 = vmatmul.mubr.bf16.vlgmr.msra.gmra.mrb[0].mxu0 %v19376_v18 }
  0x83   :  { %8520 = vmatpush1.bf16.msra.mxu0 %v16989_v19  ;;  %8551 = vmatprep.mubr.bf16.mxu0 %v19393_v24  ;;  %v17073_v19 = vld [vmem:[%s24990_s1 + $0x2840] ss:$112 sps:$4 sm:$0xff]  }
  0x84   :  { %8673 = vmatpush1.bf16.msra.mxu1 %v16992_v20  ;;  %8521 = vmatprep.subr.bf16.mxu0 %v16997_v21  ;;  %v17076_v20 = vld [vmem:[%s24990_s1 + $0x2768] ss:$112 sps:$4 sm:$0xff]   ;;  %v17081_v21 = vld [vmem:[%s24990_s1 + $0x2924] ss:$112 sps:$4 sm:$0xff]  }
  0x85   :  { %8683 = vmatprep.subr.bf16.mxu1 %v17000_v23  ;;  %v17079_v23 = vld [vmem:[%s24990_s1 + $0x2920] ss:$112 sps:$4 sm:$0xff]  }
  0x87   :  { %8522 = vmatpush1.bf16.msra.mxu0 %v16995_v25  ;;  %8675 = vmatmul.mubr.bf16.vlgmr.msra.gmra.mrb[4].mxu1 %v19376_v18  ;;  %v17082_v25 = vld [vmem:[%s24990_s1 + $0x2848] ss:$112 sps:$4 sm:$0xff]  }
  0x88   :  { %8684 = vmatpush1.bf16.msra.mxu1 %v16998_v26  ;;  %8523 = vmatprep.subr.bf16.mxu0 %v17003_v27  ;;  %v43_v26 = vld [vmem:[%s24991_s0 + $0x20] sm:$0xff] }
  0x89   :  { %8685 = vmatprep.subr.bf16.mxu1 %v17006_v28  ;;  %8715 = vmatprep.mubr.bf16.mxu1 %v19393_v24  ;;  %v17090_v27 = vld [vmem:[%s24990_s1 + $0x14] ss:$112 sps:$4 sm:$0xff]   ;;  %v17087_v28 = vld [vmem:[%s24990_s1 + $0x292c] ss:$112 sps:$4 sm:$0xff]  }
  0x8b   :  { %8524 = vmatpush1.bf16.msra.mxu0 %v17001_v29  ;;  %v19582_v29 = vpack.c.bf16 %v43_v26, %v43_v26  ;;  %v17162_v26 = vld [vmem:[%s24990_s1 + $0x71c] ss:$112 sps:$4 sm:$0xff]  }
  0x8c   :  { %8686 = vmatpush1.bf16.msra.mxu1 %v17004_v30  ;;  %8525 = vmatprep.subr.bf16.mxu0 %v17009_v31  ;;  %v17085_v30 = vld [vmem:[%s24990_s1 + $0x2928] ss:$112 sps:$4 sm:$0xff]   ;;  %v17088_v31 = vld [vmem:[%s24990_s1 + $0x10] ss:$112 sps:$4 sm:$0xff]  }
  0x8d   :  { %8687 = vmatprep.subr.bf16.mxu1 %v17012_v32  ;;  %v17093_v32 = vld [vmem:[%s24990_s1 + $0xf4] ss:$112 sps:$4 sm:$0xff]  }
  0x8f   :  { %8526 = vmatpush1.bf16.msra.mxu0 %v17007_v33  ;;  %v17099_v33 = vld [vmem:[%s24990_s1 + $0x2a0c] ss:$112 sps:$4 sm:$0xff]  }
  0x90   :  { %8688 = vmatpush1.bf16.msra.mxu1 %v17010_v34  ;;  %8527 = vmatprep.subr.bf16.mxu0 %v17015_v35  ;;  %v17091_v34 = vld [vmem:[%s24990_s1 + $0xf0] ss:$112 sps:$4 sm:$0xff]   ;;  %v17096_v35 = vld [vmem:[%s24990_s1 + $0x1d4] ss:$112 sps:$4 sm:$0xff]  }
  0x91   :  { %8689 = vmatprep.subr.bf16.mxu1 %v17018_v37  ;;  %v17097_v37 = vld [vmem:[%s24990_s1 + $0x2a08] ss:$112 sps:$4 sm:$0xff]  }
  0x93   :  { %8528 = vmatpush1.bf16.msra.mxu0 %v17013_v38  ;;  %v17108_v38 = vld [vmem:[%s24990_s1 + $0x2a14] ss:$112 sps:$4 sm:$0xff]  }
  0x94   :  { %8690 = vmatpush1.bf16.msra.mxu1 %v17016_v39  ;;  %8529 = vmatprep.subr.bf16.mxu0 %v17021_v40  ;;  %v17094_v39 = vld [vmem:[%s24990_s1 + $0x1d0] ss:$112 sps:$4 sm:$0xff]   ;;  %v17102_v40 = vld [vmem:[%s24990_s1 + $0x2b4] ss:$112 sps:$4 sm:$0xff]  }
  0x95   :  { %8691 = vmatprep.subr.bf16.mxu1 %v17024_v41  ;;  %v17100_v41 = vld [vmem:[%s24990_s1 + $0x2b0] ss:$112 sps:$4 sm:$0xff]  }
  0x97   :  { %8530 = vmatpush1.bf16.msra.mxu0 %v17019_v42  ;;  %v17105_v42 = vld [vmem:[%s24990_s1 + $0x394] ss:$112 sps:$4 sm:$0xff]  }
  0x98   :  { %8692 = vmatpush1.bf16.msra.mxu1 %v17022_v43  ;;  %8531 = vmatprep.subr.bf16.mxu0 %v17027_v44  ;;  %v17103_v43 = vld [vmem:[%s24990_s1 + $0x390] ss:$112 sps:$4 sm:$0xff]  }
  0x99   :  { %8693 = vmatprep.subr.bf16.mxu1 %v17030_v45  ;;  %v17106_v44 = vld [vmem:[%s24990_s1 + $0x2a10] ss:$112 sps:$4 sm:$0xff]   ;;  %v17111_v45 = vld [vmem:[%s24990_s1 + $0x474] ss:$112 sps:$4 sm:$0xff]  }
  0x9b   :  { %8532 = vmatpush1.bf16.msra.mxu0 %v17025_v46  ;;  %v17114_v46 = vld [vmem:[%s24990_s1 + $0x1c] ss:$112 sps:$4 sm:$0xff]  }
  0x9c   :  { %8694 = vmatpush1.bf16.msra.mxu1 %v17028_v47  ;;  %8533 = vmatprep.subr.bf16.mxu0 %v17033_v48  ;;  %v17109_v47 = vld [vmem:[%s24990_s1 + $0x470] ss:$112 sps:$4 sm:$0xff]   ;;  %v17117_v48 = vld [vmem:[%s24990_s1 + $0x554] ss:$112 sps:$4 sm:$0xff]  }
  0x9d   :  { %8695 = vmatprep.subr.bf16.mxu1 %v17036_v49  ;;  %v17112_v49 = vld [vmem:[%s24990_s1 + $0x18] ss:$112 sps:$4 sm:$0xff]  }
  0x9f   :  { %8534 = vmatpush1.bf16.msra.mxu0 %v17031_v50  ;;  %v17115_v50 = vld [vmem:[%s24990_s1 + $0x550] ss:$112 sps:$4 sm:$0xff]  }
  0xa0   :  { %8696 = vmatpush1.bf16.msra.mxu1 %v17034_v52  ;;  %8535 = vmatprep.subr.bf16.mxu0 %v17039_v53  ;;  %v17123_v52 = vld [vmem:[%s24990_s1 + $0x634] ss:$112 sps:$4 sm:$0xff]   ;;  %v17120_v53 = vld [vmem:[%s24990_s1 + $0xfc] ss:$112 sps:$4 sm:$0xff]  }
  0xa1   :  { %8697 = vmatprep.subr.bf16.mxu1 %v17042_v54 }
  0xa3   :  { %8536 = vmatpush1.bf16.msra.mxu0 %v17037_v55  ;;  %v17118_v55 = vld [vmem:[%s24990_s1 + $0xf8] ss:$112 sps:$4 sm:$0xff]  }
  0xa4   :  { %8698 = vmatpush1.bf16.msra.mxu1 %v17040_v56  ;;  %8537 = vmatprep.subr.bf16.mxu0 %v17045_v57  ;;  %v17121_v56 = vld [vmem:[%s24990_s1 + $0x630] ss:$112 sps:$4 sm:$0xff]  }
  0xa5   :  { %8699 = vmatprep.subr.bf16.mxu1 %v17048_v58  ;;  %v17129_v58 = vld [vmem:[%s24990_s1 + $0x714] ss:$112 sps:$4 sm:$0xff]  }
  0xa7   :  { %8538 = vmatpush1.bf16.msra.mxu0 %v17043_v59 }
  0xa8   :  { %8700 = vmatpush1.bf16.msra.mxu1 %v17046_v60  ;;  %8539 = vmatprep.subr.bf16.mxu0 %v17051_v61  ;;  %v17126_v60 = vld [vmem:[%s24990_s1 + $0x1dc] ss:$112 sps:$4 sm:$0xff]  }
  0xa9   :  { %8701 = vmatprep.subr.bf16.mxu1 %v17054_v62  ;;  %v17124_v62 = vld [vmem:[%s24990_s1 + $0x1d8] ss:$112 sps:$4 sm:$0xff]  }
  0xab   :  { %8540 = vmatpush1.bf16.msra.mxu0 %v17049_v63  ;;  %v17127_v63 = vld [vmem:[%s24990_s1 + $0x710] ss:$112 sps:$4 sm:$0xff]  }
  0xac   :  { %8702 = vmatpush1.bf16.msra.mxu1 %v17052_v0  ;;  %8541 = vmatprep.subr.bf16.mxu0 %v17057_v2  ;;  %v17135_v0 = vld [vmem:[%s24990_s1 + $0x7f4] ss:$112 sps:$4 sm:$0xff]   ;;  %v17132_v2 = vld [vmem:[%s24990_s1 + $0x2bc] ss:$112 sps:$4 sm:$0xff]  }
  0xad   :  { %8703 = vmatprep.subr.bf16.mxu1 %v17060_v3  ;;  %v17130_v3 = vld [vmem:[%s24990_s1 + $0x2b8] ss:$112 sps:$4 sm:$0xff]  }
  0xaf   :  { %8542 = vmatpush1.bf16.msra.mxu0 %v17055_v4  ;;  %v17133_v4 = vld [vmem:[%s24990_s1 + $0x7f0] ss:$112 sps:$4 sm:$0xff]  }
  0xb0   :  { %8704 = vmatpush1.bf16.msra.mxu1 %v17058_v5  ;;  %8543 = vmatprep.subr.bf16.mxu0 %v17063_v6  ;;  %v17141_v5 = vld [vmem:[%s24990_s1 + $0x8d4] ss:$112 sps:$4 sm:$0xff]   ;;  %v17138_v6 = vld [vmem:[%s24990_s1 + $0x39c] ss:$112 sps:$4 sm:$0xff]  }
  0xb1   :  { %8705 = vmatprep.subr.bf16.mxu1 %v17066_v7  ;;  %v17136_v7 = vld [vmem:[%s24990_s1 + $0x398] ss:$112 sps:$4 sm:$0xff]  }
  0xb3   :  { %8544 = vmatpush1.bf16.msra.mxu0 %v17061_v8  ;;  %v17139_v8 = vld [vmem:[%s24990_s1 + $0x8d0] ss:$112 sps:$4 sm:$0xff]  }
  0xb4   :  { %8706 = vmatpush1.bf16.msra.mxu1 %v17064_v11  ;;  %8545 = vmatprep.subr.bf16.mxu0 %v17069_v12  ;;  %v17147_v11 = vld [vmem:[%s24990_s1 + $0x9b4] ss:$112 sps:$4 sm:$0xff]   ;;  %v17144_v12 = vld [vmem:[%s24990_s1 + $0x47c] ss:$112 sps:$4 sm:$0xff]  }
  0xb5   :  { %8707 = vmatprep.subr.bf16.mxu1 %v17072_v13  ;;  %v17142_v13 = vld [vmem:[%s24990_s1 + $0x478] ss:$112 sps:$4 sm:$0xff]  }
  0xb7   :  { %8546 = vmatpush1.bf16.msra.mxu0 %v17067_v14  ;;  %v17145_v14 = vld [vmem:[%s24990_s1 + $0x9b0] ss:$112 sps:$4 sm:$0xff]  }
  0xb8   :  { %8708 = vmatpush1.bf16.msra.mxu1 %v17070_v15  ;;  %8547 = vmatprep.subr.bf16.mxu0 %v17075_v16  ;;  %v17153_v15 = vld [vmem:[%s24990_s1 + $0xa94] ss:$112 sps:$4 sm:$0xff]   ;;  %v17150_v16 = vld [vmem:[%s24990_s1 + $0x55c] ss:$112 sps:$4 sm:$0xff]  }
  0xb9   :  { %8709 = vmatprep.subr.bf16.mxu1 %v17078_v17  ;;  %v17148_v17 = vld [vmem:[%s24990_s1 + $0x558] ss:$112 sps:$4 sm:$0xff]  }
  0xbb   :  { %8548 = vmatpush1.bf16.msra.mxu0 %v17073_v19  ;;  %v17151_v19 = vld [vmem:[%s24990_s1 + $0xa90] ss:$112 sps:$4 sm:$0xff]  }
  0xbc   :  { %8710 = vmatpush1.bf16.msra.mxu1 %v17076_v20  ;;  %8549 = vmatprep.subr.bf16.mxu0 %v17081_v21  ;;  %v17159_v20 = vld [vmem:[%s24990_s1 + $0xb74] ss:$112 sps:$4 sm:$0xff]   ;;  %v17156_v21 = vld [vmem:[%s24990_s1 + $0x63c] ss:$112 sps:$4 sm:$0xff]  }
  0xbd   :  { %8711 = vmatprep.subr.bf16.mxu1 %v17084_v22  ;;  %v17154_v22 = vld [vmem:[%s24990_s1 + $0x638] ss:$112 sps:$4 sm:$0xff]  }
  0xbf   :  { %8550 = vmatpush1.bf16.msra.mxu0 %v17079_v23  ;;  %v17157_v23 = vld [vmem:[%s24990_s1 + $0xb70] ss:$112 sps:$4 sm:$0xff]  }
  0xc0   :  { %8712 = vmatpush1.bf16.msra.mxu1 %v17082_v25  ;;  %8765 = vmatprep.subr.bf16.mxu0 %v17090_v27  ;;  %v17165_v25 = vld [vmem:[%s24990_s1 + $0xc54] ss:$112 sps:$4 sm:$0xff]   ;;  %v17160_v27 = vld [vmem:[%s24990_s1 + $0x718] ss:$112 sps:$4 sm:$0xff]  }
  0xc1   :  { %8713 = vmatprep.subr.bf16.mxu1 %v17087_v28  ;;  %v17163_v28 = vld [vmem:[%s24990_s1 + $0xc50] ss:$112 sps:$4 sm:$0xff]  }
  0xc2   :  { %8552 = vmatmul.mubr.bf16.vlgmr.msra.gmra.mrb[0].mxu0 %v19582_v29 }
  0xc3   :  { %8766 = vmatpush1.bf16.msra.mxu0 %v17088_v31  ;;  %8797 = vmatprep.mubr.bf16.mxu0 %v19106_v51  ;;  %v17168_v31 = vld [vmem:[%s24990_s1 + $0x7fc] ss:$112 sps:$4 sm:$0xff]  }
  0xc4   :  { %8714 = vmatpush1.bf16.msra.mxu1 %v17085_v30  ;;  %8767 = vmatprep.subr.bf16.mxu0 %v17093_v32  ;;  %v17171_v30 = vld [vmem:[%s24990_s1 + $0xd34] ss:$112 sps:$4 sm:$0xff]   ;;  %v17169_v32 = vld [vmem:[%s24990_s1 + $0xd30] ss:$112 sps:$4 sm:$0xff]  }
  0xc5   :  { %8724 = vmatprep.subr.bf16.mxu1 %v17099_v33  ;;  %v17166_v33 = vld [vmem:[%s24990_s1 + $0x7f8] ss:$112 sps:$4 sm:$0xff]  }
  0xc7   :  { %8716 = vmatmul.mubr.bf16.vlgmr.msra.gmra.mrb[4].mxu1 %v19582_v29  ;;  %8768 = vmatpush1.bf16.msra.mxu0 %v17091_v34  ;;  %v17177_v34 = vld [vmem:[%s24990_s1 + $0xe14] ss:$112 sps:$4 sm:$0xff]  }
  0xc8   :  { %8769 = vmatprep.subr.bf16.mxu0 %v17096_v35  ;;  %8725 = vmatpush1.bf16.msra.mxu1 %v17097_v37  ;;  %v17174_v35 = vld [vmem:[%s24990_s1 + $0x8dc] ss:$112 sps:$4 sm:$0xff]   ;;  %v17175_v37 = vld [vmem:[%s24990_s1 + $0xe10] ss:$112 sps:$4 sm:$0xff]  }
  0xc9   :  { %8756 = vmatprep.mubr.bf16.mxu1 %v18891_v1  ;;  %8888 = vmatprep.subr.bf16.mxu1 %v17108_v38  ;;  %v17172_v38 = vld [vmem:[%s24990_s1 + $0x8d8] ss:$112 sps:$4 sm:$0xff]  }
  0xcb   :  { %8770 = vmatpush1.bf16.msra.mxu0 %v17094_v39  ;;  %v17180_v39 = vld [vmem:[%s24990_s1 + $0x9bc] ss:$112 sps:$4 sm:$0xff]  }
  0xcc   :  { %8771 = vmatprep.subr.bf16.mxu0 %v17102_v40  ;;  %v17183_v40 = vld [vmem:[%s24990_s1 + $0xef4] ss:$112 sps:$4 sm:$0xff]  }
  0xcf   :  { %8772 = vmatpush1.bf16.msra.mxu0 %v17100_v41  ;;  %v17178_v41 = vld [vmem:[%s24990_s1 + $0x9b8] ss:$112 sps:$4 sm:$0xff]  }
  0xd0   :  { %8773 = vmatprep.subr.bf16.mxu0 %v17105_v42  ;;  %v17181_v42 = vld [vmem:[%s24990_s1 + $0xef0] ss:$112 sps:$4 sm:$0xff]  }
  0xd3   :  { %15970 = vmatmul.mubr.msk.bf16.vlgmr.msra.gmra.mrb[4].mxu1 %vm8433_vm0, %v18982_v10  ;;  %8774 = vmatpush1.bf16.msra.mxu0 %v17103_v43  ;;  %v17186_v43 = vld [vmem:[%s24990_s1 + $0xa9c] ss:$112 sps:$4 sm:$0xff]  }
  0xd4   :  { %8775 = vmatprep.subr.bf16.mxu0 %v17111_v45  ;;  %8889 = vmatpush1.bf16.msra.mxu1 %v17106_v44  ;;  %v17189_v44 = vld [vmem:[%s24990_s1 + $0xfd4] ss:$112 sps:$4 sm:$0xff]   ;;  %v17184_v45 = vld [vmem:[%s24990_s1 + $0xa98] ss:$112 sps:$4 sm:$0xff]  }
  0xd5   :  { %8920 = vmatprep.mubr.bf16.mxu1 %v18891_v1  ;;  %8929 = vmatprep.subr.bf16.mxu1 %v17114_v46  ;;  %v17187_v46 = vld [vmem:[%s24990_s1 + $0xfd0] ss:$112 sps:$4 sm:$0xff]  }
  0xd7   :  { %8776 = vmatpush1.bf16.msra.mxu0 %v17109_v47  ;;  %v17192_v47 = vld [vmem:[%s24990_s1 + $0xb7c] ss:$112 sps:$4 sm:$0xff]  }
  0xd8   :  { %8777 = vmatprep.subr.bf16.mxu0 %v17117_v48  ;;  %v17195_v48 = vld [vmem:[%s24990_s1 + $0x10b4] ss:$112 sps:$4 sm:$0xff]  }
  0xda   :  { %v19657_v54 = vpop.f32.mrb[0].mxu1 }
  0xdb   :  { %15971 = vmatmul.mubr.msk.bf16.vlgmr.msra.gmra.mrb[8].mxu1 %vm8433_vm0, %v18982_v10  ;;  %8778 = vmatpush1.bf16.msra.mxu0 %v17115_v50  ;;  %v19667_v57 = vpop.f32.mrb[1].mxu1  ;;  %v17193_v50 = vld [vmem:[%s24990_s1 + $0x10b0] ss:$112 sps:$4 sm:$0xff]  }
  0xdc   :  { %8930 = vmatpush1.bf16.msra.mxu1 %v17112_v49  ;;  %8779 = vmatprep.subr.bf16.mxu0 %v17123_v52  ;;  %v8598_v59 = vpop.f32.mrb[2].mxu1  ;;  %v17190_v49 = vld [vmem:[%s24990_s1 + $0xb78] ss:$112 sps:$4 sm:$0xff]   ;;  %v17198_v52 = vld [vmem:[%s24990_s1 + $0xc5c] ss:$112 sps:$4 sm:$0xff]  }
  0xdd   :  { %8931 = vmatprep.subr.bf16.mxu1 %v17120_v53  ;;  %v8599_v61 = vpop.f32.mrb[3].mxu1  ;;  %8961 = vmatprep.mubr.bf16.mxu1 %v19106_v51  ;;  %v17201_v53 = vld [vmem:[%s24990_s1 + $0x1194] ss:$112 sps:$4 sm:$0xff]  }
  0xde   :  { %v17207_v59 = vld [vmem:[%s24990_s1 + $0x1274] ss:$112 sps:$4 sm:$0xff]   ;;  %v17205_v61 = vld [vmem:[%s24990_s1 + $0x1270] ss:$112 sps:$4 sm:$0xff]  }
  0xdf   :  { %8780 = vmatpush1.bf16.msra.mxu0 %v17121_v56  ;;  %v17199_v56 = vld [vmem:[%s24990_s1 + $0x1190] ss:$112 sps:$4 sm:$0xff]  }
  0xe0   :  { %8932 = vmatpush1.bf16.msra.mxu1 %v17118_v55  ;;  %8781 = vmatprep.subr.bf16.mxu0 %v17129_v58  ;;  %v17196_v55 = vld [vmem:[%s24990_s1 + $0xc58] ss:$112 sps:$4 sm:$0xff]   ;;  %v17204_v58 = vld [vmem:[%s24990_s1 + $0xd3c] ss:$112 sps:$4 sm:$0xff]  }
  0xe1   :  { %8933 = vmatprep.subr.bf16.mxu1 %v17126_v60  ;;  %v17202_v60 = vld [vmem:[%s24990_s1 + $0xd38] ss:$112 sps:$4 sm:$0xff]  }
  0xe3   :  { %8782 = vmatpush1.bf16.msra.mxu0 %v17127_v63  ;;  %v17210_v63 = vld [vmem:[%s24990_s1 + $0xe1c] ss:$112 sps:$4 sm:$0xff]  }
  0xe4   :  { %8934 = vmatpush1.bf16.msra.mxu1 %v17124_v62  ;;  %8783 = vmatprep.subr.bf16.mxu0 %v17135_v0  ;;  %v17213_v62 = vld [vmem:[%s24990_s1 + $0x1354] ss:$112 sps:$4 sm:$0xff]   ;;  %v17208_v0 = vld [vmem:[%s24990_s1 + $0xe18] ss:$112 sps:$4 sm:$0xff]  }
  0xe5   :  { %8935 = vmatprep.subr.bf16.mxu1 %v17132_v2  ;;  %v17211_v2 = vld [vmem:[%s24990_s1 + $0x1350] ss:$112 sps:$4 sm:$0xff]  }
  0xe7   :  { %8784 = vmatpush1.bf16.msra.mxu0 %v17133_v4  ;;  %v17219_v4 = vld [vmem:[%s24990_s1 + $0x1434] ss:$112 sps:$4 sm:$0xff]  }
  0xe8   :  { %8936 = vmatpush1.bf16.msra.mxu1 %v17130_v3  ;;  %8785 = vmatprep.subr.bf16.mxu0 %v17141_v5  ;;  %v17216_v3 = vld [vmem:[%s24990_s1 + $0xefc] ss:$112 sps:$4 sm:$0xff]   ;;  %v17214_v5 = vld [vmem:[%s24990_s1 + $0xef8] ss:$112 sps:$4 sm:$0xff]  }
  0xe9   :  { %8937 = vmatprep.subr.bf16.mxu1 %v17138_v6  ;;  %v17217_v6 = vld [vmem:[%s24990_s1 + $0x1430] ss:$112 sps:$4 sm:$0xff]  }
  0xeb   :  { %8786 = vmatpush1.bf16.msra.mxu0 %v17139_v8  ;;  %v17225_v8 = vld [vmem:[%s24990_s1 + $0x1514] ss:$112 sps:$4 sm:$0xff]  }
  0xec   :  { %8938 = vmatpush1.bf16.msra.mxu1 %v17136_v7  ;;  %8787 = vmatprep.subr.bf16.mxu0 %v17147_v11  ;;  %v17222_v7 = vld [vmem:[%s24990_s1 + $0xfdc] ss:$112 sps:$4 sm:$0xff]   ;;  %v17220_v11 = vld [vmem:[%s24990_s1 + $0xfd8] ss:$112 sps:$4 sm:$0xff]  }
  0xed   :  { %8939 = vmatprep.subr.bf16.mxu1 %v17144_v12  ;;  %v17223_v12 = vld [vmem:[%s24990_s1 + $0x1510] ss:$112 sps:$4 sm:$0xff]  }
  0xef   :  { %8788 = vmatpush1.bf16.msra.mxu0 %v17145_v14  ;;  %v17231_v14 = vld [vmem:[%s24990_s1 + $0x15f4] ss:$112 sps:$4 sm:$0xff]  }
  0xf0   :  { %8940 = vmatpush1.bf16.msra.mxu1 %v17142_v13  ;;  %8789 = vmatprep.subr.bf16.mxu0 %v17153_v15  ;;  %v17228_v13 = vld [vmem:[%s24990_s1 + $0x10bc] ss:$112 sps:$4 sm:$0xff]   ;;  %v17229_v15 = vld [vmem:[%s24990_s1 + $0x15f0] ss:$112 sps:$4 sm:$0xff]  }
  0xf1   :  { %8941 = vmatprep.subr.bf16.mxu1 %v17150_v16  ;;  %v17226_v16 = vld [vmem:[%s24990_s1 + $0x10b8] ss:$112 sps:$4 sm:$0xff]  }
  0xf3   :  { %8790 = vmatpush1.bf16.msra.mxu0 %v17151_v19  ;;  %v17237_v19 = vld [vmem:[%s24990_s1 + $0x16d4] ss:$112 sps:$4 sm:$0xff]  }
  0xf4   :  { %8942 = vmatpush1.bf16.msra.mxu1 %v17148_v17  ;;  %8791 = vmatprep.subr.bf16.mxu0 %v17159_v20  ;;  %v17234_v17 = vld [vmem:[%s24990_s1 + $0x119c] ss:$112 sps:$4 sm:$0xff]   ;;  %v17232_v20 = vld [vmem:[%s24990_s1 + $0x1198] ss:$112 sps:$4 sm:$0xff]  }
  0xf5   :  { %8943 = vmatprep.subr.bf16.mxu1 %v17156_v21  ;;  %v17235_v21 = vld [vmem:[%s24990_s1 + $0x16d0] ss:$112 sps:$4 sm:$0xff]  }
  0xf7   :  { %8792 = vmatpush1.bf16.msra.mxu0 %v17157_v23  ;;  %v17240_v23 = vld [vmem:[%s24990_s1 + $0x127c] ss:$112 sps:$4 sm:$0xff]  }
  0xf8   :  { %8944 = vmatpush1.bf16.msra.mxu1 %v17154_v22  ;;  %8793 = vmatprep.subr.bf16.mxu0 %v17165_v25  ;;  %v17243_v22 = vld [vmem:[%s24990_s1 + $0x17b4] ss:$112 sps:$4 sm:$0xff]   ;;  %v17241_v25 = vld [vmem:[%s24990_s1 + $0x17b0] ss:$112 sps:$4 sm:$0xff]  }
  0xf9   :  { %8945 = vmatprep.subr.bf16.mxu1 %v17162_v26  ;;  %v17238_v26 = vld [vmem:[%s24990_s1 + $0x1278] ss:$112 sps:$4 sm:$0xff]  }
  0xfb   :  { %8794 = vmatpush1.bf16.msra.mxu0 %v17163_v28  ;;  %v17249_v28 = vld [vmem:[%s24990_s1 + $0x1894] ss:$112 sps:$4 sm:$0xff]  }
  0xfc   :  { %8946 = vmatpush1.bf16.msra.mxu1 %v17160_v27  ;;  %8795 = vmatprep.subr.bf16.mxu0 %v17171_v30  ;;  %v17246_v27 = vld [vmem:[%s24990_s1 + $0x135c] ss:$112 sps:$4 sm:$0xff]   ;;  %v17247_v30 = vld [vmem:[%s24990_s1 + $0x1890] ss:$112 sps:$4 sm:$0xff]  }
  0xfd   :  { %8947 = vmatprep.subr.bf16.mxu1 %v17168_v31  ;;  %v17244_v31 = vld [vmem:[%s24990_s1 + $0x1358] ss:$112 sps:$4 sm:$0xff]  }
  0xff   :  { %8796 = vmatpush1.bf16.msra.mxu0 %v17169_v32  ;;  %v17252_v32 = vld [vmem:[%s24990_s1 + $0x143c] ss:$112 sps:$4 sm:$0xff]  }
 0x100   :  { %8948 = vmatpush1.bf16.msra.mxu1 %v17166_v33  ;;  %8806 = vmatprep.subr.bf16.mxu0 %v17177_v34  ;;  %v17255_v33 = vld [vmem:[%s24990_s1 + $0x1974] ss:$112 sps:$4 sm:$0xff]   ;;  %v17253_v34 = vld [vmem:[%s24990_s1 + $0x1970] ss:$112 sps:$4 sm:$0xff]  }
 0x101   :  { %8949 = vmatprep.subr.bf16.mxu1 %v17174_v35  ;;  %v17250_v35 = vld [vmem:[%s24990_s1 + $0x1438] ss:$112 sps:$4 sm:$0xff]  }
 0x102   :  { %8798 = vmatmul.mubr.bf16.vlgmr.msra.gmra.mrb[4].mxu0 %v19170_v9 }
 0x103   :  { %8807 = vmatpush1.bf16.msra.mxu0 %v17175_v37  ;;  %8838 = vmatprep.mubr.bf16.mxu0 %v19249_v36  ;;  %v17258_v37 = vld [vmem:[%s24990_s1 + $0x151c] ss:$112 sps:$4 sm:$0xff]  }
 0x104   :  { %8950 = vmatpush1.bf16.msra.mxu1 %v17172_v38  ;;  %8808 = vmatprep.subr.bf16.mxu0 %v17183_v40  ;;  %v17261_v38 = vld [vmem:[%s24990_s1 + $0x1a54] ss:$112 sps:$4 sm:$0xff]   ;;  %v17256_v40 = vld [vmem:[%s24990_s1 + $0x1518] ss:$112 sps:$4 sm:$0xff]  }
 0x105   :  { %8951 = vmatprep.subr.bf16.mxu1 %v17180_v39  ;;  %v17259_v39 = vld [vmem:[%s24990_s1 + $0x1a50] ss:$112 sps:$4 sm:$0xff]  }
 0x107   :  { %8809 = vmatpush1.bf16.msra.mxu0 %v17181_v42  ;;  %v17267_v42 = vld [vmem:[%s24990_s1 + $0x1b34] ss:$112 sps:$4 sm:$0xff]  }
 0x108   :  { %8952 = vmatpush1.bf16.msra.mxu1 %v17178_v41  ;;  %8810 = vmatprep.subr.bf16.mxu0 %v17189_v44  ;;  %v17264_v41 = vld [vmem:[%s24990_s1 + $0x15fc] ss:$112 sps:$4 sm:$0xff]   ;;  %v17262_v44 = vld [vmem:[%s24990_s1 + $0x15f8] ss:$112 sps:$4 sm:$0xff]  }
 0x109   :  { %8953 = vmatprep.subr.bf16.mxu1 %v17186_v43  ;;  %v17265_v43 = vld [vmem:[%s24990_s1 + $0x1b30] ss:$112 sps:$4 sm:$0xff]  }
 0x10b   :  { %8811 = vmatpush1.bf16.msra.mxu0 %v17187_v46  ;;  %v17273_v46 = vld [vmem:[%s24990_s1 + $0x1c14] ss:$112 sps:$4 sm:$0xff]  }
 0x10c   :  { %8954 = vmatpush1.bf16.msra.mxu1 %v17184_v45  ;;  %8812 = vmatprep.subr.bf16.mxu0 %v17195_v48  ;;  %v17270_v45 = vld [vmem:[%s24990_s1 + $0x16dc] ss:$112 sps:$4 sm:$0xff]   ;;  %v17268_v48 = vld [vmem:[%s24990_s1 + $0x16d8] ss:$112 sps:$4 sm:$0xff]  }
 0x10d   :  { %8955 = vmatprep.subr.bf16.mxu1 %v17192_v47  ;;  %v17271_v47 = vld [vmem:[%s24990_s1 + $0x1c10] ss:$112 sps:$4 sm:$0xff]  }
 0x10f   :  { %8813 = vmatpush1.bf16.msra.mxu0 %v17193_v50  ;;  %v17279_v50 = vld [vmem:[%s24990_s1 + $0x1cf4] ss:$112 sps:$4 sm:$0xff]  }
 0x110   :  { %8956 = vmatpush1.bf16.msra.mxu1 %v17190_v49  ;;  %8814 = vmatprep.subr.bf16.mxu0 %v17201_v53  ;;  %v17276_v49 = vld [vmem:[%s24990_s1 + $0x17bc] ss:$112 sps:$4 sm:$0xff]   ;;  %v17274_v53 = vld [vmem:[%s24990_s1 + $0x17b8] ss:$112 sps:$4 sm:$0xff]  }
 0x111   :  { %8957 = vmatprep.subr.bf16.mxu1 %v17198_v52  ;;  %v17277_v52 = vld [vmem:[%s24990_s1 + $0x1cf0] ss:$112 sps:$4 sm:$0xff]  }
 0x113   :  { %8815 = vmatpush1.bf16.msra.mxu0 %v17199_v56  ;;  %v17285_v56 = vld [vmem:[%s24990_s1 + $0x1dd4] ss:$112 sps:$4 sm:$0xff]  }
 0x114   :  { %8958 = vmatpush1.bf16.msra.mxu1 %v17196_v55  ;;  %8816 = vmatprep.subr.bf16.mxu0 %v17207_v59  ;;  %v17282_v55 = vld [vmem:[%s24990_s1 + $0x189c] ss:$112 sps:$4 sm:$0xff]   ;;  %v17280_v59 = vld [vmem:[%s24990_s1 + $0x1898] ss:$112 sps:$4 sm:$0xff]  }
 0x115   :  { %8959 = vmatprep.subr.bf16.mxu1 %v17204_v58  ;;  %v17283_v58 = vld [vmem:[%s24990_s1 + $0x1dd0] ss:$112 sps:$4 sm:$0xff]  }
 0x117   :  { %8817 = vmatpush1.bf16.msra.mxu0 %v17205_v61  ;;  %v17291_v61 = vld [vmem:[%s24990_s1 + $0x1eb4] ss:$112 sps:$4 sm:$0xff]  }
 0x118   :  { %8960 = vmatpush1.bf16.msra.mxu1 %v17202_v60  ;;  %8818 = vmatprep.subr.bf16.mxu0 %v17213_v62  ;;  %v17288_v60 = vld [vmem:[%s24990_s1 + $0x197c] ss:$112 sps:$4 sm:$0xff]   ;;  %v17289_v62 = vld [vmem:[%s24990_s1 + $0x1eb0] ss:$112 sps:$4 sm:$0xff]  }
 0x119   :  { %8970 = vmatprep.subr.bf16.mxu1 %v17210_v63  ;;  %v17286_v63 = vld [vmem:[%s24990_s1 + $0x1978] ss:$112 sps:$4 sm:$0xff]  }
 0x11b   :  { %8962 = vmatmul.mubr.bf16.vlgmr.msra.gmra.mrb[12].mxu1 %v19170_v9  ;;  %8819 = vmatpush1.bf16.msra.mxu0 %v17211_v2  ;;  %v17297_v2 = vld [vmem:[%s24990_s1 + $0x1f94] ss:$112 sps:$4 sm:$0xff]  }
 0x11c   :  { %8971 = vmatpush1.bf16.msra.mxu1 %v17208_v0  ;;  %8820 = vmatprep.subr.bf16.mxu0 %v17219_v4  ;;  %v17294_v0 = vld [vmem:[%s24990_s1 + $0x1a5c] ss:$112 sps:$4 sm:$0xff]   ;;  %v17292_v4 = vld [vmem:[%s24990_s1 + $0x1a58] ss:$112 sps:$4 sm:$0xff]  }
 0x11d   :  { %8972 = vmatprep.subr.bf16.mxu1 %v17216_v3  ;;  %9002 = vmatprep.mubr.bf16.mxu1 %v19249_v36  ;;  %v17295_v3 = vld [vmem:[%s24990_s1 + $0x1f90] ss:$112 sps:$4 sm:$0xff]  }
 0x11f   :  { %8821 = vmatpush1.bf16.msra.mxu0 %v17217_v6  ;;  %v17303_v6 = vld [vmem:[%s24990_s1 + $0x2074] ss:$112 sps:$4 sm:$0xff]  }
 0x120   :  { %8973 = vmatpush1.bf16.msra.mxu1 %v17214_v5  ;;  %8822 = vmatprep.subr.bf16.mxu0 %v17225_v8  ;;  %v17300_v5 = vld [vmem:[%s24990_s1 + $0x1b3c] ss:$112 sps:$4 sm:$0xff]   ;;  %v17298_v8 = vld [vmem:[%s24990_s1 + $0x1b38] ss:$112 sps:$4 sm:$0xff]  }
 0x121   :  { %8974 = vmatprep.subr.bf16.mxu1 %v17222_v7  ;;  %v17301_v7 = vld [vmem:[%s24990_s1 + $0x2070] ss:$112 sps:$4 sm:$0xff]  }
 0x123   :  { %8823 = vmatpush1.bf16.msra.mxu0 %v17223_v12  ;;  %v17309_v12 = vld [vmem:[%s24990_s1 + $0x2154] ss:$112 sps:$4 sm:$0xff]  }
 0x124   :  { %8975 = vmatpush1.bf16.msra.mxu1 %v17220_v11  ;;  %8824 = vmatprep.subr.bf16.mxu0 %v17231_v14  ;;  %v17306_v11 = vld [vmem:[%s24990_s1 + $0x1c1c] ss:$112 sps:$4 sm:$0xff]   ;;  %v17304_v14 = vld [vmem:[%s24990_s1 + $0x1c18] ss:$112 sps:$4 sm:$0xff]  }
 0x125   :  { %8976 = vmatprep.subr.bf16.mxu1 %v17228_v13  ;;  %v17307_v13 = vld [vmem:[%s24990_s1 + $0x2150] ss:$112 sps:$4 sm:$0xff]  }
 0x127   :  { %8825 = vmatpush1.bf16.msra.mxu0 %v17229_v15  ;;  %v17312_v15 = vld [vmem:[%s24990_s1 + $0x1cfc] ss:$112 sps:$4 sm:$0xff]  }
 0x128   :  { %8977 = vmatpush1.bf16.msra.mxu1 %v17226_v16  ;;  %8826 = vmatprep.subr.bf16.mxu0 %v17237_v19  ;;  %v17315_v16 = vld [vmem:[%s24990_s1 + $0x2234] ss:$112 sps:$4 sm:$0xff]   ;;  %v17310_v19 = vld [vmem:[%s24990_s1 + $0x1cf8] ss:$112 sps:$4 sm:$0xff]  }
 0x129   :  { %8978 = vmatprep.subr.bf16.mxu1 %v17234_v17  ;;  %v17313_v17 = vld [vmem:[%s24990_s1 + $0x2230] ss:$112 sps:$4 sm:$0xff]  }
 0x12b   :  { %8827 = vmatpush1.bf16.msra.mxu0 %v17235_v21  ;;  %v17321_v21 = vld [vmem:[%s24990_s1 + $0x2314] ss:$112 sps:$4 sm:$0xff]  }
 0x12c   :  { %8979 = vmatpush1.bf16.msra.mxu1 %v17232_v20  ;;  %8828 = vmatprep.subr.bf16.mxu0 %v17243_v22  ;;  %v17318_v20 = vld [vmem:[%s24990_s1 + $0x1ddc] ss:$112 sps:$4 sm:$0xff]   ;;  %v17319_v22 = vld [vmem:[%s24990_s1 + $0x2310] ss:$112 sps:$4 sm:$0xff]  }
 0x12d   :  { %8980 = vmatprep.subr.bf16.mxu1 %v17240_v23  ;;  %v17316_v23 = vld [vmem:[%s24990_s1 + $0x1dd8] ss:$112 sps:$4 sm:$0xff]  }
 0x12f   :  { %8829 = vmatpush1.bf16.msra.mxu0 %v17241_v25  ;;  %v17324_v25 = vld [vmem:[%s24990_s1 + $0x1ebc] ss:$112 sps:$4 sm:$0xff]  }
 0x130   :  { %8981 = vmatpush1.bf16.msra.mxu1 %v17238_v26  ;;  %8830 = vmatprep.subr.bf16.mxu0 %v17249_v28  ;;  %v17327_v26 = vld [vmem:[%s24990_s1 + $0x23f4] ss:$112 sps:$4 sm:$0xff]   ;;  %v17322_v28 = vld [vmem:[%s24990_s1 + $0x1eb8] ss:$112 sps:$4 sm:$0xff]  }
 0x131   :  { %8982 = vmatprep.subr.bf16.mxu1 %v17246_v27  ;;  %v17325_v27 = vld [vmem:[%s24990_s1 + $0x23f0] ss:$112 sps:$4 sm:$0xff]  }
 0x133   :  { %8831 = vmatpush1.bf16.msra.mxu0 %v17247_v30  ;;  %v17330_v30 = vld [vmem:[%s24990_s1 + $0x1f9c] ss:$112 sps:$4 sm:$0xff]  }
 0x134   :  { %8983 = vmatpush1.bf16.msra.mxu1 %v17244_v31  ;;  %8832 = vmatprep.subr.bf16.mxu0 %v17255_v33  ;;  %v17333_v31 = vld [vmem:[%s24990_s1 + $0x24d4] ss:$112 sps:$4 sm:$0xff]   ;;  %v17328_v33 = vld [vmem:[%s24990_s1 + $0x1f98] ss:$112 sps:$4 sm:$0xff]  }
 0x135   :  { %8984 = vmatprep.subr.bf16.mxu1 %v17252_v32  ;;  %v17331_v32 = vld [vmem:[%s24990_s1 + $0x24d0] ss:$112 sps:$4 sm:$0xff]  }
 0x137   :  { %8833 = vmatpush1.bf16.msra.mxu0 %v17253_v34  ;;  %v17336_v34 = vld [vmem:[%s24990_s1 + $0x207c] ss:$112 sps:$4 sm:$0xff]  }
 0x138   :  { %8985 = vmatpush1.bf16.msra.mxu1 %v17250_v35  ;;  %8834 = vmatprep.subr.bf16.mxu0 %v17261_v38  ;;  %v17339_v35 = vld [vmem:[%s24990_s1 + $0x25b4] ss:$112 sps:$4 sm:$0xff]   ;;  %v17334_v38 = vld [vmem:[%s24990_s1 + $0x2078] ss:$112 sps:$4 sm:$0xff]  }
 0x139   :  { %8986 = vmatprep.subr.bf16.mxu1 %v17258_v37  ;;  %v17337_v37 = vld [vmem:[%s24990_s1 + $0x25b0] ss:$112 sps:$4 sm:$0xff]  }
 0x13b   :  { %8835 = vmatpush1.bf16.msra.mxu0 %v17259_v39  ;;  %v17342_v39 = vld [vmem:[%s24990_s1 + $0x215c] ss:$112 sps:$4 sm:$0xff]  }
 0x13c   :  { %8987 = vmatpush1.bf16.msra.mxu1 %v17256_v40  ;;  %8836 = vmatprep.subr.bf16.mxu0 %v17267_v42  ;;  %v17345_v40 = vld [vmem:[%s24990_s1 + $0x2694] ss:$112 sps:$4 sm:$0xff]   ;;  %v17340_v42 = vld [vmem:[%s24990_s1 + $0x2158] ss:$112 sps:$4 sm:$0xff]  }
 0x13d   :  { %8988 = vmatprep.subr.bf16.mxu1 %v17264_v41  ;;  %v17343_v41 = vld [vmem:[%s24990_s1 + $0x2690] ss:$112 sps:$4 sm:$0xff]  }
 0x13f   :  { %8837 = vmatpush1.bf16.msra.mxu0 %v17265_v43  ;;  %v17348_v43 = vld [vmem:[%s24990_s1 + $0x223c] ss:$112 sps:$4 sm:$0xff]  }
 0x140   :  { %8989 = vmatpush1.bf16.msra.mxu1 %v17262_v44  ;;  %8847 = vmatprep.subr.bf16.mxu0 %v17273_v46  ;;  %v17351_v44 = vld [vmem:[%s24990_s1 + $0x2774] ss:$112 sps:$4 sm:$0xff]   ;;  %v17346_v46 = vld [vmem:[%s24990_s1 + $0x2238] ss:$112 sps:$4 sm:$0xff]  }
 0x141   :  { %8990 = vmatprep.subr.bf16.mxu1 %v17270_v45  ;;  %v17349_v45 = vld [vmem:[%s24990_s1 + $0x2770] ss:$112 sps:$4 sm:$0xff]  }
 0x142   :  { %8839 = vmatmul.mubr.bf16.vlgmr.msra.gmra.mrb[4].mxu0 %v19376_v18 }
 0x143   :  { %8848 = vmatpush1.bf16.msra.mxu0 %v17271_v47  ;;  %8879 = vmatprep.mubr.bf16.mxu0 %v19393_v24  ;;  %v17354_v47 = vld [vmem:[%s24990_s1 + $0x231c] ss:$112 sps:$4 sm:$0xff]  }
 0x144   :  { %8991 = vmatpush1.bf16.msra.mxu1 %v17268_v48  ;;  %8849 = vmatprep.subr.bf16.mxu0 %v17279_v50  ;;  %v17357_v48 = vld [vmem:[%s24990_s1 + $0x2854] ss:$112 sps:$4 sm:$0xff]   ;;  %v17352_v50 = vld [vmem:[%s24990_s1 + $0x2318] ss:$112 sps:$4 sm:$0xff]  }
 0x145   :  { %8992 = vmatprep.subr.bf16.mxu1 %v17276_v49  ;;  %v17355_v49 = vld [vmem:[%s24990_s1 + $0x2850] ss:$112 sps:$4 sm:$0xff]  }
 0x147   :  { %8850 = vmatpush1.bf16.msra.mxu0 %v17277_v52  ;;  %v17360_v52 = vld [vmem:[%s24990_s1 + $0x23fc] ss:$112 sps:$4 sm:$0xff]  }
 0x148   :  { %8993 = vmatpush1.bf16.msra.mxu1 %v17274_v53  ;;  %8851 = vmatprep.subr.bf16.mxu0 %v17285_v56  ;;  %v17363_v53 = vld [vmem:[%s24990_s1 + $0x2934] ss:$112 sps:$4 sm:$0xff]   ;;  %v17358_v56 = vld [vmem:[%s24990_s1 + $0x23f8] ss:$112 sps:$4 sm:$0xff]  }
 0x149   :  { %8994 = vmatprep.subr.bf16.mxu1 %v17282_v55  ;;  %v17361_v55 = vld [vmem:[%s24990_s1 + $0x2930] ss:$112 sps:$4 sm:$0xff]  }
 0x14b   :  { %8852 = vmatpush1.bf16.msra.mxu0 %v17283_v58  ;;  %v17366_v58 = vld [vmem:[%s24990_s1 + $0x24dc] ss:$112 sps:$4 sm:$0xff]  }
 0x14c   :  { %8995 = vmatpush1.bf16.msra.mxu1 %v17280_v59  ;;  %8853 = vmatprep.subr.bf16.mxu0 %v17291_v61  ;;  %v17369_v59 = vld [vmem:[%s24990_s1 + $0x24] ss:$112 sps:$4 sm:$0xff]   ;;  %v17364_v61 = vld [vmem:[%s24990_s1 + $0x24d8] ss:$112 sps:$4 sm:$0xff]  }
 0x14d   :  { %8996 = vmatprep.subr.bf16.mxu1 %v17288_v60  ;;  %v17367_v60 = vld [vmem:[%s24990_s1 + $0x20] ss:$112 sps:$4 sm:$0xff]  }
 0x14f   :  { %8854 = vmatpush1.bf16.msra.mxu0 %v17289_v62  ;;  %v17372_v62 = vld [vmem:[%s24990_s1 + $0x25bc] ss:$112 sps:$4 sm:$0xff]  }
 0x150   :  { %8997 = vmatpush1.bf16.msra.mxu1 %v17286_v63  ;;  %8855 = vmatprep.subr.bf16.mxu0 %v17297_v2  ;;  %v17375_v63 = vld [vmem:[%s24990_s1 + $0x104] ss:$112 sps:$4 sm:$0xff]   ;;  %v17370_v2 = vld [vmem:[%s24990_s1 + $0x25b8] ss:$112 sps:$4 sm:$0xff]  }
 0x151   :  { %8998 = vmatprep.subr.bf16.mxu1 %v17294_v0  ;;  %v17373_v0 = vld [vmem:[%s24990_s1 + $0x100] ss:$112 sps:$4 sm:$0xff]  }
 0x153   :  { %8856 = vmatpush1.bf16.msra.mxu0 %v17295_v3  ;;  %v17378_v3 = vld [vmem:[%s24990_s1 + $0x269c] ss:$112 sps:$4 sm:$0xff]  }
 0x154   :  { %8999 = vmatpush1.bf16.msra.mxu1 %v17292_v4  ;;  %8857 = vmatprep.subr.bf16.mxu0 %v17303_v6  ;;  %v17381_v4 = vld [vmem:[%s24990_s1 + $0x1e4] ss:$112 sps:$4 sm:$0xff]   ;;  %v17379_v6 = vld [vmem:[%s24990_s1 + $0x1e0] ss:$112 sps:$4 sm:$0xff]  }
 0x155   :  { %9000 = vmatprep.subr.bf16.mxu1 %v17300_v5  ;;  %v1433_v5 = vlaneseq }
 0x157   :  { %8858 = vmatpush1.bf16.msra.mxu0 %v17301_v7  ;;  %v17376_v7 = vld [vmem:[%s24990_s1 + $0x2698] ss:$112 sps:$4 sm:$0xff]  }
 0x158   :  { %9001 = vmatpush1.bf16.msra.mxu1 %v17298_v8  ;;  %8859 = vmatprep.subr.bf16.mxu0 %v17309_v12  ;;  %v17384_v8 = vld [vmem:[%s24990_s1 + $0x277c] ss:$112 sps:$4 sm:$0xff]   ;;  %v20202_v12 = vshrl.u32 %v1433_v5, 7  ;;  %v17433_v5 = vld [vmem:[%s24990_s1 + $0xaa0] ss:$112 sps:$4 sm:$0xff]  }
 0x159   :  { %9011 = vmatprep.subr.bf16.mxu1 %v17306_v11  ;;  %v17387_v11 = vld [vmem:[%s24990_s1 + $0x2c4] ss:$112 sps:$4 sm:$0xff]  }
 0x15b   :  { %9003 = vmatmul.mubr.bf16.vlgmr.msra.gmra.mrb[12].mxu1 %v19376_v18  ;;  %8860 = vmatpush1.bf16.msra.mxu0 %v17307_v13  ;;  %v17385_v13 = vld [vmem:[%s24990_s1 + $0x2c0] ss:$112 sps:$4 sm:$0xff]  }
 0x15c   :  { %9012 = vmatpush1.bf16.msra.mxu1 %v17304_v14  ;;  %8861 = vmatprep.subr.bf16.mxu0 %v17315_v16  ;;  %v17382_v14 = vld [vmem:[%s24990_s1 + $0x2778] ss:$112 sps:$4 sm:$0xff]   ;;  %v17393_v16 = vld [vmem:[%s24990_s1 + $0x3a4] ss:$112 sps:$4 sm:$0xff]  }
 0x15d   :  { %9013 = vmatprep.subr.bf16.mxu1 %v17312_v15  ;;  %9043 = vmatprep.mubr.bf16.mxu1 %v19393_v24  ;;  %v17390_v15 = vld [vmem:[%s24990_s1 + $0x285c] ss:$112 sps:$4 sm:$0xff]  }
 0x15f   :  { %8862 = vmatpush1.bf16.msra.mxu0 %v17313_v17  ;;  %v17391_v17 = vld [vmem:[%s24990_s1 + $0x3a0] ss:$112 sps:$4 sm:$0xff]  }
 0x160   :  { %9014 = vmatpush1.bf16.msra.mxu1 %v17310_v19  ;;  %8863 = vmatprep.subr.bf16.mxu0 %v17321_v21  ;;  %v20220_v19 = vsub.s32 0, %v20202_v12  ;;  %v20226_v21 = vsub.s32 1, %v20202_v12 }
 0x161   :  { %9015 = vmatprep.subr.bf16.mxu1 %v17318_v20  ;;  %v1425_v20 = vld [vmem:[%s24992_s2] sm:$0xff] }
 0x163   :  { %8864 = vmatpush1.bf16.msra.mxu0 %v17319_v22  ;;  %v17388_v22 = vld [vmem:[%s24990_s1 + $0x2858] ss:$112 sps:$4 sm:$0xff]  }
 0x164   :  { %9016 = vmatpush1.bf16.msra.mxu1 %v17316_v23  ;;  %8865 = vmatprep.subr.bf16.mxu0 %v17327_v26  ;;  %v17396_v23 = vld [vmem:[%s24990_s1 + $0x293c] ss:$112 sps:$4 sm:$0xff]   ;;  %v1436_v26 = vrot.slane %v1425_v20, %v20220_v19 }
 0x165   :  { %9017 = vmatprep.subr.bf16.mxu1 %v17324_v25  ;;  %v17399_v25 = vld [vmem:[%s24990_s1 + $0x484] ss:$112 sps:$4 sm:$0xff]  }
 0x167   :  { %8866 = vmatpush1.bf16.msra.mxu0 %v17325_v27  ;;  %v1440_v27 = vrot.slane %v1425_v20, %v20226_v21  ;;  %v17447_v20 = vld [vmem:[%s24990_s1 + $0xc64] ss:$112 sps:$4 sm:$0xff]  }
 0x168   :  { %9018 = vmatpush1.bf16.msra.mxu1 %v17322_v28  ;;  %8867 = vmatprep.subr.bf16.mxu0 %v17333_v31  ;;  %v17397_v28 = vld [vmem:[%s24990_s1 + $0x480] ss:$112 sps:$4 sm:$0xff]   ;;  %v17402_v31 = vld [vmem:[%s24990_s1 + $0x564] ss:$112 sps:$4 sm:$0xff]  }
 0x169   :  { %9019 = vmatprep.subr.bf16.mxu1 %v17330_v30  ;;  %v17394_v30 = vld [vmem:[%s24990_s1 + $0x2938] ss:$112 sps:$4 sm:$0xff]  }
 0x16b   :  { %8868 = vmatpush1.bf16.msra.mxu0 %v17331_v32  ;;  %v17408_v32 = vld [vmem:[%s24990_s1 + $0x2a1c] ss:$112 sps:$4 sm:$0xff]  }
 0x16c   :  { %9020 = vmatpush1.bf16.msra.mxu1 %v17328_v33  ;;  %8869 = vmatprep.subr.bf16.mxu0 %v17339_v35 }
 0x16d   :  { %9021 = vmatprep.subr.bf16.mxu1 %v17336_v34 }
 0x16f   :  { %8870 = vmatpush1.bf16.msra.mxu0 %v17337_v37 }
 0x170   :  { %9022 = vmatpush1.bf16.msra.mxu1 %v17334_v38  ;;  %8871 = vmatprep.subr.bf16.mxu0 %v17345_v40 }
 0x171   :  { %9023 = vmatprep.subr.bf16.mxu1 %v17342_v39  ;;  %v17400_v39 = vld [vmem:[%s24990_s1 + $0x560] ss:$112 sps:$4 sm:$0xff]  }
 0x173   :  { %8872 = vmatpush1.bf16.msra.mxu0 %v17343_v41 }
 0x174   :  { %9024 = vmatpush1.bf16.msra.mxu1 %v17340_v42  ;;  %8873 = vmatprep.subr.bf16.mxu0 %v17351_v44  ;;  %v17405_v42 = vld [vmem:[%s24990_s1 + $0x644] ss:$112 sps:$4 sm:$0xff]  }
 0x175   :  { %9025 = vmatprep.subr.bf16.mxu1 %v17348_v43  ;;  %v17406_v43 = vld [vmem:[%s24990_s1 + $0x2a18] ss:$112 sps:$4 sm:$0xff]  }
 0x177   :  { %8874 = vmatpush1.bf16.msra.mxu0 %v17349_v45  ;;  %v17403_v45 = vld [vmem:[%s24990_s1 + $0x640] ss:$112 sps:$4 sm:$0xff]  }
 0x178   :  { %9026 = vmatpush1.bf16.msra.mxu1 %v17346_v46  ;;  %8875 = vmatprep.subr.bf16.mxu0 %v17357_v48  ;;  %v17411_v46 = vld [vmem:[%s24990_s1 + $0x724] ss:$112 sps:$4 sm:$0xff]   ;;  %v17415_v48 = vld [vmem:[%s24990_s1 + $0x800] ss:$112 sps:$4 sm:$0xff]  }
 0x179   :  { %9027 = vmatprep.subr.bf16.mxu1 %v17354_v47  ;;  %v17417_v47 = vld [vmem:[%s24990_s1 + $0x804] ss:$112 sps:$4 sm:$0xff]  }
 0x17b   :  { %8876 = vmatpush1.bf16.msra.mxu0 %v17355_v49  ;;  %v17412_v49 = vld [vmem:[%s24990_s1 + $0x28] ss:$112 sps:$4 sm:$0xff]  }
 0x17c   :  { %9028 = vmatpush1.bf16.msra.mxu1 %v17352_v50  ;;  %8877 = vmatprep.subr.bf16.mxu0 %v17363_v53  ;;  %v17420_v50 = vld [vmem:[%s24990_s1 + $0x10c] ss:$112 sps:$4 sm:$0xff]  }
 0x17d   :  { %9029 = vmatprep.subr.bf16.mxu1 %v17360_v52  ;;  %v17423_v52 = vld [vmem:[%s24990_s1 + $0x8e4] ss:$112 sps:$4 sm:$0xff]  }
 0x17f   :  { %8878 = vmatpush1.bf16.msra.mxu0 %v17361_v55 }
 0x180   :  { %9030 = vmatpush1.bf16.msra.mxu1 %v17358_v56  ;;  %9093 = vmatprep.subr.bf16.mxu0 %v17369_v59  ;;  %v17421_v56 = vld [vmem:[%s24990_s1 + $0x8e0] ss:$112 sps:$4 sm:$0xff]   ;;  %v17418_v59 = vld [vmem:[%s24990_s1 + $0x108] ss:$112 sps:$4 sm:$0xff]  }
 0x181   :  { %9031 = vmatprep.subr.bf16.mxu1 %v17366_v58 }
 0x182   :  { %8880 = vmatmul.mubr.bf16.vlgmr.msra.gmra.mrb[4].mxu0 %v19582_v29 }
 0x183   :  { %9094 = vmatpush1.bf16.msra.mxu0 %v17367_v60  ;;  %9125 = vmatprep.mubr.bf16.mxu0 %v19106_v51  ;;  %v17429_v60 = vld [vmem:[%s24990_s1 + $0x9c4] ss:$112 sps:$4 sm:$0xff]  }
 0x184   :  { %9032 = vmatpush1.bf16.msra.mxu1 %v17364_v61  ;;  %9095 = vmatprep.subr.bf16.mxu0 %v17375_v63  ;;  %v17427_v63 = vld [vmem:[%s24990_s1 + $0x9c0] ss:$112 sps:$4 sm:$0xff]  }
 0x185   :  { %9033 = vmatprep.subr.bf16.mxu1 %v17372_v62  ;;  %v17426_v62 = vld [vmem:[%s24990_s1 + $0x1ec] ss:$112 sps:$4 sm:$0xff]  }
 0x187   :  { %9096 = vmatpush1.bf16.msra.mxu0 %v17373_v0  ;;  %v17424_v0 = vld [vmem:[%s24990_s1 + $0x1e8] ss:$112 sps:$4 sm:$0xff]  }
 0x188   :  { %9034 = vmatpush1.bf16.msra.mxu1 %v17370_v2  ;;  %9097 = vmatprep.subr.bf16.mxu0 %v17381_v4  ;;  %v17432_v2 = vld [vmem:[%s24990_s1 + $0x2cc] ss:$112 sps:$4 sm:$0xff]  }
 0x189   :  { %9035 = vmatprep.subr.bf16.mxu1 %v17378_v3  ;;  %v17435_v3 = vld [vmem:[%s24990_s1 + $0xaa4] ss:$112 sps:$4 sm:$0xff]  }
 0x18b   :  { %9098 = vmatpush1.bf16.msra.mxu0 %v17379_v6 }
 0x18c   :  { %9036 = vmatpush1.bf16.msra.mxu1 %v17376_v7  ;;  %9099 = vmatprep.subr.bf16.mxu0 %v17387_v11  ;;  %v17430_v7 = vld [vmem:[%s24990_s1 + $0x2c8] ss:$112 sps:$4 sm:$0xff]  }
 0x18d   :  { %9037 = vmatprep.subr.bf16.mxu1 %v17384_v8  ;;  %v17441_v8 = vld [vmem:[%s24990_s1 + $0xb84] ss:$112 sps:$4 sm:$0xff]  }
 0x18f   :  { %9100 = vmatpush1.bf16.msra.mxu0 %v17385_v13  ;;  %v17438_v13 = vld [vmem:[%s24990_s1 + $0x3ac] ss:$112 sps:$4 sm:$0xff]  }
 0x190   :  { %9038 = vmatpush1.bf16.msra.mxu1 %v17382_v14  ;;  %9101 = vmatprep.subr.bf16.mxu0 %v17393_v16  ;;  %v17436_v16 = vld [vmem:[%s24990_s1 + $0x3a8] ss:$112 sps:$4 sm:$0xff]  }
 0x191   :  { %9039 = vmatprep.subr.bf16.mxu1 %v17390_v15  ;;  %v17439_v15 = vld [vmem:[%s24990_s1 + $0xb80] ss:$112 sps:$4 sm:$0xff]  }
 0x193   :  { %9102 = vmatpush1.bf16.msra.mxu0 %v17391_v17  ;;  %v17444_v17 = vld [vmem:[%s24990_s1 + $0x48c] ss:$112 sps:$4 sm:$0xff]  }
 0x194   :  { %9040 = vmatpush1.bf16.msra.mxu1 %v17388_v22  ;;  %9103 = vmatprep.subr.bf16.mxu0 %v17399_v25  ;;  %v17445_v22 = vld [vmem:[%s24990_s1 + $0xc60] ss:$112 sps:$4 sm:$0xff]   ;;  %v17450_v25 = vld [vmem:[%s24990_s1 + $0x56c] ss:$112 sps:$4 sm:$0xff]  }
 0x195   :  { %v8553_v33 = vpop.f32.mrb[0].mxu0  ;;  %9041 = vmatprep.subr.bf16.mxu1 %v17396_v23  ;;  %v17442_v23 = vld [vmem:[%s24990_s1 + $0x488] ss:$112 sps:$4 sm:$0xff]  }
 0x196   :  { %v16546_v34 = vadd.f32 %v8553_v33, %v1436_v26  ;;  %v8555_v35 = vpop.f32.mrb[1].mxu0  ;;  %v17453_v26 = vld [vmem:[%s24990_s1 + $0xd44] ss:$112 sps:$4 sm:$0xff]   ;;  %v17454_v33 = vld [vmem:[%s24990_s1 + $0x648] ss:$112 sps:$4 sm:$0xff]  }
 0x197   :  { %v16548_v37 = vadd.f32 %v8555_v35, %v1440_v27  ;;  %v8557_v38 = vpop.f32.mrb[2].mxu0  ;;  %9104 = vmatpush1.bf16.msra.mxu0 %v17397_v28  ;;  %v17451_v27 = vld [vmem:[%s24990_s1 + $0xd40] ss:$112 sps:$4 sm:$0xff]   ;;  %v17448_v28 = vld [vmem:[%s24990_s1 + $0x568] ss:$112 sps:$4 sm:$0xff]  }
 0x198   :  { %v20255_v40 = vadd.f32 %v16546_v34, %v19657_v54  ;;  %9042 = vmatpush1.bf16.msra.mxu1 %v17394_v30  ;;  %v8558_v41 = vpop.f32.mrb[3].mxu0  ;;  %9105 = vmatprep.subr.bf16.mxu0 %v17402_v31  ;;  %v17414_v54 = vld [vmem:[%s24990_s1 + $0x2c] ss:$112 sps:$4 sm:$0xff]   ;;  %v17459_v31 = vld [vmem:[%s24990_s1 + $0xe24] ss:$112 sps:$4 sm:$0xff]  }
 0x199   :  { %v20264_v44 = vadd.f32 %v16548_v37, %v19667_v57  ;;  %9052 = vmatprep.subr.bf16.mxu1 %v17408_v32  ;;  %v17409_v57 = vld [vmem:[%s24990_s1 + $0x720] ss:$112 sps:$4 sm:$0xff]   ;;  %v17456_v30 = vld [vmem:[%s24990_s1 + $0x64c] ss:$112 sps:$4 sm:$0xff]   ;;  %v17465_v35 = vld [vmem:[%s24990_s1 + $0xf04] ss:$112 sps:$4 sm:$0xff]  }
 0x19a   :  { %v17457_v32 = vld [vmem:[%s24990_s1 + $0xe20] ss:$112 sps:$4 sm:$0xff]   ;;  %v17462_v34 = vld [vmem:[%s24990_s1 + $0x72c] ss:$112 sps:$4 sm:$0xff]   ;;  %v17460_v38 = vld [vmem:[%s24990_s1 + $0x728] ss:$112 sps:$4 sm:$0xff]  }
 0x19b   :  { %9044 = vmatmul.mubr.bf16.vlgmr.msra.gmra.mrb[12].mxu1 %v19582_v29  ;;  %9106 = vmatpush1.bf16.msra.mxu0 %v17400_v39  ;;  %v17463_v37 = vld [vmem:[%s24990_s1 + $0xf00] ss:$112 sps:$4 sm:$0xff]   ;;  %v17468_v39 = vld [vmem:[%s24990_s1 + $0x80c] ss:$112 sps:$4 sm:$0xff]   ;;  %v17471_v41 = vld [vmem:[%s24990_s1 + $0xfe4] ss:$112 sps:$4 sm:$0xff]  }
 0x19c   :  { %9107 = vmatprep.subr.bf16.mxu0 %v17405_v42  ;;  %9053 = vmatpush1.bf16.msra.mxu1 %v17406_v43  ;;  %v17469_v42 = vld [vmem:[%s24990_s1 + $0xfe0] ss:$112 sps:$4 sm:$0xff]   ;;  %v17466_v43 = vld [vmem:[%s24990_s1 + $0x808] ss:$112 sps:$4 sm:$0xff]  }
 0x19d   :  { %9084 = vmatprep.mubr.bf16.mxu1 %v18891_v1  ;;  %9257 = vmatprep.subr.bf16.mxu1 %v17414_v54  ;;  %v17474_v54 = vld [vmem:[%s24990_s1 + $0x8ec] ss:$112 sps:$4 sm:$0xff]  }
 0x19f   :  { %9108 = vmatpush1.bf16.msra.mxu0 %v17403_v45  ;;  %v17477_v45 = vld [vmem:[%s24990_s1 + $0x10c4] ss:$112 sps:$4 sm:$0xff]  }
 0x1a0   :  { %9109 = vmatprep.subr.bf16.mxu0 %v17411_v46  ;;  %v17475_v46 = vld [vmem:[%s24990_s1 + $0x10c0] ss:$112 sps:$4 sm:$0xff]  }
 0x1a3   :  { %9110 = vmatpush1.bf16.msra.mxu0 %v17409_v57  ;;  %v17472_v57 = vld [vmem:[%s24990_s1 + $0x8e8] ss:$112 sps:$4 sm:$0xff]  }
 0x1a4   :  { %9111 = vmatprep.subr.bf16.mxu0 %v17417_v47  ;;  %v17480_v47 = vld [vmem:[%s24990_s1 + $0x9cc] ss:$112 sps:$4 sm:$0xff]  }
 0x1a6   :  { %v20295_v53 = vpop.f32.mrb[4].mxu1 }
 0x1a7   :  { %15972 = vmatmul.mubr.msk.bf16.vlgmr.msra.gmra.mrb[12].mxu1 %vm8433_vm0, %v18982_v10  ;;  %v20299_v55 = vpop.f32.mrb[5].mxu1  ;;  %9112 = vmatpush1.bf16.msra.mxu0 %v17415_v48  ;;  %v17483_v48 = vld [vmem:[%s24990_s1 + $0x11a4] ss:$112 sps:$4 sm:$0xff]  }
 0x1a8   :  { %9258 = vmatpush1.bf16.msra.mxu1 %v17412_v49  ;;  %v8762_v58 = vpop.f32.mrb[6].mxu1  ;;  %9113 = vmatprep.subr.bf16.mxu0 %v17423_v52  ;;  %v17478_v49 = vld [vmem:[%s24990_s1 + $0x9c8] ss:$112 sps:$4 sm:$0xff]   ;;  %v17486_v52 = vld [vmem:[%s24990_s1 + $0xaac] ss:$112 sps:$4 sm:$0xff]  }
 0x1a9   :  { %v8763_v61 = vpop.f32.mrb[7].mxu1  ;;  %9259 = vmatprep.subr.bf16.mxu1 %v17420_v50  ;;  %9289 = vmatprep.mubr.bf16.mxu1 %v19106_v51  ;;  %v17481_v50 = vld [vmem:[%s24990_s1 + $0x11a0] ss:$112 sps:$4 sm:$0xff]   ;;  %v17484_v58 = vld [vmem:[%s24990_s1 + $0xaa8] ss:$112 sps:$4 sm:$0xff]  }
 0x1aa   :  { %v17495_v61 = vld [vmem:[%s24990_s1 + $0x1364] ss:$112 sps:$4 sm:$0xff]  }
 0x1ab   :  { %9114 = vmatpush1.bf16.msra.mxu0 %v17421_v56  ;;  %v17489_v56 = vld [vmem:[%s24990_s1 + $0x1284] ss:$112 sps:$4 sm:$0xff]  }
 0x1ac   :  { %9260 = vmatpush1.bf16.msra.mxu1 %v17418_v59  ;;  %9115 = vmatprep.subr.bf16.mxu0 %v17429_v60  ;;  %v17487_v59 = vld [vmem:[%s24990_s1 + $0x1280] ss:$112 sps:$4 sm:$0xff]   ;;  %v17492_v60 = vld [vmem:[%s24990_s1 + $0xb8c] ss:$112 sps:$4 sm:$0xff]  }
 0x1ad   :  { %9261 = vmatprep.subr.bf16.mxu1 %v17426_v62  ;;  %v17490_v62 = vld [vmem:[%s24990_s1 + $0xb88] ss:$112 sps:$4 sm:$0xff]  }
 0x1ae   :  { %v20326_v4 = vpop.f32.mrb[8].mxu1 }
 0x1af   :  { %9116 = vmatpush1.bf16.msra.mxu0 %v17427_v63  ;;  %v20331_v6 = vpop.f32.mrb[9].mxu1  ;;  %v17493_v63 = vld [vmem:[%s24990_s1 + $0x1360] ss:$112 sps:$4 sm:$0xff]  }
 0x1b0   :  { %9262 = vmatpush1.bf16.msra.mxu1 %v17424_v0  ;;  %9117 = vmatprep.subr.bf16.mxu0 %v17435_v3  ;;  %v8926_v11 = vpop.f32.mrb[10].mxu1  ;;  %v17501_v0 = vld [vmem:[%s24990_s1 + $0x1444] ss:$112 sps:$4 sm:$0xff]   ;;  %v17496_v3 = vld [vmem:[%s24990_s1 + $0xc68] ss:$112 sps:$4 sm:$0xff]  }
 0x1b1   :  { %9263 = vmatprep.subr.bf16.mxu1 %v17432_v2  ;;  %v8927_v14 = vpop.f32.mrb[11].mxu1  ;;  %v17498_v2 = vld [vmem:[%s24990_s1 + $0xc6c] ss:$112 sps:$4 sm:$0xff]   ;;  %v17502_v11 = vld [vmem:[%s24990_s1 + $0xd48] ss:$112 sps:$4 sm:$0xff]  }
 0x1b2   :  { %v17510_v14 = vld [vmem:[%s24990_s1 + $0xe2c] ss:$112 sps:$4 sm:$0xff]  }
 0x1b3   :  { %9118 = vmatpush1.bf16.msra.mxu0 %v17433_v5  ;;  %v17499_v5 = vld [vmem:[%s24990_s1 + $0x1440] ss:$112 sps:$4 sm:$0xff]  }
 0x1b4   :  { %9264 = vmatpush1.bf16.msra.mxu1 %v17430_v7  ;;  %9119 = vmatprep.subr.bf16.mxu0 %v17441_v8  ;;  %v17504_v7 = vld [vmem:[%s24990_s1 + $0xd4c] ss:$112 sps:$4 sm:$0xff]   ;;  %v17507_v8 = vld [vmem:[%s24990_s1 + $0x1524] ss:$112 sps:$4 sm:$0xff]  }
 0x1b5   :  { %9265 = vmatprep.subr.bf16.mxu1 %v17438_v13  ;;  %v17505_v13 = vld [vmem:[%s24990_s1 + $0x1520] ss:$112 sps:$4 sm:$0xff]  }
 0x1b7   :  { %9120 = vmatpush1.bf16.msra.mxu0 %v17439_v15  ;;  %v17513_v15 = vld [vmem:[%s24990_s1 + $0x1604] ss:$112 sps:$4 sm:$0xff]  }
 0x1b8   :  { %9266 = vmatpush1.bf16.msra.mxu1 %v17436_v16  ;;  %9121 = vmatprep.subr.bf16.mxu0 %v17447_v20  ;;  %v17508_v16 = vld [vmem:[%s24990_s1 + $0xe28] ss:$112 sps:$4 sm:$0xff]   ;;  %v17516_v20 = vld [vmem:[%s24990_s1 + $0xf0c] ss:$112 sps:$4 sm:$0xff]  }
 0x1b9   :  { %9267 = vmatprep.subr.bf16.mxu1 %v17444_v17  ;;  %v17511_v17 = vld [vmem:[%s24990_s1 + $0x1600] ss:$112 sps:$4 sm:$0xff]  }
 0x1bb   :  { %9122 = vmatpush1.bf16.msra.mxu0 %v17445_v22  ;;  %v17519_v22 = vld [vmem:[%s24990_s1 + $0x16e4] ss:$112 sps:$4 sm:$0xff]  }
 0x1bc   :  { %9268 = vmatpush1.bf16.msra.mxu1 %v17442_v23  ;;  %9123 = vmatprep.subr.bf16.mxu0 %v17453_v26  ;;  %v17514_v23 = vld [vmem:[%s24990_s1 + $0xf08] ss:$112 sps:$4 sm:$0xff]   ;;  %v17522_v26 = vld [vmem:[%s24990_s1 + $0xfec] ss:$112 sps:$4 sm:$0xff]  }
 0x1bd   :  { %9269 = vmatprep.subr.bf16.mxu1 %v17450_v25  ;;  %v17517_v25 = vld [vmem:[%s24990_s1 + $0x16e0] ss:$112 sps:$4 sm:$0xff]  }
 0x1bf   :  { %9124 = vmatpush1.bf16.msra.mxu0 %v17451_v27  ;;  %v17525_v27 = vld [vmem:[%s24990_s1 + $0x17c4] ss:$112 sps:$4 sm:$0xff]  }
 0x1c0   :  { %9270 = vmatpush1.bf16.msra.mxu1 %v17448_v28  ;;  %9134 = vmatprep.subr.bf16.mxu0 %v17459_v31  ;;  %v17520_v28 = vld [vmem:[%s24990_s1 + $0xfe8] ss:$112 sps:$4 sm:$0xff]   ;;  %v17528_v31 = vld [vmem:[%s24990_s1 + $0x10cc] ss:$112 sps:$4 sm:$0xff]  }
 0x1c1   :  { %9271 = vmatprep.subr.bf16.mxu1 %v17456_v30  ;;  %v17523_v30 = vld [vmem:[%s24990_s1 + $0x17c0] ss:$112 sps:$4 sm:$0xff]  }
 0x1c2   :  { %9126 = vmatmul.mubr.bf16.vlgmr.msra.gmra.mrb[8].mxu0 %v19170_v9 }
 0x1c3   :  { %9135 = vmatpush1.bf16.msra.mxu0 %v17457_v32  ;;  %9166 = vmatprep.mubr.bf16.mxu0 %v19249_v36  ;;  %v17531_v32 = vld [vmem:[%s24990_s1 + $0x18a4] ss:$112 sps:$4 sm:$0xff]  }
 0x1c4   :  { %9272 = vmatpush1.bf16.msra.mxu1 %v17454_v33  ;;  %9136 = vmatprep.subr.bf16.mxu0 %v17465_v35  ;;  %v17529_v33 = vld [vmem:[%s24990_s1 + $0x18a0] ss:$112 sps:$4 sm:$0xff]   ;;  %v17534_v35 = vld [vmem:[%s24990_s1 + $0x11ac] ss:$112 sps:$4 sm:$0xff]  }
 0x1c5   :  { %9273 = vmatprep.subr.bf16.mxu1 %v17462_v34  ;;  %v17526_v34 = vld [vmem:[%s24990_s1 + $0x10c8] ss:$112 sps:$4 sm:$0xff]  }
 0x1c7   :  { %9137 = vmatpush1.bf16.msra.mxu0 %v17463_v37  ;;  %v17537_v37 = vld [vmem:[%s24990_s1 + $0x1984] ss:$112 sps:$4 sm:$0xff]  }
 0x1c8   :  { %9274 = vmatpush1.bf16.msra.mxu1 %v17460_v38  ;;  %9138 = vmatprep.subr.bf16.mxu0 %v17471_v41  ;;  %v17535_v38 = vld [vmem:[%s24990_s1 + $0x1980] ss:$112 sps:$4 sm:$0xff]   ;;  %v17540_v41 = vld [vmem:[%s24990_s1 + $0x128c] ss:$112 sps:$4 sm:$0xff]  }
 0x1c9   :  { %9275 = vmatprep.subr.bf16.mxu1 %v17468_v39  ;;  %v17532_v39 = vld [vmem:[%s24990_s1 + $0x11a8] ss:$112 sps:$4 sm:$0xff]  }
 0x1cb   :  { %9139 = vmatpush1.bf16.msra.mxu0 %v17469_v42  ;;  %v17543_v42 = vld [vmem:[%s24990_s1 + $0x1a64] ss:$112 sps:$4 sm:$0xff]  }
 0x1cc   :  { %9276 = vmatpush1.bf16.msra.mxu1 %v17466_v43  ;;  %9140 = vmatprep.subr.bf16.mxu0 %v17477_v45  ;;  %v17541_v43 = vld [vmem:[%s24990_s1 + $0x1a60] ss:$112 sps:$4 sm:$0xff]   ;;  %v17546_v45 = vld [vmem:[%s24990_s1 + $0x136c] ss:$112 sps:$4 sm:$0xff]  }
 0x1cd   :  { %9277 = vmatprep.subr.bf16.mxu1 %v17474_v54  ;;  %v17538_v54 = vld [vmem:[%s24990_s1 + $0x1288] ss:$112 sps:$4 sm:$0xff]  }
 0x1cf   :  { %9141 = vmatpush1.bf16.msra.mxu0 %v17475_v46  ;;  %v17549_v46 = vld [vmem:[%s24990_s1 + $0x1b44] ss:$112 sps:$4 sm:$0xff]  }
 0x1d0   :  { %9278 = vmatpush1.bf16.msra.mxu1 %v17472_v57  ;;  %9142 = vmatprep.subr.bf16.mxu0 %v17483_v48  ;;  %v17544_v57 = vld [vmem:[%s24990_s1 + $0x1368] ss:$112 sps:$4 sm:$0xff]   ;;  %v17555_v48 = vld [vmem:[%s24990_s1 + $0x1c24] ss:$112 sps:$4 sm:$0xff]  }
 0x1d1   :  { %9279 = vmatprep.subr.bf16.mxu1 %v17480_v47  ;;  %v17547_v47 = vld [vmem:[%s24990_s1 + $0x1b40] ss:$112 sps:$4 sm:$0xff]  }
 0x1d3   :  { %9143 = vmatpush1.bf16.msra.mxu0 %v17481_v50  ;;  %v17553_v50 = vld [vmem:[%s24990_s1 + $0x1c20] ss:$112 sps:$4 sm:$0xff]  }
 0x1d4   :  { %9280 = vmatpush1.bf16.msra.mxu1 %v17478_v49  ;;  %9144 = vmatprep.subr.bf16.mxu0 %v17489_v56  ;;  %v17552_v49 = vld [vmem:[%s24990_s1 + $0x144c] ss:$112 sps:$4 sm:$0xff]  }
 0x1d5   :  { %9281 = vmatprep.subr.bf16.mxu1 %v17486_v52  ;;  %v17550_v52 = vld [vmem:[%s24990_s1 + $0x1448] ss:$112 sps:$4 sm:$0xff]   ;;  %v17558_v56 = vld [vmem:[%s24990_s1 + $0x152c] ss:$112 sps:$4 sm:$0xff]  }
 0x1d7   :  { %9145 = vmatpush1.bf16.msra.mxu0 %v17487_v59  ;;  %v17559_v59 = vld [vmem:[%s24990_s1 + $0x1d00] ss:$112 sps:$4 sm:$0xff]  }
 0x1d8   :  { %9282 = vmatpush1.bf16.msra.mxu1 %v17484_v58  ;;  %9146 = vmatprep.subr.bf16.mxu0 %v17495_v61  ;;  %v17561_v58 = vld [vmem:[%s24990_s1 + $0x1d04] ss:$112 sps:$4 sm:$0xff]   ;;  %v17564_v61 = vld [vmem:[%s24990_s1 + $0x160c] ss:$112 sps:$4 sm:$0xff]  }
 0x1d9   :  { %9283 = vmatprep.subr.bf16.mxu1 %v17492_v60  ;;  %v17556_v60 = vld [vmem:[%s24990_s1 + $0x1528] ss:$112 sps:$4 sm:$0xff]  }
 0x1db   :  { %9147 = vmatpush1.bf16.msra.mxu0 %v17493_v63  ;;  %v17565_v63 = vld [vmem:[%s24990_s1 + $0x1de0] ss:$112 sps:$4 sm:$0xff]  }
 0x1dc   :  { %9284 = vmatpush1.bf16.msra.mxu1 %v17490_v62  ;;  %9148 = vmatprep.subr.bf16.mxu0 %v17501_v0  ;;  %v17567_v62 = vld [vmem:[%s24990_s1 + $0x1de4] ss:$112 sps:$4 sm:$0xff]   ;;  %v17562_v0 = vld [vmem:[%s24990_s1 + $0x1608] ss:$112 sps:$4 sm:$0xff]  }
 0x1dd   :  { %9285 = vmatprep.subr.bf16.mxu1 %v17498_v2  ;;  %v17570_v2 = vld [vmem:[%s24990_s1 + $0x16ec] ss:$112 sps:$4 sm:$0xff]  }
 0x1df   :  { %9149 = vmatpush1.bf16.msra.mxu0 %v17499_v5  ;;  %v17571_v5 = vld [vmem:[%s24990_s1 + $0x1ec0] ss:$112 sps:$4 sm:$0xff]  }
 0x1e0   :  { %9286 = vmatpush1.bf16.msra.mxu1 %v17496_v3  ;;  %9150 = vmatprep.subr.bf16.mxu0 %v17507_v8  ;;  %v17573_v3 = vld [vmem:[%s24990_s1 + $0x1ec4] ss:$112 sps:$4 sm:$0xff]   ;;  %v17576_v8 = vld [vmem:[%s24990_s1 + $0x17cc] ss:$112 sps:$4 sm:$0xff]  }
 0x1e1   :  { %9287 = vmatprep.subr.bf16.mxu1 %v17504_v7  ;;  %v17568_v7 = vld [vmem:[%s24990_s1 + $0x16e8] ss:$112 sps:$4 sm:$0xff]  }
 0x1e3   :  { %9151 = vmatpush1.bf16.msra.mxu0 %v17505_v13  ;;  %v17577_v13 = vld [vmem:[%s24990_s1 + $0x1fa0] ss:$112 sps:$4 sm:$0xff]  }
 0x1e4   :  { %9288 = vmatpush1.bf16.msra.mxu1 %v17502_v11  ;;  %9152 = vmatprep.subr.bf16.mxu0 %v17513_v15  ;;  %v17579_v11 = vld [vmem:[%s24990_s1 + $0x1fa4] ss:$112 sps:$4 sm:$0xff]   ;;  %v17582_v15 = vld [vmem:[%s24990_s1 + $0x18ac] ss:$112 sps:$4 sm:$0xff]  }
 0x1e5   :  { %9298 = vmatprep.subr.bf16.mxu1 %v17510_v14  ;;  %v17574_v14 = vld [vmem:[%s24990_s1 + $0x17c8] ss:$112 sps:$4 sm:$0xff]  }
 0x1e7   :  { %9290 = vmatmul.mubr.bf16.vlgmr.msra.gmra.mrb[16].mxu1 %v19170_v9  ;;  %9153 = vmatpush1.bf16.msra.mxu0 %v17511_v17  ;;  %v17583_v17 = vld [vmem:[%s24990_s1 + $0x2080] ss:$112 sps:$4 sm:$0xff]  }
 0x1e8   :  { %9299 = vmatpush1.bf16.msra.mxu1 %v17508_v16  ;;  %9154 = vmatprep.subr.bf16.mxu0 %v17519_v22  ;;  %v17585_v16 = vld [vmem:[%s24990_s1 + $0x2084] ss:$112 sps:$4 sm:$0xff]   ;;  %v17588_v22 = vld [vmem:[%s24990_s1 + $0x198c] ss:$112 sps:$4 sm:$0xff]  }
 0x1e9   :  { %9300 = vmatprep.subr.bf16.mxu1 %v17516_v20  ;;  %9330 = vmatprep.mubr.bf16.mxu1 %v19249_v36  ;;  %v17580_v20 = vld [vmem:[%s24990_s1 + $0x18a8] ss:$112 sps:$4 sm:$0xff]  }
 0x1eb   :  { %9155 = vmatpush1.bf16.msra.mxu0 %v17517_v25  ;;  %v17589_v25 = vld [vmem:[%s24990_s1 + $0x2160] ss:$112 sps:$4 sm:$0xff]  }
 0x1ec   :  { %9301 = vmatpush1.bf16.msra.mxu1 %v17514_v23  ;;  %9156 = vmatprep.subr.bf16.mxu0 %v17525_v27  ;;  %v17591_v23 = vld [vmem:[%s24990_s1 + $0x2164] ss:$112 sps:$4 sm:$0xff]   ;;  %v17594_v27 = vld [vmem:[%s24990_s1 + $0x1a6c] ss:$112 sps:$4 sm:$0xff]  }
 0x1ed   :  { %9302 = vmatprep.subr.bf16.mxu1 %v17522_v26  ;;  %v17586_v26 = vld [vmem:[%s24990_s1 + $0x1988] ss:$112 sps:$4 sm:$0xff]  }
 0x1ef   :  { %9157 = vmatpush1.bf16.msra.mxu0 %v17523_v30  ;;  %v17595_v30 = vld [vmem:[%s24990_s1 + $0x2240] ss:$112 sps:$4 sm:$0xff]  }
 0x1f0   :  { %9303 = vmatpush1.bf16.msra.mxu1 %v17520_v28  ;;  %9158 = vmatprep.subr.bf16.mxu0 %v17531_v32  ;;  %v17597_v28 = vld [vmem:[%s24990_s1 + $0x2244] ss:$112 sps:$4 sm:$0xff]   ;;  %v17600_v32 = vld [vmem:[%s24990_s1 + $0x1b4c] ss:$112 sps:$4 sm:$0xff]  }
 0x1f1   :  { %9304 = vmatprep.subr.bf16.mxu1 %v17528_v31  ;;  %v17592_v31 = vld [vmem:[%s24990_s1 + $0x1a68] ss:$112 sps:$4 sm:$0xff]  }
 0x1f3   :  { %9159 = vmatpush1.bf16.msra.mxu0 %v17529_v33  ;;  %v17603_v33 = vld [vmem:[%s24990_s1 + $0x2324] ss:$112 sps:$4 sm:$0xff]  }
 0x1f4   :  { %9305 = vmatpush1.bf16.msra.mxu1 %v17526_v34  ;;  %9160 = vmatprep.subr.bf16.mxu0 %v17537_v37  ;;  %v17601_v34 = vld [vmem:[%s24990_s1 + $0x2320] ss:$112 sps:$4 sm:$0xff]   ;;  %v17606_v37 = vld [vmem:[%s24990_s1 + $0x1c2c] ss:$112 sps:$4 sm:$0xff]  }
 0x1f5   :  { %9306 = vmatprep.subr.bf16.mxu1 %v17534_v35  ;;  %v17598_v35 = vld [vmem:[%s24990_s1 + $0x1b48] ss:$112 sps:$4 sm:$0xff]  }
 0x1f7   :  { %9161 = vmatpush1.bf16.msra.mxu0 %v17535_v38  ;;  %v17609_v38 = vld [vmem:[%s24990_s1 + $0x2404] ss:$112 sps:$4 sm:$0xff]  }
 0x1f8   :  { %9307 = vmatpush1.bf16.msra.mxu1 %v17532_v39  ;;  %9162 = vmatprep.subr.bf16.mxu0 %v17543_v42  ;;  %v17607_v39 = vld [vmem:[%s24990_s1 + $0x2400] ss:$112 sps:$4 sm:$0xff]   ;;  %v17612_v42 = vld [vmem:[%s24990_s1 + $0x1d0c] ss:$112 sps:$4 sm:$0xff]  }
 0x1f9   :  { %9308 = vmatprep.subr.bf16.mxu1 %v17540_v41  ;;  %v17604_v41 = vld [vmem:[%s24990_s1 + $0x1c28] ss:$112 sps:$4 sm:$0xff]  }
 0x1fb   :  { %9163 = vmatpush1.bf16.msra.mxu0 %v17541_v43  ;;  %v17615_v43 = vld [vmem:[%s24990_s1 + $0x24e4] ss:$112 sps:$4 sm:$0xff]  }
 0x1fc   :  { %9309 = vmatpush1.bf16.msra.mxu1 %v17538_v54  ;;  %9164 = vmatprep.subr.bf16.mxu0 %v17549_v46  ;;  %v17613_v54 = vld [vmem:[%s24990_s1 + $0x24e0] ss:$112 sps:$4 sm:$0xff]   ;;  %v17618_v46 = vld [vmem:[%s24990_s1 + $0x1dec] ss:$112 sps:$4 sm:$0xff]  }
 0x1fd   :  { %9310 = vmatprep.subr.bf16.mxu1 %v17546_v45  ;;  %v17610_v45 = vld [vmem:[%s24990_s1 + $0x1d08] ss:$112 sps:$4 sm:$0xff]  }
 0x1ff   :  { %9165 = vmatpush1.bf16.msra.mxu0 %v17547_v47  ;;  %v17619_v47 = vld [vmem:[%s24990_s1 + $0x25c0] ss:$112 sps:$4 sm:$0xff]  }
 0x200   :  { %9311 = vmatpush1.bf16.msra.mxu1 %v17544_v57  ;;  %9175 = vmatprep.subr.bf16.mxu0 %v17555_v48  ;;  %v17621_v57 = vld [vmem:[%s24990_s1 + $0x25c4] ss:$112 sps:$4 sm:$0xff]   ;;  %v17616_v48 = vld [vmem:[%s24990_s1 + $0x1de8] ss:$112 sps:$4 sm:$0xff]  }
 0x201   :  { %9312 = vmatprep.subr.bf16.mxu1 %v17552_v49  ;;  %v17624_v49 = vld [vmem:[%s24990_s1 + $0x1ecc] ss:$112 sps:$4 sm:$0xff]  }
 0x202   :  { %9167 = vmatmul.mubr.bf16.vlgmr.msra.gmra.mrb[8].mxu0 %v19376_v18 }
 0x203   :  { %9176 = vmatpush1.bf16.msra.mxu0 %v17553_v50  ;;  %9207 = vmatprep.mubr.bf16.mxu0 %v19393_v24  ;;  %v17627_v50 = vld [vmem:[%s24990_s1 + $0x26a4] ss:$112 sps:$4 sm:$0xff]  }
 0x204   :  { %9313 = vmatpush1.bf16.msra.mxu1 %v17550_v52  ;;  %9177 = vmatprep.subr.bf16.mxu0 %v17561_v58  ;;  %v17625_v52 = vld [vmem:[%s24990_s1 + $0x26a0] ss:$112 sps:$4 sm:$0xff]   ;;  %v17630_v58 = vld [vmem:[%s24990_s1 + $0x1fac] ss:$112 sps:$4 sm:$0xff]  }
 0x205   :  { %9314 = vmatprep.subr.bf16.mxu1 %v17558_v56  ;;  %v17622_v56 = vld [vmem:[%s24990_s1 + $0x1ec8] ss:$112 sps:$4 sm:$0xff]  }
 0x207   :  { %9178 = vmatpush1.bf16.msra.mxu0 %v17559_v59  ;;  %v17633_v59 = vld [vmem:[%s24990_s1 + $0x2784] ss:$112 sps:$4 sm:$0xff]  }
 0x208   :  { %9315 = vmatpush1.bf16.msra.mxu1 %v17556_v60  ;;  %9179 = vmatprep.subr.bf16.mxu0 %v17567_v62  ;;  %v17631_v60 = vld [vmem:[%s24990_s1 + $0x2780] ss:$112 sps:$4 sm:$0xff]   ;;  %v17636_v62 = vld [vmem:[%s24990_s1 + $0x208c] ss:$112 sps:$4 sm:$0xff]  }
 0x209   :  { %9316 = vmatprep.subr.bf16.mxu1 %v17564_v61  ;;  %v17628_v61 = vld [vmem:[%s24990_s1 + $0x1fa8] ss:$112 sps:$4 sm:$0xff]  }
 0x20b   :  { %9180 = vmatpush1.bf16.msra.mxu0 %v17565_v63  ;;  %v17639_v63 = vld [vmem:[%s24990_s1 + $0x2864] ss:$112 sps:$4 sm:$0xff]  }
 0x20c   :  { %9317 = vmatpush1.bf16.msra.mxu1 %v17562_v0  ;;  %9181 = vmatprep.subr.bf16.mxu0 %v17573_v3  ;;  %v17637_v0 = vld [vmem:[%s24990_s1 + $0x2860] ss:$112 sps:$4 sm:$0xff]   ;;  %v17642_v3 = vld [vmem:[%s24990_s1 + $0x216c] ss:$112 sps:$4 sm:$0xff]  }
 0x20d   :  { %9318 = vmatprep.subr.bf16.mxu1 %v17570_v2  ;;  %v17634_v2 = vld [vmem:[%s24990_s1 + $0x2088] ss:$112 sps:$4 sm:$0xff]  }
 0x20f   :  { %9182 = vmatpush1.bf16.msra.mxu0 %v17571_v5  ;;  %v17645_v5 = vld [vmem:[%s24990_s1 + $0x2944] ss:$112 sps:$4 sm:$0xff]  }
 0x210   :  { %9319 = vmatpush1.bf16.msra.mxu1 %v17568_v7  ;;  %9183 = vmatprep.subr.bf16.mxu0 %v17579_v11  ;;  %v17643_v7 = vld [vmem:[%s24990_s1 + $0x2940] ss:$112 sps:$4 sm:$0xff]   ;;  %v17648_v11 = vld [vmem:[%s24990_s1 + $0x224c] ss:$112 sps:$4 sm:$0xff]  }
 0x211   :  { %9320 = vmatprep.subr.bf16.mxu1 %v17576_v8  ;;  %v17640_v8 = vld [vmem:[%s24990_s1 + $0x2168] ss:$112 sps:$4 sm:$0xff]  }
 0x213   :  { %9184 = vmatpush1.bf16.msra.mxu0 %v17577_v13  ;;  %v17651_v13 = vld [vmem:[%s24990_s1 + $0x2a24] ss:$112 sps:$4 sm:$0xff]  }
 0x214   :  { %9321 = vmatpush1.bf16.msra.mxu1 %v17574_v14  ;;  %9185 = vmatprep.subr.bf16.mxu0 %v17585_v16  ;;  %v17649_v14 = vld [vmem:[%s24990_s1 + $0x2a20] ss:$112 sps:$4 sm:$0xff]   ;;  %v17654_v16 = vld [vmem:[%s24990_s1 + $0x232c] ss:$112 sps:$4 sm:$0xff]  }
 0x215   :  { %9322 = vmatprep.subr.bf16.mxu1 %v17582_v15  ;;  %v17646_v15 = vld [vmem:[%s24990_s1 + $0x2248] ss:$112 sps:$4 sm:$0xff]  }
 0x217   :  { %9186 = vmatpush1.bf16.msra.mxu0 %v17583_v17  ;;  %v17663_v17 = vld [vmem:[%s24990_s1 + $0x34] ss:$112 sps:$4 sm:$0xff]  }
 0x218   :  { %9323 = vmatpush1.bf16.msra.mxu1 %v17580_v20  ;;  %9187 = vmatprep.subr.bf16.mxu0 %v17591_v23  ;;  %v17652_v20 = vld [vmem:[%s24990_s1 + $0x2328] ss:$112 sps:$4 sm:$0xff]  }
 0x219   :  { %9324 = vmatprep.subr.bf16.mxu1 %v17588_v22  ;;  %v17657_v22 = vld [vmem:[%s24990_s1 + $0x240c] ss:$112 sps:$4 sm:$0xff]   ;;  %v17655_v23 = vld [vmem:[%s24990_s1 + $0x2408] ss:$112 sps:$4 sm:$0xff]  }
 0x21b   :  { %9188 = vmatpush1.bf16.msra.mxu0 %v17589_v25  ;;  %v17660_v25 = vld [vmem:[%s24990_s1 + $0x24ec] ss:$112 sps:$4 sm:$0xff]  }
 0x21c   :  { %9325 = vmatpush1.bf16.msra.mxu1 %v17586_v26  ;;  %9189 = vmatprep.subr.bf16.mxu0 %v17597_v28  ;;  %v17661_v26 = vld [vmem:[%s24990_s1 + $0x30] ss:$112 sps:$4 sm:$0xff]   ;;  %v17666_v28 = vld [vmem:[%s24990_s1 + $0x25cc] ss:$112 sps:$4 sm:$0xff]  }
 0x21d   :  { %9326 = vmatprep.subr.bf16.mxu1 %v17594_v27  ;;  %v17658_v27 = vld [vmem:[%s24990_s1 + $0x24e8] ss:$112 sps:$4 sm:$0xff]  }
 0x21f   :  { %9190 = vmatpush1.bf16.msra.mxu0 %v17595_v30  ;;  %v17669_v30 = vld [vmem:[%s24990_s1 + $0x114] ss:$112 sps:$4 sm:$0xff]  }
 0x220   :  { %9327 = vmatpush1.bf16.msra.mxu1 %v17592_v31  ;;  %9191 = vmatprep.subr.bf16.mxu0 %v17603_v33  ;;  %v20811_v31 = vsub.s32 4, %v20202_v12  ;;  %v20817_v33 = vsub.s32 5, %v20202_v12 }
 0x221   :  { %9328 = vmatprep.subr.bf16.mxu1 %v17600_v32  ;;  %v17667_v32 = vld [vmem:[%s24990_s1 + $0x110] ss:$112 sps:$4 sm:$0xff]  }
 0x223   :  { %9192 = vmatpush1.bf16.msra.mxu0 %v17601_v34  ;;  %v17664_v34 = vld [vmem:[%s24990_s1 + $0x25c8] ss:$112 sps:$4 sm:$0xff]  }
 0x224   :  { %9329 = vmatpush1.bf16.msra.mxu1 %v17598_v35  ;;  %9193 = vmatprep.subr.bf16.mxu0 %v17609_v38  ;;  %v17672_v35 = vld [vmem:[%s24990_s1 + $0x26ac] ss:$112 sps:$4 sm:$0xff]   ;;  %v20832_v38 = vld [vmem:[%s24992_s2] sm:$0xff] }
 0x225   :  { %9339 = vmatprep.subr.bf16.mxu1 %v17606_v37  ;;  %v17675_v37 = vld [vmem:[%s24990_s1 + $0x1f4] ss:$112 sps:$4 sm:$0xff]  }
 0x227   :  { %9331 = vmatmul.mubr.bf16.vlgmr.msra.gmra.mrb[16].mxu1 %v19376_v18  ;;  %9194 = vmatpush1.bf16.msra.mxu0 %v17607_v39  ;;  %v1452_v39 = vrot.slane %v20832_v38, %v20811_v31 }
 0x228   :  { %9340 = vmatpush1.bf16.msra.mxu1 %v17604_v41  ;;  %9195 = vmatprep.subr.bf16.mxu0 %v17615_v43  ;;  %v17673_v41 = vld [vmem:[%s24990_s1 + $0x1f0] ss:$112 sps:$4 sm:$0xff]   ;;  %v17670_v43 = vld [vmem:[%s24990_s1 + $0x26a8] ss:$112 sps:$4 sm:$0xff]  }
 0x229   :  { %9341 = vmatprep.subr.bf16.mxu1 %v17612_v42  ;;  %9371 = vmatprep.mubr.bf16.mxu1 %v19393_v24  ;;  %v1456_v42 = vrot.slane %v20832_v38, %v20817_v33 }
 0x22b   :  { %9196 = vmatpush1.bf16.msra.mxu0 %v17613_v54  ;;  %v17678_v54 = vld [vmem:[%s24990_s1 + $0x278c] ss:$112 sps:$4 sm:$0xff]  }
 0x22c   :  { %9342 = vmatpush1.bf16.msra.mxu1 %v17610_v45  ;;  %9197 = vmatprep.subr.bf16.mxu0 %v17621_v57  ;;  %v17681_v45 = vld [vmem:[%s24990_s1 + $0x2d4] ss:$112 sps:$4 sm:$0xff]  }
 0x22d   :  { %9343 = vmatprep.subr.bf16.mxu1 %v17618_v46 }
 0x22f   :  { %9198 = vmatpush1.bf16.msra.mxu0 %v17619_v47 }
 0x230   :  { %9344 = vmatpush1.bf16.msra.mxu1 %v17616_v48  ;;  %9199 = vmatprep.subr.bf16.mxu0 %v17627_v50  ;;  %v17679_v50 = vld [vmem:[%s24990_s1 + $0x2d0] ss:$112 sps:$4 sm:$0xff]  }
 0x231   :  { %9345 = vmatprep.subr.bf16.mxu1 %v17624_v49 }
 0x233   :  { %9200 = vmatpush1.bf16.msra.mxu0 %v17625_v52 }
 0x234   :  { %9346 = vmatpush1.bf16.msra.mxu1 %v17622_v56  ;;  %9201 = vmatprep.subr.bf16.mxu0 %v17633_v59  ;;  %v17687_v59 = vld [vmem:[%s24990_s1 + $0x3b4] ss:$112 sps:$4 sm:$0xff]  }
 0x235   :  { %9347 = vmatprep.subr.bf16.mxu1 %v17630_v58  ;;  %v17676_v58 = vld [vmem:[%s24990_s1 + $0x2788] ss:$112 sps:$4 sm:$0xff]  }
 0x237   :  { %9202 = vmatpush1.bf16.msra.mxu0 %v17631_v60 }
 0x238   :  { %9348 = vmatpush1.bf16.msra.mxu1 %v17628_v61  ;;  %9203 = vmatprep.subr.bf16.mxu0 %v17639_v63  ;;  %v17685_v61 = vld [vmem:[%s24990_s1 + $0x3b0] ss:$112 sps:$4 sm:$0xff]   ;;  %v17693_v63 = vld [vmem:[%s24990_s1 + $0x494] ss:$112 sps:$4 sm:$0xff]  }
 0x239   :  { %9349 = vmatprep.subr.bf16.mxu1 %v17636_v62  ;;  %v17682_v62 = vld [vmem:[%s24990_s1 + $0x2868] ss:$112 sps:$4 sm:$0xff]  }
 0x23b   :  { %9204 = vmatpush1.bf16.msra.mxu0 %v17637_v0  ;;  %v17691_v0 = vld [vmem:[%s24990_s1 + $0x490] ss:$112 sps:$4 sm:$0xff]  }
 0x23c   :  { %9350 = vmatpush1.bf16.msra.mxu1 %v17634_v2  ;;  %9205 = vmatprep.subr.bf16.mxu0 %v17645_v5  ;;  %v17688_v2 = vld [vmem:[%s24990_s1 + $0x2948] ss:$112 sps:$4 sm:$0xff]   ;;  %v17702_v5 = vld [vmem:[%s24990_s1 + $0x2a2c] ss:$112 sps:$4 sm:$0xff]  }
 0x23d   :  { %9351 = vmatprep.subr.bf16.mxu1 %v17642_v3  ;;  %v17696_v3 = vld [vmem:[%s24990_s1 + $0x574] ss:$112 sps:$4 sm:$0xff]  }
 0x23f   :  { %9206 = vmatpush1.bf16.msra.mxu0 %v17643_v7  ;;  %v17694_v7 = vld [vmem:[%s24990_s1 + $0x570] ss:$112 sps:$4 sm:$0xff]  }
 0x240   :  { %9352 = vmatpush1.bf16.msra.mxu1 %v17640_v8  ;;  %9216 = vmatprep.subr.bf16.mxu0 %v17651_v13  ;;  %v17699_v8 = vld [vmem:[%s24990_s1 + $0x654] ss:$112 sps:$4 sm:$0xff]   ;;  %v17708_v13 = vld [vmem:[%s24990_s1 + $0x3c] ss:$112 sps:$4 sm:$0xff]  }
 0x241   :  { %9353 = vmatprep.subr.bf16.mxu1 %v17648_v11  ;;  %v17700_v11 = vld [vmem:[%s24990_s1 + $0x2a28] ss:$112 sps:$4 sm:$0xff]  }
 0x242   :  { %9208 = vmatmul.mubr.bf16.vlgmr.msra.gmra.mrb[8].mxu0 %v19582_v29 }
 0x243   :  { %9217 = vmatpush1.bf16.msra.mxu0 %v17649_v14  ;;  %9248 = vmatprep.mubr.bf16.mxu0 %v18891_v1  ;;  %v17697_v14 = vld [vmem:[%s24990_s1 + $0x650] ss:$112 sps:$4 sm:$0xff]  }
 0x244   :  { %9354 = vmatpush1.bf16.msra.mxu1 %v17646_v15  ;;  %9421 = vmatprep.subr.bf16.mxu0 %v17663_v17  ;;  %v17705_v15 = vld [vmem:[%s24990_s1 + $0x734] ss:$112 sps:$4 sm:$0xff]  }
 0x245   :  { %9355 = vmatprep.subr.bf16.mxu1 %v17654_v16  ;;  %v17703_v16 = vld [vmem:[%s24990_s1 + $0x730] ss:$112 sps:$4 sm:$0xff]   ;;  %v17711_v17 = vld [vmem:[%s24990_s1 + $0x814] ss:$112 sps:$4 sm:$0xff]  }
 0x248   :  { %9356 = vmatpush1.bf16.msra.mxu1 %v17652_v20  ;;  %v17709_v20 = vld [vmem:[%s24990_s1 + $0x810] ss:$112 sps:$4 sm:$0xff]  }
 0x249   :  { %9357 = vmatprep.subr.bf16.mxu1 %v17657_v22  ;;  %v17706_v22 = vld [vmem:[%s24990_s1 + $0x38] ss:$112 sps:$4 sm:$0xff]  }
 0x24c   :  { %9358 = vmatpush1.bf16.msra.mxu1 %v17655_v23  ;;  %v17714_v23 = vld [vmem:[%s24990_s1 + $0x11c] ss:$112 sps:$4 sm:$0xff]  }
 0x24d   :  { %9359 = vmatprep.subr.bf16.mxu1 %v17660_v25  ;;  %v17717_v25 = vld [vmem:[%s24990_s1 + $0x8f4] ss:$112 sps:$4 sm:$0xff]  }
 0x24e   :  { %15973 = vmatmul.mubr.msk.bf16.vlgmr.msra.gmra.mrb[8].mxu0 %vm8433_vm0, %v18982_v10 }
 0x24f   :  { %9422 = vmatpush1.bf16.msra.mxu0 %v17661_v26  ;;  %9453 = vmatprep.mubr.bf16.mxu0 %v19106_v51  ;;  %v17712_v26 = vld [vmem:[%s24990_s1 + $0x118] ss:$112 sps:$4 sm:$0xff]  }
 0x250   :  { %9360 = vmatpush1.bf16.msra.mxu1 %v17658_v27  ;;  %9423 = vmatprep.subr.bf16.mxu0 %v17669_v30  ;;  %v17715_v27 = vld [vmem:[%s24990_s1 + $0x8f0] ss:$112 sps:$4 sm:$0xff]   ;;  %v20942_v30 = vsub.s32 7, %v20202_v12 }
 0x251   :  { %9361 = vmatprep.subr.bf16.mxu1 %v17666_v28  ;;  %v17720_v28 = vld [vmem:[%s24990_s1 + $0x1fc] ss:$112 sps:$4 sm:$0xff]  }
 0x253   :  { %9424 = vmatpush1.bf16.msra.mxu0 %v17667_v32  ;;  %v17723_v32 = vld [vmem:[%s24990_s1 + $0x9d4] ss:$112 sps:$4 sm:$0xff]  }
 0x254   :  { %9362 = vmatpush1.bf16.msra.mxu1 %v17664_v34  ;;  %9425 = vmatprep.subr.bf16.mxu0 %v17675_v37  ;;  %v17721_v34 = vld [vmem:[%s24990_s1 + $0x9d0] ss:$112 sps:$4 sm:$0xff]   ;;  %v1464_v37 = vrot.slane %v20832_v38, %v20942_v30 }
 0x255   :  { %9363 = vmatprep.subr.bf16.mxu1 %v17672_v35  ;;  %v8881_v46 = vpop.f32.mrb[4].mxu0  ;;  %v17718_v35 = vld [vmem:[%s24990_s1 + $0x1f8] ss:$112 sps:$4 sm:$0xff]  }
 0x256   :  { %v16552_v57 = vadd.f32 %v8881_v46, %v1452_v39  ;;  %v8883_v47 = vpop.f32.mrb[5].mxu0  ;;  %v17726_v39 = vld [vmem:[%s24990_s1 + $0x2dc] ss:$112 sps:$4 sm:$0xff]   ;;  %v17724_v46 = vld [vmem:[%s24990_s1 + $0x2d8] ss:$112 sps:$4 sm:$0xff]  }
 0x257   :  { %v16554_v48 = vadd.f32 %v8883_v47, %v1456_v42  ;;  %9426 = vmatpush1.bf16.msra.mxu0 %v17673_v41  ;;  %v8885_v49 = vpop.f32.mrb[6].mxu0  ;;  %v17729_v41 = vld [vmem:[%s24990_s1 + $0xab4] ss:$112 sps:$4 sm:$0xff]  }
 0x258   :  { %v20854_v52 = vadd.f32 %v16552_v57, %v20326_v4  ;;  %9364 = vmatpush1.bf16.msra.mxu1 %v17670_v43  ;;  %v8886_v56 = vpop.f32.mrb[7].mxu0  ;;  %9427 = vmatprep.subr.bf16.mxu0 %v17681_v45  ;;  %v17684_v4 = vld [vmem:[%s24990_s1 + $0x286c] ss:$112 sps:$4 sm:$0xff]   ;;  %v17735_v57 = vld [vmem:[%s24990_s1 + $0xb94] ss:$112 sps:$4 sm:$0xff]   ;;  %v10733_v49 = vmax.f32 %v20255_v40, 0.0 }
 0x259   :  { %v20863_v60 = vadd.f32 %v16554_v48, %v20331_v6  ;;  %9365 = vmatprep.subr.bf16.mxu1 %v17678_v54  ;;  %v17690_v6 = vld [vmem:[%s24990_s1 + $0x294c] ss:$112 sps:$4 sm:$0xff]   ;;  %v17727_v54 = vld [vmem:[%s24990_s1 + $0xab0] ss:$112 sps:$4 sm:$0xff]   ;;  %v17741_v40 = vld [vmem:[%s24990_s1 + $0xc74] ss:$112 sps:$4 sm:$0xff]  }
 0x25a   :  { %v17732_v48 = vld [vmem:[%s24990_s1 + $0x3bc] ss:$112 sps:$4 sm:$0xff]   ;;  %v17733_v56 = vld [vmem:[%s24990_s1 + $0xb90] ss:$112 sps:$4 sm:$0xff]  }
 0x25b   :  { %9428 = vmatpush1.bf16.msra.mxu0 %v17679_v50 }
 0x25c   :  { %9366 = vmatpush1.bf16.msra.mxu1 %v17676_v58  ;;  %9429 = vmatprep.subr.bf16.mxu0 %v17687_v59  ;;  %v17730_v59 = vld [vmem:[%s24990_s1 + $0x3b8] ss:$112 sps:$4 sm:$0xff]  }
 0x25d   :  { %9367 = vmatprep.subr.bf16.mxu1 %v17684_v4  ;;  %v17738_v4 = vld [vmem:[%s24990_s1 + $0x49c] ss:$112 sps:$4 sm:$0xff]  }
 0x25f   :  { %9430 = vmatpush1.bf16.msra.mxu0 %v17685_v61  ;;  %v17739_v61 = vld [vmem:[%s24990_s1 + $0xc70] ss:$112 sps:$4 sm:$0xff]  }
 0x260   :  { %9368 = vmatpush1.bf16.msra.mxu1 %v17682_v62  ;;  %9431 = vmatprep.subr.bf16.mxu0 %v17693_v63  ;;  %v17736_v62 = vld [vmem:[%s24990_s1 + $0x498] ss:$112 sps:$4 sm:$0xff]   ;;  %v17747_v63 = vld [vmem:[%s24990_s1 + $0xd54] ss:$112 sps:$4 sm:$0xff]  }
 0x261   :  { %9369 = vmatprep.subr.bf16.mxu1 %v17690_v6  ;;  %v17744_v6 = vld [vmem:[%s24990_s1 + $0x57c] ss:$112 sps:$4 sm:$0xff]  }
 0x263   :  { %9432 = vmatpush1.bf16.msra.mxu0 %v17691_v0  ;;  %v17745_v0 = vld [vmem:[%s24990_s1 + $0xd50] ss:$112 sps:$4 sm:$0xff]  }
 0x264   :  { %9370 = vmatpush1.bf16.msra.mxu1 %v17688_v2  ;;  %9433 = vmatprep.subr.bf16.mxu0 %v17696_v3  ;;  %v17742_v2 = vld [vmem:[%s24990_s1 + $0x578] ss:$112 sps:$4 sm:$0xff]   ;;  %v17750_v3 = vld [vmem:[%s24990_s1 + $0x65c] ss:$112 sps:$4 sm:$0xff]  }
 0x265   :  { %9380 = vmatprep.subr.bf16.mxu1 %v17702_v5  ;;  %v17753_v5 = vld [vmem:[%s24990_s1 + $0xe34] ss:$112 sps:$4 sm:$0xff]  }
 0x267   :  { %9372 = vmatmul.mubr.bf16.vlgmr.msra.gmra.mrb[16].mxu1 %v19582_v29  ;;  %9434 = vmatpush1.bf16.msra.mxu0 %v17694_v7  ;;  %v17751_v7 = vld [vmem:[%s24990_s1 + $0xe30] ss:$112 sps:$4 sm:$0xff]  }
 0x268   :  { %9435 = vmatprep.subr.bf16.mxu0 %v17699_v8  ;;  %9381 = vmatpush1.bf16.msra.mxu1 %v17700_v11  ;;  %v17748_v8 = vld [vmem:[%s24990_s1 + $0x658] ss:$112 sps:$4 sm:$0xff]   ;;  %v17756_v11 = vld [vmem:[%s24990_s1 + $0x73c] ss:$112 sps:$4 sm:$0xff]  }
 0x269   :  { %9412 = vmatprep.mubr.bf16.mxu1 %v18891_v1  ;;  %9585 = vmatprep.subr.bf16.mxu1 %v17708_v13  ;;  %v17759_v13 = vld [vmem:[%s24990_s1 + $0xf14] ss:$112 sps:$4 sm:$0xff]  }
 0x26b   :  { %9436 = vmatpush1.bf16.msra.mxu0 %v17697_v14  ;;  %v17757_v14 = vld [vmem:[%s24990_s1 + $0xf10] ss:$112 sps:$4 sm:$0xff]  }
 0x26c   :  { %9437 = vmatprep.subr.bf16.mxu0 %v17705_v15  ;;  %v17754_v15 = vld [vmem:[%s24990_s1 + $0x738] ss:$112 sps:$4 sm:$0xff]  }
 0x26f   :  { %9438 = vmatpush1.bf16.msra.mxu0 %v17703_v16  ;;  %v17762_v16 = vld [vmem:[%s24990_s1 + $0x81c] ss:$112 sps:$4 sm:$0xff]  }
 0x270   :  { %9439 = vmatprep.subr.bf16.mxu0 %v17711_v17  ;;  %v17765_v17 = vld [vmem:[%s24990_s1 + $0xff4] ss:$112 sps:$4 sm:$0xff]  }
 0x273   :  { %15974 = vmatmul.mubr.msk.bf16.vlgmr.msra.gmra.mrb[16].mxu1 %vm8433_vm0, %v18982_v10  ;;  %9440 = vmatpush1.bf16.msra.mxu0 %v17709_v20  ;;  %v17763_v20 = vld [vmem:[%s24990_s1 + $0xff0] ss:$112 sps:$4 sm:$0xff]  }
 0x274   :  { %9586 = vmatpush1.bf16.msra.mxu1 %v17706_v22  ;;  %9441 = vmatprep.subr.bf16.mxu0 %v17717_v25  ;;  %v17760_v22 = vld [vmem:[%s24990_s1 + $0x818] ss:$112 sps:$4 sm:$0xff]   ;;  %v17771_v25 = vld [vmem:[%s24990_s1 + $0x10d4] ss:$112 sps:$4 sm:$0xff]  }
 0x275   :  { %9587 = vmatprep.subr.bf16.mxu1 %v17714_v23  ;;  %9617 = vmatprep.mubr.bf16.mxu1 %v19106_v51  ;;  %v17768_v23 = vld [vmem:[%s24990_s1 + $0x8fc] ss:$112 sps:$4 sm:$0xff]  }
 0x277   :  { %9442 = vmatpush1.bf16.msra.mxu0 %v17715_v27  ;;  %v17766_v27 = vld [vmem:[%s24990_s1 + $0x8f8] ss:$112 sps:$4 sm:$0xff]  }
 0x278   :  { %9588 = vmatpush1.bf16.msra.mxu1 %v17712_v26  ;;  %9443 = vmatprep.subr.bf16.mxu0 %v17723_v32  ;;  %v17769_v26 = vld [vmem:[%s24990_s1 + $0x10d0] ss:$112 sps:$4 sm:$0xff]   ;;  %v17777_v32 = vld [vmem:[%s24990_s1 + $0x11b4] ss:$112 sps:$4 sm:$0xff]  }
 0x279   :  { %9589 = vmatprep.subr.bf16.mxu1 %v17720_v28  ;;  %v17774_v28 = vld [vmem:[%s24990_s1 + $0x9dc] ss:$112 sps:$4 sm:$0xff]  }
 0x27a   :  { %v20962_v42 = vpop.f32.mrb[12].mxu1 }
 0x27b   :  { %v9088_v43 = vpop.f32.mrb[13].mxu1  ;;  %9444 = vmatpush1.bf16.msra.mxu0 %v17721_v34  ;;  %v17772_v34 = vld [vmem:[%s24990_s1 + $0x9d8] ss:$112 sps:$4 sm:$0xff]  }
 0x27c   :  { %9590 = vmatpush1.bf16.msra.mxu1 %v17718_v35  ;;  %v16557_v38 = vadd.f32 %v9088_v43, %v1464_v37  ;;  %v9090_v45 = vpop.f32.mrb[14].mxu1  ;;  %9445 = vmatprep.subr.bf16.mxu0 %v17729_v41  ;;  %v17775_v35 = vld [vmem:[%s24990_s1 + $0x11b0] ss:$112 sps:$4 sm:$0xff]   ;;  %v17780_v37 = vld [vmem:[%s24990_s1 + $0xabc] ss:$112 sps:$4 sm:$0xff]  }
 0x27d   :  { %v9091_v47 = vpop.f32.mrb[15].mxu1  ;;  %9591 = vmatprep.subr.bf16.mxu1 %v17726_v39  ;;  %v17783_v39 = vld [vmem:[%s24990_s1 + $0x1294] ss:$112 sps:$4 sm:$0xff]   ;;  %v17778_v41 = vld [vmem:[%s24990_s1 + $0xab8] ss:$112 sps:$4 sm:$0xff]  }
 0x27e   :  { %v10740_v50 = vmax.f32 %v16557_v38, 0.0  ;;  %v17781_v43 = vld [vmem:[%s24990_s1 + $0x1290] ss:$112 sps:$4 sm:$0xff]   ;;  %v17789_v38 = vld [vmem:[%s24990_s1 + $0x1374] ss:$112 sps:$4 sm:$0xff]  }
 0x27f   :  { %9446 = vmatpush1.bf16.msra.mxu0 %v17727_v54  ;;  %v17786_v54 = vld [vmem:[%s24990_s1 + $0xb9c] ss:$112 sps:$4 sm:$0xff]   ;;  %v17784_v45 = vld [vmem:[%s24990_s1 + $0xb98] ss:$112 sps:$4 sm:$0xff]  }
 0x280   :  { %v20980_v58 = vmax.f32 %v10733_v49, %v10740_v50  ;;  %9592 = vmatpush1.bf16.msra.mxu1 %v17724_v46  ;;  %9447 = vmatprep.subr.bf16.mxu0 %v17735_v57  ;;  %v17787_v46 = vld [vmem:[%s24990_s1 + $0x1370] ss:$112 sps:$4 sm:$0xff]   ;;  %v17795_v57 = vld [vmem:[%s24990_s1 + $0x1454] ss:$112 sps:$4 sm:$0xff]   ;;  %v17792_v47 = vld [vmem:[%s24990_s1 + $0xc7c] ss:$112 sps:$4 sm:$0xff]  }
 0x281   :  { %9593 = vmatprep.subr.bf16.mxu1 %v17732_v48  ;;  %v17790_v48 = vld [vmem:[%s24990_s1 + $0xc78] ss:$112 sps:$4 sm:$0xff]   ;;  %v17793_v49 = vld [vmem:[%s24990_s1 + $0x1450] ss:$112 sps:$4 sm:$0xff]   ;;  %v17798_v50 = vld [vmem:[%s24990_s1 + $0xd5c] ss:$112 sps:$4 sm:$0xff]  }
 0x283   :  { %9448 = vmatpush1.bf16.msra.mxu0 %v17733_v56  ;;  %v17801_v56 = vld [vmem:[%s24990_s1 + $0x1534] ss:$112 sps:$4 sm:$0xff]  }
 0x284   :  { %9594 = vmatpush1.bf16.msra.mxu1 %v17730_v59  ;;  %9449 = vmatprep.subr.bf16.mxu0 %v17741_v40  ;;  %v17796_v59 = vld [vmem:[%s24990_s1 + $0xd58] ss:$112 sps:$4 sm:$0xff]   ;;  %v17804_v40 = vld [vmem:[%s24990_s1 + $0xe3c] ss:$112 sps:$4 sm:$0xff]  }
 0x285   :  { %9595 = vmatprep.subr.bf16.mxu1 %v17738_v4  ;;  %v17799_v4 = vld [vmem:[%s24990_s1 + $0x1530] ss:$112 sps:$4 sm:$0xff]  }
 0x287   :  { %9450 = vmatpush1.bf16.msra.mxu0 %v17739_v61  ;;  %v17807_v61 = vld [vmem:[%s24990_s1 + $0x1614] ss:$112 sps:$4 sm:$0xff]  }
 0x288   :  { %9596 = vmatpush1.bf16.msra.mxu1 %v17736_v62  ;;  %9451 = vmatprep.subr.bf16.mxu0 %v17747_v63  ;;  %v17802_v62 = vld [vmem:[%s24990_s1 + $0xe38] ss:$112 sps:$4 sm:$0xff]   ;;  %v17810_v63 = vld [vmem:[%s24990_s1 + $0xf1c] ss:$112 sps:$4 sm:$0xff]  }
 0x289   :  { %9597 = vmatprep.subr.bf16.mxu1 %v17744_v6  ;;  %v17805_v6 = vld [vmem:[%s24990_s1 + $0x1610] ss:$112 sps:$4 sm:$0xff]  }
 0x28b   :  { %9452 = vmatpush1.bf16.msra.mxu0 %v17745_v0  ;;  %v17813_v0 = vld [vmem:[%s24990_s1 + $0x16f4] ss:$112 sps:$4 sm:$0xff]  }
 0x28c   :  { %9598 = vmatpush1.bf16.msra.mxu1 %v17742_v2  ;;  %9462 = vmatprep.subr.bf16.mxu0 %v17753_v5  ;;  %v17808_v2 = vld [vmem:[%s24990_s1 + $0xf18] ss:$112 sps:$4 sm:$0xff]   ;;  %v17816_v5 = vld [vmem:[%s24990_s1 + $0xffc] ss:$112 sps:$4 sm:$0xff]  }
 0x28d   :  { %9599 = vmatprep.subr.bf16.mxu1 %v17750_v3  ;;  %v17811_v3 = vld [vmem:[%s24990_s1 + $0x16f0] ss:$112 sps:$4 sm:$0xff]  }
 0x28e   :  { %9454 = vmatmul.mubr.bf16.vlgmr.msra.gmra.mrb[12].mxu0 %v19170_v9 }
 0x28f   :  { %9463 = vmatpush1.bf16.msra.mxu0 %v17751_v7  ;;  %9494 = vmatprep.mubr.bf16.mxu0 %v19249_v36  ;;  %v17819_v7 = vld [vmem:[%s24990_s1 + $0x17d4] ss:$112 sps:$4 sm:$0xff]  }
 0x290   :  { %9600 = vmatpush1.bf16.msra.mxu1 %v17748_v8  ;;  %9464 = vmatprep.subr.bf16.mxu0 %v17759_v13  ;;  %v17814_v8 = vld [vmem:[%s24990_s1 + $0xff8] ss:$112 sps:$4 sm:$0xff]   ;;  %v17822_v13 = vld [vmem:[%s24990_s1 + $0x10dc] ss:$112 sps:$4 sm:$0xff]  }
 0x291   :  { %9601 = vmatprep.subr.bf16.mxu1 %v17756_v11  ;;  %v17817_v11 = vld [vmem:[%s24990_s1 + $0x17d0] ss:$112 sps:$4 sm:$0xff]  }
 0x293   :  { %9465 = vmatpush1.bf16.msra.mxu0 %v17757_v14  ;;  %v17825_v14 = vld [vmem:[%s24990_s1 + $0x18b4] ss:$112 sps:$4 sm:$0xff]  }
 0x294   :  { %9602 = vmatpush1.bf16.msra.mxu1 %v17754_v15  ;;  %9466 = vmatprep.subr.bf16.mxu0 %v17765_v17  ;;  %v17823_v15 = vld [vmem:[%s24990_s1 + $0x18b0] ss:$112 sps:$4 sm:$0xff]   ;;  %v17828_v17 = vld [vmem:[%s24990_s1 + $0x11bc] ss:$112 sps:$4 sm:$0xff]  }
 0x295   :  { %9603 = vmatprep.subr.bf16.mxu1 %v17762_v16  ;;  %v17820_v16 = vld [vmem:[%s24990_s1 + $0x10d8] ss:$112 sps:$4 sm:$0xff]  }
 0x297   :  { %9467 = vmatpush1.bf16.msra.mxu0 %v17763_v20  ;;  %v17831_v20 = vld [vmem:[%s24990_s1 + $0x1994] ss:$112 sps:$4 sm:$0xff]  }
 0x298   :  { %9604 = vmatpush1.bf16.msra.mxu1 %v17760_v22  ;;  %9468 = vmatprep.subr.bf16.mxu0 %v17771_v25  ;;  %v17829_v22 = vld [vmem:[%s24990_s1 + $0x1990] ss:$112 sps:$4 sm:$0xff]   ;;  %v17834_v25 = vld [vmem:[%s24990_s1 + $0x129c] ss:$112 sps:$4 sm:$0xff]  }
 0x299   :  { %9605 = vmatprep.subr.bf16.mxu1 %v17768_v23  ;;  %v17826_v23 = vld [vmem:[%s24990_s1 + $0x11b8] ss:$112 sps:$4 sm:$0xff]  }
 0x29b   :  { %9469 = vmatpush1.bf16.msra.mxu0 %v17769_v26  ;;  %v17837_v26 = vld [vmem:[%s24990_s1 + $0x1a74] ss:$112 sps:$4 sm:$0xff]  }
 0x29c   :  { %9606 = vmatpush1.bf16.msra.mxu1 %v17766_v27  ;;  %9470 = vmatprep.subr.bf16.mxu0 %v17777_v32  ;;  %v17835_v27 = vld [vmem:[%s24990_s1 + $0x1a70] ss:$112 sps:$4 sm:$0xff]   ;;  %v17840_v32 = vld [vmem:[%s24990_s1 + $0x137c] ss:$112 sps:$4 sm:$0xff]  }
 0x29d   :  { %9607 = vmatprep.subr.bf16.mxu1 %v17774_v28  ;;  %v17832_v28 = vld [vmem:[%s24990_s1 + $0x1298] ss:$112 sps:$4 sm:$0xff]  }
 0x29f   :  { %9471 = vmatpush1.bf16.msra.mxu0 %v17775_v35  ;;  %v17838_v35 = vld [vmem:[%s24990_s1 + $0x1378] ss:$112 sps:$4 sm:$0xff]  }
 0x2a0   :  { %9608 = vmatpush1.bf16.msra.mxu1 %v17772_v34  ;;  %9472 = vmatprep.subr.bf16.mxu0 %v17783_v39  ;;  %v17843_v34 = vld [vmem:[%s24990_s1 + $0x1b54] ss:$112 sps:$4 sm:$0xff]  }
 0x2a1   :  { %9609 = vmatprep.subr.bf16.mxu1 %v17780_v37  ;;  %v17841_v37 = vld [vmem:[%s24990_s1 + $0x1b50] ss:$112 sps:$4 sm:$0xff]   ;;  %v17849_v39 = vld [vmem:[%s24990_s1 + $0x1c34] ss:$112 sps:$4 sm:$0xff]  }
 0x2a3   :  { %9473 = vmatpush1.bf16.msra.mxu0 %v17781_v43  ;;  %v17847_v43 = vld [vmem:[%s24990_s1 + $0x1c30] ss:$112 sps:$4 sm:$0xff]  }
 0x2a4   :  { %9610 = vmatpush1.bf16.msra.mxu1 %v17778_v41  ;;  %9474 = vmatprep.subr.bf16.mxu0 %v17789_v38  ;;  %v17846_v41 = vld [vmem:[%s24990_s1 + $0x145c] ss:$112 sps:$4 sm:$0xff]  }
 0x2a5   :  { %9611 = vmatprep.subr.bf16.mxu1 %v17786_v54  ;;  %v17844_v54 = vld [vmem:[%s24990_s1 + $0x1458] ss:$112 sps:$4 sm:$0xff]   ;;  %v17852_v38 = vld [vmem:[%s24990_s1 + $0x153c] ss:$112 sps:$4 sm:$0xff]  }
 0x2a7   :  { %9475 = vmatpush1.bf16.msra.mxu0 %v17787_v46  ;;  %v17853_v46 = vld [vmem:[%s24990_s1 + $0x1d10] ss:$112 sps:$4 sm:$0xff]  }
 0x2a8   :  { %9612 = vmatpush1.bf16.msra.mxu1 %v17784_v45  ;;  %9476 = vmatprep.subr.bf16.mxu0 %v17795_v57  ;;  %v17855_v45 = vld [vmem:[%s24990_s1 + $0x1d14] ss:$112 sps:$4 sm:$0xff]   ;;  %v17850_v57 = vld [vmem:[%s24990_s1 + $0x1538] ss:$112 sps:$4 sm:$0xff]  }
 0x2a9   :  { %9613 = vmatprep.subr.bf16.mxu1 %v17792_v47  ;;  %v17858_v47 = vld [vmem:[%s24990_s1 + $0x161c] ss:$112 sps:$4 sm:$0xff]  }
 0x2ab   :  { %9477 = vmatpush1.bf16.msra.mxu0 %v17793_v49  ;;  %v17859_v49 = vld [vmem:[%s24990_s1 + $0x1df0] ss:$112 sps:$4 sm:$0xff]  }
 0x2ac   :  { %9614 = vmatpush1.bf16.msra.mxu1 %v17790_v48  ;;  %9478 = vmatprep.subr.bf16.mxu0 %v17801_v56  ;;  %v17861_v48 = vld [vmem:[%s24990_s1 + $0x1df4] ss:$112 sps:$4 sm:$0xff]   ;;  %v17864_v56 = vld [vmem:[%s24990_s1 + $0x16fc] ss:$112 sps:$4 sm:$0xff]  }
 0x2ad   :  { %9615 = vmatprep.subr.bf16.mxu1 %v17798_v50  ;;  %v17856_v50 = vld [vmem:[%s24990_s1 + $0x1618] ss:$112 sps:$4 sm:$0xff]  }
 0x2af   :  { %9479 = vmatpush1.bf16.msra.mxu0 %v17799_v4  ;;  %v17865_v4 = vld [vmem:[%s24990_s1 + $0x1ed0] ss:$112 sps:$4 sm:$0xff]  }
 0x2b0   :  { %9616 = vmatpush1.bf16.msra.mxu1 %v17796_v59  ;;  %9480 = vmatprep.subr.bf16.mxu0 %v17807_v61  ;;  %v17867_v59 = vld [vmem:[%s24990_s1 + $0x1ed4] ss:$112 sps:$4 sm:$0xff]   ;;  %v17870_v61 = vld [vmem:[%s24990_s1 + $0x17dc] ss:$112 sps:$4 sm:$0xff]  }
 0x2b1   :  { %9626 = vmatprep.subr.bf16.mxu1 %v17804_v40  ;;  %v17862_v40 = vld [vmem:[%s24990_s1 + $0x16f8] ss:$112 sps:$4 sm:$0xff]  }
 0x2b3   :  { %9618 = vmatmul.mubr.bf16.vlgmr.msra.gmra.mrb[20].mxu1 %v19170_v9  ;;  %9481 = vmatpush1.bf16.msra.mxu0 %v17805_v6  ;;  %v17871_v6 = vld [vmem:[%s24990_s1 + $0x1fb0] ss:$112 sps:$4 sm:$0xff]  }
 0x2b4   :  { %9627 = vmatpush1.bf16.msra.mxu1 %v17802_v62  ;;  %9482 = vmatprep.subr.bf16.mxu0 %v17813_v0  ;;  %v17873_v62 = vld [vmem:[%s24990_s1 + $0x1fb4] ss:$112 sps:$4 sm:$0xff]   ;;  %v17876_v0 = vld [vmem:[%s24990_s1 + $0x18bc] ss:$112 sps:$4 sm:$0xff]  }
 0x2b5   :  { %9628 = vmatprep.subr.bf16.mxu1 %v17810_v63  ;;  %9658 = vmatprep.mubr.bf16.mxu1 %v19249_v36  ;;  %v17868_v63 = vld [vmem:[%s24990_s1 + $0x17d8] ss:$112 sps:$4 sm:$0xff]  }
 0x2b7   :  { %9483 = vmatpush1.bf16.msra.mxu0 %v17811_v3  ;;  %v17877_v3 = vld [vmem:[%s24990_s1 + $0x2090] ss:$112 sps:$4 sm:$0xff]  }
 0x2b8   :  { %9629 = vmatpush1.bf16.msra.mxu1 %v17808_v2  ;;  %9484 = vmatprep.subr.bf16.mxu0 %v17819_v7  ;;  %v17879_v2 = vld [vmem:[%s24990_s1 + $0x2094] ss:$112 sps:$4 sm:$0xff]   ;;  %v17882_v7 = vld [vmem:[%s24990_s1 + $0x199c] ss:$112 sps:$4 sm:$0xff]  }
 0x2b9   :  { %9630 = vmatprep.subr.bf16.mxu1 %v17816_v5  ;;  %v17874_v5 = vld [vmem:[%s24990_s1 + $0x18b8] ss:$112 sps:$4 sm:$0xff]  }
 0x2bb   :  { %9485 = vmatpush1.bf16.msra.mxu0 %v17817_v11  ;;  %v17883_v11 = vld [vmem:[%s24990_s1 + $0x2170] ss:$112 sps:$4 sm:$0xff]  }
 0x2bc   :  { %9631 = vmatpush1.bf16.msra.mxu1 %v17814_v8  ;;  %9486 = vmatprep.subr.bf16.mxu0 %v17825_v14  ;;  %v17885_v8 = vld [vmem:[%s24990_s1 + $0x2174] ss:$112 sps:$4 sm:$0xff]  }
 0x2bd   :  { %9632 = vmatprep.subr.bf16.mxu1 %v17822_v13  ;;  %v17880_v13 = vld [vmem:[%s24990_s1 + $0x1998] ss:$112 sps:$4 sm:$0xff]   ;;  %v17891_v14 = vld [vmem:[%s24990_s1 + $0x2254] ss:$112 sps:$4 sm:$0xff]  }
 0x2bf   :  { %9487 = vmatpush1.bf16.msra.mxu0 %v17823_v15  ;;  %v17888_v15 = vld [vmem:[%s24990_s1 + $0x1a7c] ss:$112 sps:$4 sm:$0xff]  }
 0x2c0   :  { %9633 = vmatpush1.bf16.msra.mxu1 %v17820_v16  ;;  %9488 = vmatprep.subr.bf16.mxu0 %v17831_v20  ;;  %v17889_v16 = vld [vmem:[%s24990_s1 + $0x2250] ss:$112 sps:$4 sm:$0xff]   ;;  %v17897_v20 = vld [vmem:[%s24990_s1 + $0x2334] ss:$112 sps:$4 sm:$0xff]  }
 0x2c1   :  { %9634 = vmatprep.subr.bf16.mxu1 %v17828_v17  ;;  %v17886_v17 = vld [vmem:[%s24990_s1 + $0x1a78] ss:$112 sps:$4 sm:$0xff]  }
 0x2c3   :  { %9489 = vmatpush1.bf16.msra.mxu0 %v17829_v22  ;;  %v17894_v22 = vld [vmem:[%s24990_s1 + $0x1b5c] ss:$112 sps:$4 sm:$0xff]  }
 0x2c4   :  { %9635 = vmatpush1.bf16.msra.mxu1 %v17826_v23  ;;  %9490 = vmatprep.subr.bf16.mxu0 %v17837_v26  ;;  %v17895_v23 = vld [vmem:[%s24990_s1 + $0x2330] ss:$112 sps:$4 sm:$0xff]   ;;  %v17903_v26 = vld [vmem:[%s24990_s1 + $0x2414] ss:$112 sps:$4 sm:$0xff]  }
 0x2c5   :  { %9636 = vmatprep.subr.bf16.mxu1 %v17834_v25  ;;  %v17892_v25 = vld [vmem:[%s24990_s1 + $0x1b58] ss:$112 sps:$4 sm:$0xff]  }
 0x2c7   :  { %9491 = vmatpush1.bf16.msra.mxu0 %v17835_v27  ;;  %v17900_v27 = vld [vmem:[%s24990_s1 + $0x1c3c] ss:$112 sps:$4 sm:$0xff]  }
 0x2c8   :  { %9637 = vmatpush1.bf16.msra.mxu1 %v17832_v28  ;;  %9492 = vmatprep.subr.bf16.mxu0 %v17843_v34  ;;  %v17901_v28 = vld [vmem:[%s24990_s1 + $0x2410] ss:$112 sps:$4 sm:$0xff]   ;;  %v17909_v34 = vld [vmem:[%s24990_s1 + $0x24f4] ss:$112 sps:$4 sm:$0xff]  }
 0x2c9   :  { %9638 = vmatprep.subr.bf16.mxu1 %v17840_v32  ;;  %v17898_v32 = vld [vmem:[%s24990_s1 + $0x1c38] ss:$112 sps:$4 sm:$0xff]  }
 0x2cb   :  { %9493 = vmatpush1.bf16.msra.mxu0 %v17841_v37  ;;  %v17907_v37 = vld [vmem:[%s24990_s1 + $0x24f0] ss:$112 sps:$4 sm:$0xff]  }
 0x2cc   :  { %9639 = vmatpush1.bf16.msra.mxu1 %v17838_v35  ;;  %9503 = vmatprep.subr.bf16.mxu0 %v17849_v39  ;;  %v17906_v35 = vld [vmem:[%s24990_s1 + $0x1d1c] ss:$112 sps:$4 sm:$0xff]   ;;  %v17904_v39 = vld [vmem:[%s24990_s1 + $0x1d18] ss:$112 sps:$4 sm:$0xff]  }
 0x2cd   :  { %9640 = vmatprep.subr.bf16.mxu1 %v17846_v41  ;;  %v17915_v41 = vld [vmem:[%s24990_s1 + $0x25d4] ss:$112 sps:$4 sm:$0xff]  }
 0x2ce   :  { %9495 = vmatmul.mubr.bf16.vlgmr.msra.gmra.mrb[12].mxu0 %v19376_v18 }
 0x2cf   :  { %9504 = vmatpush1.bf16.msra.mxu0 %v17847_v43  ;;  %9535 = vmatprep.mubr.bf16.mxu0 %v19393_v24  ;;  %v17912_v43 = vld [vmem:[%s24990_s1 + $0x1dfc] ss:$112 sps:$4 sm:$0xff]  }
 0x2d0   :  { %9641 = vmatpush1.bf16.msra.mxu1 %v17844_v54  ;;  %9505 = vmatprep.subr.bf16.mxu0 %v17855_v45  ;;  %v17913_v54 = vld [vmem:[%s24990_s1 + $0x25d0] ss:$112 sps:$4 sm:$0xff]   ;;  %v17921_v45 = vld [vmem:[%s24990_s1 + $0x26b4] ss:$112 sps:$4 sm:$0xff]  }
 0x2d1   :  { %9642 = vmatprep.subr.bf16.mxu1 %v17852_v38  ;;  %v17910_v38 = vld [vmem:[%s24990_s1 + $0x1df8] ss:$112 sps:$4 sm:$0xff]  }
 0x2d3   :  { %9506 = vmatpush1.bf16.msra.mxu0 %v17853_v46  ;;  %v17918_v46 = vld [vmem:[%s24990_s1 + $0x1edc] ss:$112 sps:$4 sm:$0xff]  }
 0x2d4   :  { %9643 = vmatpush1.bf16.msra.mxu1 %v17850_v57  ;;  %9507 = vmatprep.subr.bf16.mxu0 %v17861_v48  ;;  %v17919_v57 = vld [vmem:[%s24990_s1 + $0x26b0] ss:$112 sps:$4 sm:$0xff]   ;;  %v17927_v48 = vld [vmem:[%s24990_s1 + $0x2794] ss:$112 sps:$4 sm:$0xff]  }
 0x2d5   :  { %9644 = vmatprep.subr.bf16.mxu1 %v17858_v47  ;;  %v17916_v47 = vld [vmem:[%s24990_s1 + $0x1ed8] ss:$112 sps:$4 sm:$0xff]  }
 0x2d7   :  { %9508 = vmatpush1.bf16.msra.mxu0 %v17859_v49  ;;  %v17924_v49 = vld [vmem:[%s24990_s1 + $0x1fbc] ss:$112 sps:$4 sm:$0xff]  }
 0x2d8   :  { %9645 = vmatpush1.bf16.msra.mxu1 %v17856_v50  ;;  %9509 = vmatprep.subr.bf16.mxu0 %v17867_v59  ;;  %v17925_v50 = vld [vmem:[%s24990_s1 + $0x2790] ss:$112 sps:$4 sm:$0xff]   ;;  %v17933_v59 = vld [vmem:[%s24990_s1 + $0x2874] ss:$112 sps:$4 sm:$0xff]  }
 0x2d9   :  { %9646 = vmatprep.subr.bf16.mxu1 %v17864_v56  ;;  %v17922_v56 = vld [vmem:[%s24990_s1 + $0x1fb8] ss:$112 sps:$4 sm:$0xff]  }
 0x2db   :  { %9510 = vmatpush1.bf16.msra.mxu0 %v17865_v4  ;;  %v17930_v4 = vld [vmem:[%s24990_s1 + $0x209c] ss:$112 sps:$4 sm:$0xff]  }
 0x2dc   :  { %9647 = vmatpush1.bf16.msra.mxu1 %v17862_v40  ;;  %9511 = vmatprep.subr.bf16.mxu0 %v17873_v62  ;;  %v17931_v40 = vld [vmem:[%s24990_s1 + $0x2870] ss:$112 sps:$4 sm:$0xff]   ;;  %v17939_v62 = vld [vmem:[%s24990_s1 + $0x2954] ss:$112 sps:$4 sm:$0xff]  }
 0x2dd   :  { %9648 = vmatprep.subr.bf16.mxu1 %v17870_v61  ;;  %v17928_v61 = vld [vmem:[%s24990_s1 + $0x2098] ss:$112 sps:$4 sm:$0xff]  }
 0x2df   :  { %9512 = vmatpush1.bf16.msra.mxu0 %v17871_v6  ;;  %v17936_v6 = vld [vmem:[%s24990_s1 + $0x217c] ss:$112 sps:$4 sm:$0xff]  }
 0x2e0   :  { %9649 = vmatpush1.bf16.msra.mxu1 %v17868_v63  ;;  %9513 = vmatprep.subr.bf16.mxu0 %v17879_v2  ;;  %v17937_v63 = vld [vmem:[%s24990_s1 + $0x2950] ss:$112 sps:$4 sm:$0xff]   ;;  %v17945_v2 = vld [vmem:[%s24990_s1 + $0x2a34] ss:$112 sps:$4 sm:$0xff]  }
 0x2e1   :  { %9650 = vmatprep.subr.bf16.mxu1 %v17876_v0  ;;  %v17934_v0 = vld [vmem:[%s24990_s1 + $0x2178] ss:$112 sps:$4 sm:$0xff]  }
 0x2e3   :  { %9514 = vmatpush1.bf16.msra.mxu0 %v17877_v3  ;;  %v17942_v3 = vld [vmem:[%s24990_s1 + $0x225c] ss:$112 sps:$4 sm:$0xff]  }
 0x2e4   :  { %9651 = vmatpush1.bf16.msra.mxu1 %v17874_v5  ;;  %9515 = vmatprep.subr.bf16.mxu0 %v17885_v8  ;;  %v17943_v5 = vld [vmem:[%s24990_s1 + $0x2a30] ss:$112 sps:$4 sm:$0xff]   ;;  %v17957_v8 = vld [vmem:[%s24990_s1 + $0x44] ss:$112 sps:$4 sm:$0xff]  }
 0x2e5   :  { %9652 = vmatprep.subr.bf16.mxu1 %v17882_v7  ;;  %v17940_v7 = vld [vmem:[%s24990_s1 + $0x2258] ss:$112 sps:$4 sm:$0xff]  }
 0x2e7   :  { %9516 = vmatpush1.bf16.msra.mxu0 %v17883_v11  ;;  %v17948_v11 = vld [vmem:[%s24990_s1 + $0x233c] ss:$112 sps:$4 sm:$0xff]  }
 0x2e8   :  { %9653 = vmatpush1.bf16.msra.mxu1 %v17880_v13  ;;  %9517 = vmatprep.subr.bf16.mxu0 %v17891_v14  ;;  %v17946_v13 = vld [vmem:[%s24990_s1 + $0x2338] ss:$112 sps:$4 sm:$0xff]   ;;  %v17951_v14 = vld [vmem:[%s24990_s1 + $0x241c] ss:$112 sps:$4 sm:$0xff]  }
 0x2e9   :  { %9654 = vmatprep.subr.bf16.mxu1 %v17888_v15  ;;  %v17949_v15 = vld [vmem:[%s24990_s1 + $0x2418] ss:$112 sps:$4 sm:$0xff]  }
 0x2eb   :  { %9518 = vmatpush1.bf16.msra.mxu0 %v17889_v16  ;;  %v17954_v16 = vld [vmem:[%s24990_s1 + $0x24fc] ss:$112 sps:$4 sm:$0xff]  }
 0x2ec   :  { %9655 = vmatpush1.bf16.msra.mxu1 %v17886_v17  ;;  %9519 = vmatprep.subr.bf16.mxu0 %v17897_v20  ;;  %v17955_v17 = vld [vmem:[%s24990_s1 + $0x40] ss:$112 sps:$4 sm:$0xff]   ;;  %v17952_v20 = vld [vmem:[%s24990_s1 + $0x24f8] ss:$112 sps:$4 sm:$0xff]  }
 0x2ed   :  { %9656 = vmatprep.subr.bf16.mxu1 %v17894_v22  ;;  %v17963_v22 = vld [vmem:[%s24990_s1 + $0x124] ss:$112 sps:$4 sm:$0xff]  }
 0x2ef   :  { %9520 = vmatpush1.bf16.msra.mxu0 %v17895_v23  ;;  %v21443_v23 = vsub.s32 2, %v20202_v12 }
 0x2f0   :  { %9657 = vmatpush1.bf16.msra.mxu1 %v17892_v25  ;;  %9521 = vmatprep.subr.bf16.mxu0 %v17903_v26  ;;  %v17960_v25 = vld [vmem:[%s24990_s1 + $0x25dc] ss:$112 sps:$4 sm:$0xff]   ;;  %v17961_v26 = vld [vmem:[%s24990_s1 + $0x120] ss:$112 sps:$4 sm:$0xff]  }
 0x2f1   :  { %9667 = vmatprep.subr.bf16.mxu1 %v17900_v27  ;;  %v21456_v27 = vld [vmem:[%s24992_s2 + $0x8] sm:$0xff] }
 0x2f3   :  { %9659 = vmatmul.mubr.bf16.vlgmr.msra.gmra.mrb[20].mxu1 %v19376_v18  ;;  %9522 = vmatpush1.bf16.msra.mxu0 %v17901_v28  ;;  %v17958_v28 = vld [vmem:[%s24990_s1 + $0x25d8] ss:$112 sps:$4 sm:$0xff]  }
 0x2f4   :  { %9668 = vmatpush1.bf16.msra.mxu1 %v17898_v32  ;;  %9523 = vmatprep.subr.bf16.mxu0 %v17909_v34  ;;  %v17969_v32 = vld [vmem:[%s24990_s1 + $0x204] ss:$112 sps:$4 sm:$0xff]  }
 0x2f5   :  { %9669 = vmatprep.subr.bf16.mxu1 %v17906_v35  ;;  %9699 = vmatprep.mubr.bf16.mxu1 %v19393_v24  ;;  %v21468_v34 = vld [vmem:[%s24992_s2] sm:$0xff] }
 0x2f6   :  { %v1444_v35 = vrot.slane %v21468_v34, %v21443_v23 }
 0x2f7   :  { %9524 = vmatpush1.bf16.msra.mxu0 %v17907_v37  ;;  %v17966_v37 = vld [vmem:[%s24990_s1 + $0x26bc] ss:$112 sps:$4 sm:$0xff]  }
 0x2f8   :  { %9670 = vmatpush1.bf16.msra.mxu1 %v17904_v39  ;;  %9525 = vmatprep.subr.bf16.mxu0 %v17915_v41  ;;  %v1468_v39 = vrot.slane %v21456_v27, %v20220_v19  ;;  %v17967_v41 = vld [vmem:[%s24990_s1 + $0x200] ss:$112 sps:$4 sm:$0xff]  }
 0x2f9   :  { %9671 = vmatprep.subr.bf16.mxu1 %v17912_v43  ;;  %v1472_v43 = vrot.slane %v21456_v27, %v20226_v21 }
 0x2fb   :  { %9526 = vmatpush1.bf16.msra.mxu0 %v17913_v54  ;;  %v17964_v54 = vld [vmem:[%s24990_s1 + $0x26b8] ss:$112 sps:$4 sm:$0xff]  }
 0x2fc   :  { %9672 = vmatpush1.bf16.msra.mxu1 %v17910_v38  ;;  %9527 = vmatprep.subr.bf16.mxu0 %v17921_v45  ;;  %v17975_v38 = vld [vmem:[%s24990_s1 + $0x2e4] ss:$112 sps:$4 sm:$0xff]   ;;  %v16550_v45 = vadd.f32 %v20295_v53, %v1444_v35  ;;  %v17970_v53 = vld [vmem:[%s24990_s1 + $0x2798] ss:$112 sps:$4 sm:$0xff]  }
 0x2fd   :  { %9673 = vmatprep.subr.bf16.mxu1 %v17918_v46  ;;  %v18000_v35 = vld [vmem:[%s24990_s1 + $0x48] ss:$112 sps:$4 sm:$0xff]  }
 0x2ff   :  { %9528 = vmatpush1.bf16.msra.mxu0 %v17919_v57  ;;  %v17972_v57 = vld [vmem:[%s24990_s1 + $0x279c] ss:$112 sps:$4 sm:$0xff]  }
 0x300   :  { %9674 = vmatpush1.bf16.msra.mxu1 %v17916_v47  ;;  %9529 = vmatprep.subr.bf16.mxu0 %v17927_v48 }
 0x301   :  { %9675 = vmatprep.subr.bf16.mxu1 %v17924_v49  ;;  %v10734_v49 = vmax.f32 %v20264_v44, 0.0  ;;  %v10735_v44 = vmax.f32 %v16550_v45, 0.0 }
 0x303   :  { %9530 = vmatpush1.bf16.msra.mxu0 %v17925_v50 }
 0x304   :  { %9676 = vmatpush1.bf16.msra.mxu1 %v17922_v56  ;;  %9531 = vmatprep.subr.bf16.mxu0 %v17933_v59  ;;  %v17973_v59 = vld [vmem:[%s24990_s1 + $0x2e0] ss:$112 sps:$4 sm:$0xff]  }
 0x305   :  { %9677 = vmatprep.subr.bf16.mxu1 %v17930_v4 }
 0x307   :  { %9532 = vmatpush1.bf16.msra.mxu0 %v17931_v40 }
 0x308   :  { %9678 = vmatpush1.bf16.msra.mxu1 %v17928_v61  ;;  %9533 = vmatprep.subr.bf16.mxu0 %v17939_v62  ;;  %v17981_v61 = vld [vmem:[%s24990_s1 + $0x3c4] ss:$112 sps:$4 sm:$0xff]  }
 0x309   :  { %9679 = vmatprep.subr.bf16.mxu1 %v17936_v6  ;;  %v17978_v6 = vld [vmem:[%s24990_s1 + $0x287c] ss:$112 sps:$4 sm:$0xff]  }
 0x30b   :  { %9534 = vmatpush1.bf16.msra.mxu0 %v17937_v63 }
 0x30c   :  { %9680 = vmatpush1.bf16.msra.mxu1 %v17934_v0  ;;  %9544 = vmatprep.subr.bf16.mxu0 %v17945_v2  ;;  %v17979_v2 = vld [vmem:[%s24990_s1 + $0x3c0] ss:$112 sps:$4 sm:$0xff]  }
 0x30d   :  { %9681 = vmatprep.subr.bf16.mxu1 %v17942_v3  ;;  %v17976_v3 = vld [vmem:[%s24990_s1 + $0x2878] ss:$112 sps:$4 sm:$0xff]  }
 0x30e   :  { %9536 = vmatmul.mubr.bf16.vlgmr.msra.gmra.mrb[12].mxu0 %v19582_v29 }
 0x30f   :  { %9545 = vmatpush1.bf16.msra.mxu0 %v17943_v5  ;;  %9576 = vmatprep.mubr.bf16.mxu0 %v18891_v1  ;;  %v17987_v5 = vld [vmem:[%s24990_s1 + $0x4a4] ss:$112 sps:$4 sm:$0xff]  }
 0x310   :  { %9682 = vmatpush1.bf16.msra.mxu1 %v17940_v7  ;;  %9749 = vmatprep.subr.bf16.mxu0 %v17957_v8  ;;  %v17984_v7 = vld [vmem:[%s24990_s1 + $0x295c] ss:$112 sps:$4 sm:$0xff]   ;;  %v17985_v8 = vld [vmem:[%s24990_s1 + $0x4a0] ss:$112 sps:$4 sm:$0xff]  }
 0x311   :  { %9683 = vmatprep.subr.bf16.mxu1 %v17948_v11  ;;  %v17982_v11 = vld [vmem:[%s24990_s1 + $0x2958] ss:$112 sps:$4 sm:$0xff]  }
 0x314   :  { %9684 = vmatpush1.bf16.msra.mxu1 %v17946_v13  ;;  %v17990_v13 = vld [vmem:[%s24990_s1 + $0x584] ss:$112 sps:$4 sm:$0xff]  }
 0x315   :  { %9685 = vmatprep.subr.bf16.mxu1 %v17951_v14  ;;  %v17996_v14 = vld [vmem:[%s24990_s1 + $0x2a3c] ss:$112 sps:$4 sm:$0xff]  }
 0x318   :  { %9686 = vmatpush1.bf16.msra.mxu1 %v17949_v15  ;;  %v17988_v15 = vld [vmem:[%s24990_s1 + $0x580] ss:$112 sps:$4 sm:$0xff]  }
 0x319   :  { %9687 = vmatprep.subr.bf16.mxu1 %v17954_v16  ;;  %v17993_v16 = vld [vmem:[%s24990_s1 + $0x664] ss:$112 sps:$4 sm:$0xff]  }
 0x31a   :  { %15975 = vmatmul.mubr.msk.bf16.vlgmr.msra.gmra.mrb[12].mxu0 %vm8433_vm0, %v18982_v10 }
 0x31b   :  { %9750 = vmatpush1.bf16.msra.mxu0 %v17955_v17  ;;  %9781 = vmatprep.mubr.bf16.mxu0 %v19106_v51  ;;  %v17994_v17 = vld [vmem:[%s24990_s1 + $0x2a38] ss:$112 sps:$4 sm:$0xff]  }
 0x31c   :  { %9688 = vmatpush1.bf16.msra.mxu1 %v17952_v20  ;;  %9751 = vmatprep.subr.bf16.mxu0 %v17963_v22  ;;  %v18002_v20 = vld [vmem:[%s24990_s1 + $0x4c] ss:$112 sps:$4 sm:$0xff]   ;;  %v17991_v22 = vld [vmem:[%s24990_s1 + $0x660] ss:$112 sps:$4 sm:$0xff]  }
 0x31d   :  { %9689 = vmatprep.subr.bf16.mxu1 %v17960_v25  ;;  %v17999_v25 = vld [vmem:[%s24990_s1 + $0x744] ss:$112 sps:$4 sm:$0xff]  }
 0x31f   :  { %9752 = vmatpush1.bf16.msra.mxu0 %v17961_v26  ;;  %v17997_v26 = vld [vmem:[%s24990_s1 + $0x740] ss:$112 sps:$4 sm:$0xff]  }
 0x320   :  { %9690 = vmatpush1.bf16.msra.mxu1 %v17958_v28  ;;  %9753 = vmatprep.subr.bf16.mxu0 %v17969_v32  ;;  %v18005_v28 = vld [vmem:[%s24990_s1 + $0x824] ss:$112 sps:$4 sm:$0xff]   ;;  %v18003_v32 = vld [vmem:[%s24990_s1 + $0x820] ss:$112 sps:$4 sm:$0xff]  }
 0x321   :  { %9691 = vmatprep.subr.bf16.mxu1 %v17966_v37  ;;  %v9250_v46 = vpop.f32.mrb[8].mxu0  ;;  %v18011_v37 = vld [vmem:[%s24990_s1 + $0x904] ss:$112 sps:$4 sm:$0xff]  }
 0x322   :  { %v16558_v47 = vadd.f32 %v9250_v46, %v1468_v39  ;;  %v9252_v48 = vpop.f32.mrb[9].mxu0  ;;  %v21569_v39 = vsub.s32 3, %v20202_v12  ;;  %v18014_v46 = vld [vmem:[%s24990_s1 + $0x20c] ss:$112 sps:$4 sm:$0xff]  }
 0x323   :  { %9754 = vmatpush1.bf16.msra.mxu0 %v17967_v41  ;;  %v16559_v50 = vadd.f32 %v9252_v48, %v1472_v43  ;;  %v9254_v56 = vpop.f32.mrb[10].mxu0  ;;  %v18008_v41 = vld [vmem:[%s24990_s1 + $0x12c] ss:$112 sps:$4 sm:$0xff]   ;;  %v18009_v43 = vld [vmem:[%s24990_s1 + $0x900] ss:$112 sps:$4 sm:$0xff]  }
 0x324   :  { %9692 = vmatpush1.bf16.msra.mxu1 %v17964_v54  ;;  %v10741_v4 = vmax.f32 %v16558_v47, 0.0  ;;  %v9255_v40 = vpop.f32.mrb[11].mxu0  ;;  %9755 = vmatprep.subr.bf16.mxu0 %v17975_v38  ;;  %v18006_v54 = vld [vmem:[%s24990_s1 + $0x128] ss:$112 sps:$4 sm:$0xff]   ;;  %v18017_v38 = vld [vmem:[%s24990_s1 + $0x9e4] ss:$112 sps:$4 sm:$0xff]   ;;  %v1448_v45 = vrot.slane %v21468_v34, %v21569_v39 }
 0x325   :  { %v10742_v62 = vmax.f32 %v16559_v50, 0.0  ;;  %9693 = vmatprep.subr.bf16.mxu1 %v17972_v57  ;;  %v1476_v57 = vrot.slane %v21456_v27, %v21443_v23  ;;  %v18015_v47 = vld [vmem:[%s24990_s1 + $0x9e0] ss:$112 sps:$4 sm:$0xff]   ;;  %v18012_v48 = vld [vmem:[%s24990_s1 + $0x208] ss:$112 sps:$4 sm:$0xff]  }
 0x326   :  { %v21505_v63 = vmax.f32 %v10734_v49, %v10741_v4  ;;  %v1480_v49 = vrot.slane %v21456_v27, %v21569_v39  ;;  %v18023_v50 = vld [vmem:[%s24990_s1 + $0xac4] ss:$112 sps:$4 sm:$0xff]   ;;  %v16551_v56 = vadd.f32 %v20299_v55, %v1448_v45  ;;  %v18018_v55 = vld [vmem:[%s24990_s1 + $0x2e8] ss:$112 sps:$4 sm:$0xff]   ;;  %v18051_v45 = vld [vmem:[%s24990_s1 + $0xf20] ss:$112 sps:$4 sm:$0xff]  }
 0x327   :  { %v21507_v0 = vmax.f32 %v10735_v44, %v10742_v62  ;;  %9756 = vmatpush1.bf16.msra.mxu0 %v17973_v59  ;;  %v18020_v59 = vld [vmem:[%s24990_s1 + $0x2ec] ss:$112 sps:$4 sm:$0xff]  }
 0x328   :  { %9694 = vmatpush1.bf16.msra.mxu1 %v17970_v53  ;;  %9757 = vmatprep.subr.bf16.mxu0 %v17981_v61  ;;  %v18021_v61 = vld [vmem:[%s24990_s1 + $0xac0] ss:$112 sps:$4 sm:$0xff]  }
 0x329   :  { %9695 = vmatprep.subr.bf16.mxu1 %v17978_v6  ;;  %v18029_v6 = vld [vmem:[%s24990_s1 + $0xba4] ss:$112 sps:$4 sm:$0xff]  }
 0x32b   :  { %9758 = vmatpush1.bf16.msra.mxu0 %v17979_v2  ;;  %v10736_v2 = vmax.f32 %v16551_v56, 0.0  ;;  %v18062_v56 = vld [vmem:[%s24990_s1 + $0x90c] ss:$112 sps:$4 sm:$0xff]  }
 0x32c   :  { %9696 = vmatpush1.bf16.msra.mxu1 %v17976_v3  ;;  %9759 = vmatprep.subr.bf16.mxu0 %v17987_v5 }
 0x32d   :  { %9697 = vmatprep.subr.bf16.mxu1 %v17984_v7  ;;  %v18026_v7 = vld [vmem:[%s24990_s1 + $0x3cc] ss:$112 sps:$4 sm:$0xff]  }
 0x32f   :  { %9760 = vmatpush1.bf16.msra.mxu0 %v17985_v8  ;;  %v10737_v8 = vmax.f32 %v20854_v52, 0.0  ;;  %v18035_v52 = vld [vmem:[%s24990_s1 + $0xc84] ss:$112 sps:$4 sm:$0xff]  }
 0x330   :  { %9698 = vmatpush1.bf16.msra.mxu1 %v17982_v11  ;;  %9761 = vmatprep.subr.bf16.mxu0 %v17990_v13 }
 0x331   :  { %9708 = vmatprep.subr.bf16.mxu1 %v17996_v14  ;;  %v18027_v14 = vld [vmem:[%s24990_s1 + $0xba0] ss:$112 sps:$4 sm:$0xff]  }
 0x333   :  { %9700 = vmatmul.mubr.bf16.vlgmr.msra.gmra.mrb[20].mxu1 %v19582_v29  ;;  %9762 = vmatpush1.bf16.msra.mxu0 %v17988_v15 }
 0x334   :  { %9763 = vmatprep.subr.bf16.mxu0 %v17993_v16  ;;  %9709 = vmatpush1.bf16.msra.mxu1 %v17994_v17  ;;  %v18024_v16 = vld [vmem:[%s24990_s1 + $0x3c8] ss:$112 sps:$4 sm:$0xff]   ;;  %v18032_v17 = vld [vmem:[%s24990_s1 + $0x4ac] ss:$112 sps:$4 sm:$0xff]  }
 0x335   :  { %9740 = vmatprep.mubr.bf16.mxu1 %v18891_v1  ;;  %9913 = vmatprep.subr.bf16.mxu1 %v18002_v20  ;;  %v18033_v20 = vld [vmem:[%s24990_s1 + $0xc80] ss:$112 sps:$4 sm:$0xff]  }
 0x337   :  { %9764 = vmatpush1.bf16.msra.mxu0 %v17991_v22  ;;  %v18030_v22 = vld [vmem:[%s24990_s1 + $0x4a8] ss:$112 sps:$4 sm:$0xff]  }
 0x338   :  { %9765 = vmatprep.subr.bf16.mxu0 %v17999_v25  ;;  %v18041_v25 = vld [vmem:[%s24990_s1 + $0xd64] ss:$112 sps:$4 sm:$0xff]  }
 0x33b   :  { %9766 = vmatpush1.bf16.msra.mxu0 %v17997_v26  ;;  %v18038_v26 = vld [vmem:[%s24990_s1 + $0x58c] ss:$112 sps:$4 sm:$0xff]  }
 0x33c   :  { %9767 = vmatprep.subr.bf16.mxu0 %v18005_v28  ;;  %v18039_v28 = vld [vmem:[%s24990_s1 + $0xd60] ss:$112 sps:$4 sm:$0xff]  }
 0x33f   :  { %15976 = vmatmul.mubr.msk.bf16.vlgmr.msra.gmra.mrb[20].mxu1 %vm8433_vm0, %v18982_v10  ;;  %9768 = vmatpush1.bf16.msra.mxu0 %v18003_v32  ;;  %v18036_v32 = vld [vmem:[%s24990_s1 + $0x588] ss:$112 sps:$4 sm:$0xff]  }
 0x340   :  { %9914 = vmatpush1.bf16.msra.mxu1 %v18000_v35  ;;  %9769 = vmatprep.subr.bf16.mxu0 %v18011_v37  ;;  %v18047_v35 = vld [vmem:[%s24990_s1 + $0xe44] ss:$112 sps:$4 sm:$0xff]   ;;  %v18044_v37 = vld [vmem:[%s24990_s1 + $0x66c] ss:$112 sps:$4 sm:$0xff]  }
 0x341   :  { %9915 = vmatprep.subr.bf16.mxu1 %v18008_v41  ;;  %9945 = vmatprep.mubr.bf16.mxu1 %v19106_v51  ;;  %v18045_v41 = vld [vmem:[%s24990_s1 + $0xe40] ss:$112 sps:$4 sm:$0xff]  }
 0x343   :  { %9770 = vmatpush1.bf16.msra.mxu0 %v18009_v43  ;;  %v18042_v43 = vld [vmem:[%s24990_s1 + $0x668] ss:$112 sps:$4 sm:$0xff]  }
 0x344   :  { %9916 = vmatpush1.bf16.msra.mxu1 %v18006_v54  ;;  %9771 = vmatprep.subr.bf16.mxu0 %v18017_v38  ;;  %v18053_v54 = vld [vmem:[%s24990_s1 + $0xf24] ss:$112 sps:$4 sm:$0xff]   ;;  %v18050_v38 = vld [vmem:[%s24990_s1 + $0x74c] ss:$112 sps:$4 sm:$0xff]  }
 0x345   :  { %9917 = vmatprep.subr.bf16.mxu1 %v18014_v46  ;;  %v18048_v46 = vld [vmem:[%s24990_s1 + $0x748] ss:$112 sps:$4 sm:$0xff]  }
 0x346   :  { %v9414_v4 = vpop.f32.mrb[16].mxu1 }
 0x347   :  { %v16560_v53 = vadd.f32 %v9414_v4, %v1476_v57  ;;  %v9416_v40 = vpop.f32.mrb[17].mxu1  ;;  %9772 = vmatpush1.bf16.msra.mxu0 %v18015_v47  ;;  %v18059_v57 = vld [vmem:[%s24990_s1 + $0x1004] ss:$112 sps:$4 sm:$0xff]   ;;  %v18056_v47 = vld [vmem:[%s24990_s1 + $0x82c] ss:$112 sps:$4 sm:$0xff]  }
 0x348   :  { %9918 = vmatpush1.bf16.msra.mxu1 %v18012_v48  ;;  %v16561_v44 = vadd.f32 %v9416_v40, %v1480_v49  ;;  %v9418_v62 = vpop.f32.mrb[18].mxu1  ;;  %9773 = vmatprep.subr.bf16.mxu0 %v18023_v50  ;;  %v18057_v48 = vld [vmem:[%s24990_s1 + $0x1000] ss:$112 sps:$4 sm:$0xff]   ;;  %v18054_v49 = vld [vmem:[%s24990_s1 + $0x828] ss:$112 sps:$4 sm:$0xff]  }
 0x349   :  { %v10743_v3 = vmax.f32 %v16560_v53, 0.0  ;;  %v9419_v5 = vpop.f32.mrb[19].mxu1  ;;  %9919 = vmatprep.subr.bf16.mxu1 %v18020_v59  ;;  %v18065_v50 = vld [vmem:[%s24990_s1 + $0x10e4] ss:$112 sps:$4 sm:$0xff]   ;;  %v18063_v59 = vld [vmem:[%s24990_s1 + $0x10e0] ss:$112 sps:$4 sm:$0xff]  }
 0x34a   :  { %v10744_v11 = vmax.f32 %v16561_v44, 0.0  ;;  %v18060_v4 = vld [vmem:[%s24990_s1 + $0x908] ss:$112 sps:$4 sm:$0xff]   ;;  %v18071_v53 = vld [vmem:[%s24990_s1 + $0x11c4] ss:$112 sps:$4 sm:$0xff]  }
 0x34b   :  { %v21621_v13 = vmax.f32 %v10736_v2, %v10743_v3  ;;  %9774 = vmatpush1.bf16.msra.mxu0 %v18021_v61  ;;  %v18068_v40 = vld [vmem:[%s24990_s1 + $0x9ec] ss:$112 sps:$4 sm:$0xff]   ;;  %v18069_v61 = vld [vmem:[%s24990_s1 + $0x11c0] ss:$112 sps:$4 sm:$0xff]   ;;  %v18066_v44 = vld [vmem:[%s24990_s1 + $0x9e8] ss:$112 sps:$4 sm:$0xff]  }
 0x34c   :  { %v21626_v15 = vmax.f32 %v10737_v8, %v10744_v11  ;;  %9920 = vmatpush1.bf16.msra.mxu1 %v18018_v55  ;;  %9775 = vmatprep.subr.bf16.mxu0 %v18029_v6  ;;  %v18077_v62 = vld [vmem:[%s24990_s1 + $0x12a4] ss:$112 sps:$4 sm:$0xff]   ;;  %v18074_v55 = vld [vmem:[%s24990_s1 + $0xacc] ss:$112 sps:$4 sm:$0xff]   ;;  %v18075_v6 = vld [vmem:[%s24990_s1 + $0x12a0] ss:$112 sps:$4 sm:$0xff]  }
 0x34d   :  { %9921 = vmatprep.subr.bf16.mxu1 %v18026_v7  ;;  %v18072_v2 = vld [vmem:[%s24990_s1 + $0xac8] ss:$112 sps:$4 sm:$0xff]   ;;  %v18083_v3 = vld [vmem:[%s24990_s1 + $0x1384] ss:$112 sps:$4 sm:$0xff]   ;;  %v18080_v5 = vld [vmem:[%s24990_s1 + $0xbac] ss:$112 sps:$4 sm:$0xff]  }
 0x34e   :  { %v18081_v7 = vld [vmem:[%s24990_s1 + $0x1380] ss:$112 sps:$4 sm:$0xff]   ;;  %v18078_v8 = vld [vmem:[%s24990_s1 + $0xba8] ss:$112 sps:$4 sm:$0xff]   ;;  %v18089_v11 = vld [vmem:[%s24990_s1 + $0x1464] ss:$112 sps:$4 sm:$0xff]  }
 0x34f   :  { %9776 = vmatpush1.bf16.msra.mxu0 %v18027_v14  ;;  %v18086_v14 = vld [vmem:[%s24990_s1 + $0xc8c] ss:$112 sps:$4 sm:$0xff]  }
 0x350   :  { %9922 = vmatpush1.bf16.msra.mxu1 %v18024_v16  ;;  %9777 = vmatprep.subr.bf16.mxu0 %v18035_v52  ;;  %v18087_v16 = vld [vmem:[%s24990_s1 + $0x1460] ss:$112 sps:$4 sm:$0xff]   ;;  %v18084_v52 = vld [vmem:[%s24990_s1 + $0xc88] ss:$112 sps:$4 sm:$0xff]  }
 0x351   :  { %9923 = vmatprep.subr.bf16.mxu1 %v18032_v17  ;;  %v18095_v17 = vld [vmem:[%s24990_s1 + $0x1544] ss:$112 sps:$4 sm:$0xff]  }
 0x353   :  { %9778 = vmatpush1.bf16.msra.mxu0 %v18033_v20  ;;  %v18092_v20 = vld [vmem:[%s24990_s1 + $0xd6c] ss:$112 sps:$4 sm:$0xff]  }
 0x354   :  { %9924 = vmatpush1.bf16.msra.mxu1 %v18030_v22  ;;  %9779 = vmatprep.subr.bf16.mxu0 %v18041_v25  ;;  %v18093_v22 = vld [vmem:[%s24990_s1 + $0x1540] ss:$112 sps:$4 sm:$0xff]   ;;  %v18090_v25 = vld [vmem:[%s24990_s1 + $0xd68] ss:$112 sps:$4 sm:$0xff]  }
 0x355   :  { %9925 = vmatprep.subr.bf16.mxu1 %v18038_v26  ;;  %v18101_v26 = vld [vmem:[%s24990_s1 + $0x1624] ss:$112 sps:$4 sm:$0xff]  }
 0x357   :  { %9780 = vmatpush1.bf16.msra.mxu0 %v18039_v28  ;;  %v18098_v28 = vld [vmem:[%s24990_s1 + $0xe4c] ss:$112 sps:$4 sm:$0xff]  }
 0x358   :  { %9926 = vmatpush1.bf16.msra.mxu1 %v18036_v32  ;;  %9790 = vmatprep.subr.bf16.mxu0 %v18047_v35  ;;  %v18099_v32 = vld [vmem:[%s24990_s1 + $0x1620] ss:$112 sps:$4 sm:$0xff]   ;;  %v18096_v35 = vld [vmem:[%s24990_s1 + $0xe48] ss:$112 sps:$4 sm:$0xff]  }
 0x359   :  { %9927 = vmatprep.subr.bf16.mxu1 %v18044_v37  ;;  %v18107_v37 = vld [vmem:[%s24990_s1 + $0x1704] ss:$112 sps:$4 sm:$0xff]  }
 0x35a   :  { %9782 = vmatmul.mubr.bf16.vlgmr.msra.gmra.mrb[16].mxu0 %v19170_v9 }
 0x35b   :  { %9791 = vmatpush1.bf16.msra.mxu0 %v18045_v41  ;;  %9822 = vmatprep.mubr.bf16.mxu0 %v19249_v36  ;;  %v18104_v41 = vld [vmem:[%s24990_s1 + $0xf2c] ss:$112 sps:$4 sm:$0xff]  }
 0x35c   :  { %9928 = vmatpush1.bf16.msra.mxu1 %v18042_v43  ;;  %9792 = vmatprep.subr.bf16.mxu0 %v18053_v54  ;;  %v18105_v43 = vld [vmem:[%s24990_s1 + $0x1700] ss:$112 sps:$4 sm:$0xff]   ;;  %v18102_v54 = vld [vmem:[%s24990_s1 + $0xf28] ss:$112 sps:$4 sm:$0xff]  }
 0x35d   :  { %9929 = vmatprep.subr.bf16.mxu1 %v18050_v38  ;;  %v18113_v38 = vld [vmem:[%s24990_s1 + $0x17e4] ss:$112 sps:$4 sm:$0xff]  }
 0x35f   :  { %9793 = vmatpush1.bf16.msra.mxu0 %v18051_v45  ;;  %v18110_v45 = vld [vmem:[%s24990_s1 + $0x100c] ss:$112 sps:$4 sm:$0xff]  }
 0x360   :  { %9930 = vmatpush1.bf16.msra.mxu1 %v18048_v46  ;;  %9794 = vmatprep.subr.bf16.mxu0 %v18059_v57  ;;  %v18111_v46 = vld [vmem:[%s24990_s1 + $0x17e0] ss:$112 sps:$4 sm:$0xff]   ;;  %v18108_v57 = vld [vmem:[%s24990_s1 + $0x1008] ss:$112 sps:$4 sm:$0xff]  }
 0x361   :  { %9931 = vmatprep.subr.bf16.mxu1 %v18056_v47  ;;  %v18119_v47 = vld [vmem:[%s24990_s1 + $0x18c4] ss:$112 sps:$4 sm:$0xff]  }
 0x363   :  { %9795 = vmatpush1.bf16.msra.mxu0 %v18057_v48  ;;  %v18116_v48 = vld [vmem:[%s24990_s1 + $0x10ec] ss:$112 sps:$4 sm:$0xff]  }
 0x364   :  { %9932 = vmatpush1.bf16.msra.mxu1 %v18054_v49  ;;  %9796 = vmatprep.subr.bf16.mxu0 %v18065_v50  ;;  %v18117_v49 = vld [vmem:[%s24990_s1 + $0x18c0] ss:$112 sps:$4 sm:$0xff]   ;;  %v18114_v50 = vld [vmem:[%s24990_s1 + $0x10e8] ss:$112 sps:$4 sm:$0xff]  }
 0x365   :  { %9933 = vmatprep.subr.bf16.mxu1 %v18062_v56  ;;  %v18125_v56 = vld [vmem:[%s24990_s1 + $0x19a4] ss:$112 sps:$4 sm:$0xff]  }
 0x367   :  { %9797 = vmatpush1.bf16.msra.mxu0 %v18063_v59  ;;  %v18122_v59 = vld [vmem:[%s24990_s1 + $0x11cc] ss:$112 sps:$4 sm:$0xff]  }
 0x368   :  { %9934 = vmatpush1.bf16.msra.mxu1 %v18060_v4  ;;  %9798 = vmatprep.subr.bf16.mxu0 %v18071_v53  ;;  %v18123_v4 = vld [vmem:[%s24990_s1 + $0x19a0] ss:$112 sps:$4 sm:$0xff]   ;;  %v18120_v53 = vld [vmem:[%s24990_s1 + $0x11c8] ss:$112 sps:$4 sm:$0xff]  }
 0x369   :  { %9935 = vmatprep.subr.bf16.mxu1 %v18068_v40  ;;  %v18131_v40 = vld [vmem:[%s24990_s1 + $0x1a84] ss:$112 sps:$4 sm:$0xff]  }
 0x36b   :  { %9799 = vmatpush1.bf16.msra.mxu0 %v18069_v61  ;;  %v18128_v61 = vld [vmem:[%s24990_s1 + $0x12ac] ss:$112 sps:$4 sm:$0xff]  }
 0x36c   :  { %9936 = vmatpush1.bf16.msra.mxu1 %v18066_v44  ;;  %9800 = vmatprep.subr.bf16.mxu0 %v18077_v62  ;;  %v18129_v44 = vld [vmem:[%s24990_s1 + $0x1a80] ss:$112 sps:$4 sm:$0xff]   ;;  %v18126_v62 = vld [vmem:[%s24990_s1 + $0x12a8] ss:$112 sps:$4 sm:$0xff]  }
 0x36d   :  { %9937 = vmatprep.subr.bf16.mxu1 %v18074_v55  ;;  %v18137_v55 = vld [vmem:[%s24990_s1 + $0x1b64] ss:$112 sps:$4 sm:$0xff]  }
 0x36f   :  { %9801 = vmatpush1.bf16.msra.mxu0 %v18075_v6  ;;  %v18134_v6 = vld [vmem:[%s24990_s1 + $0x138c] ss:$112 sps:$4 sm:$0xff]  }
 0x370   :  { %9938 = vmatpush1.bf16.msra.mxu1 %v18072_v2  ;;  %9802 = vmatprep.subr.bf16.mxu0 %v18083_v3  ;;  %v18135_v2 = vld [vmem:[%s24990_s1 + $0x1b60] ss:$112 sps:$4 sm:$0xff]   ;;  %v18132_v3 = vld [vmem:[%s24990_s1 + $0x1388] ss:$112 sps:$4 sm:$0xff]  }
 0x371   :  { %9939 = vmatprep.subr.bf16.mxu1 %v18080_v5  ;;  %v18143_v5 = vld [vmem:[%s24990_s1 + $0x1c44] ss:$112 sps:$4 sm:$0xff]  }
 0x373   :  { %9803 = vmatpush1.bf16.msra.mxu0 %v18081_v7  ;;  %v18140_v7 = vld [vmem:[%s24990_s1 + $0x146c] ss:$112 sps:$4 sm:$0xff]  }
 0x374   :  { %9940 = vmatpush1.bf16.msra.mxu1 %v18078_v8  ;;  %9804 = vmatprep.subr.bf16.mxu0 %v18089_v11  ;;  %v18141_v8 = vld [vmem:[%s24990_s1 + $0x1c40] ss:$112 sps:$4 sm:$0xff]   ;;  %v18138_v11 = vld [vmem:[%s24990_s1 + $0x1468] ss:$112 sps:$4 sm:$0xff]  }
 0x375   :  { %9941 = vmatprep.subr.bf16.mxu1 %v18086_v14  ;;  %v18149_v14 = vld [vmem:[%s24990_s1 + $0x1d24] ss:$112 sps:$4 sm:$0xff]  }
 0x377   :  { %9805 = vmatpush1.bf16.msra.mxu0 %v18087_v16  ;;  %v18146_v16 = vld [vmem:[%s24990_s1 + $0x154c] ss:$112 sps:$4 sm:$0xff]  }
 0x378   :  { %9942 = vmatpush1.bf16.msra.mxu1 %v18084_v52  ;;  %9806 = vmatprep.subr.bf16.mxu0 %v18095_v17  ;;  %v18147_v52 = vld [vmem:[%s24990_s1 + $0x1d20] ss:$112 sps:$4 sm:$0xff]   ;;  %v18144_v17 = vld [vmem:[%s24990_s1 + $0x1548] ss:$112 sps:$4 sm:$0xff]  }
 0x379   :  { %9943 = vmatprep.subr.bf16.mxu1 %v18092_v20  ;;  %v18155_v20 = vld [vmem:[%s24990_s1 + $0x1e04] ss:$112 sps:$4 sm:$0xff]  }
 0x37b   :  { %9807 = vmatpush1.bf16.msra.mxu0 %v18093_v22  ;;  %v18152_v22 = vld [vmem:[%s24990_s1 + $0x162c] ss:$112 sps:$4 sm:$0xff]  }
 0x37c   :  { %9944 = vmatpush1.bf16.msra.mxu1 %v18090_v25  ;;  %9808 = vmatprep.subr.bf16.mxu0 %v18101_v26  ;;  %v18153_v25 = vld [vmem:[%s24990_s1 + $0x1e00] ss:$112 sps:$4 sm:$0xff]   ;;  %v18150_v26 = vld [vmem:[%s24990_s1 + $0x1628] ss:$112 sps:$4 sm:$0xff]  }
 0x37d   :  { %9954 = vmatprep.subr.bf16.mxu1 %v18098_v28  ;;  %v18161_v28 = vld [vmem:[%s24990_s1 + $0x1ee4] ss:$112 sps:$4 sm:$0xff]  }
 0x37f   :  { %9946 = vmatmul.mubr.bf16.vlgmr.msra.gmra.mrb[24].mxu1 %v19170_v9  ;;  %9809 = vmatpush1.bf16.msra.mxu0 %v18099_v32  ;;  %v18158_v32 = vld [vmem:[%s24990_s1 + $0x170c] ss:$112 sps:$4 sm:$0xff]  }
 0x380   :  { %9955 = vmatpush1.bf16.msra.mxu1 %v18096_v35  ;;  %9810 = vmatprep.subr.bf16.mxu0 %v18107_v37  ;;  %v18159_v35 = vld [vmem:[%s24990_s1 + $0x1ee0] ss:$112 sps:$4 sm:$0xff]   ;;  %v18156_v37 = vld [vmem:[%s24990_s1 + $0x1708] ss:$112 sps:$4 sm:$0xff]  }
 0x381   :  { %9956 = vmatprep.subr.bf16.mxu1 %v18104_v41  ;;  %9986 = vmatprep.mubr.bf16.mxu1 %v19249_v36  ;;  %v18167_v41 = vld [vmem:[%s24990_s1 + $0x1fc4] ss:$112 sps:$4 sm:$0xff]  }
 0x383   :  { %9811 = vmatpush1.bf16.msra.mxu0 %v18105_v43  ;;  %v18164_v43 = vld [vmem:[%s24990_s1 + $0x17ec] ss:$112 sps:$4 sm:$0xff]  }
 0x384   :  { %9957 = vmatpush1.bf16.msra.mxu1 %v18102_v54  ;;  %9812 = vmatprep.subr.bf16.mxu0 %v18113_v38  ;;  %v18165_v54 = vld [vmem:[%s24990_s1 + $0x1fc0] ss:$112 sps:$4 sm:$0xff]   ;;  %v18162_v38 = vld [vmem:[%s24990_s1 + $0x17e8] ss:$112 sps:$4 sm:$0xff]  }
 0x385   :  { %9958 = vmatprep.subr.bf16.mxu1 %v18110_v45  ;;  %v18173_v45 = vld [vmem:[%s24990_s1 + $0x20a4] ss:$112 sps:$4 sm:$0xff]  }
 0x387   :  { %9813 = vmatpush1.bf16.msra.mxu0 %v18111_v46  ;;  %v18170_v46 = vld [vmem:[%s24990_s1 + $0x18cc] ss:$112 sps:$4 sm:$0xff]  }
 0x388   :  { %9959 = vmatpush1.bf16.msra.mxu1 %v18108_v57  ;;  %9814 = vmatprep.subr.bf16.mxu0 %v18119_v47  ;;  %v18171_v57 = vld [vmem:[%s24990_s1 + $0x20a0] ss:$112 sps:$4 sm:$0xff]   ;;  %v18168_v47 = vld [vmem:[%s24990_s1 + $0x18c8] ss:$112 sps:$4 sm:$0xff]  }
 0x389   :  { %9960 = vmatprep.subr.bf16.mxu1 %v18116_v48  ;;  %v18179_v48 = vld [vmem:[%s24990_s1 + $0x2184] ss:$112 sps:$4 sm:$0xff]  }
 0x38b   :  { %9815 = vmatpush1.bf16.msra.mxu0 %v18117_v49  ;;  %v18176_v49 = vld [vmem:[%s24990_s1 + $0x19ac] ss:$112 sps:$4 sm:$0xff]  }
 0x38c   :  { %9961 = vmatpush1.bf16.msra.mxu1 %v18114_v50  ;;  %9816 = vmatprep.subr.bf16.mxu0 %v18125_v56  ;;  %v18177_v50 = vld [vmem:[%s24990_s1 + $0x2180] ss:$112 sps:$4 sm:$0xff]   ;;  %v18174_v56 = vld [vmem:[%s24990_s1 + $0x19a8] ss:$112 sps:$4 sm:$0xff]  }
 0x38d   :  { %9962 = vmatprep.subr.bf16.mxu1 %v18122_v59  ;;  %v18185_v59 = vld [vmem:[%s24990_s1 + $0x2264] ss:$112 sps:$4 sm:$0xff]  }
 0x38f   :  { %9817 = vmatpush1.bf16.msra.mxu0 %v18123_v4  ;;  %v18182_v4 = vld [vmem:[%s24990_s1 + $0x1a8c] ss:$112 sps:$4 sm:$0xff]  }
 0x390   :  { %9963 = vmatpush1.bf16.msra.mxu1 %v18120_v53  ;;  %9818 = vmatprep.subr.bf16.mxu0 %v18131_v40  ;;  %v18183_v53 = vld [vmem:[%s24990_s1 + $0x2260] ss:$112 sps:$4 sm:$0xff]   ;;  %v18180_v40 = vld [vmem:[%s24990_s1 + $0x1a88] ss:$112 sps:$4 sm:$0xff]  }
 0x391   :  { %9964 = vmatprep.subr.bf16.mxu1 %v18128_v61  ;;  %v18191_v61 = vld [vmem:[%s24990_s1 + $0x2344] ss:$112 sps:$4 sm:$0xff]  }
 0x393   :  { %9819 = vmatpush1.bf16.msra.mxu0 %v18129_v44  ;;  %v18188_v44 = vld [vmem:[%s24990_s1 + $0x1b6c] ss:$112 sps:$4 sm:$0xff]  }
 0x394   :  { %9965 = vmatpush1.bf16.msra.mxu1 %v18126_v62  ;;  %9820 = vmatprep.subr.bf16.mxu0 %v18137_v55  ;;  %v18189_v62 = vld [vmem:[%s24990_s1 + $0x2340] ss:$112 sps:$4 sm:$0xff]   ;;  %v18186_v55 = vld [vmem:[%s24990_s1 + $0x1b68] ss:$112 sps:$4 sm:$0xff]  }
 0x395   :  { %9966 = vmatprep.subr.bf16.mxu1 %v18134_v6  ;;  %v18197_v6 = vld [vmem:[%s24990_s1 + $0x2424] ss:$112 sps:$4 sm:$0xff]  }
 0x397   :  { %9821 = vmatpush1.bf16.msra.mxu0 %v18135_v2  ;;  %v18194_v2 = vld [vmem:[%s24990_s1 + $0x1c4c] ss:$112 sps:$4 sm:$0xff]  }
 0x398   :  { %9967 = vmatpush1.bf16.msra.mxu1 %v18132_v3  ;;  %9831 = vmatprep.subr.bf16.mxu0 %v18143_v5  ;;  %v18195_v3 = vld [vmem:[%s24990_s1 + $0x2420] ss:$112 sps:$4 sm:$0xff]   ;;  %v18192_v5 = vld [vmem:[%s24990_s1 + $0x1c48] ss:$112 sps:$4 sm:$0xff]  }
 0x399   :  { %9968 = vmatprep.subr.bf16.mxu1 %v18140_v7  ;;  %v18203_v7 = vld [vmem:[%s24990_s1 + $0x2504] ss:$112 sps:$4 sm:$0xff]  }
 0x39a   :  { %9823 = vmatmul.mubr.bf16.vlgmr.msra.gmra.mrb[16].mxu0 %v19376_v18 }
 0x39b   :  { %9832 = vmatpush1.bf16.msra.mxu0 %v18141_v8  ;;  %9863 = vmatprep.mubr.bf16.mxu0 %v19393_v24  ;;  %v18200_v8 = vld [vmem:[%s24990_s1 + $0x1d2c] ss:$112 sps:$4 sm:$0xff]  }
 0x39c   :  { %9969 = vmatpush1.bf16.msra.mxu1 %v18138_v11  ;;  %9833 = vmatprep.subr.bf16.mxu0 %v18149_v14  ;;  %v18201_v11 = vld [vmem:[%s24990_s1 + $0x2500] ss:$112 sps:$4 sm:$0xff]   ;;  %v18198_v14 = vld [vmem:[%s24990_s1 + $0x1d28] ss:$112 sps:$4 sm:$0xff]  }
 0x39d   :  { %9970 = vmatprep.subr.bf16.mxu1 %v18146_v16  ;;  %v18209_v16 = vld [vmem:[%s24990_s1 + $0x25e4] ss:$112 sps:$4 sm:$0xff]  }
 0x39f   :  { %9834 = vmatpush1.bf16.msra.mxu0 %v18147_v52  ;;  %v18206_v52 = vld [vmem:[%s24990_s1 + $0x1e0c] ss:$112 sps:$4 sm:$0xff]  }
 0x3a0   :  { %9971 = vmatpush1.bf16.msra.mxu1 %v18144_v17  ;;  %9835 = vmatprep.subr.bf16.mxu0 %v18155_v20  ;;  %v18207_v17 = vld [vmem:[%s24990_s1 + $0x25e0] ss:$112 sps:$4 sm:$0xff]   ;;  %v18204_v20 = vld [vmem:[%s24990_s1 + $0x1e08] ss:$112 sps:$4 sm:$0xff]  }
 0x3a1   :  { %9972 = vmatprep.subr.bf16.mxu1 %v18152_v22  ;;  %v18215_v22 = vld [vmem:[%s24990_s1 + $0x26c4] ss:$112 sps:$4 sm:$0xff]  }
 0x3a3   :  { %9836 = vmatpush1.bf16.msra.mxu0 %v18153_v25  ;;  %v18212_v25 = vld [vmem:[%s24990_s1 + $0x1eec] ss:$112 sps:$4 sm:$0xff]  }
 0x3a4   :  { %9973 = vmatpush1.bf16.msra.mxu1 %v18150_v26  ;;  %9837 = vmatprep.subr.bf16.mxu0 %v18161_v28  ;;  %v18213_v26 = vld [vmem:[%s24990_s1 + $0x26c0] ss:$112 sps:$4 sm:$0xff]   ;;  %v18210_v28 = vld [vmem:[%s24990_s1 + $0x1ee8] ss:$112 sps:$4 sm:$0xff]  }
 0x3a5   :  { %9974 = vmatprep.subr.bf16.mxu1 %v18158_v32  ;;  %v18221_v32 = vld [vmem:[%s24990_s1 + $0x27a4] ss:$112 sps:$4 sm:$0xff]  }
 0x3a7   :  { %9838 = vmatpush1.bf16.msra.mxu0 %v18159_v35  ;;  %v18218_v35 = vld [vmem:[%s24990_s1 + $0x1fcc] ss:$112 sps:$4 sm:$0xff]  }
 0x3a8   :  { %9975 = vmatpush1.bf16.msra.mxu1 %v18156_v37  ;;  %9839 = vmatprep.subr.bf16.mxu0 %v18167_v41  ;;  %v18219_v37 = vld [vmem:[%s24990_s1 + $0x27a0] ss:$112 sps:$4 sm:$0xff]   ;;  %v18216_v41 = vld [vmem:[%s24990_s1 + $0x1fc8] ss:$112 sps:$4 sm:$0xff]  }
 0x3a9   :  { %9976 = vmatprep.subr.bf16.mxu1 %v18164_v43  ;;  %v18227_v43 = vld [vmem:[%s24990_s1 + $0x2884] ss:$112 sps:$4 sm:$0xff]  }
 0x3ab   :  { %9840 = vmatpush1.bf16.msra.mxu0 %v18165_v54  ;;  %v18224_v54 = vld [vmem:[%s24990_s1 + $0x20ac] ss:$112 sps:$4 sm:$0xff]  }
 0x3ac   :  { %9977 = vmatpush1.bf16.msra.mxu1 %v18162_v38  ;;  %9841 = vmatprep.subr.bf16.mxu0 %v18173_v45  ;;  %v18225_v38 = vld [vmem:[%s24990_s1 + $0x2880] ss:$112 sps:$4 sm:$0xff]   ;;  %v18222_v45 = vld [vmem:[%s24990_s1 + $0x20a8] ss:$112 sps:$4 sm:$0xff]  }
 0x3ad   :  { %9978 = vmatprep.subr.bf16.mxu1 %v18170_v46  ;;  %v18233_v46 = vld [vmem:[%s24990_s1 + $0x2964] ss:$112 sps:$4 sm:$0xff]  }
 0x3af   :  { %9842 = vmatpush1.bf16.msra.mxu0 %v18171_v57  ;;  %v18230_v57 = vld [vmem:[%s24990_s1 + $0x218c] ss:$112 sps:$4 sm:$0xff]  }
 0x3b0   :  { %9979 = vmatpush1.bf16.msra.mxu1 %v18168_v47  ;;  %9843 = vmatprep.subr.bf16.mxu0 %v18179_v48  ;;  %v18231_v47 = vld [vmem:[%s24990_s1 + $0x2960] ss:$112 sps:$4 sm:$0xff]   ;;  %v18228_v48 = vld [vmem:[%s24990_s1 + $0x2188] ss:$112 sps:$4 sm:$0xff]  }
 0x3b1   :  { %9980 = vmatprep.subr.bf16.mxu1 %v18176_v49  ;;  %v18239_v49 = vld [vmem:[%s24990_s1 + $0x2a44] ss:$112 sps:$4 sm:$0xff]  }
 0x3b3   :  { %9844 = vmatpush1.bf16.msra.mxu0 %v18177_v50  ;;  %v18236_v50 = vld [vmem:[%s24990_s1 + $0x226c] ss:$112 sps:$4 sm:$0xff]  }
 0x3b4   :  { %9981 = vmatpush1.bf16.msra.mxu1 %v18174_v56  ;;  %9845 = vmatprep.subr.bf16.mxu0 %v18185_v59  ;;  %v18237_v56 = vld [vmem:[%s24990_s1 + $0x2a40] ss:$112 sps:$4 sm:$0xff]   ;;  %v18234_v59 = vld [vmem:[%s24990_s1 + $0x2268] ss:$112 sps:$4 sm:$0xff]  }
 0x3b5   :  { %9982 = vmatprep.subr.bf16.mxu1 %v18182_v4  ;;  %v18251_v4 = vld [vmem:[%s24990_s1 + $0x54] ss:$112 sps:$4 sm:$0xff]  }
 0x3b7   :  { %9846 = vmatpush1.bf16.msra.mxu0 %v18183_v53  ;;  %v18242_v53 = vld [vmem:[%s24990_s1 + $0x234c] ss:$112 sps:$4 sm:$0xff]  }
 0x3b8   :  { %9983 = vmatpush1.bf16.msra.mxu1 %v18180_v40  ;;  %9847 = vmatprep.subr.bf16.mxu0 %v18191_v61  ;;  %v18240_v40 = vld [vmem:[%s24990_s1 + $0x2348] ss:$112 sps:$4 sm:$0xff]   ;;  %v18245_v61 = vld [vmem:[%s24990_s1 + $0x242c] ss:$112 sps:$4 sm:$0xff]  }
 0x3b9   :  { %9984 = vmatprep.subr.bf16.mxu1 %v18188_v44  ;;  %v18243_v44 = vld [vmem:[%s24990_s1 + $0x2428] ss:$112 sps:$4 sm:$0xff]  }
 0x3bb   :  { %9848 = vmatpush1.bf16.msra.mxu0 %v18189_v62  ;;  %v18248_v62 = vld [vmem:[%s24990_s1 + $0x250c] ss:$112 sps:$4 sm:$0xff]  }
 0x3bc   :  { %9985 = vmatpush1.bf16.msra.mxu1 %v18186_v55  ;;  %9849 = vmatprep.subr.bf16.mxu0 %v18197_v6  ;;  %v18249_v55 = vld [vmem:[%s24990_s1 + $0x50] ss:$112 sps:$4 sm:$0xff]   ;;  %v18246_v6 = vld [vmem:[%s24990_s1 + $0x2508] ss:$112 sps:$4 sm:$0xff]  }
 0x3bd   :  { %9995 = vmatprep.subr.bf16.mxu1 %v18194_v2  ;;  %v18257_v2 = vld [vmem:[%s24990_s1 + $0x134] ss:$112 sps:$4 sm:$0xff]  }
 0x3bf   :  { %9987 = vmatmul.mubr.bf16.vlgmr.msra.gmra.mrb[24].mxu1 %v19376_v18  ;;  %9850 = vmatpush1.bf16.msra.mxu0 %v18195_v3  ;;  %v22089_v3 = vsub.s32 6, %v20202_v12  ;;  %v18252_v12 = vld [vmem:[%s24990_s1 + $0x25e8] ss:$112 sps:$4 sm:$0xff]  }
 0x3c0   :  { %9996 = vmatpush1.bf16.msra.mxu1 %v18192_v5  ;;  %9851 = vmatprep.subr.bf16.mxu0 %v18203_v7  ;;  %v18254_v5 = vld [vmem:[%s24990_s1 + $0x25ec] ss:$112 sps:$4 sm:$0xff]   ;;  %v18255_v7 = vld [vmem:[%s24990_s1 + $0x130] ss:$112 sps:$4 sm:$0xff]  }
 0x3c1   :  { %9997 = vmatprep.subr.bf16.mxu1 %v18200_v8  ;;  %10027 = vmatprep.mubr.bf16.mxu1 %v19393_v24  ;;  %v18263_v8 = vld [vmem:[%s24990_s1 + $0x214] ss:$112 sps:$4 sm:$0xff]  }
 0x3c3   :  { %9852 = vmatpush1.bf16.msra.mxu0 %v18201_v11  ;;  %v1460_v11 = vrot.slane %v21468_v34, %v22089_v3  ;;  %v18258_v34 = vld [vmem:[%s24990_s1 + $0x26c8] ss:$112 sps:$4 sm:$0xff]  }
 0x3c4   :  { %9998 = vmatpush1.bf16.msra.mxu1 %v18198_v14  ;;  %9853 = vmatprep.subr.bf16.mxu0 %v18209_v16  ;;  %v18260_v14 = vld [vmem:[%s24990_s1 + $0x26cc] ss:$112 sps:$4 sm:$0xff]   ;;  %v1484_v16 = vrot.slane %v21456_v27, %v20811_v31 }
 0x3c5   :  { %9999 = vmatprep.subr.bf16.mxu1 %v18206_v52  ;;  %v18261_v52 = vld [vmem:[%s24990_s1 + $0x210] ss:$112 sps:$4 sm:$0xff]  }
 0x3c7   :  { %9854 = vmatpush1.bf16.msra.mxu0 %v18207_v17  ;;  %v1488_v17 = vrot.slane %v21456_v27, %v20817_v33 }
 0x3c8   :  { %10000 = vmatpush1.bf16.msra.mxu1 %v18204_v20  ;;  %9855 = vmatprep.subr.bf16.mxu0 %v18215_v22  ;;  %v18269_v20 = vld [vmem:[%s24990_s1 + $0x2f4] ss:$112 sps:$4 sm:$0xff]   ;;  %v16556_v22 = vadd.f32 %v20962_v42, %v1460_v11  ;;  %v18264_v42 = vld [vmem:[%s24990_s1 + $0x27a8] ss:$112 sps:$4 sm:$0xff]  }
 0x3c9   :  { %10001 = vmatprep.subr.bf16.mxu1 %v18212_v25  ;;  %v18305_v11 = vld [vmem:[%s24990_s1 + $0x914] ss:$112 sps:$4 sm:$0xff]  }
 0x3cb   :  { %9856 = vmatpush1.bf16.msra.mxu0 %v18213_v26  ;;  %v18266_v26 = vld [vmem:[%s24990_s1 + $0x27ac] ss:$112 sps:$4 sm:$0xff]  }
 0x3cc   :  { %10002 = vmatpush1.bf16.msra.mxu1 %v18210_v28  ;;  %9857 = vmatprep.subr.bf16.mxu0 %v18221_v32  ;;  %v10738_v32 = vmax.f32 %v20863_v60, 0.0  ;;  %v10739_v60 = vmax.f32 %v16556_v22, 0.0  ;;  %v18306_v22 = vld [vmem:[%s24990_s1 + $0x218] ss:$112 sps:$4 sm:$0xff]  }
 0x3cd   :  { %10003 = vmatprep.subr.bf16.mxu1 %v18218_v35 }
 0x3cf   :  { %9858 = vmatpush1.bf16.msra.mxu0 %v18219_v37 }
 0x3d0   :  { %10004 = vmatpush1.bf16.msra.mxu1 %v18216_v41  ;;  %9859 = vmatprep.subr.bf16.mxu0 %v18227_v43  ;;  %v18267_v41 = vld [vmem:[%s24990_s1 + $0x2f0] ss:$112 sps:$4 sm:$0xff]  }
 0x3d1   :  { %10005 = vmatprep.subr.bf16.mxu1 %v18224_v54 }
 0x3d3   :  { %9860 = vmatpush1.bf16.msra.mxu0 %v18225_v38  ;;  %v18275_v38 = vld [vmem:[%s24990_s1 + $0x3d4] ss:$112 sps:$4 sm:$0xff]  }
 0x3d4   :  { %10006 = vmatpush1.bf16.msra.mxu1 %v18222_v45  ;;  %9861 = vmatprep.subr.bf16.mxu0 %v18233_v46  ;;  %v18272_v46 = vld [vmem:[%s24990_s1 + $0x288c] ss:$112 sps:$4 sm:$0xff]  }
 0x3d5   :  { %10007 = vmatprep.subr.bf16.mxu1 %v18230_v57 }
 0x3d7   :  { %9862 = vmatpush1.bf16.msra.mxu0 %v18231_v47 }
 0x3d8   :  { %10008 = vmatpush1.bf16.msra.mxu1 %v18228_v48  ;;  %9872 = vmatprep.subr.bf16.mxu0 %v18239_v49  ;;  %v18273_v48 = vld [vmem:[%s24990_s1 + $0x3d0] ss:$112 sps:$4 sm:$0xff]   ;;  %v18270_v49 = vld [vmem:[%s24990_s1 + $0x2888] ss:$112 sps:$4 sm:$0xff]  }
 0x3d9   :  { %10009 = vmatprep.subr.bf16.mxu1 %v18236_v50  ;;  %v18281_v50 = vld [vmem:[%s24990_s1 + $0x4b4] ss:$112 sps:$4 sm:$0xff]  }
 0x3da   :  { %9864 = vmatmul.mubr.bf16.vlgmr.msra.gmra.mrb[16].mxu0 %v19582_v29 }
 0x3db   :  { %9873 = vmatpush1.bf16.msra.mxu0 %v18237_v56  ;;  %9904 = vmatprep.mubr.bf16.mxu0 %v18891_v1  ;;  %v18278_v56 = vld [vmem:[%s24990_s1 + $0x296c] ss:$112 sps:$4 sm:$0xff]  }
 0x3dc   :  { %10010 = vmatpush1.bf16.msra.mxu1 %v18234_v59  ;;  %10077 = vmatprep.subr.bf16.mxu0 %v18251_v4  ;;  %v18279_v59 = vld [vmem:[%s24990_s1 + $0x4b0] ss:$112 sps:$4 sm:$0xff]   ;;  %v18276_v4 = vld [vmem:[%s24990_s1 + $0x2968] ss:$112 sps:$4 sm:$0xff]  }
 0x3dd   :  { %10011 = vmatprep.subr.bf16.mxu1 %v18242_v53  ;;  %v18284_v53 = vld [vmem:[%s24990_s1 + $0x594] ss:$112 sps:$4 sm:$0xff]  }
 0x3e0   :  { %10012 = vmatpush1.bf16.msra.mxu1 %v18240_v40  ;;  %v18290_v40 = vld [vmem:[%s24990_s1 + $0x2a4c] ss:$112 sps:$4 sm:$0xff]  }
 0x3e1   :  { %10013 = vmatprep.subr.bf16.mxu1 %v18245_v61  ;;  %v18282_v61 = vld [vmem:[%s24990_s1 + $0x590] ss:$112 sps:$4 sm:$0xff]  }
 0x3e4   :  { %10014 = vmatpush1.bf16.msra.mxu1 %v18243_v44  ;;  %v18287_v44 = vld [vmem:[%s24990_s1 + $0x674] ss:$112 sps:$4 sm:$0xff]  }
 0x3e5   :  { %10015 = vmatprep.subr.bf16.mxu1 %v18248_v62  ;;  %v18288_v62 = vld [vmem:[%s24990_s1 + $0x2a48] ss:$112 sps:$4 sm:$0xff]  }
 0x3e6   :  { %15977 = vmatmul.mubr.msk.bf16.vlgmr.msra.gmra.mrb[16].mxu0 %vm8433_vm0, %v18982_v10 }
 0x3e7   :  { %10078 = vmatpush1.bf16.msra.mxu0 %v18249_v55  ;;  %10109 = vmatprep.mubr.bf16.mxu0 %v19106_v51  ;;  %v18296_v55 = vld [vmem:[%s24990_s1 + $0x5c] ss:$112 sps:$4 sm:$0xff]  }
 0x3e8   :  { %10016 = vmatpush1.bf16.msra.mxu1 %v18246_v6  ;;  %10079 = vmatprep.subr.bf16.mxu0 %v18257_v2  ;;  %v18285_v6 = vld [vmem:[%s24990_s1 + $0x670] ss:$112 sps:$4 sm:$0xff]   ;;  %v18293_v2 = vld [vmem:[%s24990_s1 + $0x754] ss:$112 sps:$4 sm:$0xff]  }
 0x3e9   :  { %10017 = vmatprep.subr.bf16.mxu1 %v18254_v5  ;;  %v18291_v5 = vld [vmem:[%s24990_s1 + $0x750] ss:$112 sps:$4 sm:$0xff]  }
 0x3eb   :  { %10080 = vmatpush1.bf16.msra.mxu0 %v18255_v7  ;;  %v18299_v7 = vld [vmem:[%s24990_s1 + $0x834] ss:$112 sps:$4 sm:$0xff]  }
 0x3ec   :  { %10018 = vmatpush1.bf16.msra.mxu1 %v18252_v12  ;;  %10081 = vmatprep.subr.bf16.mxu0 %v18263_v8  ;;  %v18297_v12 = vld [vmem:[%s24990_s1 + $0x830] ss:$112 sps:$4 sm:$0xff]   ;;  %v18294_v8 = vld [vmem:[%s24990_s1 + $0x58] ss:$112 sps:$4 sm:$0xff]  }
 0x3ed   :  { %10019 = vmatprep.subr.bf16.mxu1 %v18260_v14  ;;  %v9578_v25 = vpop.f32.mrb[12].mxu0  ;;  %v18302_v14 = vld [vmem:[%s24990_s1 + $0x13c] ss:$112 sps:$4 sm:$0xff]  }
 0x3ee   :  { %v16562_v28 = vadd.f32 %v9578_v25, %v1484_v16  ;;  %v9580_v27 = vpop.f32.mrb[13].mxu0  ;;  %v18303_v16 = vld [vmem:[%s24990_s1 + $0x910] ss:$112 sps:$4 sm:$0xff]   ;;  %v18317_v25 = vld [vmem:[%s24990_s1 + $0xad4] ss:$112 sps:$4 sm:$0xff]  }
 0x3ef   :  { %10082 = vmatpush1.bf16.msra.mxu0 %v18261_v52  ;;  %v16563_v35 = vadd.f32 %v9580_v27, %v1488_v17  ;;  %v9582_v37 = vpop.f32.mrb[14].mxu0  ;;  %v18300_v52 = vld [vmem:[%s24990_s1 + $0x138] ss:$112 sps:$4 sm:$0xff]   ;;  %v18311_v17 = vld [vmem:[%s24990_s1 + $0x9f4] ss:$112 sps:$4 sm:$0xff]  }
 0x3f0   :  { %10020 = vmatpush1.bf16.msra.mxu1 %v18258_v34  ;;  %v10745_v43 = vmax.f32 %v16562_v28, 0.0  ;;  %v9583_v54 = vpop.f32.mrb[15].mxu0  ;;  %10083 = vmatprep.subr.bf16.mxu0 %v18269_v20  ;;  %v18308_v34 = vld [vmem:[%s24990_s1 + $0x21c] ss:$112 sps:$4 sm:$0xff]   ;;  %v18309_v20 = vld [vmem:[%s24990_s1 + $0x9f0] ss:$112 sps:$4 sm:$0xff]  }
 0x3f1   :  { %v10746_v45 = vmax.f32 %v16563_v35, 0.0  ;;  %10021 = vmatprep.subr.bf16.mxu1 %v18266_v26  ;;  %v18314_v26 = vld [vmem:[%s24990_s1 + $0x2fc] ss:$112 sps:$4 sm:$0xff]   ;;  %v18312_v37 = vld [vmem:[%s24990_s1 + $0x2f8] ss:$112 sps:$4 sm:$0xff]  }
 0x3f2   :  { %v22141_v57 = vmax.f32 %v10738_v32, %v10745_v43  ;;  %v18315_v32 = vld [vmem:[%s24990_s1 + $0xad0] ss:$112 sps:$4 sm:$0xff]  }
 0x3f3   :  { %v22143_v47 = vmax.f32 %v10739_v60, %v10746_v45  ;;  %10084 = vmatpush1.bf16.msra.mxu0 %v18267_v41  ;;  %v18323_v41 = vld [vmem:[%s24990_s1 + $0xbb4] ss:$112 sps:$4 sm:$0xff]   ;;  %v18321_v54 = vld [vmem:[%s24990_s1 + $0xbb0] ss:$112 sps:$4 sm:$0xff]   ;;  %v18326_v45 = vld [vmem:[%s24990_s1 + $0x4bc] ss:$112 sps:$4 sm:$0xff]  }
 0x3f4   :  { %10022 = vmatpush1.bf16.msra.mxu1 %v18264_v42  ;;  %10085 = vmatprep.subr.bf16.mxu0 %v18275_v38  ;;  %v18320_v42 = vld [vmem:[%s24990_s1 + $0x3dc] ss:$112 sps:$4 sm:$0xff]   ;;  %v18318_v38 = vld [vmem:[%s24990_s1 + $0x3d8] ss:$112 sps:$4 sm:$0xff]   ;;  %v18329_v60 = vld [vmem:[%s24990_s1 + $0xc94] ss:$112 sps:$4 sm:$0xff]  }
 0x3f5   :  { %10023 = vmatprep.subr.bf16.mxu1 %v18272_v46  ;;  %v18327_v46 = vld [vmem:[%s24990_s1 + $0xc90] ss:$112 sps:$4 sm:$0xff]  }
 0x3f7   :  { %10086 = vmatpush1.bf16.msra.mxu0 %v18273_v48  ;;  %v18324_v48 = vld [vmem:[%s24990_s1 + $0x4b8] ss:$112 sps:$4 sm:$0xff]  }
 0x3f8   :  { %10024 = vmatpush1.bf16.msra.mxu1 %v18270_v49  ;;  %10087 = vmatprep.subr.bf16.mxu0 %v18281_v50  ;;  %v18335_v49 = vld [vmem:[%s24990_s1 + $0xd74] ss:$112 sps:$4 sm:$0xff]   ;;  %v18332_v50 = vld [vmem:[%s24990_s1 + $0x59c] ss:$112 sps:$4 sm:$0xff]  }
 0x3f9   :  { %10025 = vmatprep.subr.bf16.mxu1 %v18278_v56  ;;  %v18333_v56 = vld [vmem:[%s24990_s1 + $0xd70] ss:$112 sps:$4 sm:$0xff]  }
 0x3fb   :  { %10088 = vmatpush1.bf16.msra.mxu0 %v18279_v59  ;;  %v18330_v59 = vld [vmem:[%s24990_s1 + $0x598] ss:$112 sps:$4 sm:$0xff]  }
 0x3fc   :  { %10026 = vmatpush1.bf16.msra.mxu1 %v18276_v4  ;;  %10089 = vmatprep.subr.bf16.mxu0 %v18284_v53  ;;  %v18341_v4 = vld [vmem:[%s24990_s1 + $0xe54] ss:$112 sps:$4 sm:$0xff]   ;;  %v18338_v53 = vld [vmem:[%s24990_s1 + $0x67c] ss:$112 sps:$4 sm:$0xff]  }
 0x3fd   :  { %10036 = vmatprep.subr.bf16.mxu1 %v18290_v40  ;;  %v18339_v40 = vld [vmem:[%s24990_s1 + $0xe50] ss:$112 sps:$4 sm:$0xff]  }
 0x3ff   :  { %10028 = vmatmul.mubr.bf16.vlgmr.msra.gmra.mrb[24].mxu1 %v19582_v29  ;;  %10090 = vmatpush1.bf16.msra.mxu0 %v18282_v61  ;;  %v18336_v61 = vld [vmem:[%s24990_s1 + $0x678] ss:$112 sps:$4 sm:$0xff]  }
 0x400   :  { %10091 = vmatprep.subr.bf16.mxu0 %v18287_v44  ;;  %10037 = vmatpush1.bf16.msra.mxu1 %v18288_v62  ;;  %v18347_v44 = vld [vmem:[%s24990_s1 + $0xf34] ss:$112 sps:$4 sm:$0xff]   ;;  %v18344_v62 = vld [vmem:[%s24990_s1 + $0x75c] ss:$112 sps:$4 sm:$0xff]  }
 0x401   :  { %10068 = vmatprep.mubr.bf16.mxu1 %v18891_v1  ;;  %10241 = vmatprep.subr.bf16.mxu1 %v18296_v55  ;;  %v18345_v55 = vld [vmem:[%s24990_s1 + $0xf30] ss:$112 sps:$4 sm:$0xff]  }
 0x403   :  { %10092 = vmatpush1.bf16.msra.mxu0 %v18285_v6  ;;  %v18342_v6 = vld [vmem:[%s24990_s1 + $0x758] ss:$112 sps:$4 sm:$0xff]  }
 0x404   :  { %10093 = vmatprep.subr.bf16.mxu0 %v18293_v2  ;;  %v18353_v2 = vld [vmem:[%s24990_s1 + $0x1014] ss:$112 sps:$4 sm:$0xff]  }
 0x407   :  { %10094 = vmatpush1.bf16.msra.mxu0 %v18291_v5  ;;  %v18350_v5 = vld [vmem:[%s24990_s1 + $0x83c] ss:$112 sps:$4 sm:$0xff]  }
 0x408   :  { %10095 = vmatprep.subr.bf16.mxu0 %v18299_v7  ;;  %v18351_v7 = vld [vmem:[%s24990_s1 + $0x1010] ss:$112 sps:$4 sm:$0xff]  }
 0x40b   :  { %15978 = vmatmul.mubr.msk.bf16.vlgmr.msra.gmra.mrb[24].mxu1 %vm8433_vm0, %v18982_v10  ;;  %10096 = vmatpush1.bf16.msra.mxu0 %v18297_v12  ;;  %v18348_v12 = vld [vmem:[%s24990_s1 + $0x838] ss:$112 sps:$4 sm:$0xff]  }
 0x40c   :  { %10242 = vmatpush1.bf16.msra.mxu1 %v18294_v8  ;;  %10097 = vmatprep.subr.bf16.mxu0 %v18305_v11  ;;  %v18359_v8 = vld [vmem:[%s24990_s1 + $0x10f4] ss:$112 sps:$4 sm:$0xff]   ;;  %v18356_v11 = vld [vmem:[%s24990_s1 + $0x91c] ss:$112 sps:$4 sm:$0xff]  }
 0x40d   :  { %10243 = vmatprep.subr.bf16.mxu1 %v18302_v14  ;;  %10273 = vmatprep.mubr.bf16.mxu1 %v19106_v51  ;;  %v18357_v14 = vld [vmem:[%s24990_s1 + $0x10f0] ss:$112 sps:$4 sm:$0xff]  }
 0x40f   :  { %10098 = vmatpush1.bf16.msra.mxu0 %v18303_v16  ;;  %v18354_v16 = vld [vmem:[%s24990_s1 + $0x918] ss:$112 sps:$4 sm:$0xff]  }
 0x410   :  { %10244 = vmatpush1.bf16.msra.mxu1 %v18300_v52  ;;  %10099 = vmatprep.subr.bf16.mxu0 %v18311_v17  ;;  %v18365_v52 = vld [vmem:[%s24990_s1 + $0x11d4] ss:$112 sps:$4 sm:$0xff]   ;;  %v18362_v17 = vld [vmem:[%s24990_s1 + $0x9fc] ss:$112 sps:$4 sm:$0xff]  }
 0x411   :  { %10245 = vmatprep.subr.bf16.mxu1 %v18308_v34  ;;  %v18363_v34 = vld [vmem:[%s24990_s1 + $0x11d0] ss:$112 sps:$4 sm:$0xff]  }
 0x412   :  { %v22234_v28 = vpop.f32.mrb[20].mxu1 }
 0x413   :  { %v22236_v27 = vpop.f32.mrb[21].mxu1  ;;  %10100 = vmatpush1.bf16.msra.mxu0 %v18309_v20  ;;  %v18360_v20 = vld [vmem:[%s24990_s1 + $0x9f8] ss:$112 sps:$4 sm:$0xff]  }
 0x414   :  { %10246 = vmatpush1.bf16.msra.mxu1 %v18306_v22  ;;  %v9746_v35 = vpop.f32.mrb[22].mxu1  ;;  %10101 = vmatprep.subr.bf16.mxu0 %v18317_v25  ;;  %v18371_v22 = vld [vmem:[%s24990_s1 + $0x12b4] ss:$112 sps:$4 sm:$0xff]   ;;  %v18368_v25 = vld [vmem:[%s24990_s1 + $0xadc] ss:$112 sps:$4 sm:$0xff]  }
 0x415   :  { %v9747_v43 = vpop.f32.mrb[23].mxu1  ;;  %10247 = vmatprep.subr.bf16.mxu1 %v18314_v26  ;;  %v18369_v26 = vld [vmem:[%s24990_s1 + $0x12b0] ss:$112 sps:$4 sm:$0xff]   ;;  %v18377_v35 = vld [vmem:[%s24990_s1 + $0x1394] ss:$112 sps:$4 sm:$0xff]  }
 0x416   :  { %v18372_v43 = vld [vmem:[%s24990_s1 + $0xbb8] ss:$112 sps:$4 sm:$0xff]  }
 0x417   :  { %10102 = vmatpush1.bf16.msra.mxu0 %v18315_v32  ;;  %v18366_v32 = vld [vmem:[%s24990_s1 + $0xad8] ss:$112 sps:$4 sm:$0xff]  }
 0x418   :  { %10248 = vmatpush1.bf16.msra.mxu1 %v18312_v37  ;;  %10103 = vmatprep.subr.bf16.mxu0 %v18323_v41  ;;  %v18374_v37 = vld [vmem:[%s24990_s1 + $0xbbc] ss:$112 sps:$4 sm:$0xff]   ;;  %v18375_v41 = vld [vmem:[%s24990_s1 + $0x1390] ss:$112 sps:$4 sm:$0xff]  }
 0x419   :  { %10249 = vmatprep.subr.bf16.mxu1 %v18320_v42  ;;  %v18383_v42 = vld [vmem:[%s24990_s1 + $0x1474] ss:$112 sps:$4 sm:$0xff]  }
 0x41b   :  { %10104 = vmatpush1.bf16.msra.mxu0 %v18321_v54  ;;  %v18380_v54 = vld [vmem:[%s24990_s1 + $0xc9c] ss:$112 sps:$4 sm:$0xff]  }
 0x41c   :  { %10250 = vmatpush1.bf16.msra.mxu1 %v18318_v38  ;;  %10105 = vmatprep.subr.bf16.mxu0 %v18329_v60  ;;  %v18381_v38 = vld [vmem:[%s24990_s1 + $0x1470] ss:$112 sps:$4 sm:$0xff]   ;;  %v18378_v60 = vld [vmem:[%s24990_s1 + $0xc98] ss:$112 sps:$4 sm:$0xff]  }
 0x41d   :  { %10251 = vmatprep.subr.bf16.mxu1 %v18326_v45  ;;  %v18389_v45 = vld [vmem:[%s24990_s1 + $0x1554] ss:$112 sps:$4 sm:$0xff]  }
 0x41f   :  { %10106 = vmatpush1.bf16.msra.mxu0 %v18327_v46  ;;  %v18386_v46 = vld [vmem:[%s24990_s1 + $0xd7c] ss:$112 sps:$4 sm:$0xff]  }
 0x420   :  { %10252 = vmatpush1.bf16.msra.mxu1 %v18324_v48  ;;  %10107 = vmatprep.subr.bf16.mxu0 %v18335_v49  ;;  %v18387_v48 = vld [vmem:[%s24990_s1 + $0x1550] ss:$112 sps:$4 sm:$0xff]   ;;  %v18384_v49 = vld [vmem:[%s24990_s1 + $0xd78] ss:$112 sps:$4 sm:$0xff]  }
 0x421   :  { %10253 = vmatprep.subr.bf16.mxu1 %v18332_v50  ;;  %v18395_v50 = vld [vmem:[%s24990_s1 + $0x1634] ss:$112 sps:$4 sm:$0xff]  }
 0x423   :  { %10108 = vmatpush1.bf16.msra.mxu0 %v18333_v56  ;;  %v18392_v56 = vld [vmem:[%s24990_s1 + $0xe5c] ss:$112 sps:$4 sm:$0xff]  }
 0x424   :  { %10254 = vmatpush1.bf16.msra.mxu1 %v18330_v59  ;;  %10118 = vmatprep.subr.bf16.mxu0 %v18341_v4  ;;  %v18393_v59 = vld [vmem:[%s24990_s1 + $0x1630] ss:$112 sps:$4 sm:$0xff]   ;;  %v18390_v4 = vld [vmem:[%s24990_s1 + $0xe58] ss:$112 sps:$4 sm:$0xff]  }
 0x425   :  { %10255 = vmatprep.subr.bf16.mxu1 %v18338_v53  ;;  %v18401_v53 = vld [vmem:[%s24990_s1 + $0x1714] ss:$112 sps:$4 sm:$0xff]  }
 0x426   :  { %10110 = vmatmul.mubr.bf16.vlgmr.msra.gmra.mrb[20].mxu0 %v19170_v9 }
 0x427   :  { %10119 = vmatpush1.bf16.msra.mxu0 %v18339_v40  ;;  %10150 = vmatprep.mubr.bf16.mxu0 %v19249_v36  ;;  %v18398_v40 = vld [vmem:[%s24990_s1 + $0xf3c] ss:$112 sps:$4 sm:$0xff]  }
 0x428   :  { %10256 = vmatpush1.bf16.msra.mxu1 %v18336_v61  ;;  %10120 = vmatprep.subr.bf16.mxu0 %v18347_v44  ;;  %v18399_v61 = vld [vmem:[%s24990_s1 + $0x1710] ss:$112 sps:$4 sm:$0xff]   ;;  %v18396_v44 = vld [vmem:[%s24990_s1 + $0xf38] ss:$112 sps:$4 sm:$0xff]  }
 0x429   :  { %10257 = vmatprep.subr.bf16.mxu1 %v18344_v62  ;;  %v18407_v62 = vld [vmem:[%s24990_s1 + $0x17f4] ss:$112 sps:$4 sm:$0xff]  }
 0x42b   :  { %10121 = vmatpush1.bf16.msra.mxu0 %v18345_v55  ;;  %v18404_v55 = vld [vmem:[%s24990_s1 + $0x101c] ss:$112 sps:$4 sm:$0xff]  }
 0x42c   :  { %10258 = vmatpush1.bf16.msra.mxu1 %v18342_v6  ;;  %10122 = vmatprep.subr.bf16.mxu0 %v18353_v2  ;;  %v18405_v6 = vld [vmem:[%s24990_s1 + $0x17f0] ss:$112 sps:$4 sm:$0xff]   ;;  %v18402_v2 = vld [vmem:[%s24990_s1 + $0x1018] ss:$112 sps:$4 sm:$0xff]  }
 0x42d   :  { %10259 = vmatprep.subr.bf16.mxu1 %v18350_v5  ;;  %v18413_v5 = vld [vmem:[%s24990_s1 + $0x18d4] ss:$112 sps:$4 sm:$0xff]  }
 0x42f   :  { %10123 = vmatpush1.bf16.msra.mxu0 %v18351_v7  ;;  %v18410_v7 = vld [vmem:[%s24990_s1 + $0x10fc] ss:$112 sps:$4 sm:$0xff]  }
 0x430   :  { %10260 = vmatpush1.bf16.msra.mxu1 %v18348_v12  ;;  %10124 = vmatprep.subr.bf16.mxu0 %v18359_v8  ;;  %v18411_v12 = vld [vmem:[%s24990_s1 + $0x18d0] ss:$112 sps:$4 sm:$0xff]   ;;  %v18408_v8 = vld [vmem:[%s24990_s1 + $0x10f8] ss:$112 sps:$4 sm:$0xff]  }
 0x431   :  { %10261 = vmatprep.subr.bf16.mxu1 %v18356_v11  ;;  %v18419_v11 = vld [vmem:[%s24990_s1 + $0x19b4] ss:$112 sps:$4 sm:$0xff]  }
 0x433   :  { %10125 = vmatpush1.bf16.msra.mxu0 %v18357_v14  ;;  %v18416_v14 = vld [vmem:[%s24990_s1 + $0x11dc] ss:$112 sps:$4 sm:$0xff]  }
 0x434   :  { %10262 = vmatpush1.bf16.msra.mxu1 %v18354_v16  ;;  %10126 = vmatprep.subr.bf16.mxu0 %v18365_v52  ;;  %v18417_v16 = vld [vmem:[%s24990_s1 + $0x19b0] ss:$112 sps:$4 sm:$0xff]   ;;  %v18414_v52 = vld [vmem:[%s24990_s1 + $0x11d8] ss:$112 sps:$4 sm:$0xff]  }
 0x435   :  { %10263 = vmatprep.subr.bf16.mxu1 %v18362_v17  ;;  %v18425_v17 = vld [vmem:[%s24990_s1 + $0x1a94] ss:$112 sps:$4 sm:$0xff]  }
 0x437   :  { %10127 = vmatpush1.bf16.msra.mxu0 %v18363_v34  ;;  %v18422_v34 = vld [vmem:[%s24990_s1 + $0x12bc] ss:$112 sps:$4 sm:$0xff]  }
 0x438   :  { %10264 = vmatpush1.bf16.msra.mxu1 %v18360_v20  ;;  %10128 = vmatprep.subr.bf16.mxu0 %v18371_v22  ;;  %v18423_v20 = vld [vmem:[%s24990_s1 + $0x1a90] ss:$112 sps:$4 sm:$0xff]   ;;  %v18420_v22 = vld [vmem:[%s24990_s1 + $0x12b8] ss:$112 sps:$4 sm:$0xff]  }
 0x439   :  { %10265 = vmatprep.subr.bf16.mxu1 %v18368_v25  ;;  %v18431_v25 = vld [vmem:[%s24990_s1 + $0x1b74] ss:$112 sps:$4 sm:$0xff]  }
 0x43b   :  { %10129 = vmatpush1.bf16.msra.mxu0 %v18369_v26  ;;  %v18428_v26 = vld [vmem:[%s24990_s1 + $0x139c] ss:$112 sps:$4 sm:$0xff]  }
 0x43c   :  { %10266 = vmatpush1.bf16.msra.mxu1 %v18366_v32  ;;  %10130 = vmatprep.subr.bf16.mxu0 %v18377_v35  ;;  %v18429_v32 = vld [vmem:[%s24990_s1 + $0x1b70] ss:$112 sps:$4 sm:$0xff]   ;;  %v18426_v35 = vld [vmem:[%s24990_s1 + $0x1398] ss:$112 sps:$4 sm:$0xff]  }
 0x43d   :  { %10267 = vmatprep.subr.bf16.mxu1 %v18374_v37  ;;  %v18437_v37 = vld [vmem:[%s24990_s1 + $0x1c54] ss:$112 sps:$4 sm:$0xff]  }
 0x43f   :  { %10131 = vmatpush1.bf16.msra.mxu0 %v18375_v41  ;;  %v18434_v41 = vld [vmem:[%s24990_s1 + $0x147c] ss:$112 sps:$4 sm:$0xff]  }
 0x440   :  { %10268 = vmatpush1.bf16.msra.mxu1 %v18372_v43  ;;  %10132 = vmatprep.subr.bf16.mxu0 %v18383_v42  ;;  %v18435_v43 = vld [vmem:[%s24990_s1 + $0x1c50] ss:$112 sps:$4 sm:$0xff]   ;;  %v18432_v42 = vld [vmem:[%s24990_s1 + $0x1478] ss:$112 sps:$4 sm:$0xff]  }
 0x441   :  { %10269 = vmatprep.subr.bf16.mxu1 %v18380_v54  ;;  %v18443_v54 = vld [vmem:[%s24990_s1 + $0x1d34] ss:$112 sps:$4 sm:$0xff]  }
 0x443   :  { %10133 = vmatpush1.bf16.msra.mxu0 %v18381_v38  ;;  %v18440_v38 = vld [vmem:[%s24990_s1 + $0x155c] ss:$112 sps:$4 sm:$0xff]  }
 0x444   :  { %10270 = vmatpush1.bf16.msra.mxu1 %v18378_v60  ;;  %10134 = vmatprep.subr.bf16.mxu0 %v18389_v45  ;;  %v18441_v60 = vld [vmem:[%s24990_s1 + $0x1d30] ss:$112 sps:$4 sm:$0xff]   ;;  %v18438_v45 = vld [vmem:[%s24990_s1 + $0x1558] ss:$112 sps:$4 sm:$0xff]  }
 0x445   :  { %10271 = vmatprep.subr.bf16.mxu1 %v18386_v46  ;;  %v18449_v46 = vld [vmem:[%s24990_s1 + $0x1e14] ss:$112 sps:$4 sm:$0xff]  }
 0x447   :  { %10135 = vmatpush1.bf16.msra.mxu0 %v18387_v48  ;;  %v18446_v48 = vld [vmem:[%s24990_s1 + $0x163c] ss:$112 sps:$4 sm:$0xff]  }
 0x448   :  { %10272 = vmatpush1.bf16.msra.mxu1 %v18384_v49  ;;  %10136 = vmatprep.subr.bf16.mxu0 %v18395_v50  ;;  %v18447_v49 = vld [vmem:[%s24990_s1 + $0x1e10] ss:$112 sps:$4 sm:$0xff]   ;;  %v18444_v50 = vld [vmem:[%s24990_s1 + $0x1638] ss:$112 sps:$4 sm:$0xff]  }
 0x449   :  { %10282 = vmatprep.subr.bf16.mxu1 %v18392_v56  ;;  %v18455_v56 = vld [vmem:[%s24990_s1 + $0x1ef4] ss:$112 sps:$4 sm:$0xff]  }
 0x44b   :  { %10274 = vmatmul.mubr.bf16.vlgmr.msra.gmra.mrb[28].mxu1 %v19170_v9  ;;  %10137 = vmatpush1.bf16.msra.mxu0 %v18393_v59  ;;  %v18452_v59 = vld [vmem:[%s24990_s1 + $0x171c] ss:$112 sps:$4 sm:$0xff]  }
 0x44c   :  { %10283 = vmatpush1.bf16.msra.mxu1 %v18390_v4  ;;  %10138 = vmatprep.subr.bf16.mxu0 %v18401_v53  ;;  %v18453_v4 = vld [vmem:[%s24990_s1 + $0x1ef0] ss:$112 sps:$4 sm:$0xff]   ;;  %v18450_v53 = vld [vmem:[%s24990_s1 + $0x1718] ss:$112 sps:$4 sm:$0xff]  }
 0x44d   :  { %10284 = vmatprep.subr.bf16.mxu1 %v18398_v40  ;;  %10314 = vmatprep.mubr.bf16.mxu1 %v19249_v36  ;;  %v18461_v40 = vld [vmem:[%s24990_s1 + $0x1fd4] ss:$112 sps:$4 sm:$0xff]  }
 0x44f   :  { %10139 = vmatpush1.bf16.msra.mxu0 %v18399_v61  ;;  %v18458_v61 = vld [vmem:[%s24990_s1 + $0x17fc] ss:$112 sps:$4 sm:$0xff]  }
 0x450   :  { %10285 = vmatpush1.bf16.msra.mxu1 %v18396_v44  ;;  %10140 = vmatprep.subr.bf16.mxu0 %v18407_v62  ;;  %v18459_v44 = vld [vmem:[%s24990_s1 + $0x1fd0] ss:$112 sps:$4 sm:$0xff]   ;;  %v18456_v62 = vld [vmem:[%s24990_s1 + $0x17f8] ss:$112 sps:$4 sm:$0xff]  }
 0x451   :  { %10286 = vmatprep.subr.bf16.mxu1 %v18404_v55  ;;  %v18467_v55 = vld [vmem:[%s24990_s1 + $0x20b4] ss:$112 sps:$4 sm:$0xff]  }
 0x453   :  { %10141 = vmatpush1.bf16.msra.mxu0 %v18405_v6  ;;  %v18464_v6 = vld [vmem:[%s24990_s1 + $0x18dc] ss:$112 sps:$4 sm:$0xff]  }
 0x454   :  { %10287 = vmatpush1.bf16.msra.mxu1 %v18402_v2  ;;  %10142 = vmatprep.subr.bf16.mxu0 %v18413_v5  ;;  %v18465_v2 = vld [vmem:[%s24990_s1 + $0x20b0] ss:$112 sps:$4 sm:$0xff]   ;;  %v18462_v5 = vld [vmem:[%s24990_s1 + $0x18d8] ss:$112 sps:$4 sm:$0xff]  }
 0x455   :  { %10288 = vmatprep.subr.bf16.mxu1 %v18410_v7  ;;  %v18473_v7 = vld [vmem:[%s24990_s1 + $0x2194] ss:$112 sps:$4 sm:$0xff]  }
 0x457   :  { %10143 = vmatpush1.bf16.msra.mxu0 %v18411_v12  ;;  %v18470_v12 = vld [vmem:[%s24990_s1 + $0x19bc] ss:$112 sps:$4 sm:$0xff]  }
 0x458   :  { %10289 = vmatpush1.bf16.msra.mxu1 %v18408_v8  ;;  %10144 = vmatprep.subr.bf16.mxu0 %v18419_v11  ;;  %v18471_v8 = vld [vmem:[%s24990_s1 + $0x2190] ss:$112 sps:$4 sm:$0xff]   ;;  %v18468_v11 = vld [vmem:[%s24990_s1 + $0x19b8] ss:$112 sps:$4 sm:$0xff]  }
 0x459   :  { %10290 = vmatprep.subr.bf16.mxu1 %v18416_v14  ;;  %v18479_v14 = vld [vmem:[%s24990_s1 + $0x2274] ss:$112 sps:$4 sm:$0xff]  }
 0x45b   :  { %10145 = vmatpush1.bf16.msra.mxu0 %v18417_v16  ;;  %v18476_v16 = vld [vmem:[%s24990_s1 + $0x1a9c] ss:$112 sps:$4 sm:$0xff]  }
 0x45c   :  { %10291 = vmatpush1.bf16.msra.mxu1 %v18414_v52  ;;  %10146 = vmatprep.subr.bf16.mxu0 %v18425_v17  ;;  %v18477_v52 = vld [vmem:[%s24990_s1 + $0x2270] ss:$112 sps:$4 sm:$0xff]   ;;  %v18474_v17 = vld [vmem:[%s24990_s1 + $0x1a98] ss:$112 sps:$4 sm:$0xff]  }
 0x45d   :  { %10292 = vmatprep.subr.bf16.mxu1 %v18422_v34  ;;  %v18485_v34 = vld [vmem:[%s24990_s1 + $0x2354] ss:$112 sps:$4 sm:$0xff]  }
 0x45f   :  { %10147 = vmatpush1.bf16.msra.mxu0 %v18423_v20  ;;  %v18482_v20 = vld [vmem:[%s24990_s1 + $0x1b7c] ss:$112 sps:$4 sm:$0xff]  }
 0x460   :  { %10293 = vmatpush1.bf16.msra.mxu1 %v18420_v22  ;;  %10148 = vmatprep.subr.bf16.mxu0 %v18431_v25  ;;  %v18483_v22 = vld [vmem:[%s24990_s1 + $0x2350] ss:$112 sps:$4 sm:$0xff]   ;;  %v18480_v25 = vld [vmem:[%s24990_s1 + $0x1b78] ss:$112 sps:$4 sm:$0xff]  }
 0x461   :  { %10294 = vmatprep.subr.bf16.mxu1 %v18428_v26  ;;  %v18491_v26 = vld [vmem:[%s24990_s1 + $0x2434] ss:$112 sps:$4 sm:$0xff]  }
 0x463   :  { %10149 = vmatpush1.bf16.msra.mxu0 %v18429_v32  ;;  %v18488_v32 = vld [vmem:[%s24990_s1 + $0x1c5c] ss:$112 sps:$4 sm:$0xff]  }
 0x464   :  { %10295 = vmatpush1.bf16.msra.mxu1 %v18426_v35  ;;  %10159 = vmatprep.subr.bf16.mxu0 %v18437_v37  ;;  %v18489_v35 = vld [vmem:[%s24990_s1 + $0x2430] ss:$112 sps:$4 sm:$0xff]   ;;  %v18486_v37 = vld [vmem:[%s24990_s1 + $0x1c58] ss:$112 sps:$4 sm:$0xff]  }
 0x465   :  { %10296 = vmatprep.subr.bf16.mxu1 %v18434_v41  ;;  %v18497_v41 = vld [vmem:[%s24990_s1 + $0x2514] ss:$112 sps:$4 sm:$0xff]  }
 0x466   :  { %10151 = vmatmul.mubr.bf16.vlgmr.msra.gmra.mrb[20].mxu0 %v19376_v18 }
 0x467   :  { %10160 = vmatpush1.bf16.msra.mxu0 %v18435_v43  ;;  %10191 = vmatprep.mubr.bf16.mxu0 %v19393_v24  ;;  %v18494_v43 = vld [vmem:[%s24990_s1 + $0x1d3c] ss:$112 sps:$4 sm:$0xff]  }
 0x468   :  { %10297 = vmatpush1.bf16.msra.mxu1 %v18432_v42  ;;  %10161 = vmatprep.subr.bf16.mxu0 %v18443_v54  ;;  %v18495_v42 = vld [vmem:[%s24990_s1 + $0x2510] ss:$112 sps:$4 sm:$0xff]   ;;  %v18492_v54 = vld [vmem:[%s24990_s1 + $0x1d38] ss:$112 sps:$4 sm:$0xff]  }
 0x469   :  { %10298 = vmatprep.subr.bf16.mxu1 %v18440_v38  ;;  %v18503_v38 = vld [vmem:[%s24990_s1 + $0x25f4] ss:$112 sps:$4 sm:$0xff]  }
 0x46b   :  { %10162 = vmatpush1.bf16.msra.mxu0 %v18441_v60  ;;  %v18500_v60 = vld [vmem:[%s24990_s1 + $0x1e1c] ss:$112 sps:$4 sm:$0xff]  }
 0x46c   :  { %10299 = vmatpush1.bf16.msra.mxu1 %v18438_v45  ;;  %10163 = vmatprep.subr.bf16.mxu0 %v18449_v46  ;;  %v18501_v45 = vld [vmem:[%s24990_s1 + $0x25f0] ss:$112 sps:$4 sm:$0xff]   ;;  %v18498_v46 = vld [vmem:[%s24990_s1 + $0x1e18] ss:$112 sps:$4 sm:$0xff]  }
 0x46d   :  { %10300 = vmatprep.subr.bf16.mxu1 %v18446_v48  ;;  %v18509_v48 = vld [vmem:[%s24990_s1 + $0x26d4] ss:$112 sps:$4 sm:$0xff]  }
 0x46f   :  { %10164 = vmatpush1.bf16.msra.mxu0 %v18447_v49  ;;  %v18506_v49 = vld [vmem:[%s24990_s1 + $0x1efc] ss:$112 sps:$4 sm:$0xff]  }
 0x470   :  { %10301 = vmatpush1.bf16.msra.mxu1 %v18444_v50  ;;  %10165 = vmatprep.subr.bf16.mxu0 %v18455_v56  ;;  %v18507_v50 = vld [vmem:[%s24990_s1 + $0x26d0] ss:$112 sps:$4 sm:$0xff]   ;;  %v18504_v56 = vld [vmem:[%s24990_s1 + $0x1ef8] ss:$112 sps:$4 sm:$0xff]  }
 0x471   :  { %10302 = vmatprep.subr.bf16.mxu1 %v18452_v59  ;;  %v18515_v59 = vld [vmem:[%s24990_s1 + $0x27b4] ss:$112 sps:$4 sm:$0xff]  }
 0x473   :  { %10166 = vmatpush1.bf16.msra.mxu0 %v18453_v4  ;;  %v18512_v4 = vld [vmem:[%s24990_s1 + $0x1fdc] ss:$112 sps:$4 sm:$0xff]  }
 0x474   :  { %10303 = vmatpush1.bf16.msra.mxu1 %v18450_v53  ;;  %10167 = vmatprep.subr.bf16.mxu0 %v18461_v40  ;;  %v18513_v53 = vld [vmem:[%s24990_s1 + $0x27b0] ss:$112 sps:$4 sm:$0xff]   ;;  %v18510_v40 = vld [vmem:[%s24990_s1 + $0x1fd8] ss:$112 sps:$4 sm:$0xff]  }
 0x475   :  { %10304 = vmatprep.subr.bf16.mxu1 %v18458_v61  ;;  %v18521_v61 = vld [vmem:[%s24990_s1 + $0x2894] ss:$112 sps:$4 sm:$0xff]  }
 0x477   :  { %10168 = vmatpush1.bf16.msra.mxu0 %v18459_v44  ;;  %v18518_v44 = vld [vmem:[%s24990_s1 + $0x20bc] ss:$112 sps:$4 sm:$0xff]  }
 0x478   :  { %10305 = vmatpush1.bf16.msra.mxu1 %v18456_v62  ;;  %10169 = vmatprep.subr.bf16.mxu0 %v18467_v55  ;;  %v18519_v62 = vld [vmem:[%s24990_s1 + $0x2890] ss:$112 sps:$4 sm:$0xff]   ;;  %v18516_v55 = vld [vmem:[%s24990_s1 + $0x20b8] ss:$112 sps:$4 sm:$0xff]  }
 0x479   :  { %10306 = vmatprep.subr.bf16.mxu1 %v18464_v6  ;;  %v18527_v6 = vld [vmem:[%s24990_s1 + $0x2974] ss:$112 sps:$4 sm:$0xff]  }
 0x47b   :  { %10170 = vmatpush1.bf16.msra.mxu0 %v18465_v2  ;;  %v18524_v2 = vld [vmem:[%s24990_s1 + $0x219c] ss:$112 sps:$4 sm:$0xff]  }
 0x47c   :  { %10307 = vmatpush1.bf16.msra.mxu1 %v18462_v5  ;;  %10171 = vmatprep.subr.bf16.mxu0 %v18473_v7  ;;  %v18525_v5 = vld [vmem:[%s24990_s1 + $0x2970] ss:$112 sps:$4 sm:$0xff]   ;;  %v18522_v7 = vld [vmem:[%s24990_s1 + $0x2198] ss:$112 sps:$4 sm:$0xff]  }
 0x47d   :  { %10308 = vmatprep.subr.bf16.mxu1 %v18470_v12  ;;  %v18533_v12 = vld [vmem:[%s24990_s1 + $0x2a54] ss:$112 sps:$4 sm:$0xff]  }
 0x47f   :  { %10172 = vmatpush1.bf16.msra.mxu0 %v18471_v8  ;;  %v18530_v8 = vld [vmem:[%s24990_s1 + $0x227c] ss:$112 sps:$4 sm:$0xff]  }
 0x480   :  { %10309 = vmatpush1.bf16.msra.mxu1 %v18468_v11  ;;  %10173 = vmatprep.subr.bf16.mxu0 %v18479_v14  ;;  %v18531_v11 = vld [vmem:[%s24990_s1 + $0x2a50] ss:$112 sps:$4 sm:$0xff]   ;;  %v18528_v14 = vld [vmem:[%s24990_s1 + $0x2278] ss:$112 sps:$4 sm:$0xff]  }
 0x481   :  { %10310 = vmatprep.subr.bf16.mxu1 %v18476_v16  ;;  %v18545_v16 = vld [vmem:[%s24990_s1 + $0x64] ss:$112 sps:$4 sm:$0xff]  }
 0x483   :  { %10174 = vmatpush1.bf16.msra.mxu0 %v18477_v52  ;;  %v18536_v52 = vld [vmem:[%s24990_s1 + $0x235c] ss:$112 sps:$4 sm:$0xff]  }
 0x484   :  { %10311 = vmatpush1.bf16.msra.mxu1 %v18474_v17  ;;  %10175 = vmatprep.subr.bf16.mxu0 %v18485_v34  ;;  %v18534_v17 = vld [vmem:[%s24990_s1 + $0x2358] ss:$112 sps:$4 sm:$0xff]   ;;  %v18539_v34 = vld [vmem:[%s24990_s1 + $0x243c] ss:$112 sps:$4 sm:$0xff]  }
 0x485   :  { %10312 = vmatprep.subr.bf16.mxu1 %v18482_v20  ;;  %v18537_v20 = vld [vmem:[%s24990_s1 + $0x2438] ss:$112 sps:$4 sm:$0xff]  }
 0x487   :  { %10176 = vmatpush1.bf16.msra.mxu0 %v18483_v22  ;;  %v18542_v22 = vld [vmem:[%s24990_s1 + $0x251c] ss:$112 sps:$4 sm:$0xff]  }
 0x488   :  { %10313 = vmatpush1.bf16.msra.mxu1 %v18480_v25  ;;  %10177 = vmatprep.subr.bf16.mxu0 %v18491_v26  ;;  %v18543_v25 = vld [vmem:[%s24990_s1 + $0x60] ss:$112 sps:$4 sm:$0xff]   ;;  %v18540_v26 = vld [vmem:[%s24990_s1 + $0x2518] ss:$112 sps:$4 sm:$0xff]  }
 0x489   :  { %10323 = vmatprep.subr.bf16.mxu1 %v18488_v32  ;;  %v18551_v32 = vld [vmem:[%s24990_s1 + $0x144] ss:$112 sps:$4 sm:$0xff]  }
 0x48b   :  { %10315 = vmatmul.mubr.bf16.vlgmr.msra.gmra.mrb[28].mxu1 %v19376_v18  ;;  %10178 = vmatpush1.bf16.msra.mxu0 %v18489_v35  ;;  %v18548_v35 = vld [vmem:[%s24990_s1 + $0x25fc] ss:$112 sps:$4 sm:$0xff]  }
 0x48c   :  { %10324 = vmatpush1.bf16.msra.mxu1 %v18486_v37  ;;  %10179 = vmatprep.subr.bf16.mxu0 %v18497_v41  ;;  %v18549_v37 = vld [vmem:[%s24990_s1 + $0x140] ss:$112 sps:$4 sm:$0xff]   ;;  %v18546_v41 = vld [vmem:[%s24990_s1 + $0x25f8] ss:$112 sps:$4 sm:$0xff]  }
 0x48d   :  { %10325 = vmatprep.subr.bf16.mxu1 %v18494_v43  ;;  %10355 = vmatprep.mubr.bf16.mxu1 %v19393_v24  ;;  %v18557_v43 = vld [vmem:[%s24990_s1 + $0x224] ss:$112 sps:$4 sm:$0xff]  }
 0x48f   :  { %10180 = vmatpush1.bf16.msra.mxu0 %v18495_v42  ;;  %v18554_v42 = vld [vmem:[%s24990_s1 + $0x26dc] ss:$112 sps:$4 sm:$0xff]  }
 0x490   :  { %10326 = vmatpush1.bf16.msra.mxu1 %v18492_v54  ;;  %10181 = vmatprep.subr.bf16.mxu0 %v18503_v38  ;;  %v18555_v54 = vld [vmem:[%s24990_s1 + $0x220] ss:$112 sps:$4 sm:$0xff]   ;;  %v18552_v38 = vld [vmem:[%s24990_s1 + $0x26d8] ss:$112 sps:$4 sm:$0xff]  }
 0x491   :  { %10327 = vmatprep.subr.bf16.mxu1 %v18500_v60  ;;  %v18563_v60 = vld [vmem:[%s24990_s1 + $0x304] ss:$112 sps:$4 sm:$0xff]  }
 0x493   :  { %10182 = vmatpush1.bf16.msra.mxu0 %v18501_v45 }
 0x494   :  { %10328 = vmatpush1.bf16.msra.mxu1 %v18498_v46  ;;  %10183 = vmatprep.subr.bf16.mxu0 %v18509_v48  ;;  %v18560_v46 = vld [vmem:[%s24990_s1 + $0x27bc] ss:$112 sps:$4 sm:$0xff]  }
 0x495   :  { %10329 = vmatprep.subr.bf16.mxu1 %v18506_v49 }
 0x497   :  { %10184 = vmatpush1.bf16.msra.mxu0 %v18507_v50  ;;  %v18561_v50 = vld [vmem:[%s24990_s1 + $0x300] ss:$112 sps:$4 sm:$0xff]  }
 0x498   :  { %10330 = vmatpush1.bf16.msra.mxu1 %v18504_v56  ;;  %10185 = vmatprep.subr.bf16.mxu0 %v18515_v59  ;;  %v18558_v56 = vld [vmem:[%s24990_s1 + $0x27b8] ss:$112 sps:$4 sm:$0xff]  }
 0x499   :  { %10331 = vmatprep.subr.bf16.mxu1 %v18512_v4  ;;  %v18569_v4 = vld [vmem:[%s24990_s1 + $0x3e4] ss:$112 sps:$4 sm:$0xff]  }
 0x49b   :  { %10186 = vmatpush1.bf16.msra.mxu0 %v18513_v53  ;;  %v18566_v53 = vld [vmem:[%s24990_s1 + $0x289c] ss:$112 sps:$4 sm:$0xff]  }
 0x49c   :  { %10332 = vmatpush1.bf16.msra.mxu1 %v18510_v40  ;;  %10187 = vmatprep.subr.bf16.mxu0 %v18521_v61  ;;  %v18567_v40 = vld [vmem:[%s24990_s1 + $0x3e0] ss:$112 sps:$4 sm:$0xff]   ;;  %v18564_v61 = vld [vmem:[%s24990_s1 + $0x2898] ss:$112 sps:$4 sm:$0xff]  }
 0x49d   :  { %10333 = vmatprep.subr.bf16.mxu1 %v18518_v44  ;;  %v18575_v44 = vld [vmem:[%s24990_s1 + $0x4c4] ss:$112 sps:$4 sm:$0xff]  }
 0x49f   :  { %10188 = vmatpush1.bf16.msra.mxu0 %v18519_v62  ;;  %v18572_v62 = vld [vmem:[%s24990_s1 + $0x297c] ss:$112 sps:$4 sm:$0xff]  }
 0x4a0   :  { %10334 = vmatpush1.bf16.msra.mxu1 %v18516_v55  ;;  %10189 = vmatprep.subr.bf16.mxu0 %v18527_v6  ;;  %v18573_v55 = vld [vmem:[%s24990_s1 + $0x4c0] ss:$112 sps:$4 sm:$0xff]   ;;  %v18570_v6 = vld [vmem:[%s24990_s1 + $0x2978] ss:$112 sps:$4 sm:$0xff]  }
 0x4a1   :  { %10335 = vmatprep.subr.bf16.mxu1 %v18524_v2  ;;  %v18578_v2 = vld [vmem:[%s24990_s1 + $0x5a4] ss:$112 sps:$4 sm:$0xff]  }
 0x4a3   :  { %10190 = vmatpush1.bf16.msra.mxu0 %v18525_v5  ;;  %v18584_v5 = vld [vmem:[%s24990_s1 + $0x2a5c] ss:$112 sps:$4 sm:$0xff]  }
 0x4a4   :  { %10336 = vmatpush1.bf16.msra.mxu1 %v18522_v7  ;;  %10200 = vmatprep.subr.bf16.mxu0 %v18533_v12  ;;  %v18576_v7 = vld [vmem:[%s24990_s1 + $0x5a0] ss:$112 sps:$4 sm:$0xff]   ;;  %v18581_v12 = vld [vmem:[%s24990_s1 + $0x684] ss:$112 sps:$4 sm:$0xff]  }
 0x4a5   :  { %10337 = vmatprep.subr.bf16.mxu1 %v18530_v8  ;;  %v18582_v8 = vld [vmem:[%s24990_s1 + $0x2a58] ss:$112 sps:$4 sm:$0xff]  }
 0x4a6   :  { %10192 = vmatmul.mubr.bf16.vlgmr.msra.gmra.mrb[20].mxu0 %v19582_v29 }
 0x4a7   :  { %10201 = vmatpush1.bf16.msra.mxu0 %v18531_v11  ;;  %10232 = vmatprep.mubr.bf16.mxu0 %v18891_v1  ;;  %v18590_v11 = vld [vmem:[%s24990_s1 + $0x6c] ss:$112 sps:$4 sm:$0xff]  }
 0x4a8   :  { %10338 = vmatpush1.bf16.msra.mxu1 %v18528_v14  ;;  %10405 = vmatprep.subr.bf16.mxu0 %v18545_v16  ;;  %v18579_v14 = vld [vmem:[%s24990_s1 + $0x680] ss:$112 sps:$4 sm:$0xff]   ;;  %v18587_v16 = vld [vmem:[%s24990_s1 + $0x764] ss:$112 sps:$4 sm:$0xff]  }
 0x4a9   :  { %10339 = vmatprep.subr.bf16.mxu1 %v18536_v52  ;;  %v18585_v52 = vld [vmem:[%s24990_s1 + $0x760] ss:$112 sps:$4 sm:$0xff]  }
 0x4ac   :  { %10340 = vmatpush1.bf16.msra.mxu1 %v18534_v17  ;;  %v18593_v17 = vld [vmem:[%s24990_s1 + $0x844] ss:$112 sps:$4 sm:$0xff]  }
 0x4ad   :  { %10341 = vmatprep.subr.bf16.mxu1 %v18539_v34  ;;  %v18591_v34 = vld [vmem:[%s24990_s1 + $0x840] ss:$112 sps:$4 sm:$0xff]  }
 0x4b0   :  { %10342 = vmatpush1.bf16.msra.mxu1 %v18537_v20  ;;  %v18588_v20 = vld [vmem:[%s24990_s1 + $0x68] ss:$112 sps:$4 sm:$0xff]  }
 0x4b1   :  { %10343 = vmatprep.subr.bf16.mxu1 %v18542_v22  ;;  %v18599_v22 = vld [vmem:[%s24990_s1 + $0x924] ss:$112 sps:$4 sm:$0xff]  }
 0x4b2   :  { %15979 = vmatmul.mubr.msk.bf16.vlgmr.msra.gmra.mrb[20].mxu0 %vm8433_vm0, %v18982_v10 }
 0x4b3   :  { %10406 = vmatpush1.bf16.msra.mxu0 %v18543_v25  ;;  %10437 = vmatprep.mubr.bf16.mxu0 %v19106_v51  ;;  %v18596_v25 = vld [vmem:[%s24990_s1 + $0x14c] ss:$112 sps:$4 sm:$0xff]  }
 0x4b4   :  { %10344 = vmatpush1.bf16.msra.mxu1 %v18540_v26  ;;  %10407 = vmatprep.subr.bf16.mxu0 %v18551_v32  ;;  %v18597_v26 = vld [vmem:[%s24990_s1 + $0x920] ss:$112 sps:$4 sm:$0xff]   ;;  %v18594_v32 = vld [vmem:[%s24990_s1 + $0x148] ss:$112 sps:$4 sm:$0xff]  }
 0x4b5   :  { %10345 = vmatprep.subr.bf16.mxu1 %v18548_v35  ;;  %v18605_v35 = vld [vmem:[%s24990_s1 + $0xa04] ss:$112 sps:$4 sm:$0xff]  }
 0x4b7   :  { %10408 = vmatpush1.bf16.msra.mxu0 %v18549_v37  ;;  %v18602_v37 = vld [vmem:[%s24990_s1 + $0x22c] ss:$112 sps:$4 sm:$0xff]  }
 0x4b8   :  { %10346 = vmatpush1.bf16.msra.mxu1 %v18546_v41  ;;  %10409 = vmatprep.subr.bf16.mxu0 %v18557_v43  ;;  %v18603_v41 = vld [vmem:[%s24990_s1 + $0xa00] ss:$112 sps:$4 sm:$0xff]   ;;  %v18600_v43 = vld [vmem:[%s24990_s1 + $0x228] ss:$112 sps:$4 sm:$0xff]  }
 0x4b9   :  { %10347 = vmatprep.subr.bf16.mxu1 %v18554_v42  ;;  %v22740_v45 = vpop.f32.mrb[16].mxu0  ;;  %v18611_v42 = vld [vmem:[%s24990_s1 + $0xae4] ss:$112 sps:$4 sm:$0xff]  }
 0x4ba   :  { %v22745_v48 = vpop.f32.mrb[17].mxu0 }
 0x4bb   :  { %10410 = vmatpush1.bf16.msra.mxu0 %v18555_v54  ;;  %v9910_v49 = vpop.f32.mrb[18].mxu0 }
 0x4bc   :  { %10348 = vmatpush1.bf16.msra.mxu1 %v18552_v38  ;;  %v9911_v59 = vpop.f32.mrb[19].mxu0  ;;  %10411 = vmatprep.subr.bf16.mxu0 %v18563_v60  ;;  %v18609_v60 = vld [vmem:[%s24990_s1 + $0xae0] ss:$112 sps:$4 sm:$0xff]   ;;  %v18606_v49 = vld [vmem:[%s24990_s1 + $0x308] ss:$112 sps:$4 sm:$0xff]  }
 0x4bd   :  { %10349 = vmatprep.subr.bf16.mxu1 %v18560_v46  ;;  %v18614_v59 = vld [vmem:[%s24990_s1 + $0x3ec] ss:$112 sps:$4 sm:$0xff]  }
 0x4bf   :  { %10412 = vmatpush1.bf16.msra.mxu0 %v18561_v50  ;;  %v18617_v50 = vld [vmem:[%s24990_s1 + $0xbc4] ss:$112 sps:$4 sm:$0xff]  }
 0x4c0   :  { %10350 = vmatpush1.bf16.msra.mxu1 %v18558_v56  ;;  %10413 = vmatprep.subr.bf16.mxu0 %v18569_v4  ;;  %v18615_v4 = vld [vmem:[%s24990_s1 + $0xbc0] ss:$112 sps:$4 sm:$0xff]  }
 0x4c1   :  { %10351 = vmatprep.subr.bf16.mxu1 %v18566_v53  ;;  %v18612_v53 = vld [vmem:[%s24990_s1 + $0x3e8] ss:$112 sps:$4 sm:$0xff]  }
 0x4c3   :  { %10414 = vmatpush1.bf16.msra.mxu0 %v18567_v40  ;;  %v18623_v40 = vld [vmem:[%s24990_s1 + $0xca4] ss:$112 sps:$4 sm:$0xff]  }
 0x4c4   :  { %10352 = vmatpush1.bf16.msra.mxu1 %v18564_v61  ;;  %10415 = vmatprep.subr.bf16.mxu0 %v18575_v44  ;;  %v18620_v61 = vld [vmem:[%s24990_s1 + $0x4cc] ss:$112 sps:$4 sm:$0xff]   ;;  %v18621_v44 = vld [vmem:[%s24990_s1 + $0xca0] ss:$112 sps:$4 sm:$0xff]  }
 0x4c5   :  { %10353 = vmatprep.subr.bf16.mxu1 %v18572_v62  ;;  %v18618_v62 = vld [vmem:[%s24990_s1 + $0x4c8] ss:$112 sps:$4 sm:$0xff]  }
 0x4c7   :  { %10416 = vmatpush1.bf16.msra.mxu0 %v18573_v55  ;;  %v18629_v55 = vld [vmem:[%s24990_s1 + $0xd84] ss:$112 sps:$4 sm:$0xff]  }
 0x4c8   :  { %10354 = vmatpush1.bf16.msra.mxu1 %v18570_v6  ;;  %10417 = vmatprep.subr.bf16.mxu0 %v18578_v2  ;;  %v18626_v6 = vld [vmem:[%s24990_s1 + $0x5ac] ss:$112 sps:$4 sm:$0xff]   ;;  %v18627_v2 = vld [vmem:[%s24990_s1 + $0xd80] ss:$112 sps:$4 sm:$0xff]  }
 0x4c9   :  { %10364 = vmatprep.subr.bf16.mxu1 %v18584_v5  ;;  %v18624_v5 = vld [vmem:[%s24990_s1 + $0x5a8] ss:$112 sps:$4 sm:$0xff]  }
 0x4cb   :  { %10356 = vmatmul.mubr.bf16.vlgmr.msra.gmra.mrb[28].mxu1 %v19582_v29  ;;  %10418 = vmatpush1.bf16.msra.mxu0 %v18576_v7  ;;  %v18635_v7 = vld [vmem:[%s24990_s1 + $0xe64] ss:$112 sps:$4 sm:$0xff]  }
 0x4cc   :  { %10419 = vmatprep.subr.bf16.mxu0 %v18581_v12  ;;  %10365 = vmatpush1.bf16.msra.mxu1 %v18582_v8  ;;  %v18632_v12 = vld [vmem:[%s24990_s1 + $0x68c] ss:$112 sps:$4 sm:$0xff]   ;;  %v18633_v8 = vld [vmem:[%s24990_s1 + $0xe60] ss:$112 sps:$4 sm:$0xff]  }
 0x4cd   :  { %10396 = vmatprep.mubr.bf16.mxu1 %v18891_v1  ;;  %10569 = vmatprep.subr.bf16.mxu1 %v18590_v11  ;;  %v18630_v11 = vld [vmem:[%s24990_s1 + $0x688] ss:$112 sps:$4 sm:$0xff]  }
 0x4cf   :  { %10420 = vmatpush1.bf16.msra.mxu0 %v18579_v14  ;;  %v18641_v14 = vld [vmem:[%s24990_s1 + $0xf44] ss:$112 sps:$4 sm:$0xff]  }
 0x4d0   :  { %10421 = vmatprep.subr.bf16.mxu0 %v18587_v16  ;;  %v18638_v16 = vld [vmem:[%s24990_s1 + $0x76c] ss:$112 sps:$4 sm:$0xff]  }
 0x4d3   :  { %10422 = vmatpush1.bf16.msra.mxu0 %v18585_v52  ;;  %v18639_v52 = vld [vmem:[%s24990_s1 + $0xf40] ss:$112 sps:$4 sm:$0xff]  }
 0x4d4   :  { %10423 = vmatprep.subr.bf16.mxu0 %v18593_v17  ;;  %v18636_v17 = vld [vmem:[%s24990_s1 + $0x768] ss:$112 sps:$4 sm:$0xff]  }
 0x4d7   :  { %15980 = vmatmul.mubr.msk.bf16.vlgmr.msra.gmra.mrb[28].mxu1 %vm8433_vm0, %v18982_v10  ;;  %10424 = vmatpush1.bf16.msra.mxu0 %v18591_v34  ;;  %v18647_v34 = vld [vmem:[%s24990_s1 + $0x1024] ss:$112 sps:$4 sm:$0xff]  }
 0x4d8   :  { %10570 = vmatpush1.bf16.msra.mxu1 %v18588_v20  ;;  %10425 = vmatprep.subr.bf16.mxu0 %v18599_v22  ;;  %v18644_v20 = vld [vmem:[%s24990_s1 + $0x84c] ss:$112 sps:$4 sm:$0xff]   ;;  %v18645_v22 = vld [vmem:[%s24990_s1 + $0x1020] ss:$112 sps:$4 sm:$0xff]  }
 0x4d9   :  { %10571 = vmatprep.subr.bf16.mxu1 %v18596_v25  ;;  %10601 = vmatprep.mubr.bf16.mxu1 %v19106_v51  ;;  %v18608_v51 = vld [vmem:[%s24990_s1 + $0x30c] ss:$112 sps:$4 sm:$0xff]   ;;  %v18642_v25 = vld [vmem:[%s24990_s1 + $0x848] ss:$112 sps:$4 sm:$0xff]  }
 0x4db   :  { %10426 = vmatpush1.bf16.msra.mxu0 %v18597_v26  ;;  %v18653_v26 = vld [vmem:[%s24990_s1 + $0x1104] ss:$112 sps:$4 sm:$0xff]  }
 0x4dc   :  { %10572 = vmatpush1.bf16.msra.mxu1 %v18594_v32  ;;  %10427 = vmatprep.subr.bf16.mxu0 %v18605_v35  ;;  %v18650_v32 = vld [vmem:[%s24990_s1 + $0x92c] ss:$112 sps:$4 sm:$0xff]   ;;  %v18651_v35 = vld [vmem:[%s24990_s1 + $0x1100] ss:$112 sps:$4 sm:$0xff]  }
 0x4dd   :  { %10573 = vmatprep.subr.bf16.mxu1 %v18602_v37  ;;  %v18648_v37 = vld [vmem:[%s24990_s1 + $0x928] ss:$112 sps:$4 sm:$0xff]  }
 0x4de   :  { %v22848_v54 = vpop.f32.mrb[24].mxu1 }
 0x4df   :  { %v22850_v38 = vpop.f32.mrb[25].mxu1  ;;  %10428 = vmatpush1.bf16.msra.mxu0 %v18603_v41  ;;  %v18659_v41 = vld [vmem:[%s24990_s1 + $0x11e4] ss:$112 sps:$4 sm:$0xff]  }
 0x4e0   :  { %10574 = vmatpush1.bf16.msra.mxu1 %v18600_v43  ;;  %v10074_v46 = vpop.f32.mrb[26].mxu1  ;;  %10429 = vmatprep.subr.bf16.mxu0 %v18611_v42  ;;  %v18656_v43 = vld [vmem:[%s24990_s1 + $0xa0c] ss:$112 sps:$4 sm:$0xff]   ;;  %v18657_v42 = vld [vmem:[%s24990_s1 + $0x11e0] ss:$112 sps:$4 sm:$0xff]  }
 0x4e1   :  { %v10075_v56 = vpop.f32.mrb[27].mxu1  ;;  %10575 = vmatprep.subr.bf16.mxu1 %v18608_v51  ;;  %v18654_v51 = vld [vmem:[%s24990_s1 + $0xa08] ss:$112 sps:$4 sm:$0xff]   ;;  %v18662_v46 = vld [vmem:[%s24990_s1 + $0xaec] ss:$112 sps:$4 sm:$0xff]  }
 0x4e2   :  { %v18671_v56 = vld [vmem:[%s24990_s1 + $0x13a4] ss:$112 sps:$4 sm:$0xff]  }
 0x4e3   :  { %10430 = vmatpush1.bf16.msra.mxu0 %v18609_v60  ;;  %v18665_v60 = vld [vmem:[%s24990_s1 + $0x12c4] ss:$112 sps:$4 sm:$0xff]  }
 0x4e4   :  { %10576 = vmatpush1.bf16.msra.mxu1 %v18606_v49  ;;  %10431 = vmatprep.subr.bf16.mxu0 %v18617_v50  ;;  %v18663_v49 = vld [vmem:[%s24990_s1 + $0x12c0] ss:$112 sps:$4 sm:$0xff]   ;;  %v18660_v50 = vld [vmem:[%s24990_s1 + $0xae8] ss:$112 sps:$4 sm:$0xff]  }
 0x4e5   :  { %10577 = vmatprep.subr.bf16.mxu1 %v18614_v59  ;;  %v18668_v59 = vld [vmem:[%s24990_s1 + $0xbcc] ss:$112 sps:$4 sm:$0xff]  }
 0x4e7   :  { %10432 = vmatpush1.bf16.msra.mxu0 %v18615_v4  ;;  %v18669_v4 = vld [vmem:[%s24990_s1 + $0x13a0] ss:$112 sps:$4 sm:$0xff]  }
 0x4e8   :  { %10578 = vmatpush1.bf16.msra.mxu1 %v18612_v53  ;;  %10433 = vmatprep.subr.bf16.mxu0 %v18623_v40  ;;  %v18666_v53 = vld [vmem:[%s24990_s1 + $0xbc8] ss:$112 sps:$4 sm:$0xff]   ;;  %v18677_v40 = vld [vmem:[%s24990_s1 + $0x1484] ss:$112 sps:$4 sm:$0xff]  }
 0x4e9   :  { %10579 = vmatprep.subr.bf16.mxu1 %v18620_v61  ;;  %v18674_v61 = vld [vmem:[%s24990_s1 + $0xcac] ss:$112 sps:$4 sm:$0xff]  }
 0x4eb   :  { %10434 = vmatpush1.bf16.msra.mxu0 %v18621_v44  ;;  %v18675_v44 = vld [vmem:[%s24990_s1 + $0x1480] ss:$112 sps:$4 sm:$0xff]  }
 0x4ec   :  { %10580 = vmatpush1.bf16.msra.mxu1 %v18618_v62  ;;  %10435 = vmatprep.subr.bf16.mxu0 %v18629_v55  ;;  %v18672_v62 = vld [vmem:[%s24990_s1 + $0xca8] ss:$112 sps:$4 sm:$0xff]   ;;  %v18683_v55 = vld [vmem:[%s24990_s1 + $0x1564] ss:$112 sps:$4 sm:$0xff]  }
 0x4ed   :  { %10581 = vmatprep.subr.bf16.mxu1 %v18626_v6  ;;  %v18680_v6 = vld [vmem:[%s24990_s1 + $0xd8c] ss:$112 sps:$4 sm:$0xff]  }
 0x4ef   :  { %10436 = vmatpush1.bf16.msra.mxu0 %v18627_v2  ;;  %v18681_v2 = vld [vmem:[%s24990_s1 + $0x1560] ss:$112 sps:$4 sm:$0xff]  }
 0x4f0   :  { %10582 = vmatpush1.bf16.msra.mxu1 %v18624_v5  ;;  %10446 = vmatprep.subr.bf16.mxu0 %v18635_v7  ;;  %v18678_v5 = vld [vmem:[%s24990_s1 + $0xd88] ss:$112 sps:$4 sm:$0xff]   ;;  %v18689_v7 = vld [vmem:[%s24990_s1 + $0x1644] ss:$112 sps:$4 sm:$0xff]  }
 0x4f1   :  { %10583 = vmatprep.subr.bf16.mxu1 %v18632_v12  ;;  %v18686_v12 = vld [vmem:[%s24990_s1 + $0xe6c] ss:$112 sps:$4 sm:$0xff]  }
 0x4f2   :  { %10438 = vmatmul.mubr.bf16.vlgmr.msra.gmra.mrb[24].mxu0 %v19170_v9 }
 0x4f3   :  { %10447 = vmatpush1.bf16.msra.mxu0 %v18633_v8  ;;  %10478 = vmatprep.mubr.bf16.mxu0 %v19249_v36  ;;  %v18687_v8 = vld [vmem:[%s24990_s1 + $0x1640] ss:$112 sps:$4 sm:$0xff]  }
 0x4f4   :  { %10584 = vmatpush1.bf16.msra.mxu1 %v18630_v11  ;;  %10448 = vmatprep.subr.bf16.mxu0 %v18641_v14  ;;  %v18684_v11 = vld [vmem:[%s24990_s1 + $0xe68] ss:$112 sps:$4 sm:$0xff]   ;;  %v18695_v14 = vld [vmem:[%s24990_s1 + $0x1724] ss:$112 sps:$4 sm:$0xff]  }
 0x4f5   :  { %10585 = vmatprep.subr.bf16.mxu1 %v18638_v16  ;;  %v18692_v16 = vld [vmem:[%s24990_s1 + $0xf4c] ss:$112 sps:$4 sm:$0xff]  }
 0x4f7   :  { %10449 = vmatpush1.bf16.msra.mxu0 %v18639_v52  ;;  %v18693_v52 = vld [vmem:[%s24990_s1 + $0x1720] ss:$112 sps:$4 sm:$0xff]  }
 0x4f8   :  { %10586 = vmatpush1.bf16.msra.mxu1 %v18636_v17  ;;  %10450 = vmatprep.subr.bf16.mxu0 %v18647_v34  ;;  %v18690_v17 = vld [vmem:[%s24990_s1 + $0xf48] ss:$112 sps:$4 sm:$0xff]   ;;  %v18701_v34 = vld [vmem:[%s24990_s1 + $0x1804] ss:$112 sps:$4 sm:$0xff]  }
 0x4f9   :  { %10587 = vmatprep.subr.bf16.mxu1 %v18644_v20  ;;  %v18699_v20 = vld [vmem:[%s24990_s1 + $0x1800] ss:$112 sps:$4 sm:$0xff]  }
 0x4fb   :  { %10451 = vmatpush1.bf16.msra.mxu0 %v18645_v22  ;;  %v18696_v22 = vld [vmem:[%s24990_s1 + $0x1028] ss:$112 sps:$4 sm:$0xff]  }
 0x4fc   :  { %10588 = vmatpush1.bf16.msra.mxu1 %v18642_v25  ;;  %10452 = vmatprep.subr.bf16.mxu0 %v18653_v26  ;;  %v18707_v25 = vld [vmem:[%s24990_s1 + $0x18e4] ss:$112 sps:$4 sm:$0xff]   ;;  %v18705_v26 = vld [vmem:[%s24990_s1 + $0x18e0] ss:$112 sps:$4 sm:$0xff]  }
 0x4fd   :  { %10589 = vmatprep.subr.bf16.mxu1 %v18650_v32  ;;  %v18702_v32 = vld [vmem:[%s24990_s1 + $0x1108] ss:$112 sps:$4 sm:$0xff]  }
 0x4ff   :  { %10453 = vmatpush1.bf16.msra.mxu0 %v18651_v35  ;;  %v18713_v35 = vld [vmem:[%s24990_s1 + $0x19c4] ss:$112 sps:$4 sm:$0xff]  }
 0x500   :  { %10590 = vmatpush1.bf16.msra.mxu1 %v18648_v37  ;;  %10454 = vmatprep.subr.bf16.mxu0 %v18659_v41  ;;  %v18710_v37 = vld [vmem:[%s24990_s1 + $0x11ec] ss:$112 sps:$4 sm:$0xff]   ;;  %v18711_v41 = vld [vmem:[%s24990_s1 + $0x19c0] ss:$112 sps:$4 sm:$0xff]  }
 0x501   :  { %10591 = vmatprep.subr.bf16.mxu1 %v18656_v43  ;;  %v18708_v43 = vld [vmem:[%s24990_s1 + $0x11e8] ss:$112 sps:$4 sm:$0xff]  }
 0x503   :  { %10455 = vmatpush1.bf16.msra.mxu0 %v18657_v42  ;;  %v18719_v42 = vld [vmem:[%s24990_s1 + $0x1aa4] ss:$112 sps:$4 sm:$0xff]  }
 0x504   :  { %10592 = vmatpush1.bf16.msra.mxu1 %v18654_v51  ;;  %10456 = vmatprep.subr.bf16.mxu0 %v18665_v60  ;;  %v18716_v51 = vld [vmem:[%s24990_s1 + $0x12cc] ss:$112 sps:$4 sm:$0xff]   ;;  %v18717_v60 = vld [vmem:[%s24990_s1 + $0x1aa0] ss:$112 sps:$4 sm:$0xff]  }
 0x505   :  { %10593 = vmatprep.subr.bf16.mxu1 %v18662_v46  ;;  %v18714_v46 = vld [vmem:[%s24990_s1 + $0x12c8] ss:$112 sps:$4 sm:$0xff]  }
 0x507   :  { %10457 = vmatpush1.bf16.msra.mxu0 %v18663_v49  ;;  %v18725_v49 = vld [vmem:[%s24990_s1 + $0x1b84] ss:$112 sps:$4 sm:$0xff]  }
 0x508   :  { %10594 = vmatpush1.bf16.msra.mxu1 %v18660_v50  ;;  %10458 = vmatprep.subr.bf16.mxu0 %v18671_v56  ;;  %v18722_v50 = vld [vmem:[%s24990_s1 + $0x13ac] ss:$112 sps:$4 sm:$0xff]   ;;  %v18723_v56 = vld [vmem:[%s24990_s1 + $0x1b80] ss:$112 sps:$4 sm:$0xff]  }
 0x509   :  { %10595 = vmatprep.subr.bf16.mxu1 %v18668_v59  ;;  %v18720_v59 = vld [vmem:[%s24990_s1 + $0x13a8] ss:$112 sps:$4 sm:$0xff]  }
 0x50b   :  { %10459 = vmatpush1.bf16.msra.mxu0 %v18669_v4  ;;  %v18731_v4 = vld [vmem:[%s24990_s1 + $0x1c64] ss:$112 sps:$4 sm:$0xff]  }
 0x50c   :  { %10596 = vmatpush1.bf16.msra.mxu1 %v18666_v53  ;;  %10460 = vmatprep.subr.bf16.mxu0 %v18677_v40  ;;  %v18728_v53 = vld [vmem:[%s24990_s1 + $0x148c] ss:$112 sps:$4 sm:$0xff]   ;;  %v18729_v40 = vld [vmem:[%s24990_s1 + $0x1c60] ss:$112 sps:$4 sm:$0xff]  }
 0x50d   :  { %10597 = vmatprep.subr.bf16.mxu1 %v18674_v61  ;;  %v18726_v61 = vld [vmem:[%s24990_s1 + $0x1488] ss:$112 sps:$4 sm:$0xff]  }
 0x50f   :  { %10461 = vmatpush1.bf16.msra.mxu0 %v18675_v44  ;;  %v18737_v44 = vld [vmem:[%s24990_s1 + $0x1d44] ss:$112 sps:$4 sm:$0xff]  }
 0x510   :  { %10598 = vmatpush1.bf16.msra.mxu1 %v18672_v62  ;;  %10462 = vmatprep.subr.bf16.mxu0 %v18683_v55  ;;  %v18734_v62 = vld [vmem:[%s24990_s1 + $0x156c] ss:$112 sps:$4 sm:$0xff]   ;;  %v18735_v55 = vld [vmem:[%s24990_s1 + $0x1d40] ss:$112 sps:$4 sm:$0xff]  }
 0x511   :  { %10599 = vmatprep.subr.bf16.mxu1 %v18680_v6  ;;  %v18732_v6 = vld [vmem:[%s24990_s1 + $0x1568] ss:$112 sps:$4 sm:$0xff]  }
 0x513   :  { %10463 = vmatpush1.bf16.msra.mxu0 %v18681_v2  ;;  %v18743_v2 = vld [vmem:[%s24990_s1 + $0x1e24] ss:$112 sps:$4 sm:$0xff]  }
 0x514   :  { %10600 = vmatpush1.bf16.msra.mxu1 %v18678_v5  ;;  %10464 = vmatprep.subr.bf16.mxu0 %v18689_v7  ;;  %v18740_v5 = vld [vmem:[%s24990_s1 + $0x164c] ss:$112 sps:$4 sm:$0xff]   ;;  %v18741_v7 = vld [vmem:[%s24990_s1 + $0x1e20] ss:$112 sps:$4 sm:$0xff]  }
 0x515   :  { %10610 = vmatprep.subr.bf16.mxu1 %v18686_v12  ;;  %v18738_v12 = vld [vmem:[%s24990_s1 + $0x1648] ss:$112 sps:$4 sm:$0xff]  }
 0x517   :  { %10602 = vmatmul.mubr.bf16.vlgmr.msra.gmra.mrb[32].mxu1 %v19170_v9  ;;  %10465 = vmatpush1.bf16.msra.mxu0 %v18687_v8  ;;  %v18698_v9 = vld [vmem:[%s24990_s1 + $0x102c] ss:$112 sps:$4 sm:$0xff]   ;;  %v18749_v8 = vld [vmem:[%s24990_s1 + $0x1f04] ss:$112 sps:$4 sm:$0xff]  }
 0x518   :  { %10611 = vmatpush1.bf16.msra.mxu1 %v18684_v11  ;;  %10466 = vmatprep.subr.bf16.mxu0 %v18695_v14  ;;  %v18746_v11 = vld [vmem:[%s24990_s1 + $0x172c] ss:$112 sps:$4 sm:$0xff]   ;;  %v18747_v14 = vld [vmem:[%s24990_s1 + $0x1f00] ss:$112 sps:$4 sm:$0xff]  }
 0x519   :  { %10612 = vmatprep.subr.bf16.mxu1 %v18692_v16  ;;  %10642 = vmatprep.mubr.bf16.mxu1 %v19249_v36  ;;  %v18704_v36 = vld [vmem:[%s24990_s1 + $0x110c] ss:$112 sps:$4 sm:$0xff]   ;;  %v18744_v16 = vld [vmem:[%s24990_s1 + $0x1728] ss:$112 sps:$4 sm:$0xff]  }
 0x51b   :  { %10467 = vmatpush1.bf16.msra.mxu0 %v18693_v52  ;;  %v18755_v52 = vld [vmem:[%s24990_s1 + $0x1fe4] ss:$112 sps:$4 sm:$0xff]  }
 0x51c   :  { %10613 = vmatpush1.bf16.msra.mxu1 %v18690_v17  ;;  %10468 = vmatprep.subr.bf16.mxu0 %v18701_v34  ;;  %v18752_v17 = vld [vmem:[%s24990_s1 + $0x180c] ss:$112 sps:$4 sm:$0xff]   ;;  %v18753_v34 = vld [vmem:[%s24990_s1 + $0x1fe0] ss:$112 sps:$4 sm:$0xff]  }
 0x51d   :  { %10614 = vmatprep.subr.bf16.mxu1 %v18698_v9  ;;  %v18750_v9 = vld [vmem:[%s24990_s1 + $0x1808] ss:$112 sps:$4 sm:$0xff]  }
 0x51f   :  { %10469 = vmatpush1.bf16.msra.mxu0 %v18699_v20  ;;  %v18761_v20 = vld [vmem:[%s24990_s1 + $0x20c4] ss:$112 sps:$4 sm:$0xff]  }
 0x520   :  { %10615 = vmatpush1.bf16.msra.mxu1 %v18696_v22  ;;  %10470 = vmatprep.subr.bf16.mxu0 %v18707_v25  ;;  %v18758_v22 = vld [vmem:[%s24990_s1 + $0x18ec] ss:$112 sps:$4 sm:$0xff]   ;;  %v18759_v25 = vld [vmem:[%s24990_s1 + $0x20c0] ss:$112 sps:$4 sm:$0xff]  }
 0x521   :  { %10616 = vmatprep.subr.bf16.mxu1 %v18704_v36  ;;  %v18756_v36 = vld [vmem:[%s24990_s1 + $0x18e8] ss:$112 sps:$4 sm:$0xff]  }
 0x523   :  { %10471 = vmatpush1.bf16.msra.mxu0 %v18705_v26  ;;  %v18767_v26 = vld [vmem:[%s24990_s1 + $0x21a4] ss:$112 sps:$4 sm:$0xff]  }
 0x524   :  { %10617 = vmatpush1.bf16.msra.mxu1 %v18702_v32  ;;  %10472 = vmatprep.subr.bf16.mxu0 %v18713_v35  ;;  %v18764_v32 = vld [vmem:[%s24990_s1 + $0x19cc] ss:$112 sps:$4 sm:$0xff]   ;;  %v18765_v35 = vld [vmem:[%s24990_s1 + $0x21a0] ss:$112 sps:$4 sm:$0xff]  }
 0x525   :  { %10618 = vmatprep.subr.bf16.mxu1 %v18710_v37  ;;  %v18762_v37 = vld [vmem:[%s24990_s1 + $0x19c8] ss:$112 sps:$4 sm:$0xff]  }
 0x527   :  { %10473 = vmatpush1.bf16.msra.mxu0 %v18711_v41  ;;  %v18773_v41 = vld [vmem:[%s24990_s1 + $0x2284] ss:$112 sps:$4 sm:$0xff]  }
 0x528   :  { %10619 = vmatpush1.bf16.msra.mxu1 %v18708_v43  ;;  %10474 = vmatprep.subr.bf16.mxu0 %v18719_v42  ;;  %v18770_v43 = vld [vmem:[%s24990_s1 + $0x1aac] ss:$112 sps:$4 sm:$0xff]   ;;  %v18771_v42 = vld [vmem:[%s24990_s1 + $0x2280] ss:$112 sps:$4 sm:$0xff]  }
 0x529   :  { %10620 = vmatprep.subr.bf16.mxu1 %v18716_v51  ;;  %v18768_v51 = vld [vmem:[%s24990_s1 + $0x1aa8] ss:$112 sps:$4 sm:$0xff]  }
 0x52b   :  { %10475 = vmatpush1.bf16.msra.mxu0 %v18717_v60  ;;  %v18779_v60 = vld [vmem:[%s24990_s1 + $0x2364] ss:$112 sps:$4 sm:$0xff]  }
 0x52c   :  { %10621 = vmatpush1.bf16.msra.mxu1 %v18714_v46  ;;  %10476 = vmatprep.subr.bf16.mxu0 %v18725_v49  ;;  %v18776_v46 = vld [vmem:[%s24990_s1 + $0x1b8c] ss:$112 sps:$4 sm:$0xff]   ;;  %v18777_v49 = vld [vmem:[%s24990_s1 + $0x2360] ss:$112 sps:$4 sm:$0xff]  }
 0x52d   :  { %10622 = vmatprep.subr.bf16.mxu1 %v18722_v50  ;;  %v18774_v50 = vld [vmem:[%s24990_s1 + $0x1b88] ss:$112 sps:$4 sm:$0xff]  }
 0x52f   :  { %10477 = vmatpush1.bf16.msra.mxu0 %v18723_v56  ;;  %v18785_v56 = vld [vmem:[%s24990_s1 + $0x2444] ss:$112 sps:$4 sm:$0xff]  }
 0x530   :  { %10623 = vmatpush1.bf16.msra.mxu1 %v18720_v59  ;;  %10487 = vmatprep.subr.bf16.mxu0 %v18731_v4  ;;  %v18782_v59 = vld [vmem:[%s24990_s1 + $0x1c6c] ss:$112 sps:$4 sm:$0xff]   ;;  %v18783_v4 = vld [vmem:[%s24990_s1 + $0x2440] ss:$112 sps:$4 sm:$0xff]  }
 0x531   :  { %10624 = vmatprep.subr.bf16.mxu1 %v18728_v53  ;;  %v18780_v53 = vld [vmem:[%s24990_s1 + $0x1c68] ss:$112 sps:$4 sm:$0xff]  }
 0x532   :  { %10479 = vmatmul.mubr.bf16.vlgmr.msra.gmra.mrb[24].mxu0 %v19376_v18 }
 0x533   :  { %10488 = vmatpush1.bf16.msra.mxu0 %v18729_v40  ;;  %10519 = vmatprep.mubr.bf16.mxu0 %v19393_v24  ;;  %v18791_v40 = vld [vmem:[%s24990_s1 + $0x2524] ss:$112 sps:$4 sm:$0xff]  }
 0x534   :  { %10625 = vmatpush1.bf16.msra.mxu1 %v18726_v61  ;;  %10489 = vmatprep.subr.bf16.mxu0 %v18737_v44  ;;  %v18788_v61 = vld [vmem:[%s24990_s1 + $0x1d4c] ss:$112 sps:$4 sm:$0xff]   ;;  %v18789_v44 = vld [vmem:[%s24990_s1 + $0x2520] ss:$112 sps:$4 sm:$0xff]  }
 0x535   :  { %10626 = vmatprep.subr.bf16.mxu1 %v18734_v62  ;;  %v18786_v62 = vld [vmem:[%s24990_s1 + $0x1d48] ss:$112 sps:$4 sm:$0xff]  }
 0x537   :  { %10490 = vmatpush1.bf16.msra.mxu0 %v18735_v55  ;;  %v18797_v55 = vld [vmem:[%s24990_s1 + $0x2604] ss:$112 sps:$4 sm:$0xff]  }
 0x538   :  { %10627 = vmatpush1.bf16.msra.mxu1 %v18732_v6  ;;  %10491 = vmatprep.subr.bf16.mxu0 %v18743_v2  ;;  %v18795_v6 = vld [vmem:[%s24990_s1 + $0x2600] ss:$112 sps:$4 sm:$0xff]   ;;  %v18792_v2 = vld [vmem:[%s24990_s1 + $0x1e28] ss:$112 sps:$4 sm:$0xff]  }
 0x539   :  { %10628 = vmatprep.subr.bf16.mxu1 %v18740_v5  ;;  %v18803_v5 = vld [vmem:[%s24990_s1 + $0x26e4] ss:$112 sps:$4 sm:$0xff]  }
 0x53b   :  { %10492 = vmatpush1.bf16.msra.mxu0 %v18741_v7  ;;  %v18801_v7 = vld [vmem:[%s24990_s1 + $0x26e0] ss:$112 sps:$4 sm:$0xff]  }
 0x53c   :  { %10629 = vmatpush1.bf16.msra.mxu1 %v18738_v12  ;;  %10493 = vmatprep.subr.bf16.mxu0 %v18749_v8  ;;  %v18798_v12 = vld [vmem:[%s24990_s1 + $0x1f08] ss:$112 sps:$4 sm:$0xff]   ;;  %v18809_v8 = vld [vmem:[%s24990_s1 + $0x27c4] ss:$112 sps:$4 sm:$0xff]  }
 0x53d   :  { %10630 = vmatprep.subr.bf16.mxu1 %v18746_v11  ;;  %v18806_v11 = vld [vmem:[%s24990_s1 + $0x1fec] ss:$112 sps:$4 sm:$0xff]  }
 0x53f   :  { %10494 = vmatpush1.bf16.msra.mxu0 %v18747_v14  ;;  %v18807_v14 = vld [vmem:[%s24990_s1 + $0x27c0] ss:$112 sps:$4 sm:$0xff]  }
 0x540   :  { %10631 = vmatpush1.bf16.msra.mxu1 %v18744_v16  ;;  %10495 = vmatprep.subr.bf16.mxu0 %v18755_v52  ;;  %v18804_v16 = vld [vmem:[%s24990_s1 + $0x1fe8] ss:$112 sps:$4 sm:$0xff]   ;;  %v18815_v52 = vld [vmem:[%s24990_s1 + $0x28a4] ss:$112 sps:$4 sm:$0xff]  }
 0x541   :  { %10632 = vmatprep.subr.bf16.mxu1 %v18752_v17  ;;  %v18812_v17 = vld [vmem:[%s24990_s1 + $0x20cc] ss:$112 sps:$4 sm:$0xff]  }
 0x543   :  { %10496 = vmatpush1.bf16.msra.mxu0 %v18753_v34  ;;  %v18813_v34 = vld [vmem:[%s24990_s1 + $0x28a0] ss:$112 sps:$4 sm:$0xff]  }
 0x544   :  { %10633 = vmatpush1.bf16.msra.mxu1 %v18750_v9  ;;  %10497 = vmatprep.subr.bf16.mxu0 %v18761_v20  ;;  %v18810_v9 = vld [vmem:[%s24990_s1 + $0x20c8] ss:$112 sps:$4 sm:$0xff]   ;;  %v18821_v20 = vld [vmem:[%s24990_s1 + $0x2984] ss:$112 sps:$4 sm:$0xff]  }
 0x545   :  { %10634 = vmatprep.subr.bf16.mxu1 %v18758_v22  ;;  %v18818_v22 = vld [vmem:[%s24990_s1 + $0x21ac] ss:$112 sps:$4 sm:$0xff]  }
 0x547   :  { %10498 = vmatpush1.bf16.msra.mxu0 %v18759_v25  ;;  %v18819_v25 = vld [vmem:[%s24990_s1 + $0x2980] ss:$112 sps:$4 sm:$0xff]  }
 0x548   :  { %10635 = vmatpush1.bf16.msra.mxu1 %v18756_v36  ;;  %10499 = vmatprep.subr.bf16.mxu0 %v18767_v26  ;;  %v18816_v36 = vld [vmem:[%s24990_s1 + $0x21a8] ss:$112 sps:$4 sm:$0xff]   ;;  %v18827_v26 = vld [vmem:[%s24990_s1 + $0x2a64] ss:$112 sps:$4 sm:$0xff]  }
 0x549   :  { %10636 = vmatprep.subr.bf16.mxu1 %v18764_v32  ;;  %v18824_v32 = vld [vmem:[%s24990_s1 + $0x228c] ss:$112 sps:$4 sm:$0xff]  }
 0x54b   :  { %10500 = vmatpush1.bf16.msra.mxu0 %v18765_v35  ;;  %v10789_v35 = vld [vmem:[%s24993_s3] sm:$0xff] }
 0x54c   :  { %10637 = vmatpush1.bf16.msra.mxu1 %v18762_v37  ;;  %10501 = vmatprep.subr.bf16.mxu0 %v18773_v41  ;;  %v10793_v37 = vld [vmem:[%s24993_s3 + $0x20] sm:$0xff] }
 0x54d   :  { %10638 = vmatprep.subr.bf16.mxu1 %v18770_v43  ;;  %v18825_v41 = vld [vmem:[%s24990_s1 + $0x2a60] ss:$112 sps:$4 sm:$0xff]   ;;  %v18822_v43 = vld [vmem:[%s24990_s1 + $0x2288] ss:$112 sps:$4 sm:$0xff]  }
 0x54f   :  { %10502 = vmatpush1.bf16.msra.mxu0 %v18771_v42  ;;  %v15984_v42 = vcombine.high %v10789_v35, %v10793_v37 }
 0x550   :  { %10639 = vmatpush1.bf16.msra.mxu1 %v18768_v51  ;;  %10503 = vmatprep.subr.bf16.mxu0 %v18779_v60  ;;  %v18830_v51 = vld [vmem:[%s24990_s1 + $0x236c] ss:$112 sps:$4 sm:$0xff]   ;;  %v18828_v60 = vld [vmem:[%s24990_s1 + $0x2368] ss:$112 sps:$4 sm:$0xff]  }
 0x551   :  { %10640 = vmatprep.subr.bf16.mxu1 %v18776_v46  ;;  %v18833_v46 = vld [vmem:[%s24990_s1 + $0x244c] ss:$112 sps:$4 sm:$0xff]  }
 0x553   :  { %10504 = vmatpush1.bf16.msra.mxu0 %v18777_v49  ;;  %v18831_v49 = vld [vmem:[%s24990_s1 + $0x2448] ss:$112 sps:$4 sm:$0xff]  }
 0x554   :  { %10641 = vmatpush1.bf16.msra.mxu1 %v18774_v50  ;;  %10505 = vmatprep.subr.bf16.mxu0 %v18785_v56  ;;  %v18836_v50 = vld [vmem:[%s24990_s1 + $0x252c] ss:$112 sps:$4 sm:$0xff]   ;;  %v10797_v56 = vld [vmem:[%s24993_s3 + $0x40] sm:$0xff] }
 0x555   :  { %10651 = vmatprep.subr.bf16.mxu1 %v18782_v59  ;;  %v10801_v59 = vld [vmem:[%s24993_s3 + $0x60] sm:$0xff] }
 0x557   :  { %10643 = vmatmul.mubr.bf16.vlgmr.msra.gmra.mrb[32].mxu1 %v19376_v18  ;;  %10506 = vmatpush1.bf16.msra.mxu0 %v18783_v4  ;;  %v18794_v18 = vld [vmem:[%s24990_s1 + $0x1e2c] ss:$112 sps:$4 sm:$0xff]   ;;  %v15983_v4 = vcombine.low %v10789_v35, %v10793_v37 }
 0x558   :  { %10652 = vmatpush1.bf16.msra.mxu1 %v18780_v53  ;;  %10507 = vmatprep.subr.bf16.mxu0 %v18791_v40  ;;  %v18834_v53 = vld [vmem:[%s24990_s1 + $0x2528] ss:$112 sps:$4 sm:$0xff]   ;;  %v15992_v40 = vcombine.high %v10797_v56, %v10801_v59 }
 0x559   :  { %10653 = vmatprep.subr.bf16.mxu1 %v18788_v61  ;;  %10683 = vmatprep.mubr.bf16.mxu1 %v19393_v24  ;;  %v18800_v24 = vld [vmem:[%s24990_s1 + $0x1f0c] ss:$112 sps:$4 sm:$0xff]  }
 0x55a   :  { %v18839_v61 = vld [vmem:[%s24990_s1 + $0x260c] ss:$112 sps:$4 sm:$0xff]  }
 0x55b   :  { %10508 = vmatpush1.bf16.msra.mxu0 %v18789_v44  ;;  %v10805_v44 = vld [vmem:[%s24993_s3 + $0x80] sm:$0xff] }
 0x55c   :  { %10654 = vmatpush1.bf16.msra.mxu1 %v18786_v62  ;;  %10509 = vmatprep.subr.bf16.mxu0 %v18797_v55  ;;  %v10809_v62 = vld [vmem:[%s24993_s3 + $0xa0] sm:$0xff]  ;;  %v15991_v55 = vcombine.low %v10797_v56, %v10801_v59 }
 0x55d   :  { %10655 = vmatprep.subr.bf16.mxu1 %v18794_v18  ;;  %v18837_v18 = vld [vmem:[%s24990_s1 + $0x2608] ss:$112 sps:$4 sm:$0xff]  }
 0x55f   :  { %10510 = vmatpush1.bf16.msra.mxu0 %v18795_v6  ;;  %v16000_v6 = vcombine.high %v10805_v44, %v10809_v62 }
 0x560   :  { %10656 = vmatpush1.bf16.msra.mxu1 %v18792_v2  ;;  %10511 = vmatprep.subr.bf16.mxu0 %v18803_v5  ;;  %v23347_v2 = vld [vmem:[%s24992_s2 + $0x8] sm:$0xff] }
 0x561   :  { %10657 = vmatprep.subr.bf16.mxu1 %v18800_v24  ;;  %v1492_v5 = vrot.slane %v23347_v2, %v22089_v3  ;;  %v18842_v24 = vld [vmem:[%s24990_s1 + $0x26ec] ss:$112 sps:$4 sm:$0xff]  }
 0x563   :  { %10512 = vmatpush1.bf16.msra.mxu0 %v18801_v7  ;;  %v10813_v7 = vld [vmem:[%s24993_s3 + $0xc0] sm:$0xff] }
 0x564   :  { %10658 = vmatpush1.bf16.msra.mxu1 %v18798_v12  ;;  %10513 = vmatprep.subr.bf16.mxu0 %v18809_v8  ;;  %v10817_v12 = vld [vmem:[%s24993_s3 + $0xe0] sm:$0xff]  ;;  %v23363_v8 = vld [vmem:[%s24992_s2 + $0x10] sm:$0xff] }
 0x565   :  { %10659 = vmatprep.subr.bf16.mxu1 %v18806_v11  ;;  %v15999_v11 = vcombine.low %v10805_v44, %v10809_v62  ;;  %v10845_v62 = vld [vmem:[%s24993_s3 + $0x1c0] sm:$0xff] }
 0x567   :  { %10514 = vmatpush1.bf16.msra.mxu0 %v18807_v14  ;;  %v1520_v14 = vrot.slane %v23363_v8, %v20817_v33 }
 0x568   :  { %10660 = vmatpush1.bf16.msra.mxu1 %v18804_v16  ;;  %10515 = vmatprep.subr.bf16.mxu0 %v18815_v52  ;;  %v18840_v16 = vld [vmem:[%s24990_s1 + $0x26e8] ss:$112 sps:$4 sm:$0xff]   ;;  %v16008_v52 = vcombine.high %v10813_v7, %v10817_v12 }
 0x569   :  { %10661 = vmatprep.subr.bf16.mxu1 %v18812_v17  ;;  %v16564_v17 = vadd.f32 %v22234_v28, %v1492_v5  ;;  %v16007_v28 = vcombine.low %v10813_v7, %v10817_v12  ;;  %v10794_v5 = vld [vmem:[%s24993_s3 + $0x28] sm:$0xff] }
 0x56a   :  { %v18852_v12 = vld [vmem:[%s24990_s1 + $0x2a68] ss:$112 sps:$4 sm:$0xff]  }
 0x56b   :  { %10516 = vmatpush1.bf16.msra.mxu0 %v18813_v34 }
 0x56c   :  { %10662 = vmatpush1.bf16.msra.mxu1 %v18810_v9  ;;  %10517 = vmatprep.subr.bf16.mxu0 %v18821_v20  ;;  %v18845_v9 = vld [vmem:[%s24990_s1 + $0x27cc] ss:$112 sps:$4 sm:$0xff]   ;;  %v10821_v20 = vld [vmem:[%s24993_s3 + $0x100] sm:$0xff] }
 0x56d   :  { %10663 = vmatprep.subr.bf16.mxu1 %v18818_v22  ;;  %v10825_v22 = vld [vmem:[%s24993_s3 + $0x120] sm:$0xff] }
 0x56e   :  { %v16016_v37 = vcombine.high %v10821_v20, %v10825_v22 }
 0x56f   :  { %10518 = vmatpush1.bf16.msra.mxu0 %v18819_v25 }
 0x570   :  { %10664 = vmatpush1.bf16.msra.mxu1 %v18816_v36  ;;  %10528 = vmatprep.subr.bf16.mxu0 %v18827_v26 }
 0x571   :  { %10665 = vmatprep.subr.bf16.mxu1 %v18824_v32  ;;  %v18843_v32 = vld [vmem:[%s24990_s1 + $0x27c8] ss:$112 sps:$4 sm:$0xff]  }
 0x572   :  { %10520 = vmatmul.mubr.bf16.vlgmr.msra.gmra.mrb[24].mxu0 %v19582_v29 }
 0x573   :  { %10529 = vmatpush1.bf16.msra.mxu0 %v18825_v41  ;;  %10560 = vmatprep.mubr.bf16.mxu0 %v18891_v1  ;;  %v10747_v41 = vmax.f32 %v16564_v17, 0.0 }
 0x574   :  { %10666 = vmatpush1.bf16.msra.mxu1 %v18822_v43  ;;  %13519 = vmatprep.subr.bf16.mxu0 %v15984_v42  ;;  %v18848_v42 = vld [vmem:[%s24990_s1 + $0x28ac] ss:$112 sps:$4 sm:$0xff]  }
 0x575   :  { %10667 = vmatprep.subr.bf16.mxu1 %v18830_v51  ;;  %v10829_v51 = vld [vmem:[%s24993_s3 + $0x140] sm:$0xff] }
 0x578   :  { %10668 = vmatpush1.bf16.msra.mxu1 %v18828_v60  ;;  %v10833_v60 = vld [vmem:[%s24993_s3 + $0x160] sm:$0xff] }
 0x579   :  { %10669 = vmatprep.subr.bf16.mxu1 %v18833_v46  ;;  %v16024_v56 = vcombine.high %v10829_v51, %v10833_v60 }
 0x57c   :  { %10670 = vmatpush1.bf16.msra.mxu1 %v18831_v49  ;;  %v16015_v49 = vcombine.low %v10821_v20, %v10825_v22  ;;  %v10865_v20 = vld [vmem:[%s24993_s3 + $0x260] sm:$0xff] }
 0x57d   :  { %10671 = vmatprep.subr.bf16.mxu1 %v18836_v50  ;;  %v18846_v50 = vld [vmem:[%s24990_s1 + $0x28a8] ss:$112 sps:$4 sm:$0xff]  }
 0x57e   :  { %15981 = vmatmul.mubr.msk.bf16.vlgmr.msra.gmra.mrb[24].mxu0 %vm8433_vm0, %v18982_v10 }
 0x57f   :  { %13520 = vmatpush1.bf16.msra.mxu0 %v15983_v4  ;;  %v18851_v4 = vld [vmem:[%s24990_s1 + $0x298c] ss:$112 sps:$4 sm:$0xff]  }
 0x580   :  { %10672 = vmatpush1.bf16.msra.mxu1 %v18834_v53  ;;  %13521 = vmatprep.subr.bf16.mxu0 %v15992_v40  ;;  %v10837_v53 = vld [vmem:[%s24993_s3 + $0x180] sm:$0xff] }
 0x581   :  { %10673 = vmatprep.subr.bf16.mxu1 %v18839_v61  ;;  %v10841_v40 = vld [vmem:[%s24993_s3 + $0x1a0] sm:$0xff]  ;;  %v16023_v61 = vcombine.low %v10829_v51, %v10833_v60  ;;  %v10806_v51 = vld [vmem:[%s24993_s3 + $0x88] sm:$0xff] }
 0x582   :  { %v16032_v44 = vcombine.high %v10837_v53, %v10841_v40  ;;  %v10810_v60 = vld [vmem:[%s24993_s3 + $0xa8] sm:$0xff] }
 0x583   :  { %13522 = vmatpush1.bf16.msra.mxu0 %v15991_v55  ;;  %v10849_v55 = vld [vmem:[%s24993_s3 + $0x1e0] sm:$0xff] }
 0x584   :  { %10674 = vmatpush1.bf16.msra.mxu1 %v18837_v18  ;;  %13523 = vmatprep.subr.bf16.mxu0 %v16000_v6  ;;  %v18854_v18 = vld [vmem:[%s24990_s1 + $0x2a6c] ss:$112 sps:$4 sm:$0xff]   ;;  %v16040_v7 = vcombine.high %v10845_v62, %v10849_v55 }
 0x585   :  { %10675 = vmatprep.subr.bf16.mxu1 %v18842_v24  ;;  %v23371_v34 = vpop.f32.mrb[20].mxu0  ;;  %v10790_v6 = vld [vmem:[%s24993_s3 + $0x8] sm:$0xff]  ;;  %v16031_v24 = vcombine.low %v10837_v53, %v10841_v40  ;;  %v10885_v53 = vld [vmem:[%s24993_s3 + $0x300] sm:$0xff] }
 0x586   :  { %v10236_v25 = vpop.f32.mrb[21].mxu0  ;;  %v10889_v40 = vld [vmem:[%s24993_s3 + $0x320] sm:$0xff] }
 0x587   :  { %13524 = vmatpush1.bf16.msra.mxu0 %v15999_v11  ;;  %v16571_v36 = vadd.f32 %v10236_v25, %v1520_v14  ;;  %v10238_v26 = vpop.f32.mrb[22].mxu0  ;;  %v10853_v11 = vld [vmem:[%s24993_s3 + $0x200] sm:$0xff] }
 0x588   :  { %10676 = vmatpush1.bf16.msra.mxu1 %v18840_v16  ;;  %v10239_v35 = vpop.f32.mrb[23].mxu0  ;;  %13525 = vmatprep.subr.bf16.mxu0 %v16008_v52  ;;  %v10857_v14 = vld [vmem:[%s24993_s3 + $0x220] sm:$0xff]  ;;  %v15986_v16 = vcombine.high %v10790_v6, %v10794_v5  ;;  %v16039_v52 = vcombine.low %v10845_v62, %v10849_v55  ;;  %v10798_v26 = vld [vmem:[%s24993_s3 + $0x48] sm:$0xff]  ;;  %v16001_v62 = vcombine.low %v10806_v51, %v10810_v60 }
 0x589   :  { %v10754_v43 = vmax.f32 %v16571_v36, 0.0  ;;  %10677 = vmatprep.subr.bf16.mxu1 %v18845_v9  ;;  %v16048_v17 = vcombine.high %v10853_v11, %v10857_v14  ;;  %v10861_v9 = vld [vmem:[%s24993_s3 + $0x240] sm:$0xff]  ;;  %v16047_v22 = vcombine.low %v10853_v11, %v10857_v14  ;;  %v15985_v35 = vcombine.low %v10790_v6, %v10794_v5  ;;  %v10822_v14 = vld [vmem:[%s24993_s3 + $0x108] sm:$0xff] }
 0x58a   :  { %v10869_v25 = vld [vmem:[%s24993_s3 + $0x280] sm:$0xff]  ;;  %v1528_v55 = vrot.slane %v23363_v8, %v20942_v30 }
 0x58b   :  { %v10768_v46 = vmax.f32 %v10747_v41, %v10754_v43  ;;  %13526 = vmatpush1.bf16.msra.mxu0 %v16007_v28  ;;  %v10873_v36 = vld [vmem:[%s24993_s3 + $0x2a0] sm:$0xff]  ;;  %v10802_v28 = vld [vmem:[%s24993_s3 + $0x68] sm:$0xff] }
 0x58c   :  { %10678 = vmatpush1.bf16.msra.mxu1 %v18843_v32  ;;  %13527 = vmatprep.subr.bf16.mxu0 %v16016_v37  ;;  %v16055_v32 = vcombine.low %v10861_v9, %v10865_v20  ;;  %v16064_v37 = vcombine.high %v10869_v25, %v10873_v36  ;;  %v15994_v41 = vcombine.high %v10798_v26, %v10802_v28  ;;  %v10877_v43 = vld [vmem:[%s24993_s3 + $0x2c0] sm:$0xff] }
 0x58d   :  { %v23398_v59 = vmax.f32 %v20980_v58, %v10768_v46  ;;  %10679 = vmatprep.subr.bf16.mxu1 %v18848_v42  ;;  %v18849_v58 = vld [vmem:[%s24990_s1 + $0x2988] ss:$112 sps:$4 sm:$0xff]   ;;  %v10881_v42 = vld [vmem:[%s24993_s3 + $0x2e0] sm:$0xff]  ;;  %v16063_v46 = vcombine.low %v10869_v25, %v10873_v36 }
 0x58f   :  { %13528 = vmatpush1.bf16.msra.mxu0 %v16015_v49  ;;  %v15993_v49 = vcombine.low %v10798_v26, %v10802_v28  ;;  %v10901_v28 = vld [vmem:[%s24993_s3 + $0x380] sm:$0xff] }
 0x590   :  { %10680 = vmatpush1.bf16.msra.mxu1 %v18846_v50  ;;  %13529 = vmatprep.subr.bf16.mxu0 %v16024_v56  ;;  %v16072_v50 = vcombine.high %v10877_v43, %v10881_v42  ;;  %v1496_v56 = vrot.slane %v23347_v2, %v20942_v30  ;;  %v10818_v2 = vld [vmem:[%s24993_s3 + $0xe8] sm:$0xff] }
 0x591   :  { %10681 = vmatprep.subr.bf16.mxu1 %v18851_v4  ;;  %v16002_v4 = vcombine.high %v10806_v51, %v10810_v60 }
 0x592   :  { %v16565_v6 = vadd.f32 %v22236_v27, %v1496_v56  ;;  %v10826_v27 = vld [vmem:[%s24993_s3 + $0x128] sm:$0xff] }
 0x593   :  { %13530 = vmatpush1.bf16.msra.mxu0 %v16023_v61  ;;  %v10814_v61 = vld [vmem:[%s24993_s3 + $0xc8] sm:$0xff]  ;;  %v16018_v26 = vcombine.high %v10822_v14, %v10826_v27 }
 0x594   :  { %10682 = vmatpush1.bf16.msra.mxu1 %v18849_v58  ;;  %13531 = vmatprep.subr.bf16.mxu0 %v16032_v44  ;;  %v1524_v58 = vrot.slane %v23363_v8, %v22089_v3  ;;  %v16071_v44 = vcombine.low %v10877_v43, %v10881_v42  ;;  %v16010_v5 = vcombine.high %v10814_v61, %v10818_v2  ;;  %v10834_v43 = vld [vmem:[%s24993_s3 + $0x168] sm:$0xff] }
 0x595   :  { %10692 = vmatprep.subr.bf16.mxu1 %v18854_v18  ;;  %v16080_v18 = vcombine.high %v10885_v53, %v10889_v40 }
 0x597   :  { %10684 = vmatmul.mubr.bf16.vlgmr.msra.gmra.mrb[32].mxu1 %v19582_v29  ;;  %13532 = vmatpush1.bf16.msra.mxu0 %v16031_v24  ;;  %v16056_v29 = vcombine.high %v10861_v9, %v10865_v20  ;;  %v10893_v24 = vld [vmem:[%s24993_s3 + $0x340] sm:$0xff] }
 0x598   :  { %13533 = vmatprep.subr.bf16.mxu0 %v16040_v7  ;;  %10693 = vmatpush1.bf16.msra.mxu1 %v18852_v12  ;;  %v10897_v7 = vld [vmem:[%s24993_s3 + $0x360] sm:$0xff] }
 0x599   :  { %10724 = vmatprep.mubr.bf16.mxu1 %v18891_v1  ;;  %13683 = vmatprep.subr.bf16.mxu1 %v15986_v16  ;;  %v16087_v51 = vcombine.low %v10893_v24, %v10897_v7 }
 0x59b   :  { %13534 = vmatpush1.bf16.msra.mxu0 %v16039_v52 }
 0x59c   :  { %13535 = vmatprep.subr.bf16.mxu0 %v16048_v17  ;;  %v16079_v17 = vcombine.low %v10885_v53, %v10889_v40  ;;  %v10913_v53 = vld [vmem:[%s24993_s3 + $0x3e0] sm:$0xff] }
 0x59f   :  { %13536 = vmatpush1.bf16.msra.mxu0 %v16047_v22  ;;  %v16009_v22 = vcombine.low %v10814_v61, %v10818_v2 }
 0x5a0   :  { %13537 = vmatprep.subr.bf16.mxu0 %v16056_v29  ;;  %v16088_v29 = vcombine.high %v10893_v24, %v10897_v7 }
 0x5a3   :  { %15982 = vmatmul.mubr.msk.bf16.vlgmr.msra.gmra.mrb[32].mxu1 %vm8433_vm0, %v18982_v10  ;;  %13538 = vmatpush1.bf16.msra.mxu0 %v16055_v32  ;;  %v1500_v10 = vrot.slane %v23363_v8, %v20220_v19  ;;  %v10905_v32 = vld [vmem:[%s24993_s3 + $0x3a0] sm:$0xff] }
 0x5a4   :  { %13684 = vmatpush1.bf16.msra.mxu1 %v15985_v35  ;;  %13539 = vmatprep.subr.bf16.mxu0 %v16064_v37  ;;  %v16095_v2 = vcombine.low %v10901_v28, %v10905_v32 }
 0x5a5   :  { %13685 = vmatprep.subr.bf16.mxu1 %v15994_v41  ;;  %v16566_v12 = vadd.f32 %v22740_v45, %v1500_v10  ;;  %v10748_v45 = vmax.f32 %v16565_v6, 0.0  ;;  %v10830_v41 = vld [vmem:[%s24993_s3 + $0x148] sm:$0xff] }
 0x5a6   :  { %v16026_v56 = vcombine.high %v10830_v41, %v10834_v43  ;;  %v10838_v10 = vld [vmem:[%s24993_s3 + $0x188] sm:$0xff] }
 0x5a7   :  { %13540 = vmatpush1.bf16.msra.mxu0 %v16063_v46  ;;  %v10749_v35 = vmax.f32 %v16566_v12, 0.0  ;;  %v16017_v46 = vcombine.low %v10822_v14, %v10826_v27  ;;  %v10850_v6 = vld [vmem:[%s24993_s3 + $0x1e8] sm:$0xff]  ;;  %v10929_v14 = vld [vmem:[%s24993_s3 + $0x460] sm:$0xff] }
 0x5a8   :  { %13686 = vmatpush1.bf16.msra.mxu1 %v15993_v49  ;;  %13541 = vmatprep.subr.bf16.mxu0 %v16072_v50  ;;  %v16096_v49 = vcombine.high %v10901_v28, %v10905_v32  ;;  %v10854_v27 = vld [vmem:[%s24993_s3 + $0x208] sm:$0xff] }
 0x5a9   :  { %13687 = vmatprep.subr.bf16.mxu1 %v16002_v4  ;;  %v10909_v4 = vld [vmem:[%s24993_s3 + $0x3c0] sm:$0xff] }
 0x5aa   :  { %v10398_v11 = vpop.f32.mrb[28].mxu1 }
 0x5ab   :  { %v16572_v16 = vadd.f32 %v10398_v11, %v1524_v58  ;;  %v10400_v52 = vpop.f32.mrb[29].mxu1  ;;  %13542 = vmatpush1.bf16.msra.mxu0 %v16071_v44  ;;  %v16025_v58 = vcombine.low %v10830_v41, %v10834_v43  ;;  %v16104_v44 = vcombine.high %v10909_v4, %v10913_v53  ;;  %v10925_v11 = vld [vmem:[%s24993_s3 + $0x440] sm:$0xff]  ;;  %v10870_v41 = vld [vmem:[%s24993_s3 + $0x288] sm:$0xff] }
 0x5ac   :  { %13688 = vmatpush1.bf16.msra.mxu1 %v16001_v62  ;;  %v16573_v9 = vadd.f32 %v10400_v52, %v1528_v55  ;;  %v10402_v20 = vpop.f32.mrb[30].mxu1  ;;  %13543 = vmatprep.subr.bf16.mxu0 %v16080_v18  ;;  %v10917_v62 = vld [vmem:[%s24993_s3 + $0x400] sm:$0xff]  ;;  %v10846_v18 = vld [vmem:[%s24993_s3 + $0x1c8] sm:$0xff] }
 0x5ad   :  { %v10755_v25 = vmax.f32 %v16572_v16, 0.0  ;;  %v10403_v36 = vpop.f32.mrb[31].mxu1  ;;  %13689 = vmatprep.subr.bf16.mxu1 %v16010_v5  ;;  %v10921_v55 = vld [vmem:[%s24993_s3 + $0x420] sm:$0xff]  ;;  %v16103_v5 = vcombine.low %v10909_v4, %v10913_v53  ;;  %v16042_v12 = vcombine.high %v10846_v18, %v10850_v6  ;;  %v10858_v16 = vld [vmem:[%s24993_s3 + $0x228] sm:$0xff]  ;;  %v16120_v20 = vcombine.high %v10925_v11, %v10929_v14 }
 0x5ae   :  { %v10756_v37 = vmax.f32 %v16573_v9, 0.0  ;;  %v16112_v7 = vcombine.high %v10917_v62, %v10921_v55  ;;  %v16111_v52 = vcombine.low %v10917_v62, %v10921_v55  ;;  %v16041_v9 = vcombine.low %v10846_v18, %v10850_v6  ;;  %v10874_v43 = vld [vmem:[%s24993_s3 + $0x2a8] sm:$0xff] }
 0x5af   :  { %v10769_v42 = vmax.f32 %v10748_v45, %v10755_v25  ;;  %13544 = vmatpush1.bf16.msra.mxu0 %v16079_v17  ;;  %v23562_v17 = vpack.c.bf16 %v23398_v59, %v23398_v59  ;;  %v10937_v45 = vld [vmem:[%s24993_s3 + $0x4a0] sm:$0xff]  ;;  %v10862_v59 = vld [vmem:[%s24993_s3 + $0x248] sm:$0xff]  ;;  %v16119_v36 = vcombine.low %v10925_v11, %v10929_v14 }
 0x5b0   :  { %v10770_v60 = vmax.f32 %v10749_v35, %v10756_v37  ;;  %13690 = vmatpush1.bf16.msra.mxu1 %v16009_v22  ;;  %13545 = vmatprep.subr.bf16.mxu0 %v16088_v29  ;;  %v16050_v22 = vcombine.high %v10854_v27, %v10858_v16  ;;  %v10933_v29 = vld [vmem:[%s24993_s3 + $0x480] sm:$0xff]  ;;  %v10866_v25 = vld [vmem:[%s24993_s3 + $0x268] sm:$0xff] }
 0x5b1   :  { %v10776_v50 = vmax.f32 %v21505_v63, %v10769_v42  ;;  %13691 = vmatprep.subr.bf16.mxu1 %v16018_v26  ;;  %v10842_v63 = vld [vmem:[%s24993_s3 + $0x1a8] sm:$0xff]  ;;  %v16049_v26 = vcombine.low %v10854_v27, %v10858_v16  ;;  %v16128_v28 = vcombine.high %v10933_v29, %v10937_v45  ;;  %v16058_v32 = vcombine.high %v10862_v59, %v10866_v25  ;;  %v10941_v35 = vld [vmem:[%s24993_s3 + $0x4c0] sm:$0xff] }
 0x5b2   :  { %v23524_v40 = vmax.f32 %v21507_v0, %v10770_v60  ;;  %v16034_v0 = vcombine.high %v10838_v10, %v10842_v63  ;;  %v16033_v24 = vcombine.low %v10838_v10, %v10842_v63  ;;  %v10945_v37 = vld [vmem:[%s24993_s3 + $0x4e0] sm:$0xff]  ;;  %v16127_v42 = vcombine.low %v10933_v29, %v10937_v45  ;;  %v10882_v4 = vld [vmem:[%s24993_s3 + $0x2e8] sm:$0xff] }
 0x5b3   :  { %v23532_v61 = vpack.c.bf16 %v10776_v50, %v10776_v50  ;;  %13546 = vmatpush1.bf16.msra.mxu0 %v16087_v51  ;;  %v16057_v51 = vcombine.low %v10862_v59, %v10866_v25  ;;  %v16136_v60 = vcombine.high %v10941_v35, %v10945_v37  ;;  %v10953_v50 = vld [vmem:[%s24993_s3 + $0x520] sm:$0xff]  ;;  %v16135_v53 = vcombine.low %v10941_v35, %v10945_v37  ;;  %v10890_v62 = vld [vmem:[%s24993_s3 + $0x328] sm:$0xff] }
 0x5b4   :  { %13692 = vmatpush1.bf16.msra.mxu1 %v16017_v46  ;;  %13547 = vmatprep.subr.bf16.mxu0 %v16096_v49  ;;  %v16066_v46 = vcombine.high %v10870_v41, %v10874_v43  ;;  %v10949_v49 = vld [vmem:[%s24993_s3 + $0x500] sm:$0xff]  ;;  %v16065_v10 = vcombine.low %v10870_v41, %v10874_v43  ;;  %v10898_v11 = vld [vmem:[%s24993_s3 + $0x368] sm:$0xff] }
 0x5b5   :  { %13551 = vmatprep.mubr.bf16.mxu0 %v23532_v61  ;;  %13693 = vmatprep.subr.bf16.mxu1 %v16026_v56  ;;  %v10878_v56 = vld [vmem:[%s24993_s3 + $0x2c8] sm:$0xff]  ;;  %v16144_v63 = vcombine.high %v10949_v49, %v10953_v50  ;;  %v16143_v55 = vcombine.low %v10949_v49, %v10953_v50 }
 0x5b6   :  { %13715 = vmatprep.mubr.bf16.mxu1 %v23532_v61  ;;  %v16073_v18 = vcombine.low %v10878_v56, %v10882_v4  ;;  %v10906_v29 = vld [vmem:[%s24993_s3 + $0x3a8] sm:$0xff] }
 0x5b7   :  { %13548 = vmatpush1.bf16.msra.mxu0 %v16095_v2  ;;  %v16074_v2 = vcombine.high %v10878_v56, %v10882_v4  ;;  %v10914_v35 = vld [vmem:[%s24993_s3 + $0x3e8] sm:$0xff] }
 0x5b8   :  { %13694 = vmatpush1.bf16.msra.mxu1 %v16025_v58  ;;  %13549 = vmatprep.subr.bf16.mxu0 %v16104_v44  ;;  %v10957_v58 = vld [vmem:[%s24993_s3 + $0x540] sm:$0xff]  ;;  %v10922_v49 = vld [vmem:[%s24993_s3 + $0x428] sm:$0xff] }
 0x5b9   :  { %13695 = vmatprep.subr.bf16.mxu1 %v16034_v0  ;;  %v10961_v44 = vld [vmem:[%s24993_s3 + $0x560] sm:$0xff]  ;;  %v10886_v0 = vld [vmem:[%s24993_s3 + $0x308] sm:$0xff] }
 0x5ba   :  { %v16152_v6 = vcombine.high %v10957_v58, %v10961_v44  ;;  %v16151_v14 = vcombine.low %v10957_v58, %v10961_v44  ;;  %v16081_v27 = vcombine.low %v10886_v0, %v10890_v62  ;;  %v11001_v58 = vld [vmem:[%s24993_s3 + $0x6a0] sm:$0xff] }
 0x5bb   :  { %13550 = vmatpush1.bf16.msra.mxu0 %v16103_v5  ;;  %v16082_v5 = vcombine.high %v10886_v0, %v10890_v62  ;;  %v10926_v0 = vld [vmem:[%s24993_s3 + $0x448] sm:$0xff] }
 0x5bc   :  { %13696 = vmatpush1.bf16.msra.mxu1 %v16033_v24  ;;  %13560 = vmatprep.subr.bf16.mxu0 %v16112_v7  ;;  %v10965_v24 = vld [vmem:[%s24993_s3 + $0x580] sm:$0xff]  ;;  %v10930_v62 = vld [vmem:[%s24993_s3 + $0x468] sm:$0xff] }
 0x5bd   :  { %13697 = vmatprep.subr.bf16.mxu1 %v16042_v12  ;;  %v10969_v7 = vld [vmem:[%s24993_s3 + $0x5a0] sm:$0xff]  ;;  %v10894_v12 = vld [vmem:[%s24993_s3 + $0x348] sm:$0xff] }
 0x5be   :  { %13552 = vmatmul.mubr.bf16.vlgmr.msra.gmra.mrb[28].mxu0 %v23562_v17  ;;  %v16160_v16 = vcombine.high %v10965_v24, %v10969_v7  ;;  %v16159_v45 = vcombine.low %v10965_v24, %v10969_v7  ;;  %v16089_v59 = vcombine.low %v10894_v12, %v10898_v11  ;;  %v11005_v24 = vld [vmem:[%s24993_s3 + $0x6c0] sm:$0xff] }
 0x5bf   :  { %13561 = vmatpush1.bf16.msra.mxu0 %v16111_v52  ;;  %v16090_v52 = vcombine.high %v10894_v12, %v10898_v11  ;;  %v11009_v7 = vld [vmem:[%s24993_s3 + $0x6e0] sm:$0xff]  ;;  %v10934_v12 = vld [vmem:[%s24993_s3 + $0x488] sm:$0xff] }
 0x5c0   :  { %13698 = vmatpush1.bf16.msra.mxu1 %v16041_v9  ;;  %13562 = vmatprep.subr.bf16.mxu0 %v16120_v20  ;;  %v10973_v9 = vld [vmem:[%s24993_s3 + $0x5c0] sm:$0xff]  ;;  %v10938_v11 = vld [vmem:[%s24993_s3 + $0x4a8] sm:$0xff] }
 0x5c1   :  { %13699 = vmatprep.subr.bf16.mxu1 %v16050_v22  ;;  %v10977_v20 = vld [vmem:[%s24993_s3 + $0x5e0] sm:$0xff]  ;;  %v10902_v22 = vld [vmem:[%s24993_s3 + $0x388] sm:$0xff] }
 0x5c2   :  { %v16168_v25 = vcombine.high %v10973_v9, %v10977_v20  ;;  %v16167_v37 = vcombine.low %v10973_v9, %v10977_v20  ;;  %v16097_v41 = vcombine.low %v10902_v22, %v10906_v29  ;;  %v11013_v9 = vld [vmem:[%s24993_s3 + $0x700] sm:$0xff] }
 0x5c3   :  { %13563 = vmatpush1.bf16.msra.mxu0 %v16119_v36  ;;  %v16098_v36 = vcombine.high %v10902_v22, %v10906_v29  ;;  %v11017_v20 = vld [vmem:[%s24993_s3 + $0x720] sm:$0xff]  ;;  %v10942_v22 = vld [vmem:[%s24993_s3 + $0x4c8] sm:$0xff] }
 0x5c4   :  { %13700 = vmatpush1.bf16.msra.mxu1 %v16049_v26  ;;  %13564 = vmatprep.subr.bf16.mxu0 %v16128_v28  ;;  %v10981_v26 = vld [vmem:[%s24993_s3 + $0x600] sm:$0xff]  ;;  %v10946_v29 = vld [vmem:[%s24993_s3 + $0x4e8] sm:$0xff] }
 0x5c5   :  { %13701 = vmatprep.subr.bf16.mxu1 %v16058_v32  ;;  %v10985_v28 = vld [vmem:[%s24993_s3 + $0x620] sm:$0xff]  ;;  %v10910_v32 = vld [vmem:[%s24993_s3 + $0x3c8] sm:$0xff] }
 0x5c6   :  { %v16176_v43 = vcombine.high %v10981_v26, %v10985_v28  ;;  %v16175_v50 = vcombine.low %v10981_v26, %v10985_v28  ;;  %v16105_v56 = vcombine.low %v10910_v32, %v10914_v35  ;;  %v11021_v26 = vld [vmem:[%s24993_s3 + $0x740] sm:$0xff] }
 0x5c7   :  { %13565 = vmatpush1.bf16.msra.mxu0 %v16127_v42  ;;  %v16106_v42 = vcombine.high %v10910_v32, %v10914_v35  ;;  %v11025_v28 = vld [vmem:[%s24993_s3 + $0x760] sm:$0xff]  ;;  %v10950_v32 = vld [vmem:[%s24993_s3 + $0x508] sm:$0xff] }
 0x5c8   :  { %13702 = vmatpush1.bf16.msra.mxu1 %v16057_v51  ;;  %13566 = vmatprep.subr.bf16.mxu0 %v16136_v60  ;;  %v10989_v51 = vld [vmem:[%s24993_s3 + $0x640] sm:$0xff]  ;;  %v10954_v35 = vld [vmem:[%s24993_s3 + $0x528] sm:$0xff] }
 0x5c9   :  { %13703 = vmatprep.subr.bf16.mxu1 %v16066_v46  ;;  %v10993_v60 = vld [vmem:[%s24993_s3 + $0x660] sm:$0xff]  ;;  %v10918_v46 = vld [vmem:[%s24993_s3 + $0x408] sm:$0xff] }
 0x5ca   :  { %v16184_v4 = vcombine.high %v10989_v51, %v10993_v60 }
 0x5cb   :  { %13567 = vmatpush1.bf16.msra.mxu0 %v16135_v53  ;;  %v23664_v53 = vld [vmem:[%s24993_s3 + $0x800] sm:$0xff] }
 0x5cc   :  { %13704 = vmatpush1.bf16.msra.mxu1 %v16065_v10  ;;  %13568 = vmatprep.subr.bf16.mxu0 %v16144_v63  ;;  %v23669_v10 = vld [vmem:[%s24993_s3 + $0x820] sm:$0xff]  ;;  %v16114_v63 = vcombine.high %v10918_v46, %v10922_v49 }
 0x5cd   :  { %13705 = vmatprep.subr.bf16.mxu1 %v16074_v2  ;;  %v10997_v2 = vld [vmem:[%s24993_s3 + $0x680] sm:$0xff]  ;;  %v16239_v44 = vcombine.low %v23664_v53, %v23669_v10 }
 0x5cf   :  { %13569 = vmatpush1.bf16.msra.mxu0 %v16143_v55  ;;  %v16183_v55 = vcombine.low %v10989_v51, %v10993_v60  ;;  %v11029_v51 = vld [vmem:[%s24993_s3 + $0x780] sm:$0xff] }
 0x5d0   :  { %13706 = vmatpush1.bf16.msra.mxu1 %v16073_v18  ;;  %13570 = vmatprep.subr.bf16.mxu0 %v16152_v6  ;;  %v16113_v18 = vcombine.low %v10918_v46, %v10922_v49  ;;  %v16192_v6 = vcombine.high %v10997_v2, %v11001_v58  ;;  %v11033_v60 = vld [vmem:[%s24993_s3 + $0x7a0] sm:$0xff]  ;;  %v10958_v46 = vld [vmem:[%s24993_s3 + $0x548] sm:$0xff] }
 0x5d1   :  { %13707 = vmatprep.subr.bf16.mxu1 %v16082_v5  ;;  %v16122_v5 = vcombine.high %v10926_v0, %v10930_v62  ;;  %v10962_v49 = vld [vmem:[%s24993_s3 + $0x568] sm:$0xff] }
 0x5d3   :  { %13571 = vmatpush1.bf16.msra.mxu0 %v16151_v14  ;;  %v16191_v14 = vcombine.low %v10997_v2, %v11001_v58  ;;  %v11037_v2 = vld [vmem:[%s24993_s3 + $0x7c0] sm:$0xff] }
 0x5d4   :  { %13708 = vmatpush1.bf16.msra.mxu1 %v16081_v27  ;;  %13572 = vmatprep.subr.bf16.mxu0 %v16160_v16  ;;  %v16121_v27 = vcombine.low %v10926_v0, %v10930_v62  ;;  %v16200_v16 = vcombine.high %v11005_v24, %v11009_v7  ;;  %v11041_v58 = vld [vmem:[%s24993_s3 + $0x7e0] sm:$0xff]  ;;  %v10966_v0 = vld [vmem:[%s24993_s3 + $0x588] sm:$0xff] }
 0x5d5   :  { %13709 = vmatprep.subr.bf16.mxu1 %v16090_v52  ;;  %v16130_v52 = vcombine.high %v10934_v12, %v10938_v11  ;;  %v10970_v62 = vld [vmem:[%s24993_s3 + $0x5a8] sm:$0xff] }
 0x5d7   :  { %13573 = vmatpush1.bf16.msra.mxu0 %v16159_v45  ;;  %v16199_v45 = vcombine.low %v11005_v24, %v11009_v7  ;;  %v10974_v24 = vld [vmem:[%s24993_s3 + $0x5c8] sm:$0xff] }
 0x5d8   :  { %13710 = vmatpush1.bf16.msra.mxu1 %v16089_v59  ;;  %13574 = vmatprep.subr.bf16.mxu0 %v16168_v25  ;;  %v16129_v59 = vcombine.low %v10934_v12, %v10938_v11  ;;  %v16208_v25 = vcombine.high %v11013_v9, %v11017_v20  ;;  %v10978_v7 = vld [vmem:[%s24993_s3 + $0x5e8] sm:$0xff]  ;;  %v16231_v12 = vcombine.low %v11037_v2, %v11041_v58 }
 0x5d9   :  { %13711 = vmatprep.subr.bf16.mxu1 %v16098_v36  ;;  %v16138_v36 = vcombine.high %v10942_v22, %v10946_v29  ;;  %v16161_v11 = vcombine.low %v10966_v0, %v10970_v62 }
 0x5db   :  { %13575 = vmatpush1.bf16.msra.mxu0 %v16167_v37  ;;  %v16207_v37 = vcombine.low %v11013_v9, %v11017_v20  ;;  %v16169_v9 = vcombine.low %v10974_v24, %v10978_v7 }
 0x5dc   :  { %13712 = vmatpush1.bf16.msra.mxu1 %v16097_v41  ;;  %13576 = vmatprep.subr.bf16.mxu0 %v16176_v43  ;;  %v16137_v41 = vcombine.low %v10942_v22, %v10946_v29  ;;  %v16216_v43 = vcombine.high %v11021_v26, %v11025_v28  ;;  %v10990_v22 = vld [vmem:[%s24993_s3 + $0x648] sm:$0xff] }
 0x5dd   :  { %13713 = vmatprep.subr.bf16.mxu1 %v16106_v42  ;;  %v16146_v42 = vcombine.high %v10950_v32, %v10954_v35  ;;  %v10994_v29 = vld [vmem:[%s24993_s3 + $0x668] sm:$0xff] }
 0x5df   :  { %13577 = vmatpush1.bf16.msra.mxu0 %v16175_v50  ;;  %v16215_v50 = vcombine.low %v11021_v26, %v11025_v28  ;;  %v16185_v26 = vcombine.low %v10990_v22, %v10994_v29 }
 0x5e0   :  { %13714 = vmatpush1.bf16.msra.mxu1 %v16105_v56  ;;  %13578 = vmatprep.subr.bf16.mxu0 %v16184_v4  ;;  %v16145_v56 = vcombine.low %v10950_v32, %v10954_v35  ;;  %v16224_v4 = vcombine.high %v11029_v51, %v11033_v60  ;;  %v11006_v32 = vld [vmem:[%s24993_s3 + $0x6c8] sm:$0xff] }
 0x5e1   :  { %13724 = vmatprep.subr.bf16.mxu1 %v16114_v63  ;;  %v16154_v63 = vcombine.high %v10958_v46, %v10962_v49  ;;  %v11010_v35 = vld [vmem:[%s24993_s3 + $0x6e8] sm:$0xff] }
 0x5e3   :  { %13716 = vmatmul.mubr.bf16.vlgmr.msra.gmra.mrb[36].mxu1 %v23562_v17  ;;  %13579 = vmatpush1.bf16.msra.mxu0 %v16183_v55  ;;  %v16223_v55 = vcombine.low %v11029_v51, %v11033_v60  ;;  %v16201_v51 = vcombine.low %v11006_v32, %v11010_v35 }
 0x5e4   :  { %13725 = vmatpush1.bf16.msra.mxu1 %v16113_v18  ;;  %13580 = vmatprep.subr.bf16.mxu0 %v16192_v6  ;;  %v16153_v18 = vcombine.low %v10958_v46, %v10962_v49  ;;  %v16232_v6 = vcombine.high %v11037_v2, %v11041_v58  ;;  %v11022_v46 = vld [vmem:[%s24993_s3 + $0x748] sm:$0xff] }
 0x5e5   :  { %13726 = vmatprep.subr.bf16.mxu1 %v16122_v5  ;;  %v16162_v5 = vcombine.high %v10966_v0, %v10970_v62  ;;  %v11026_v49 = vld [vmem:[%s24993_s3 + $0x768] sm:$0xff] }
 0x5e6   :  { %v16217_v2 = vcombine.low %v11022_v46, %v11026_v49  ;;  %v11038_v0 = vld [vmem:[%s24993_s3 + $0x7c8] sm:$0xff] }
 0x5e7   :  { %13581 = vmatpush1.bf16.msra.mxu0 %v16191_v14  ;;  %v16240_v14 = vcombine.high %v23664_v53, %v23669_v10  ;;  %v11042_v62 = vld [vmem:[%s24993_s3 + $0x7e8] sm:$0xff] }
 0x5e8   :  { %13727 = vmatpush1.bf16.msra.mxu1 %v16121_v27  ;;  %13582 = vmatprep.subr.bf16.mxu0 %v16200_v16  ;;  %v16170_v27 = vcombine.high %v10974_v24, %v10978_v7  ;;  %v10982_v16 = vld [vmem:[%s24993_s3 + $0x608] sm:$0xff]  ;;  %v16233_v24 = vcombine.low %v11038_v0, %v11042_v62 }
 0x5e9   :  { %13728 = vmatprep.subr.bf16.mxu1 %v16130_v52  ;;  %v10986_v52 = vld [vmem:[%s24993_s3 + $0x628] sm:$0xff] }
 0x5ea   :  { %v16178_v20 = vcombine.high %v10982_v16, %v10986_v52  ;;  %v11070_v53 = vld [vmem:[%s24993_s3 + $0x8c8] sm:$0xff] }
 0x5eb   :  { %13583 = vmatpush1.bf16.msra.mxu0 %v16199_v45  ;;  %v16177_v45 = vcombine.low %v10982_v16, %v10986_v52  ;;  %v11074_v10 = vld [vmem:[%s24993_s3 + $0x8e8] sm:$0xff] }
 0x5ec   :  { %13729 = vmatpush1.bf16.msra.mxu1 %v16129_v59  ;;  %13584 = vmatprep.subr.bf16.mxu0 %v16208_v25  ;;  %v16186_v59 = vcombine.high %v10990_v22, %v10994_v29  ;;  %v10998_v25 = vld [vmem:[%s24993_s3 + $0x688] sm:$0xff] }
 0x5ed   :  { %13730 = vmatprep.subr.bf16.mxu1 %v16138_v36  ;;  %v11002_v36 = vld [vmem:[%s24993_s3 + $0x6a8] sm:$0xff] }
 0x5ee   :  { %v16194_v28 = vcombine.high %v10998_v25, %v11002_v36 }
 0x5ef   :  { %13585 = vmatpush1.bf16.msra.mxu0 %v16207_v37  ;;  %v16193_v37 = vcombine.low %v10998_v25, %v11002_v36 }
 0x5f0   :  { %13731 = vmatpush1.bf16.msra.mxu1 %v16137_v41  ;;  %13586 = vmatprep.subr.bf16.mxu0 %v16216_v43  ;;  %v16202_v41 = vcombine.high %v11006_v32, %v11010_v35  ;;  %v11014_v43 = vld [vmem:[%s24993_s3 + $0x708] sm:$0xff] }
 0x5f1   :  { %13732 = vmatprep.subr.bf16.mxu1 %v16146_v42  ;;  %v11018_v42 = vld [vmem:[%s24993_s3 + $0x728] sm:$0xff] }
 0x5f2   :  { %v16210_v60 = vcombine.high %v11014_v43, %v11018_v42 }
 0x5f3   :  { %13587 = vmatpush1.bf16.msra.mxu0 %v16215_v50  ;;  %v16209_v50 = vcombine.low %v11014_v43, %v11018_v42  ;;  %v11058_v43 = vld [vmem:[%s24993_s3 + $0x868] sm:$0xff] }
 0x5f4   :  { %13733 = vmatpush1.bf16.msra.mxu1 %v16145_v56  ;;  %13588 = vmatprep.subr.bf16.mxu0 %v16224_v4  ;;  %v16218_v56 = vcombine.high %v11022_v46, %v11026_v49  ;;  %v11030_v4 = vld [vmem:[%s24993_s3 + $0x788] sm:$0xff] }
 0x5f5   :  { %13734 = vmatprep.subr.bf16.mxu1 %v16154_v63  ;;  %v11034_v63 = vld [vmem:[%s24993_s3 + $0x7a8] sm:$0xff] }
 0x5f6   :  { %v16226_v58 = vcombine.high %v11030_v4, %v11034_v63 }
 0x5f7   :  { %13589 = vmatpush1.bf16.msra.mxu0 %v16223_v55  ;;  %v16225_v55 = vcombine.low %v11030_v4, %v11034_v63 }
 0x5f8   :  { %13735 = vmatpush1.bf16.msra.mxu1 %v16153_v18  ;;  %13590 = vmatprep.subr.bf16.mxu0 %v16232_v6  ;;  %v16234_v18 = vcombine.high %v11038_v0, %v11042_v62  ;;  %v11046_v6 = vld [vmem:[%s24993_s3 + $0x808] sm:$0xff]  ;;  %v11069_v0 = vld [vmem:[%s24993_s3 + $0x8c0] sm:$0xff] }
 0x5f9   :  { %13736 = vmatprep.subr.bf16.mxu1 %v16162_v5  ;;  %v11050_v5 = vld [vmem:[%s24993_s3 + $0x828] sm:$0xff]  ;;  %v11073_v62 = vld [vmem:[%s24993_s3 + $0x8e0] sm:$0xff] }
 0x5fa   :  { %v16242_v7 = vcombine.high %v11046_v6, %v11050_v5 }
 0x5fb   :  { %13591 = vmatpush1.bf16.msra.mxu0 %v16231_v12  ;;  %v23811_v12 = vld [vmem:[%s24992_s2 + $0x18] sm:$0xf] }
 0x5fc   :  { %13737 = vmatpush1.bf16.msra.mxu1 %v16161_v11  ;;  %13601 = vmatprep.subr.bf16.mxu0 %v16240_v14  ;;  %v1504_v11 = vrot.slane %v23363_v8, %v20226_v21  ;;  %v1508_v14 = vrot.slane %v23363_v8, %v21443_v23  ;;  %v1536_v16 = vrot.slane %v23811_v12, %v20226_v21 }
 0x5fd   :  { %13738 = vmatprep.subr.bf16.mxu1 %v16170_v27  ;;  %v1532_v27 = vrot.slane %v23811_v12, %v20220_v19 }
 0x5fe   :  { %v16567_v52 = vadd.f32 %v22745_v48, %v1504_v11  ;;  %v11082_v11 = vld [vmem:[%s24993_s3 + $0x928] sm:$0xff] }
 0x600   :  { %13739 = vmatpush1.bf16.msra.mxu1 %v16169_v9  ;;  %v16568_v9 = vadd.f32 %v22848_v54, %v1508_v14  ;;  %v10750_v25 = vmax.f32 %v16567_v52, 0.0  ;;  %v11057_v54 = vld [vmem:[%s24993_s3 + $0x860] sm:$0xff]  ;;  %v16263_v14 = vcombine.low %v11069_v0, %v11073_v62 }
 0x601   :  { %13740 = vmatprep.subr.bf16.mxu1 %v16178_v20 }
 0x604   :  { %13741 = vmatpush1.bf16.msra.mxu1 %v16177_v45 }
 0x605   :  { %13742 = vmatprep.subr.bf16.mxu1 %v16186_v59 }
 0x608   :  { %13743 = vmatpush1.bf16.msra.mxu1 %v16185_v26 }
 0x609   :  { %13744 = vmatprep.subr.bf16.mxu1 %v16194_v28  ;;  %v10751_v28 = vmax.f32 %v16568_v9, 0.0  ;;  %v11085_v9 = vld [vmem:[%s24993_s3 + $0x940] sm:$0xff] }
 0x60c   :  { %13745 = vmatpush1.bf16.msra.mxu1 %v16193_v37  ;;  %v11053_v37 = vld [vmem:[%s24993_s3 + $0x840] sm:$0xff] }
 0x60d   :  { %13746 = vmatprep.subr.bf16.mxu1 %v16202_v41  ;;  %v11054_v41 = vld [vmem:[%s24993_s3 + $0x848] sm:$0xff]  ;;  %v16248_v46 = vcombine.high %v11053_v37, %v11057_v54  ;;  %v16247_v4 = vcombine.low %v11053_v37, %v11057_v54 }
 0x60e   :  { %v16250_v49 = vcombine.high %v11054_v41, %v11058_v43  ;;  %v16249_v63 = vcombine.low %v11054_v41, %v11058_v43  ;;  %v11101_v41 = vld [vmem:[%s24993_s3 + $0x9c0] sm:$0xff] }
 0x60f   :  { %v11105_v43 = vld [vmem:[%s24993_s3 + $0x9e0] sm:$0xff] }
 0x610   :  { %13747 = vmatpush1.bf16.msra.mxu1 %v16201_v51 }
 0x611   :  { %13748 = vmatprep.subr.bf16.mxu1 %v16210_v60  ;;  %v16241_v60 = vcombine.low %v11046_v6, %v11050_v5  ;;  %v16266_v6 = vcombine.high %v11070_v53, %v11074_v10  ;;  %v11077_v5 = vld [vmem:[%s24993_s3 + $0x900] sm:$0xff] }
 0x614   :  { %13749 = vmatpush1.bf16.msra.mxu1 %v16209_v50  ;;  %v11061_v50 = vld [vmem:[%s24993_s3 + $0x880] sm:$0xff] }
 0x615   :  { %13750 = vmatprep.subr.bf16.mxu1 %v16218_v56  ;;  %v11062_v56 = vld [vmem:[%s24993_s3 + $0x888] sm:$0xff] }
 0x618   :  { %13751 = vmatpush1.bf16.msra.mxu1 %v16217_v2 }
 0x619   :  { %13752 = vmatprep.subr.bf16.mxu1 %v16226_v58 }
 0x61c   :  { %13753 = vmatpush1.bf16.msra.mxu1 %v16225_v55 }
 0x61d   :  { %13754 = vmatprep.subr.bf16.mxu1 %v16234_v18  ;;  %v16264_v18 = vcombine.high %v11069_v0, %v11073_v62  ;;  %v1544_v0 = vrot.slane %v23811_v12, %v21569_v39  ;;  %v11113_v62 = vld [vmem:[%s24993_s3 + $0xa20] sm:$0xff] }
 0x620   :  { %13755 = vmatpush1.bf16.msra.mxu1 %v16233_v24  ;;  %v11081_v24 = vld [vmem:[%s24993_s3 + $0x920] sm:$0xff] }
 0x621   :  { %13765 = vmatprep.subr.bf16.mxu1 %v16242_v7  ;;  %v11078_v7 = vld [vmem:[%s24993_s3 + $0x908] sm:$0xff] }
 0x622   :  { %v16274_v52 = vcombine.high %v11078_v7, %v11082_v11 }
 0x651   :  { %v10562_v20 = vpop.f32.mrb[24].mxu0 }
 0x652   :  { %v16574_v22 = vadd.f32 %v10562_v20, %v1532_v27  ;;  %v10564_v29 = vpop.f32.mrb[25].mxu0  ;;  %v16265_v27 = vcombine.low %v11070_v53, %v11074_v10  ;;  %v11089_v20 = vld [vmem:[%s24993_s3 + $0x960] sm:$0xff]  ;;  %v11110_v53 = vld [vmem:[%s24993_s3 + $0xa08] sm:$0xff] }
 0x653   :  { %v16575_v45 = vadd.f32 %v10564_v29, %v1536_v16  ;;  %v10566_v59 = vpop.f32.mrb[26].mxu0  ;;  %v16272_v16 = vcombine.high %v11077_v5, %v11081_v24  ;;  %v11090_v29 = vld [vmem:[%s24993_s3 + $0x968] sm:$0xff] }
 0x654   :  { %v10757_v36 = vmax.f32 %v16574_v22, 0.0  ;;  %v10567_v26 = vpop.f32.mrb[27].mxu0  ;;  %v11086_v22 = vld [vmem:[%s24993_s3 + $0x948] sm:$0xff]  ;;  %v16273_v59 = vcombine.low %v11078_v7, %v11082_v11 }
 0x655   :  { %v10758_v8 = vmax.f32 %v16575_v45, 0.0  ;;  %v16271_v45 = vcombine.low %v11077_v5, %v11081_v24  ;;  %v11093_v26 = vld [vmem:[%s24993_s3 + $0x980] sm:$0xff]  ;;  %v16281_v37 = vcombine.low %v11086_v22, %v11090_v29  ;;  %v11114_v10 = vld [vmem:[%s24993_s3 + $0xa28] sm:$0xff] }
 0x656   :  { %v10771_v32 = vmax.f32 %v10750_v25, %v10757_v36  ;;  %v16280_v25 = vcombine.high %v11085_v9, %v11089_v20  ;;  %v16282_v36 = vcombine.high %v11086_v22, %v11090_v29  ;;  %v16306_v11 = vcombine.high %v11110_v53, %v11114_v10 }
 0x657   :  { %v10772_v35 = vmax.f32 %v10751_v28, %v10758_v8  ;;  %v11097_v28 = vld [vmem:[%s24993_s3 + $0x9a0] sm:$0xff]  ;;  %v11094_v8 = vld [vmem:[%s24993_s3 + $0x988] sm:$0xff] }
 0x658   :  { %v10778_v48 = vmax.f32 %v21621_v13, %v10771_v32  ;;  %v23843_v13 = vpack.c.bf16 %v23524_v40, %v23524_v40  ;;  %v11066_v40 = vld [vmem:[%s24993_s3 + $0x8a8] sm:$0xff] }
 0x659   :  { %v23837_v42 = vmax.f32 %v21626_v15, %v10772_v35  ;;  %v11065_v15 = vld [vmem:[%s24993_s3 + $0x8a0] sm:$0xff]  ;;  %v16258_v58 = vcombine.high %v11062_v56, %v11066_v40  ;;  %v16257_v55 = vcombine.low %v11062_v56, %v11066_v40  ;;  %v11098_v32 = vld [vmem:[%s24993_s3 + $0x9a8] sm:$0xff]  ;;  %v16279_v35 = vcombine.low %v11085_v9, %v11089_v20 }
 0x65a   :  { %v23839_v51 = vpack.c.bf16 %v10778_v48, %v10778_v48  ;;  %v16256_v2 = vcombine.high %v11061_v50, %v11065_v15  ;;  %v16288_v48 = vcombine.high %v11093_v26, %v11097_v28  ;;  %v16290_v54 = vcombine.high %v11094_v8, %v11098_v32 }
 0x65b   :  { %v16287_v56 = vcombine.low %v11093_v26, %v11097_v28  ;;  %v16289_v40 = vcombine.low %v11094_v8, %v11098_v32  ;;  %v11125_v8 = vld [vmem:[%s24993_s3 + $0xa80] sm:$0xff] }
 0x65c   :  { %13592 = vmatprep.mubr.bf16.mxu0 %v23839_v51  ;;  %13756 = vmatprep.mubr.bf16.mxu1 %v23839_v51 }
 0x65d   :  { %13593 = vmatmul.mubr.bf16.vlgmr.msra.gmra.mrb[28].mxu0 %v23843_v13  ;;  %13757 = vmatmul.mubr.bf16.vlgmr.msra.gmra.mrb[36].mxu1 %v23843_v13 }
 0x65e   :  { %13602 = vmatpush1.bf16.msra.mxu0 %v16239_v44  ;;  %13766 = vmatpush1.bf16.msra.mxu1 %v16241_v60  ;;  %v16255_v44 = vcombine.low %v11061_v50, %v11065_v15  ;;  %v11102_v60 = vld [vmem:[%s24993_s3 + $0x9c8] sm:$0xff] }
 0x65f   :  { %13603 = vmatprep.subr.bf16.mxu0 %v16248_v46  ;;  %13767 = vmatprep.subr.bf16.mxu1 %v16250_v49  ;;  %v11106_v46 = vld [vmem:[%s24993_s3 + $0x9e8] sm:$0xff]  ;;  %v18890_v49 = vld [vmem:[%s24992_s2 + $0x10] sm:$0xff] }
 0x660   :  { %v1512_v50 = vrot.slane %v18890_v49, %v21569_v39  ;;  %v1516_v15 = vrot.slane %v18890_v49, %v20811_v31 }
 0x662   :  { %13604 = vmatpush1.bf16.msra.mxu0 %v16247_v4  ;;  %13768 = vmatpush1.bf16.msra.mxu1 %v16249_v63  ;;  %v1540_v4 = vrot.slane %v23811_v12, %v21443_v23  ;;  %v16296_v63 = vcombine.high %v11101_v41, %v11105_v43  ;;  %v16295_v12 = vcombine.low %v11101_v41, %v11105_v43 }
 0x663   :  { %13605 = vmatprep.subr.bf16.mxu0 %v16256_v2  ;;  %13769 = vmatprep.subr.bf16.mxu1 %v16258_v58  ;;  %v16298_v2 = vcombine.high %v11102_v60, %v11106_v46  ;;  %v11109_v58 = vld [vmem:[%s24993_s3 + $0xa00] sm:$0xff] }
 0x664   :  { %v16304_v7 = vcombine.high %v11109_v58, %v11113_v62 }
 0x666   :  { %13606 = vmatpush1.bf16.msra.mxu0 %v16255_v44  ;;  %13770 = vmatpush1.bf16.msra.mxu1 %v16257_v55  ;;  %v16569_v44 = vadd.f32 %v22850_v38, %v1512_v50  ;;  %v16570_v55 = vadd.f32 %v23371_v34, %v1516_v15  ;;  %v11121_v38 = vld [vmem:[%s24993_s3 + $0xa60] sm:$0xff]  ;;  %v11118_v34 = vld [vmem:[%s24993_s3 + $0xa48] sm:$0xff] }
 0x667   :  { %13607 = vmatprep.subr.bf16.mxu0 %v16264_v18  ;;  %13771 = vmatprep.subr.bf16.mxu1 %v16266_v6  ;;  %v16297_v6 = vcombine.low %v11102_v60, %v11106_v46  ;;  %v11133_v15 = vld [vmem:[%s24993_s3 + $0xac0] sm:$0xff] }
 0x668   :  { %v10752_v9 = vmax.f32 %v16569_v44, 0.0  ;;  %v10753_v29 = vmax.f32 %v16570_v55, 0.0 }
 0x66a   :  { %13608 = vmatpush1.bf16.msra.mxu0 %v16263_v14  ;;  %13772 = vmatpush1.bf16.msra.mxu1 %v16265_v27  ;;  %v11117_v14 = vld [vmem:[%s24993_s3 + $0xa40] sm:$0xff] }
 0x66b   :  { %13609 = vmatprep.subr.bf16.mxu0 %v16272_v16  ;;  %13773 = vmatprep.subr.bf16.mxu1 %v16274_v52  ;;  %v11122_v52 = vld [vmem:[%s24993_s3 + $0xa68] sm:$0xff]  ;;  %v16312_v26 = vcombine.high %v11117_v14, %v11121_v38  ;;  %v16311_v43 = vcombine.low %v11117_v14, %v11121_v38  ;;  %v11161_v38 = vld [vmem:[%s24993_s3 + $0xba0] sm:$0xff] }
 0x66c   :  { %v16314_v28 = vcombine.high %v11118_v34, %v11122_v52  ;;  %v16313_v60 = vcombine.low %v11118_v34, %v11122_v52  ;;  %v11158_v34 = vld [vmem:[%s24993_s3 + $0xb88] sm:$0xff] }
 0x66d   :  { %v11162_v52 = vld [vmem:[%s24993_s3 + $0xba8] sm:$0xff] }
 0x66e   :  { %13610 = vmatpush1.bf16.msra.mxu0 %v16271_v45  ;;  %13774 = vmatpush1.bf16.msra.mxu1 %v16273_v59  ;;  %v16303_v59 = vcombine.low %v11109_v58, %v11113_v62  ;;  %v11141_v58 = vld [vmem:[%s24993_s3 + $0xb00] sm:$0xff]  ;;  %v11142_v62 = vld [vmem:[%s24993_s3 + $0xb08] sm:$0xff] }
 0x66f   :  { %13611 = vmatprep.subr.bf16.mxu0 %v16280_v25  ;;  %13775 = vmatprep.subr.bf16.mxu1 %v16282_v36  ;;  %v16305_v25 = vcombine.low %v11110_v53, %v11114_v10  ;;  %v11146_v53 = vld [vmem:[%s24993_s3 + $0xb28] sm:$0xff] }
 0x672   :  { %13612 = vmatpush1.bf16.msra.mxu0 %v16279_v35  ;;  %13776 = vmatpush1.bf16.msra.mxu1 %v16281_v37  ;;  %v11129_v35 = vld [vmem:[%s24993_s3 + $0xaa0] sm:$0xff]  ;;  %v11126_v37 = vld [vmem:[%s24993_s3 + $0xa88] sm:$0xff] }
 0x673   :  { %13613 = vmatprep.subr.bf16.mxu0 %v16288_v48  ;;  %13777 = vmatprep.subr.bf16.mxu1 %v16290_v54  ;;  %v11130_v48 = vld [vmem:[%s24993_s3 + $0xaa8] sm:$0xff]  ;;  %v16320_v49 = vcombine.high %v11125_v8, %v11129_v35 }
 0x674   :  { %v16322_v50 = vcombine.high %v11126_v37, %v11130_v48 }
 0x676   :  { %v10726_v18 = vpop.f32.mrb[32].mxu1  ;;  %13614 = vmatpush1.bf16.msra.mxu0 %v16287_v56  ;;  %13778 = vmatpush1.bf16.msra.mxu1 %v16289_v40  ;;  %v11138_v56 = vld [vmem:[%s24993_s3 + $0xae8] sm:$0xff]  ;;  %v16319_v40 = vcombine.low %v11125_v8, %v11129_v35  ;;  %v11173_v35 = vld [vmem:[%s24993_s3 + $0xc00] sm:$0xff] }
 0x677   :  { %v16576_v5 = vadd.f32 %v10726_v18, %v1540_v4  ;;  %v10728_v24 = vpop.f32.mrb[33].mxu1  ;;  %13615 = vmatprep.subr.bf16.mxu0 %v16296_v63  ;;  %13779 = vmatprep.subr.bf16.mxu1 %v16298_v2  ;;  %v16321_v4 = vcombine.low %v11126_v37, %v11130_v48  ;;  %v16338_v18 = vcombine.high %v11142_v62, %v11146_v53  ;;  %v11177_v37 = vld [vmem:[%s24993_s3 + $0xc20] sm:$0xff]  ;;  %v11174_v48 = vld [vmem:[%s24993_s3 + $0xc08] sm:$0xff] }
 0x678   :  { %v16577_v27 = vadd.f32 %v10728_v24, %v1544_v0  ;;  %v10730_v16 = vpop.f32.mrb[34].mxu1  ;;  %v11145_v0 = vld [vmem:[%s24993_s3 + $0xb20] sm:$0xff]  ;;  %v11154_v24 = vld [vmem:[%s24993_s3 + $0xb68] sm:$0xff] }
 0x679   :  { %v10759_v20 = vmax.f32 %v16576_v5, 0.0  ;;  %v10731_v22 = vpop.f32.mrb[35].mxu1  ;;  %v16336_v55 = vcombine.high %v11141_v58, %v11145_v0  ;;  %v11150_v5 = vld [vmem:[%s24993_s3 + $0xb48] sm:$0xff]  ;;  %v11157_v16 = vld [vmem:[%s24993_s3 + $0xb80] sm:$0xff] }
 0x67a   :  { %v10760_v45 = vmax.f32 %v16577_v27, 0.0  ;;  %13616 = vmatpush1.bf16.msra.mxu0 %v16295_v12  ;;  %13780 = vmatpush1.bf16.msra.mxu1 %v16297_v6  ;;  %v11149_v12 = vld [vmem:[%s24993_s3 + $0xb40] sm:$0xff]  ;;  %v16346_v27 = vcombine.high %v11150_v5, %v11154_v24  ;;  %v16352_v22 = vcombine.high %v11157_v16, %v11161_v38 }
 0x67b   :  { %v10773_v36 = vmax.f32 %v10752_v9, %v10759_v20  ;;  %13617 = vmatprep.subr.bf16.mxu0 %v16304_v7  ;;  %13781 = vmatprep.subr.bf16.mxu1 %v16306_v11  ;;  %v11153_v6 = vld [vmem:[%s24993_s3 + $0xb60] sm:$0xff]  ;;  %v16335_v7 = vcombine.low %v11141_v58, %v11145_v0  ;;  %v16337_v11 = vcombine.low %v11142_v62, %v11146_v53  ;;  %v11190_v53 = vld [vmem:[%s24993_s3 + $0xc88] sm:$0xff] }
 0x67c   :  { %v10774_v32 = vmax.f32 %v10753_v29, %v10760_v45  ;;  %v16344_v14 = vcombine.high %v11149_v12, %v11153_v6  ;;  %v16343_v9 = vcombine.low %v11149_v12, %v11153_v6  ;;  %v16345_v20 = vcombine.low %v11150_v5, %v11154_v24  ;;  %v11165_v45 = vld [vmem:[%s24993_s3 + $0xbc0] sm:$0xff]  ;;  %v11198_v5 = vld [vmem:[%s24993_s3 + $0xcc8] sm:$0xff] }
 0x67d   :  { %v10780_v54 = vmax.f32 %v22141_v57, %v10773_v36  ;;  %v11137_v57 = vld [vmem:[%s24993_s3 + $0xae0] sm:$0xff]  ;;  %v16354_v29 = vcombine.high %v11158_v34, %v11162_v52  ;;  %v11170_v36 = vld [vmem:[%s24993_s3 + $0xbe8] sm:$0xff] }
 0x67e   :  { %v23973_v41 = vmax.f32 %v22143_v47, %v10774_v32  ;;  %13618 = vmatpush1.bf16.msra.mxu0 %v16303_v59  ;;  %13782 = vmatpush1.bf16.msra.mxu1 %v16305_v25  ;;  %v11134_v47 = vld [vmem:[%s24993_s3 + $0xac8] sm:$0xff]  ;;  %v16328_v63 = vcombine.high %v11133_v15, %v11137_v57  ;;  %v16327_v10 = vcombine.low %v11133_v15, %v11137_v57  ;;  %v11169_v59 = vld [vmem:[%s24993_s3 + $0xbe0] sm:$0xff] }
 0x67f   :  { %v23975_v46 = vpack.c.bf16 %v10780_v54, %v10780_v54  ;;  %13619 = vmatprep.subr.bf16.mxu0 %v16312_v26  ;;  %13783 = vmatprep.subr.bf16.mxu1 %v16314_v28  ;;  %v16330_v2 = vcombine.high %v11134_v47, %v11138_v56  ;;  %v16329_v44 = vcombine.low %v11134_v47, %v11138_v56  ;;  %v11166_v25 = vld [vmem:[%s24993_s3 + $0xbc8] sm:$0xff]  ;;  %v11181_v15 = vld [vmem:[%s24993_s3 + $0xc40] sm:$0xff] }
 0x680   :  { %v16351_v26 = vcombine.low %v11157_v16, %v11161_v38  ;;  %v16353_v28 = vcombine.low %v11158_v34, %v11162_v52  ;;  %v16360_v8 = vcombine.high %v11165_v45, %v11169_v59  ;;  %v16362_v32 = vcombine.high %v11166_v25, %v11170_v36  ;;  %v11178_v54 = vld [vmem:[%s24993_s3 + $0xc28] sm:$0xff]  ;;  %v11185_v57 = vld [vmem:[%s24993_s3 + $0xc60] sm:$0xff] }
 0x681   :  { %13633 = vmatprep.mubr.bf16.mxu0 %v23975_v46  ;;  %13797 = vmatprep.mubr.bf16.mxu1 %v23975_v46  ;;  %v11182_v47 = vld [vmem:[%s24993_s3 + $0xc48] sm:$0xff]  ;;  %v11189_v0 = vld [vmem:[%s24993_s3 + $0xc80] sm:$0xff] }
 0x682   :  { %13620 = vmatpush1.bf16.msra.mxu0 %v16311_v43  ;;  %13784 = vmatpush1.bf16.msra.mxu1 %v16313_v60  ;;  %v16359_v43 = vcombine.low %v11165_v45, %v11169_v59  ;;  %v16361_v60 = vcombine.low %v11166_v25, %v11170_v36  ;;  %v11186_v56 = vld [vmem:[%s24993_s3 + $0xc68] sm:$0xff]  ;;  %v11193_v62 = vld [vmem:[%s24993_s3 + $0xca0] sm:$0xff] }
 0x683   :  { %13621 = vmatprep.subr.bf16.mxu0 %v16320_v49  ;;  %13785 = vmatprep.subr.bf16.mxu1 %v16322_v50  ;;  %v16368_v49 = vcombine.high %v11173_v35, %v11177_v37  ;;  %v16370_v50 = vcombine.high %v11174_v48, %v11178_v54  ;;  %v16378_v58 = vcombine.high %v11182_v47, %v11186_v56  ;;  %v11197_v12 = vld [vmem:[%s24993_s3 + $0xcc0] sm:$0xff]  ;;  %v11202_v24 = vld [vmem:[%s24993_s3 + $0xce8] sm:$0xff] }
 0x684   :  { %v11201_v6 = vld [vmem:[%s24993_s3 + $0xce0] sm:$0xff]  ;;  %v11206_v34 = vld [vmem:[%s24993_s3 + $0xd08] sm:$0xff] }
 0x685   :  { %v11205_v16 = vld [vmem:[%s24993_s3 + $0xd00] sm:$0xff]  ;;  %v11210_v52 = vld [vmem:[%s24993_s3 + $0xd28] sm:$0xff] }
 0x686   :  { %13622 = vmatpush1.bf16.msra.mxu0 %v16319_v40  ;;  %13786 = vmatpush1.bf16.msra.mxu1 %v16321_v4  ;;  %v16367_v40 = vcombine.low %v11173_v35, %v11177_v37  ;;  %v16369_v4 = vcombine.low %v11174_v48, %v11178_v54  ;;  %v11209_v38 = vld [vmem:[%s24993_s3 + $0xd20] sm:$0xff]  ;;  %v11214_v25 = vld [vmem:[%s24993_s3 + $0xd48] sm:$0xff] }
 0x687   :  { %13623 = vmatprep.subr.bf16.mxu0 %v16328_v63  ;;  %13787 = vmatprep.subr.bf16.mxu1 %v16330_v2  ;;  %v24065_v63 = vpack.c.bf16 %v23837_v42, %v23837_v42  ;;  %v16376_v2 = vcombine.high %v11181_v15, %v11185_v57  ;;  %v11194_v42 = vld [vmem:[%s24993_s3 + $0xca8] sm:$0xff]  ;;  %v11213_v45 = vld [vmem:[%s24993_s3 + $0xd40] sm:$0xff] }
 0x688   :  { %v11217_v59 = vld [vmem:[%s24993_s3 + $0xd60] sm:$0xff]  ;;  %v11218_v36 = vld [vmem:[%s24993_s3 + $0xd68] sm:$0xff] }
 0x689   :  { %v11221_v35 = vld [vmem:[%s24993_s3 + $0xd80] sm:$0xff]  ;;  %v11222_v48 = vld [vmem:[%s24993_s3 + $0xd88] sm:$0xff] }
 0x68a   :  { %13624 = vmatpush1.bf16.msra.mxu0 %v16327_v10  ;;  %13788 = vmatpush1.bf16.msra.mxu1 %v16329_v44  ;;  %v16375_v10 = vcombine.low %v11181_v15, %v11185_v57  ;;  %v16377_v44 = vcombine.low %v11182_v47, %v11186_v56  ;;  %v11225_v37 = vld [vmem:[%s24993_s3 + $0xda0] sm:$0xff]  ;;  %v11226_v54 = vld [vmem:[%s24993_s3 + $0xda8] sm:$0xff] }
 0x68b   :  { %13625 = vmatprep.subr.bf16.mxu0 %v16336_v55  ;;  %13789 = vmatprep.subr.bf16.mxu1 %v16338_v18  ;;  %v16384_v55 = vcombine.high %v11189_v0, %v11193_v62  ;;  %v16386_v18 = vcombine.high %v11190_v53, %v11194_v42  ;;  %v11229_v15 = vld [vmem:[%s24993_s3 + $0xdc0] sm:$0xff]  ;;  %v11230_v47 = vld [vmem:[%s24993_s3 + $0xdc8] sm:$0xff] }
 0x68c   :  { %v11233_v57 = vld [vmem:[%s24993_s3 + $0xde0] sm:$0xff]  ;;  %v11234_v56 = vld [vmem:[%s24993_s3 + $0xde8] sm:$0xff] }
 0x68e   :  { %13626 = vmatpush1.bf16.msra.mxu0 %v16335_v7  ;;  %13790 = vmatpush1.bf16.msra.mxu1 %v16337_v11  ;;  %v16383_v7 = vcombine.low %v11189_v0, %v11193_v62  ;;  %v16385_v11 = vcombine.low %v11190_v53, %v11194_v42  ;;  %v10791_v0 = vld [vmem:[%s24993_s3 + $0x10] sm:$0xff]  ;;  %v10792_v53 = vld [vmem:[%s24993_s3 + $0x18] sm:$0xff] }
 0x68f   :  { %13627 = vmatprep.subr.bf16.mxu0 %v16344_v14  ;;  %13791 = vmatprep.subr.bf16.mxu1 %v16346_v27  ;;  %v16392_v14 = vcombine.high %v11197_v12, %v11201_v6  ;;  %v16394_v27 = vcombine.high %v11198_v5, %v11202_v24  ;;  %v10795_v62 = vld [vmem:[%s24993_s3 + $0x30] sm:$0xff]  ;;  %v10796_v42 = vld [vmem:[%s24993_s3 + $0x38] sm:$0xff] }
 0x692   :  { %13628 = vmatpush1.bf16.msra.mxu0 %v16343_v9  ;;  %13792 = vmatpush1.bf16.msra.mxu1 %v16345_v20  ;;  %v16391_v9 = vcombine.low %v11197_v12, %v11201_v6  ;;  %v16393_v20 = vcombine.low %v11198_v5, %v11202_v24  ;;  %v10799_v12 = vld [vmem:[%s24993_s3 + $0x50] sm:$0xff]  ;;  %v10800_v5 = vld [vmem:[%s24993_s3 + $0x58] sm:$0xff] }
 0x693   :  { %13629 = vmatprep.subr.bf16.mxu0 %v16352_v22  ;;  %13793 = vmatprep.subr.bf16.mxu1 %v16354_v29  ;;  %v16400_v22 = vcombine.high %v11205_v16, %v11209_v38  ;;  %v16402_v29 = vcombine.high %v11206_v34, %v11210_v52  ;;  %v10803_v6 = vld [vmem:[%s24993_s3 + $0x70] sm:$0xff]  ;;  %v10804_v24 = vld [vmem:[%s24993_s3 + $0x78] sm:$0xff] }
 0x696   :  { %13630 = vmatpush1.bf16.msra.mxu0 %v16351_v26  ;;  %13794 = vmatpush1.bf16.msra.mxu1 %v16353_v28  ;;  %v16399_v26 = vcombine.low %v11205_v16, %v11209_v38  ;;  %v16401_v28 = vcombine.low %v11206_v34, %v11210_v52  ;;  %v15998_v16 = vcombine.high %v10800_v5, %v10804_v24  ;;  %v10807_v38 = vld [vmem:[%s24993_s3 + $0x90] sm:$0xff]  ;;  %v10812_v52 = vld [vmem:[%s24993_s3 + $0xb8] sm:$0xff] }
 0x697   :  { %13631 = vmatprep.subr.bf16.mxu0 %v16360_v8  ;;  %13795 = vmatprep.subr.bf16.mxu1 %v16362_v32  ;;  %v16408_v8 = vcombine.high %v11213_v45, %v11217_v59  ;;  %v16410_v32 = vcombine.high %v11214_v25, %v11218_v36  ;;  %v10811_v34 = vld [vmem:[%s24993_s3 + $0xb0] sm:$0xff] }
 0x69a   :  { %13632 = vmatpush1.bf16.msra.mxu0 %v16359_v43  ;;  %13796 = vmatpush1.bf16.msra.mxu1 %v16361_v60  ;;  %v16407_v43 = vcombine.low %v11213_v45, %v11217_v59  ;;  %v16409_v60 = vcombine.low %v11214_v25, %v11218_v36  ;;  %v10815_v45 = vld [vmem:[%s24993_s3 + $0xd0] sm:$0xff]  ;;  %v10816_v25 = vld [vmem:[%s24993_s3 + $0xd8] sm:$0xff]  ;;  %v16003_v36 = vcombine.low %v10807_v38, %v10811_v34 }
 0x69b   :  { %13642 = vmatprep.subr.bf16.mxu0 %v16368_v49  ;;  %13806 = vmatprep.subr.bf16.mxu1 %v16370_v50  ;;  %v16416_v49 = vcombine.high %v11221_v35, %v11225_v37  ;;  %v16418_v50 = vcombine.high %v11222_v48, %v11226_v54  ;;  %v10819_v59 = vld [vmem:[%s24993_s3 + $0xf0] sm:$0xff] }
 0x69d   :  { %13634 = vmatmul.mubr.bf16.vlgmr.msra.gmra.mrb[28].mxu0 %v24065_v63  ;;  %13798 = vmatmul.mubr.bf16.vlgmr.msra.gmra.mrb[36].mxu1 %v24065_v63 }
 0x69e   :  { %13643 = vmatpush1.bf16.msra.mxu0 %v16367_v40  ;;  %13807 = vmatpush1.bf16.msra.mxu1 %v16369_v4  ;;  %v16415_v40 = vcombine.low %v11221_v35, %v11225_v37  ;;  %v16417_v4 = vcombine.low %v11222_v48, %v11226_v54  ;;  %v10827_v35 = vld [vmem:[%s24993_s3 + $0x130] sm:$0xff]  ;;  %v10824_v37 = vld [vmem:[%s24993_s3 + $0x118] sm:$0xff]  ;;  %v16011_v54 = vcombine.low %v10815_v45, %v10819_v59 }
 0x69f   :  { %13644 = vmatprep.subr.bf16.mxu0 %v16376_v2  ;;  %13808 = vmatprep.subr.bf16.mxu1 %v16378_v58  ;;  %v16424_v2 = vcombine.high %v11229_v15, %v11233_v57  ;;  %v16426_v58 = vcombine.high %v11230_v47, %v11234_v56  ;;  %v10828_v48 = vld [vmem:[%s24993_s3 + $0x138] sm:$0xff] }
 0x6a0   :  { %13674 = vmatprep.mubr.bf16.mxu0 %v18891_v1  ;;  %13838 = vmatprep.mubr.bf16.mxu1 %v18891_v1 }
 0x6a2   :  { %13645 = vmatpush1.bf16.msra.mxu0 %v16375_v10  ;;  %13809 = vmatpush1.bf16.msra.mxu1 %v16377_v44  ;;  %v16423_v10 = vcombine.low %v11229_v15, %v11233_v57  ;;  %v16425_v44 = vcombine.low %v11230_v47, %v11234_v56  ;;  %v10835_v15 = vld [vmem:[%s24993_s3 + $0x170] sm:$0xff]  ;;  %v10832_v57 = vld [vmem:[%s24993_s3 + $0x158] sm:$0xff] }
 0x6a3   :  { %13646 = vmatprep.subr.bf16.mxu0 %v16384_v55  ;;  %13810 = vmatprep.subr.bf16.mxu1 %v16386_v18  ;;  %v15988_v55 = vcombine.high %v10791_v0, %v10795_v62  ;;  %v15990_v18 = vcombine.high %v10792_v53, %v10796_v42  ;;  %v10836_v47 = vld [vmem:[%s24993_s3 + $0x178] sm:$0xff] }
 0x6a6   :  { %13647 = vmatpush1.bf16.msra.mxu0 %v16383_v7  ;;  %13811 = vmatpush1.bf16.msra.mxu1 %v16385_v11  ;;  %v15987_v7 = vcombine.low %v10791_v0, %v10795_v62  ;;  %v24169_v11 = vpack.c.bf16 %v23973_v41, %v23973_v41  ;;  %v10808_v41 = vld [vmem:[%s24993_s3 + $0x98] sm:$0xff]  ;;  %v10843_v0 = vld [vmem:[%s24993_s3 + $0x1b0] sm:$0xff] }
 0x6a7   :  { %13648 = vmatprep.subr.bf16.mxu0 %v16392_v14  ;;  %13812 = vmatprep.subr.bf16.mxu1 %v16394_v27  ;;  %v15989_v14 = vcombine.low %v10792_v53, %v10796_v42  ;;  %v15996_v27 = vcombine.high %v10799_v12, %v10803_v6  ;;  %v10840_v62 = vld [vmem:[%s24993_s3 + $0x198] sm:$0xff] }
 0x6a8   :  { %v10844_v53 = vld [vmem:[%s24993_s3 + $0x1b8] sm:$0xff] }
 0x6aa   :  { %13649 = vmatpush1.bf16.msra.mxu0 %v16391_v9  ;;  %13813 = vmatpush1.bf16.msra.mxu1 %v16393_v20  ;;  %v15995_v9 = vcombine.low %v10799_v12, %v10803_v6  ;;  %v15997_v20 = vcombine.low %v10800_v5, %v10804_v24  ;;  %v10851_v12 = vld [vmem:[%s24993_s3 + $0x1f0] sm:$0xff]  ;;  %v10848_v6 = vld [vmem:[%s24993_s3 + $0x1d8] sm:$0xff] }
 0x6ab   :  { %13650 = vmatprep.subr.bf16.mxu0 %v16400_v22  ;;  %13814 = vmatprep.subr.bf16.mxu1 %v16402_v29  ;;  %v16004_v22 = vcombine.high %v10807_v38, %v10811_v34  ;;  %v16006_v29 = vcombine.high %v10808_v41, %v10812_v52  ;;  %v10852_v5 = vld [vmem:[%s24993_s3 + $0x1f8] sm:$0xff]  ;;  %v10859_v38 = vld [vmem:[%s24993_s3 + $0x230] sm:$0xff] }
 0x6ac   :  { %v10856_v34 = vld [vmem:[%s24993_s3 + $0x218] sm:$0xff] }
 0x6ae   :  { %13651 = vmatpush1.bf16.msra.mxu0 %v16399_v26  ;;  %13815 = vmatpush1.bf16.msra.mxu1 %v16401_v28  ;;  %v16005_v26 = vcombine.low %v10808_v41, %v10812_v52  ;;  %v16012_v28 = vcombine.high %v10815_v45, %v10819_v59  ;;  %v10860_v41 = vld [vmem:[%s24993_s3 + $0x238] sm:$0xff]  ;;  %v10867_v45 = vld [vmem:[%s24993_s3 + $0x270] sm:$0xff] }
 0x6af   :  { %13652 = vmatprep.subr.bf16.mxu0 %v16408_v8  ;;  %13816 = vmatprep.subr.bf16.mxu1 %v16410_v32  ;;  %v10823_v32 = vld [vmem:[%s24993_s3 + $0x110] sm:$0xff]  ;;  %v10864_v59 = vld [vmem:[%s24993_s3 + $0x258] sm:$0xff] }
 0x6b0   :  { %v16019_v56 = vcombine.low %v10823_v32, %v10827_v35 }
 0x6b2   :  { %13653 = vmatpush1.bf16.msra.mxu0 %v16407_v43  ;;  %13817 = vmatpush1.bf16.msra.mxu1 %v16409_v60  ;;  %v16020_v60 = vcombine.high %v10823_v32, %v10827_v35  ;;  %v10875_v32 = vld [vmem:[%s24993_s3 + $0x2b0] sm:$0xff]  ;;  %v10872_v35 = vld [vmem:[%s24993_s3 + $0x298] sm:$0xff] }
 0x6b3   :  { %13654 = vmatprep.subr.bf16.mxu0 %v16416_v49  ;;  %13818 = vmatprep.subr.bf16.mxu1 %v16418_v50  ;;  %v16022_v49 = vcombine.high %v10824_v37, %v10828_v48  ;;  %v10831_v50 = vld [vmem:[%s24993_s3 + $0x150] sm:$0xff] }
 0x6b4   :  { %v16027_v42 = vcombine.low %v10831_v50, %v10835_v15 }
 0x6b6   :  { %13655 = vmatpush1.bf16.msra.mxu0 %v16415_v40  ;;  %13819 = vmatpush1.bf16.msra.mxu1 %v16417_v4  ;;  %v16021_v40 = vcombine.low %v10824_v37, %v10828_v48  ;;  %v16028_v4 = vcombine.high %v10831_v50, %v10835_v15  ;;  %v10876_v37 = vld [vmem:[%s24993_s3 + $0x2b8] sm:$0xff]  ;;  %v10883_v50 = vld [vmem:[%s24993_s3 + $0x2f0] sm:$0xff] }
 0x6b7   :  { %13656 = vmatprep.subr.bf16.mxu0 %v16424_v2  ;;  %13820 = vmatprep.subr.bf16.mxu1 %v16426_v58  ;;  %v16030_v2 = vcombine.high %v10832_v57, %v10836_v47  ;;  %v10839_v58 = vld [vmem:[%s24993_s3 + $0x190] sm:$0xff]  ;;  %v10880_v15 = vld [vmem:[%s24993_s3 + $0x2d8] sm:$0xff] }
 0x6b8   :  { %v16035_v24 = vcombine.low %v10839_v58, %v10843_v0 }
 0x6ba   :  { %13657 = vmatpush1.bf16.msra.mxu0 %v16423_v10  ;;  %13821 = vmatpush1.bf16.msra.mxu1 %v16425_v44  ;;  %v16029_v10 = vcombine.low %v10832_v57, %v10836_v47  ;;  %v16036_v44 = vcombine.high %v10839_v58, %v10843_v0  ;;  %v10884_v57 = vld [vmem:[%s24993_s3 + $0x2f8] sm:$0xff]  ;;  %v10891_v58 = vld [vmem:[%s24993_s3 + $0x330] sm:$0xff] }
 0x6bb   :  { %13847 = vmatprep.subr.bf16.mxu0 %v15988_v55  ;;  %14011 = vmatprep.subr.bf16.mxu1 %v15990_v18  ;;  %v16038_v55 = vcombine.high %v10840_v62, %v10844_v53  ;;  %v10847_v18 = vld [vmem:[%s24993_s3 + $0x1d0] sm:$0xff]  ;;  %v10888_v0 = vld [vmem:[%s24993_s3 + $0x318] sm:$0xff] }
 0x6bc   :  { %v16043_v52 = vcombine.low %v10847_v18, %v10851_v12 }
 0x6bd   :  { %13675 = vmatmul.mubr.bf16.vlgmr.msra.gmra.mrb[28].mxu0 %v24169_v11  ;;  %13839 = vmatmul.mubr.bf16.vlgmr.msra.gmra.mrb[36].mxu1 %v24169_v11 }
 0x6be   :  { %13848 = vmatpush1.bf16.msra.mxu0 %v15987_v7  ;;  %13879 = vmatprep.mubr.bf16.mxu0 %v23532_v61  ;;  %v16037_v7 = vcombine.low %v10840_v62, %v10844_v53  ;;  %v10892_v62 = vld [vmem:[%s24993_s3 + $0x338] sm:$0xff] }
 0x6bf   :  { %14012 = vmatpush1.bf16.msra.mxu1 %v15989_v14  ;;  %14043 = vmatprep.mubr.bf16.mxu1 %v23532_v61  ;;  %v10820_v61 = vld [vmem:[%s24993_s3 + $0xf8] sm:$0xff]  ;;  %v16044_v14 = vcombine.high %v10847_v18, %v10851_v12  ;;  %v10899_v18 = vld [vmem:[%s24993_s3 + $0x370] sm:$0xff] }
 0x6c0   :  { %13849 = vmatprep.subr.bf16.mxu0 %v15996_v27  ;;  %14013 = vmatprep.subr.bf16.mxu1 %v15998_v16  ;;  %v16014_v8 = vcombine.high %v10816_v25, %v10820_v61  ;;  %v16013_v43 = vcombine.low %v10816_v25, %v10820_v61  ;;  %v16046_v27 = vcombine.high %v10848_v6, %v10852_v5  ;;  %v10855_v16 = vld [vmem:[%s24993_s3 + $0x210] sm:$0xff]  ;;  %v10868_v25 = vld [vmem:[%s24993_s3 + $0x278] sm:$0xff] }
 0x6c1   :  { %v16051_v61 = vcombine.low %v10855_v16, %v10859_v38  ;;  %v10896_v12 = vld [vmem:[%s24993_s3 + $0x358] sm:$0xff] }
 0x6c2   :  { %13850 = vmatpush1.bf16.msra.mxu0 %v15995_v9  ;;  %v16045_v9 = vcombine.low %v10848_v6, %v10852_v5  ;;  %v10900_v6 = vld [vmem:[%s24993_s3 + $0x378] sm:$0xff] }
 0x6c3   :  { %14014 = vmatpush1.bf16.msra.mxu1 %v15997_v20  ;;  %13851 = vmatprep.subr.bf16.mxu0 %v16004_v22  ;;  %v16052_v20 = vcombine.high %v10855_v16, %v10859_v38  ;;  %v16054_v22 = vcombine.high %v10856_v34, %v10860_v41  ;;  %v10907_v16 = vld [vmem:[%s24993_s3 + $0x3b0] sm:$0xff]  ;;  %v10904_v38 = vld [vmem:[%s24993_s3 + $0x398] sm:$0xff] }
 0x6c4   :  { %14015 = vmatprep.subr.bf16.mxu1 %v16006_v29  ;;  %v10863_v29 = vld [vmem:[%s24993_s3 + $0x250] sm:$0xff] }
 0x6c5   :  { %v16059_v48 = vcombine.low %v10863_v29, %v10867_v45 }
 0x6c6   :  { %13852 = vmatpush1.bf16.msra.mxu0 %v16003_v36  ;;  %v16053_v36 = vcombine.low %v10856_v34, %v10860_v41  ;;  %v10908_v34 = vld [vmem:[%s24993_s3 + $0x3b8] sm:$0xff] }
 0x6c7   :  { %14016 = vmatpush1.bf16.msra.mxu1 %v16005_v26  ;;  %13853 = vmatprep.subr.bf16.mxu0 %v16012_v28  ;;  %v16060_v26 = vcombine.high %v10863_v29, %v10867_v45  ;;  %v16062_v28 = vcombine.high %v10864_v59, %v10868_v25  ;;  %v10915_v29 = vld [vmem:[%s24993_s3 + $0x3f0] sm:$0xff]  ;;  %v10912_v45 = vld [vmem:[%s24993_s3 + $0x3d8] sm:$0xff] }
 0x6c8   :  { %14017 = vmatprep.subr.bf16.mxu1 %v16014_v8  ;;  %v10871_v8 = vld [vmem:[%s24993_s3 + $0x290] sm:$0xff] }
 0x6c9   :  { %v16067_v47 = vcombine.low %v10871_v8, %v10875_v32 }
 0x6ca   :  { %13854 = vmatpush1.bf16.msra.mxu0 %v16011_v54  ;;  %v16061_v54 = vcombine.low %v10864_v59, %v10868_v25  ;;  %v10916_v59 = vld [vmem:[%s24993_s3 + $0x3f8] sm:$0xff] }
 0x6cb   :  { %14018 = vmatpush1.bf16.msra.mxu1 %v16013_v43  ;;  %13855 = vmatprep.subr.bf16.mxu0 %v16020_v60  ;;  %v16068_v43 = vcombine.high %v10871_v8, %v10875_v32  ;;  %v16070_v60 = vcombine.high %v10872_v35, %v10876_v37  ;;  %v10923_v8 = vld [vmem:[%s24993_s3 + $0x430] sm:$0xff]  ;;  %v10920_v32 = vld [vmem:[%s24993_s3 + $0x418] sm:$0xff] }
 0x6cc   :  { %14019 = vmatprep.subr.bf16.mxu1 %v16022_v49  ;;  %v10879_v49 = vld [vmem:[%s24993_s3 + $0x2d0] sm:$0xff] }
 0x6cd   :  { %v16075_v53 = vcombine.low %v10879_v49, %v10883_v50 }
 0x6ce   :  { %13856 = vmatpush1.bf16.msra.mxu0 %v16019_v56  ;;  %v16069_v56 = vcombine.low %v10872_v35, %v10876_v37  ;;  %v10924_v35 = vld [vmem:[%s24993_s3 + $0x438] sm:$0xff] }
 0x6cf   :  { %14020 = vmatpush1.bf16.msra.mxu1 %v16021_v40  ;;  %13857 = vmatprep.subr.bf16.mxu0 %v16028_v4  ;;  %v16076_v40 = vcombine.high %v10879_v49, %v10883_v50  ;;  %v16078_v4 = vcombine.high %v10880_v15, %v10884_v57  ;;  %v10931_v49 = vld [vmem:[%s24993_s3 + $0x470] sm:$0xff] }
 0x6d0   :  { %14021 = vmatprep.subr.bf16.mxu1 %v16030_v2  ;;  %v10887_v2 = vld [vmem:[%s24993_s3 + $0x310] sm:$0xff] }
 0x6d1   :  { %v16083_v5 = vcombine.low %v10887_v2, %v10891_v58 }
 0x6d2   :  { %13858 = vmatpush1.bf16.msra.mxu0 %v16027_v42  ;;  %v16077_v42 = vcombine.low %v10880_v15, %v10884_v57  ;;  %v10928_v15 = vld [vmem:[%s24993_s3 + $0x458] sm:$0xff] }
 0x6d3   :  { %14022 = vmatpush1.bf16.msra.mxu1 %v16029_v10  ;;  %13859 = vmatprep.subr.bf16.mxu0 %v16036_v44  ;;  %v16084_v10 = vcombine.high %v10887_v2, %v10891_v58  ;;  %v16086_v44 = vcombine.high %v10888_v0, %v10892_v62  ;;  %v10932_v57 = vld [vmem:[%s24993_s3 + $0x478] sm:$0xff] }
 0x6d4   :  { %14023 = vmatprep.subr.bf16.mxu1 %v16038_v55  ;;  %v10895_v55 = vld [vmem:[%s24993_s3 + $0x350] sm:$0xff]  ;;  %v16126_v2 = vcombine.high %v10928_v15, %v10932_v57  ;;  %v10936_v58 = vld [vmem:[%s24993_s3 + $0x498] sm:$0xff] }
 0x6d5   :  { %v16091_v41 = vcombine.low %v10895_v55, %v10899_v18 }
 0x6d6   :  { %13860 = vmatpush1.bf16.msra.mxu0 %v16035_v24  ;;  %v16085_v24 = vcombine.low %v10888_v0, %v10892_v62  ;;  %v10940_v0 = vld [vmem:[%s24993_s3 + $0x4b8] sm:$0xff] }
 0x6d7   :  { %14024 = vmatpush1.bf16.msra.mxu1 %v16037_v7  ;;  %13861 = vmatprep.subr.bf16.mxu0 %v16044_v14  ;;  %v16092_v7 = vcombine.high %v10895_v55, %v10899_v18  ;;  %v16094_v14 = vcombine.high %v10896_v12, %v10900_v6  ;;  %v10947_v55 = vld [vmem:[%s24993_s3 + $0x4f0] sm:$0xff]  ;;  %v10948_v18 = vld [vmem:[%s24993_s3 + $0x4f8] sm:$0xff] }
 0x6d8   :  { %14025 = vmatprep.subr.bf16.mxu1 %v16046_v27  ;;  %v10903_v27 = vld [vmem:[%s24993_s3 + $0x390] sm:$0xff] }
 0x6d9   :  { %v16099_v25 = vcombine.low %v10903_v27, %v10907_v16 }
 0x6da   :  { %13862 = vmatpush1.bf16.msra.mxu0 %v16043_v52  ;;  %v16093_v52 = vcombine.low %v10896_v12, %v10900_v6  ;;  %v16133_v12 = vcombine.low %v10936_v58, %v10940_v0 }
 0x6db   :  { %14026 = vmatpush1.bf16.msra.mxu1 %v16045_v9  ;;  %13863 = vmatprep.subr.bf16.mxu0 %v16052_v20  ;;  %v16100_v9 = vcombine.high %v10903_v27, %v10907_v16  ;;  %v16102_v20 = vcombine.high %v10904_v38, %v10908_v34  ;;  %v10956_v27 = vld [vmem:[%s24993_s3 + $0x538] sm:$0xff] }
 0x6dc   :  { %14027 = vmatprep.subr.bf16.mxu1 %v16054_v22  ;;  %v10911_v22 = vld [vmem:[%s24993_s3 + $0x3d0] sm:$0xff] }
 0x6dd   :  { %v16107_v37 = vcombine.low %v10911_v22, %v10915_v29 }
 0x6de   :  { %13864 = vmatpush1.bf16.msra.mxu0 %v16051_v61  ;;  %v16101_v61 = vcombine.low %v10904_v38, %v10908_v34 }
 0x6df   :  { %14028 = vmatpush1.bf16.msra.mxu1 %v16053_v36  ;;  %13865 = vmatprep.subr.bf16.mxu0 %v16060_v26  ;;  %v16108_v36 = vcombine.high %v10911_v22, %v10915_v29  ;;  %v16110_v26 = vcombine.high %v10912_v45, %v10916_v59  ;;  %v10964_v22 = vld [vmem:[%s24993_s3 + $0x578] sm:$0xff] }
 0x6e0   :  { %14029 = vmatprep.subr.bf16.mxu1 %v16062_v28  ;;  %v10919_v28 = vld [vmem:[%s24993_s3 + $0x410] sm:$0xff] }
 0x6e1   :  { %v16115_v50 = vcombine.low %v10919_v28, %v10923_v8 }
 0x6e2   :  { %13866 = vmatpush1.bf16.msra.mxu0 %v16059_v48  ;;  %v16109_v48 = vcombine.low %v10912_v45, %v10916_v59 }
 0x6e3   :  { %14030 = vmatpush1.bf16.msra.mxu1 %v16061_v54  ;;  %13867 = vmatprep.subr.bf16.mxu0 %v16068_v43  ;;  %v16116_v54 = vcombine.high %v10919_v28, %v10923_v8  ;;  %v16118_v43 = vcombine.high %v10920_v32, %v10924_v35  ;;  %v10972_v28 = vld [vmem:[%s24993_s3 + $0x5b8] sm:$0xff] }
 0x6e4   :  { %14031 = vmatprep.subr.bf16.mxu1 %v16070_v60  ;;  %v10927_v60 = vld [vmem:[%s24993_s3 + $0x450] sm:$0xff] }
 0x6e5   :  { %v16123_v62 = vcombine.low %v10927_v60, %v10931_v49 }
 0x6e6   :  { %13868 = vmatpush1.bf16.msra.mxu0 %v16067_v47  ;;  %v16117_v47 = vcombine.low %v10920_v32, %v10924_v35 }
 0x6e7   :  { %14032 = vmatpush1.bf16.msra.mxu1 %v16069_v56  ;;  %13869 = vmatprep.subr.bf16.mxu0 %v16076_v40  ;;  %v16124_v56 = vcombine.high %v10927_v60, %v10931_v49  ;;  %v10935_v40 = vld [vmem:[%s24993_s3 + $0x490] sm:$0xff]  ;;  %v10980_v60 = vld [vmem:[%s24993_s3 + $0x5f8] sm:$0xff] }
 0x6e8   :  { %14033 = vmatprep.subr.bf16.mxu1 %v16078_v4  ;;  %v10939_v4 = vld [vmem:[%s24993_s3 + $0x4b0] sm:$0xff] }
 0x6ea   :  { %13870 = vmatpush1.bf16.msra.mxu0 %v16075_v53  ;;  %v16125_v53 = vcombine.low %v10928_v15, %v10932_v57 }
 0x6eb   :  { %14034 = vmatpush1.bf16.msra.mxu1 %v16077_v42  ;;  %13871 = vmatprep.subr.bf16.mxu0 %v16084_v10  ;;  %v16132_v42 = vcombine.high %v10935_v40, %v10939_v4  ;;  %v16134_v10 = vcombine.high %v10936_v58, %v10940_v0 }
 0x6ec   :  { %14035 = vmatprep.subr.bf16.mxu1 %v16086_v44  ;;  %v10943_v44 = vld [vmem:[%s24993_s3 + $0x4d0] sm:$0xff] }
 0x6ed   :  { %v16140_v6 = vcombine.high %v10943_v44, %v10947_v55  ;;  %v16139_v16 = vcombine.low %v10943_v44, %v10947_v55  ;;  %v10996_v44 = vld [vmem:[%s24993_s3 + $0x678] sm:$0xff] }
 0x6ee   :  { %13872 = vmatpush1.bf16.msra.mxu0 %v16083_v5 }
 0x6ef   :  { %14036 = vmatpush1.bf16.msra.mxu1 %v16085_v24  ;;  %13873 = vmatprep.subr.bf16.mxu0 %v16092_v7  ;;  %v10951_v24 = vld [vmem:[%s24993_s3 + $0x510] sm:$0xff] }
 0x6f0   :  { %14037 = vmatprep.subr.bf16.mxu1 %v16094_v14  ;;  %v10955_v7 = vld [vmem:[%s24993_s3 + $0x530] sm:$0xff]  ;;  %v10952_v14 = vld [vmem:[%s24993_s3 + $0x518] sm:$0xff] }
 0x6f1   :  { %v16148_v34 = vcombine.high %v10951_v24, %v10955_v7  ;;  %v16147_v29 = vcombine.low %v10951_v24, %v10955_v7  ;;  %v16149_v45 = vcombine.low %v10952_v14, %v10956_v27  ;;  %v11004_v24 = vld [vmem:[%s24993_s3 + $0x6b8] sm:$0xff] }
 0x6f2   :  { %13874 = vmatpush1.bf16.msra.mxu0 %v16091_v41  ;;  %v16150_v41 = vcombine.high %v10952_v14, %v10956_v27  ;;  %v11007_v14 = vld [vmem:[%s24993_s3 + $0x6d0] sm:$0xff] }
 0x6f3   :  { %14038 = vmatpush1.bf16.msra.mxu1 %v16093_v52  ;;  %13875 = vmatprep.subr.bf16.mxu0 %v16100_v9  ;;  %v10959_v52 = vld [vmem:[%s24993_s3 + $0x550] sm:$0xff] }
 0x6f4   :  { %14039 = vmatprep.subr.bf16.mxu1 %v16102_v20  ;;  %v10963_v9 = vld [vmem:[%s24993_s3 + $0x570] sm:$0xff]  ;;  %v10960_v20 = vld [vmem:[%s24993_s3 + $0x558] sm:$0xff] }
 0x6f5   :  { %v16156_v59 = vcombine.high %v10959_v52, %v10963_v9  ;;  %v16155_v8 = vcombine.low %v10959_v52, %v10963_v9  ;;  %v16157_v32 = vcombine.low %v10960_v20, %v10964_v22  ;;  %v11012_v52 = vld [vmem:[%s24993_s3 + $0x6f8] sm:$0xff] }
 0x6f6   :  { %13876 = vmatpush1.bf16.msra.mxu0 %v16099_v25  ;;  %v16158_v25 = vcombine.high %v10960_v20, %v10964_v22  ;;  %v11015_v20 = vld [vmem:[%s24993_s3 + $0x710] sm:$0xff] }
 0x6f7   :  { %14040 = vmatpush1.bf16.msra.mxu1 %v16101_v61  ;;  %13877 = vmatprep.subr.bf16.mxu0 %v16108_v36  ;;  %v10967_v61 = vld [vmem:[%s24993_s3 + $0x590] sm:$0xff] }
 0x6f8   :  { %14041 = vmatprep.subr.bf16.mxu1 %v16110_v26  ;;  %v10971_v36 = vld [vmem:[%s24993_s3 + $0x5b0] sm:$0xff]  ;;  %v10968_v26 = vld [vmem:[%s24993_s3 + $0x598] sm:$0xff] }
 0x6f9   :  { %v16164_v35 = vcombine.high %v10967_v61, %v10971_v36  ;;  %v16163_v49 = vcombine.low %v10967_v61, %v10971_v36  ;;  %v11019_v22 = vld [vmem:[%s24993_s3 + $0x730] sm:$0xff]  ;;  %v11020_v61 = vld [vmem:[%s24993_s3 + $0x738] sm:$0xff] }
 0x6fa   :  { %13878 = vmatpush1.bf16.msra.mxu0 %v16107_v37  ;;  %v16166_v37 = vcombine.high %v10968_v26, %v10972_v28 }
 0x6fb   :  { %14042 = vmatpush1.bf16.msra.mxu1 %v16109_v48  ;;  %13888 = vmatprep.subr.bf16.mxu0 %v16116_v54  ;;  %v10975_v48 = vld [vmem:[%s24993_s3 + $0x5d0] sm:$0xff] }
 0x6fc   :  { %14052 = vmatprep.subr.bf16.mxu1 %v16118_v43  ;;  %v10979_v54 = vld [vmem:[%s24993_s3 + $0x5f0] sm:$0xff]  ;;  %v10976_v43 = vld [vmem:[%s24993_s3 + $0x5d8] sm:$0xff] }
 0x6fd   :  { %13880 = vmatmul.mubr.bf16.vlgmr.msra.gmra.mrb[32].mxu0 %v23562_v17  ;;  %v16172_v15 = vcombine.high %v10975_v48, %v10979_v54  ;;  %v16174_v57 = vcombine.high %v10976_v43, %v10980_v60  ;;  %v16173_v58 = vcombine.low %v10976_v43, %v10980_v60  ;;  %v11031_v43 = vld [vmem:[%s24993_s3 + $0x790] sm:$0xff] }
 0x6fe   :  { %14044 = vmatmul.mubr.bf16.vlgmr.msra.gmra.mrb[40].mxu1 %v23562_v17  ;;  %13889 = vmatpush1.bf16.msra.mxu0 %v16115_v50  ;;  %v10944_v17 = vld [vmem:[%s24993_s3 + $0x4d8] sm:$0xff]  ;;  %v16165_v50 = vcombine.low %v10968_v26, %v10972_v28  ;;  %v11023_v26 = vld [vmem:[%s24993_s3 + $0x750] sm:$0xff] }
 0x6ff   :  { %13920 = vmatprep.mubr.bf16.mxu0 %v23839_v51  ;;  %14053 = vmatpush1.bf16.msra.mxu1 %v16117_v47  ;;  %v16142_v5 = vcombine.high %v10944_v17, %v10948_v18  ;;  %v16141_v38 = vcombine.low %v10944_v17, %v10948_v18  ;;  %v10983_v47 = vld [vmem:[%s24993_s3 + $0x610] sm:$0xff] }
 0x700   :  { %14084 = vmatprep.mubr.bf16.mxu1 %v23839_v51  ;;  %13890 = vmatprep.subr.bf16.mxu0 %v16124_v56  ;;  %v16131_v51 = vcombine.low %v10935_v40, %v10939_v4  ;;  %v10987_v56 = vld [vmem:[%s24993_s3 + $0x630] sm:$0xff]  ;;  %v10984_v40 = vld [vmem:[%s24993_s3 + $0x618] sm:$0xff] }
 0x701   :  { %14054 = vmatprep.subr.bf16.mxu1 %v16126_v2  ;;  %v10988_v4 = vld [vmem:[%s24993_s3 + $0x638] sm:$0xff]  ;;  %v16171_v2 = vcombine.low %v10975_v48, %v10979_v54  ;;  %v16180_v0 = vcombine.high %v10983_v47, %v10987_v56  ;;  %v16179_v55 = vcombine.low %v10983_v47, %v10987_v56  ;;  %v11027_v28 = vld [vmem:[%s24993_s3 + $0x770] sm:$0xff]  ;;  %v16211_v54 = vcombine.low %v11015_v20, %v11019_v22 }
 0x702   :  { %13891 = vmatpush1.bf16.msra.mxu0 %v16123_v62  ;;  %v16182_v62 = vcombine.high %v10984_v40, %v10988_v4  ;;  %v16181_v17 = vcombine.low %v10984_v40, %v10988_v4  ;;  %v11036_v47 = vld [vmem:[%s24993_s3 + $0x7b8] sm:$0xff]  ;;  %v16219_v56 = vcombine.low %v11023_v26, %v11027_v28 }
 0x703   :  { %14055 = vmatpush1.bf16.msra.mxu1 %v16125_v53  ;;  %13892 = vmatprep.subr.bf16.mxu0 %v16132_v42  ;;  %v10991_v53 = vld [vmem:[%s24993_s3 + $0x650] sm:$0xff] }
 0x704   :  { %14056 = vmatprep.subr.bf16.mxu1 %v16134_v10  ;;  %v10995_v42 = vld [vmem:[%s24993_s3 + $0x670] sm:$0xff]  ;;  %v10992_v10 = vld [vmem:[%s24993_s3 + $0x658] sm:$0xff] }
 0x705   :  { %v16188_v18 = vcombine.high %v10991_v53, %v10995_v42  ;;  %v16187_v7 = vcombine.low %v10991_v53, %v10995_v42  ;;  %v16189_v27 = vcombine.low %v10992_v10, %v10996_v44  ;;  %v11044_v53 = vld [vmem:[%s24993_s3 + $0x7f8] sm:$0xff] }
 0x706   :  { %13893 = vmatpush1.bf16.msra.mxu0 %v16131_v51  ;;  %v16190_v51 = vcombine.high %v10992_v10, %v10996_v44 }
 0x707   :  { %14057 = vmatpush1.bf16.msra.mxu1 %v16133_v12  ;;  %13894 = vmatprep.subr.bf16.mxu0 %v16140_v6  ;;  %v10999_v12 = vld [vmem:[%s24993_s3 + $0x690] sm:$0xff] }
 0x708   :  { %14058 = vmatprep.subr.bf16.mxu1 %v16142_v5  ;;  %v11003_v6 = vld [vmem:[%s24993_s3 + $0x6b0] sm:$0xff]  ;;  %v11000_v5 = vld [vmem:[%s24993_s3 + $0x698] sm:$0xff] }
 0x709   :  { %v16195_v9 = vcombine.low %v10999_v12, %v11003_v6 }
 0x70a   :  { %13895 = vmatpush1.bf16.msra.mxu0 %v16139_v16  ;;  %v16196_v16 = vcombine.high %v10999_v12, %v11003_v6  ;;  %v11052_v12 = vld [vmem:[%s24993_s3 + $0x838] sm:$0xff] }
 0x70b   :  { %14059 = vmatpush1.bf16.msra.mxu1 %v16141_v38  ;;  %13896 = vmatprep.subr.bf16.mxu0 %v16148_v34  ;;  %v11011_v38 = vld [vmem:[%s24993_s3 + $0x6f0] sm:$0xff]  ;;  %v16198_v34 = vcombine.high %v11000_v5, %v11004_v24 }
 0x70c   :  { %14060 = vmatprep.subr.bf16.mxu1 %v16150_v41  ;;  %v11008_v41 = vld [vmem:[%s24993_s3 + $0x6d8] sm:$0xff]  ;;  %v16203_v36 = vcombine.low %v11007_v14, %v11011_v38 }
 0x70e   :  { %13897 = vmatpush1.bf16.msra.mxu0 %v16147_v29  ;;  %v16197_v29 = vcombine.low %v11000_v5, %v11004_v24 }
 0x70f   :  { %14061 = vmatpush1.bf16.msra.mxu1 %v16149_v45  ;;  %13898 = vmatprep.subr.bf16.mxu0 %v16156_v59  ;;  %v16204_v45 = vcombine.high %v11007_v14, %v11011_v38  ;;  %v11016_v59 = vld [vmem:[%s24993_s3 + $0x718] sm:$0xff]  ;;  %v11055_v14 = vld [vmem:[%s24993_s3 + $0x850] sm:$0xff] }
 0x710   :  { %14062 = vmatprep.subr.bf16.mxu1 %v16158_v25  ;;  %v16206_v25 = vcombine.high %v11008_v41, %v11012_v52  ;;  %v16214_v48 = vcombine.high %v11016_v59, %v11020_v61  ;;  %v16213_v60 = vcombine.low %v11016_v59, %v11020_v61  ;;  %v11056_v38 = vld [vmem:[%s24993_s3 + $0x858] sm:$0xff] }
 0x712   :  { %13899 = vmatpush1.bf16.msra.mxu0 %v16155_v8  ;;  %v16205_v8 = vcombine.low %v11008_v41, %v11012_v52 }
 0x713   :  { %14063 = vmatpush1.bf16.msra.mxu1 %v16157_v32  ;;  %13900 = vmatprep.subr.bf16.mxu0 %v16164_v35  ;;  %v16212_v32 = vcombine.high %v11015_v20, %v11019_v22  ;;  %v11024_v35 = vld [vmem:[%s24993_s3 + $0x758] sm:$0xff]  ;;  %v11067_v20 = vld [vmem:[%s24993_s3 + $0x8b0] sm:$0xff] }
 0x714   :  { %14064 = vmatprep.subr.bf16.mxu1 %v16166_v37  ;;  %v11028_v37 = vld [vmem:[%s24993_s3 + $0x778] sm:$0xff] }
 0x715   :  { %v16221_v40 = vcombine.low %v11024_v35, %v11028_v37 }
 0x716   :  { %13901 = vmatpush1.bf16.msra.mxu0 %v16163_v49  ;;  %v16220_v49 = vcombine.high %v11023_v26, %v11027_v28  ;;  %v11071_v26 = vld [vmem:[%s24993_s3 + $0x8d0] sm:$0xff] }
 0x717   :  { %14065 = vmatpush1.bf16.msra.mxu1 %v16165_v50  ;;  %13902 = vmatprep.subr.bf16.mxu0 %v16172_v15  ;;  %v11035_v50 = vld [vmem:[%s24993_s3 + $0x7b0] sm:$0xff]  ;;  %v16222_v15 = vcombine.high %v11024_v35, %v11028_v37 }
 0x718   :  { %14066 = vmatprep.subr.bf16.mxu1 %v16174_v57  ;;  %v11032_v57 = vld [vmem:[%s24993_s3 + $0x798] sm:$0xff]  ;;  %v16228_v4 = vcombine.high %v11031_v43, %v11035_v50  ;;  %v16227_v42 = vcombine.low %v11031_v43, %v11035_v50  ;;  %v11075_v28 = vld [vmem:[%s24993_s3 + $0x8f0] sm:$0xff] }
 0x719   :  { %v16229_v10 = vcombine.low %v11032_v57, %v11036_v47  ;;  %v16268_v35 = vcombine.high %v11071_v26, %v11075_v28  ;;  %v11080_v43 = vld [vmem:[%s24993_s3 + $0x918] sm:$0xff] }
 0x71a   :  { %13903 = vmatpush1.bf16.msra.mxu0 %v16171_v2  ;;  %v16230_v2 = vcombine.high %v11032_v57, %v11036_v47  ;;  %v11087_v47 = vld [vmem:[%s24993_s3 + $0x950] sm:$0xff] }
 0x71b   :  { %14067 = vmatpush1.bf16.msra.mxu1 %v16173_v58  ;;  %13904 = vmatprep.subr.bf16.mxu0 %v16180_v0  ;;  %v11039_v58 = vld [vmem:[%s24993_s3 + $0x7d0] sm:$0xff] }
 0x71c   :  { %14068 = vmatprep.subr.bf16.mxu1 %v16182_v62  ;;  %v11043_v0 = vld [vmem:[%s24993_s3 + $0x7f0] sm:$0xff]  ;;  %v11040_v62 = vld [vmem:[%s24993_s3 + $0x7d8] sm:$0xff] }
 0x71d   :  { %v16236_v44 = vcombine.high %v11039_v58, %v11043_v0  ;;  %v16235_v6 = vcombine.low %v11039_v58, %v11043_v0  ;;  %v16237_v5 = vcombine.low %v11040_v62, %v11044_v53 }
 0x71e   :  { %13905 = vmatpush1.bf16.msra.mxu0 %v16179_v55  ;;  %v16238_v55 = vcombine.high %v11040_v62, %v11044_v53  ;;  %v11095_v53 = vld [vmem:[%s24993_s3 + $0x990] sm:$0xff] }
 0x71f   :  { %14069 = vmatpush1.bf16.msra.mxu1 %v16181_v17  ;;  %13906 = vmatprep.subr.bf16.mxu0 %v16188_v18  ;;  %v11047_v17 = vld [vmem:[%s24993_s3 + $0x810] sm:$0xff] }
 0x720   :  { %14070 = vmatprep.subr.bf16.mxu1 %v16190_v51  ;;  %v11051_v18 = vld [vmem:[%s24993_s3 + $0x830] sm:$0xff]  ;;  %v11048_v51 = vld [vmem:[%s24993_s3 + $0x818] sm:$0xff] }
 0x721   :  { %v16244_v24 = vcombine.high %v11047_v17, %v11051_v18  ;;  %v16245_v41 = vcombine.low %v11048_v51, %v11052_v12 }
 0x722   :  { %13907 = vmatpush1.bf16.msra.mxu0 %v16187_v7  ;;  %v16246_v7 = vcombine.high %v11048_v51, %v11052_v12  ;;  %v11103_v12 = vld [vmem:[%s24993_s3 + $0x9d0] sm:$0xff] }
 0x723   :  { %14071 = vmatpush1.bf16.msra.mxu1 %v16189_v27  ;;  %13908 = vmatprep.subr.bf16.mxu0 %v16196_v16  ;;  %v11059_v27 = vld [vmem:[%s24993_s3 + $0x870] sm:$0xff]  ;;  %v16243_v16 = vcombine.low %v11047_v17, %v11051_v18 }
 0x724   :  { %14072 = vmatprep.subr.bf16.mxu1 %v16198_v34  ;;  %v11060_v34 = vld [vmem:[%s24993_s3 + $0x878] sm:$0xff]  ;;  %v16252_v52 = vcombine.high %v11055_v14, %v11059_v27  ;;  %v16251_v59 = vcombine.low %v11055_v14, %v11059_v27 }
 0x725   :  { %v16254_v22 = vcombine.high %v11056_v38, %v11060_v34 }
 0x726   :  { %13909 = vmatpush1.bf16.msra.mxu0 %v16195_v9  ;;  %v11063_v9 = vld [vmem:[%s24993_s3 + $0x890] sm:$0xff] }
 0x727   :  { %14073 = vmatpush1.bf16.msra.mxu1 %v16197_v29  ;;  %13910 = vmatprep.subr.bf16.mxu0 %v16204_v45  ;;  %v11064_v29 = vld [vmem:[%s24993_s3 + $0x898] sm:$0xff]  ;;  %v16260_v61 = vcombine.high %v11063_v9, %v11067_v20 }
 0x728   :  { %14074 = vmatprep.subr.bf16.mxu1 %v16206_v25  ;;  %v11068_v45 = vld [vmem:[%s24993_s3 + $0x8b8] sm:$0xff]  ;;  %v16253_v25 = vcombine.low %v11056_v38, %v11060_v34  ;;  %v11111_v38 = vld [vmem:[%s24993_s3 + $0xa10] sm:$0xff] }
 0x729   :  { %v11115_v34 = vld [vmem:[%s24993_s3 + $0xa30] sm:$0xff] }
 0x72a   :  { %13911 = vmatpush1.bf16.msra.mxu0 %v16203_v36  ;;  %v16262_v36 = vcombine.high %v11064_v29, %v11068_v45 }
 0x72b   :  { %14075 = vmatpush1.bf16.msra.mxu1 %v16205_v8  ;;  %13912 = vmatprep.subr.bf16.mxu0 %v16212_v32  ;;  %v11076_v8 = vld [vmem:[%s24993_s3 + $0x8f8] sm:$0xff]  ;;  %v16261_v32 = vcombine.low %v11064_v29, %v11068_v45  ;;  %v11119_v45 = vld [vmem:[%s24993_s3 + $0xa50] sm:$0xff] }
 0x72c   :  { %14076 = vmatprep.subr.bf16.mxu1 %v16214_v48  ;;  %v11079_v48 = vld [vmem:[%s24993_s3 + $0x910] sm:$0xff] }
 0x72e   :  { %13913 = vmatpush1.bf16.msra.mxu0 %v16211_v54  ;;  %v11083_v54 = vld [vmem:[%s24993_s3 + $0x930] sm:$0xff] }
 0x72f   :  { %14077 = vmatpush1.bf16.msra.mxu1 %v16213_v60  ;;  %13914 = vmatprep.subr.bf16.mxu0 %v16220_v49  ;;  %v11084_v60 = vld [vmem:[%s24993_s3 + $0x938] sm:$0xff]  ;;  %v16267_v49 = vcombine.low %v11071_v26, %v11075_v28 }
 0x730   :  { %14078 = vmatprep.subr.bf16.mxu1 %v16222_v15  ;;  %v16276_v15 = vcombine.high %v11079_v48, %v11083_v54  ;;  %v16278_v57 = vcombine.high %v11080_v43, %v11084_v60  ;;  %v16277_v58 = vcombine.low %v11080_v43, %v11084_v60  ;;  %v11135_v60 = vld [vmem:[%s24993_s3 + $0xad0] sm:$0xff] }
 0x732   :  { %13915 = vmatpush1.bf16.msra.mxu0 %v16219_v56  ;;  %v11091_v56 = vld [vmem:[%s24993_s3 + $0x970] sm:$0xff] }
 0x733   :  { %14079 = vmatpush1.bf16.msra.mxu1 %v16221_v40  ;;  %13916 = vmatprep.subr.bf16.mxu0 %v16228_v4  ;;  %v11088_v40 = vld [vmem:[%s24993_s3 + $0x958] sm:$0xff]  ;;  %v16284_v0 = vcombine.high %v11087_v47, %v11091_v56 }
 0x734   :  { %14080 = vmatprep.subr.bf16.mxu1 %v16230_v2  ;;  %v11092_v4 = vld [vmem:[%s24993_s3 + $0x978] sm:$0xff]  ;;  %v16275_v2 = vcombine.low %v11079_v48, %v11083_v54 }
 0x735   :  { %v16286_v62 = vcombine.high %v11088_v40, %v11092_v4  ;;  %v16285_v17 = vcombine.low %v11088_v40, %v11092_v4  ;;  %v11143_v4 = vld [vmem:[%s24993_s3 + $0xb10] sm:$0xff] }
 0x736   :  { %13917 = vmatpush1.bf16.msra.mxu0 %v16227_v42  ;;  %v11099_v42 = vld [vmem:[%s24993_s3 + $0x9b0] sm:$0xff] }
 0x737   :  { %14081 = vmatpush1.bf16.msra.mxu1 %v16229_v10  ;;  %13918 = vmatprep.subr.bf16.mxu0 %v16236_v44  ;;  %v11096_v10 = vld [vmem:[%s24993_s3 + $0x998] sm:$0xff]  ;;  %v16292_v18 = vcombine.high %v11095_v53, %v11099_v42 }
 0x738   :  { %14082 = vmatprep.subr.bf16.mxu1 %v16238_v55  ;;  %v11100_v44 = vld [vmem:[%s24993_s3 + $0x9b8] sm:$0xff]  ;;  %v16283_v55 = vcombine.low %v11087_v47, %v11091_v56 }
 0x739   :  { %v16294_v51 = vcombine.high %v11096_v10, %v11100_v44  ;;  %v16293_v14 = vcombine.low %v11096_v10, %v11100_v44  ;;  %v11151_v44 = vld [vmem:[%s24993_s3 + $0xb50] sm:$0xff] }
 0x73a   :  { %13919 = vmatpush1.bf16.msra.mxu0 %v16235_v6  ;;  %v11107_v6 = vld [vmem:[%s24993_s3 + $0x9f0] sm:$0xff] }
 0x73b   :  { %14083 = vmatpush1.bf16.msra.mxu1 %v16237_v5  ;;  %13929 = vmatprep.subr.bf16.mxu0 %v16244_v24  ;;  %v11104_v5 = vld [vmem:[%s24993_s3 + $0x9d8] sm:$0xff]  ;;  %v16300_v27 = vcombine.high %v11103_v12, %v11107_v6 }
 0x73c   :  { %14093 = vmatprep.subr.bf16.mxu1 %v16246_v7  ;;  %v11108_v24 = vld [vmem:[%s24993_s3 + $0x9f8] sm:$0xff]  ;;  %v16291_v7 = vcombine.low %v11095_v53, %v11099_v42 }
 0x73d   :  { %13921 = vmatmul.mubr.bf16.vlgmr.msra.gmra.mrb[32].mxu0 %v23843_v13 }
 0x73e   :  { %14085 = vmatmul.mubr.bf16.vlgmr.msra.gmra.mrb[40].mxu1 %v23843_v13  ;;  %13930 = vmatpush1.bf16.msra.mxu0 %v16243_v16  ;;  %v11072_v13 = vld [vmem:[%s24993_s3 + $0x8d8] sm:$0xff]  ;;  %v16302_v16 = vcombine.high %v11104_v5, %v11108_v24 }
 0x73f   :  { %13961 = vmatprep.mubr.bf16.mxu0 %v23975_v46  ;;  %14094 = vmatpush1.bf16.msra.mxu1 %v16245_v41  ;;  %v16270_v37 = vcombine.high %v11072_v13, %v11076_v8  ;;  %v16269_v50 = vcombine.low %v11072_v13, %v11076_v8  ;;  %v11112_v41 = vld [vmem:[%s24993_s3 + $0xa18] sm:$0xff]  ;;  %v11127_v8 = vld [vmem:[%s24993_s3 + $0xa90] sm:$0xff] }
 0x740   :  { %14125 = vmatprep.mubr.bf16.mxu1 %v23975_v46  ;;  %13931 = vmatprep.subr.bf16.mxu0 %v16252_v52  ;;  %v16259_v46 = vcombine.low %v11063_v9, %v11067_v20  ;;  %v11116_v52 = vld [vmem:[%s24993_s3 + $0xa38] sm:$0xff]  ;;  %v16299_v9 = vcombine.low %v11103_v12, %v11107_v6  ;;  %v16301_v20 = vcombine.low %v11104_v5, %v11108_v24  ;;  %v11159_v24 = vld [vmem:[%s24993_s3 + $0xb90] sm:$0xff] }
 0x741   :  { %14095 = vmatprep.subr.bf16.mxu1 %v16254_v22  ;;  %v16308_v22 = vcombine.high %v11111_v38, %v11115_v34  ;;  %v16310_v29 = vcombine.high %v11112_v41, %v11116_v52  ;;  %v16309_v26 = vcombine.low %v11112_v41, %v11116_v52  ;;  %v11167_v52 = vld [vmem:[%s24993_s3 + $0xbd0] sm:$0xff] }
 0x742   :  { %13932 = vmatpush1.bf16.msra.mxu0 %v16251_v59  ;;  %v11123_v59 = vld [vmem:[%s24993_s3 + $0xa70] sm:$0xff] }
 0x743   :  { %14096 = vmatpush1.bf16.msra.mxu1 %v16253_v25  ;;  %13933 = vmatprep.subr.bf16.mxu0 %v16260_v61  ;;  %v11120_v25 = vld [vmem:[%s24993_s3 + $0xa58] sm:$0xff]  ;;  %v16316_v28 = vcombine.high %v11119_v45, %v11123_v59 }
 0x744   :  { %14097 = vmatprep.subr.bf16.mxu1 %v16262_v36  ;;  %v11124_v61 = vld [vmem:[%s24993_s3 + $0xa78] sm:$0xff]  ;;  %v16307_v36 = vcombine.low %v11111_v38, %v11115_v34 }
 0x745   :  { %v16318_v13 = vcombine.high %v11120_v25, %v11124_v61  ;;  %v16317_v48 = vcombine.low %v11120_v25, %v11124_v61  ;;  %v11175_v61 = vld [vmem:[%s24993_s3 + $0xc10] sm:$0xff] }
 0x746   :  { %13934 = vmatpush1.bf16.msra.mxu0 %v16259_v46  ;;  %v11131_v46 = vld [vmem:[%s24993_s3 + $0xab0] sm:$0xff] }
 0x747   :  { %14098 = vmatpush1.bf16.msra.mxu1 %v16261_v32  ;;  %13935 = vmatprep.subr.bf16.mxu0 %v16268_v35  ;;  %v11128_v32 = vld [vmem:[%s24993_s3 + $0xa98] sm:$0xff]  ;;  %v16324_v54 = vcombine.high %v11127_v8, %v11131_v46 }
 0x748   :  { %14099 = vmatprep.subr.bf16.mxu1 %v16270_v37  ;;  %v11132_v35 = vld [vmem:[%s24993_s3 + $0xab8] sm:$0xff]  ;;  %v16315_v37 = vcombine.low %v11119_v45, %v11123_v59 }
 0x749   :  { %v16326_v43 = vcombine.high %v11128_v32, %v11132_v35  ;;  %v16325_v47 = vcombine.low %v11128_v32, %v11132_v35  ;;  %v11183_v35 = vld [vmem:[%s24993_s3 + $0xc50] sm:$0xff] }
 0x74a   :  { %13936 = vmatpush1.bf16.msra.mxu0 %v16267_v49  ;;  %v11139_v49 = vld [vmem:[%s24993_s3 + $0xaf0] sm:$0xff] }
 0x74b   :  { %14100 = vmatpush1.bf16.msra.mxu1 %v16269_v50  ;;  %13937 = vmatprep.subr.bf16.mxu0 %v16276_v15  ;;  %v11136_v50 = vld [vmem:[%s24993_s3 + $0xad8] sm:$0xff]  ;;  %v16332_v56 = vcombine.high %v11135_v60, %v11139_v49 }
 0x74c   :  { %14101 = vmatprep.subr.bf16.mxu1 %v16278_v57  ;;  %v11140_v15 = vld [vmem:[%s24993_s3 + $0xaf8] sm:$0xff]  ;;  %v16323_v57 = vcombine.low %v11127_v8, %v11131_v46 }
 0x74d   :  { %v16334_v40 = vcombine.high %v11136_v50, %v11140_v15  ;;  %v16333_v53 = vcombine.low %v11136_v50, %v11140_v15  ;;  %v11191_v15 = vld [vmem:[%s24993_s3 + $0xc90] sm:$0xff] }
 0x74e   :  { %13938 = vmatpush1.bf16.msra.mxu0 %v16275_v2  ;;  %v11147_v2 = vld [vmem:[%s24993_s3 + $0xb30] sm:$0xff] }
 0x74f   :  { %14102 = vmatpush1.bf16.msra.mxu1 %v16277_v58  ;;  %13939 = vmatprep.subr.bf16.mxu0 %v16284_v0  ;;  %v11144_v58 = vld [vmem:[%s24993_s3 + $0xb18] sm:$0xff]  ;;  %v16340_v42 = vcombine.high %v11143_v4, %v11147_v2 }
 0x750   :  { %14103 = vmatprep.subr.bf16.mxu1 %v16286_v62  ;;  %v11148_v0 = vld [vmem:[%s24993_s3 + $0xb38] sm:$0xff]  ;;  %v16331_v62 = vcombine.low %v11135_v60, %v11139_v49 }
 0x751   :  { %v16342_v10 = vcombine.high %v11144_v58, %v11148_v0  ;;  %v16341_v12 = vcombine.low %v11144_v58, %v11148_v0  ;;  %v11199_v0 = vld [vmem:[%s24993_s3 + $0xcd0] sm:$0xff] }
 0x752   :  { %13940 = vmatpush1.bf16.msra.mxu0 %v16283_v55  ;;  %v11155_v55 = vld [vmem:[%s24993_s3 + $0xb70] sm:$0xff] }
 0x753   :  { %14104 = vmatpush1.bf16.msra.mxu1 %v16285_v17  ;;  %13941 = vmatprep.subr.bf16.mxu0 %v16292_v18  ;;  %v11152_v17 = vld [vmem:[%s24993_s3 + $0xb58] sm:$0xff]  ;;  %v16348_v6 = vcombine.high %v11151_v44, %v11155_v55 }
 0x754   :  { %14105 = vmatprep.subr.bf16.mxu1 %v16294_v51  ;;  %v11156_v18 = vld [vmem:[%s24993_s3 + $0xb78] sm:$0xff]  ;;  %v16339_v51 = vcombine.low %v11143_v4, %v11147_v2 }
 0x755   :  { %v16350_v5 = vcombine.high %v11152_v17, %v11156_v18  ;;  %v16349_v38 = vcombine.low %v11152_v17, %v11156_v18  ;;  %v11207_v17 = vld [vmem:[%s24993_s3 + $0xd10] sm:$0xff] }
 0x756   :  { %13942 = vmatpush1.bf16.msra.mxu0 %v16291_v7  ;;  %v11163_v7 = vld [vmem:[%s24993_s3 + $0xbb0] sm:$0xff] }
 0x757   :  { %14106 = vmatpush1.bf16.msra.mxu1 %v16293_v14  ;;  %13943 = vmatprep.subr.bf16.mxu0 %v16300_v27  ;;  %v11160_v14 = vld [vmem:[%s24993_s3 + $0xb98] sm:$0xff]  ;;  %v16356_v34 = vcombine.high %v11159_v24, %v11163_v7  ;;  %v11211_v18 = vld [vmem:[%s24993_s3 + $0xd30] sm:$0xff] }
 0x758   :  { %14107 = vmatprep.subr.bf16.mxu1 %v16302_v16  ;;  %v11164_v27 = vld [vmem:[%s24993_s3 + $0xbb8] sm:$0xff]  ;;  %v16347_v16 = vcombine.low %v11151_v44, %v11155_v55 }
 0x759   :  { %v16358_v41 = vcombine.high %v11160_v14, %v11164_v27  ;;  %v16357_v45 = vcombine.low %v11160_v14, %v11164_v27  ;;  %v11219_v14 = vld [vmem:[%s24993_s3 + $0xd70] sm:$0xff]  ;;  %v11216_v27 = vld [vmem:[%s24993_s3 + $0xd58] sm:$0xff] }
 0x75a   :  { %13944 = vmatpush1.bf16.msra.mxu0 %v16299_v9  ;;  %v11171_v9 = vld [vmem:[%s24993_s3 + $0xbf0] sm:$0xff] }
 0x75b   :  { %14108 = vmatpush1.bf16.msra.mxu1 %v16301_v20  ;;  %13945 = vmatprep.subr.bf16.mxu0 %v16308_v22  ;;  %v11168_v20 = vld [vmem:[%s24993_s3 + $0xbd8] sm:$0xff]  ;;  %v16364_v59 = vcombine.high %v11167_v52, %v11171_v9 }
 0x75c   :  { %14109 = vmatprep.subr.bf16.mxu1 %v16310_v29  ;;  %v11172_v22 = vld [vmem:[%s24993_s3 + $0xbf8] sm:$0xff]  ;;  %v16355_v29 = vcombine.low %v11159_v24, %v11163_v7  ;;  %v11215_v7 = vld [vmem:[%s24993_s3 + $0xd50] sm:$0xff] }
 0x75d   :  { %v16366_v25 = vcombine.high %v11168_v20, %v11172_v22  ;;  %v16365_v8 = vcombine.low %v11168_v20, %v11172_v22  ;;  %v11223_v20 = vld [vmem:[%s24993_s3 + $0xd90] sm:$0xff] }
 0x75e   :  { %13946 = vmatpush1.bf16.msra.mxu0 %v16307_v36  ;;  %v11179_v36 = vld [vmem:[%s24993_s3 + $0xc30] sm:$0xff] }
 0x75f   :  { %14110 = vmatpush1.bf16.msra.mxu1 %v16309_v26  ;;  %13947 = vmatprep.subr.bf16.mxu0 %v16316_v28  ;;  %v11176_v26 = vld [vmem:[%s24993_s3 + $0xc18] sm:$0xff]  ;;  %v16372_v46 = vcombine.high %v11175_v61, %v11179_v36  ;;  %v11227_v22 = vld [vmem:[%s24993_s3 + $0xdb0] sm:$0xff] }
 0x760   :  { %14111 = vmatprep.subr.bf16.mxu1 %v16318_v13  ;;  %v11180_v28 = vld [vmem:[%s24993_s3 + $0xc38] sm:$0xff]  ;;  %v16363_v13 = vcombine.low %v11167_v52, %v11171_v9  ;;  %v16412_v52 = vcombine.high %v11215_v7, %v11219_v14 }
 0x761   :  { %v16374_v32 = vcombine.high %v11176_v26, %v11180_v28  ;;  %v16373_v60 = vcombine.low %v11176_v26, %v11180_v28  ;;  %v16411_v26 = vcombine.low %v11215_v7, %v11219_v14  ;;  %v18866_v7 = vld [vmem:[%s24994_s5 + $0x28] sm:$0xff]   ;;  %v18867_v14 = vld [vmem:[%s24994_s5 + $0x70] sm:$0xff]  }
 0x762   :  { %13948 = vmatpush1.bf16.msra.mxu0 %v16315_v37  ;;  %v11187_v37 = vld [vmem:[%s24993_s3 + $0xc70] sm:$0xff] }
 0x763   :  { %14112 = vmatpush1.bf16.msra.mxu1 %v16317_v48  ;;  %13949 = vmatprep.subr.bf16.mxu0 %v16324_v54  ;;  %v11184_v48 = vld [vmem:[%s24993_s3 + $0xc58] sm:$0xff]  ;;  %v16380_v49 = vcombine.high %v11183_v35, %v11187_v37 }
 0x764   :  { %14113 = vmatprep.subr.bf16.mxu1 %v16326_v43  ;;  %v11188_v54 = vld [vmem:[%s24993_s3 + $0xc78] sm:$0xff]  ;;  %v16371_v43 = vcombine.low %v11175_v61, %v11179_v36 }
 0x765   :  { %v16382_v50 = vcombine.high %v11184_v48, %v11188_v54  ;;  %v16381_v4 = vcombine.low %v11184_v48, %v11188_v54  ;;  %v11232_v48 = vld [vmem:[%s24993_s3 + $0xdd8] sm:$0xff] }
 0x766   :  { %13950 = vmatpush1.bf16.msra.mxu0 %v16323_v57  ;;  %v11195_v57 = vld [vmem:[%s24993_s3 + $0xcb0] sm:$0xff]  ;;  %v11236_v54 = vld [vmem:[%s24993_s3 + $0xdf8] sm:$0xff] }
 0x767   :  { %14114 = vmatpush1.bf16.msra.mxu1 %v16325_v47  ;;  %13951 = vmatprep.subr.bf16.mxu0 %v16332_v56  ;;  %v11192_v47 = vld [vmem:[%s24993_s3 + $0xc98] sm:$0xff]  ;;  %v16388_v2 = vcombine.high %v11191_v15, %v11195_v57 }
 0x768   :  { %14115 = vmatprep.subr.bf16.mxu1 %v16334_v40  ;;  %v11196_v56 = vld [vmem:[%s24993_s3 + $0xcb8] sm:$0xff]  ;;  %v16379_v40 = vcombine.low %v11183_v35, %v11187_v37 }
 0x769   :  { %v16390_v58 = vcombine.high %v11192_v47, %v11196_v56 }
 0x76a   :  { %13952 = vmatpush1.bf16.msra.mxu0 %v16331_v62  ;;  %v11203_v62 = vld [vmem:[%s24993_s3 + $0xcf0] sm:$0xff] }
 0x76b   :  { %14116 = vmatpush1.bf16.msra.mxu1 %v16333_v53  ;;  %13953 = vmatprep.subr.bf16.mxu0 %v16340_v42  ;;  %v11204_v53 = vld [vmem:[%s24993_s3 + $0xcf8] sm:$0xff]  ;;  %v16387_v42 = vcombine.low %v11191_v15, %v11195_v57  ;;  %v16396_v44 = vcombine.high %v11199_v0, %v11203_v62  ;;  %v16419_v15 = vcombine.low %v11223_v20, %v11227_v22 }
 0x76c   :  { %14117 = vmatprep.subr.bf16.mxu1 %v16342_v10  ;;  %v16389_v10 = vcombine.low %v11192_v47, %v11196_v56 }
 0x76e   :  { %13954 = vmatpush1.bf16.msra.mxu0 %v16339_v51  ;;  %v11212_v51 = vld [vmem:[%s24993_s3 + $0xd38] sm:$0xff] }
 0x76f   :  { %14118 = vmatpush1.bf16.msra.mxu1 %v16341_v12  ;;  %13955 = vmatprep.subr.bf16.mxu0 %v16348_v6  ;;  %v16395_v12 = vcombine.low %v11199_v0, %v11203_v62  ;;  %v16430_v62 = vcombine.high %v11232_v48, %v11236_v54 }
 0x770   :  { %14119 = vmatprep.subr.bf16.mxu1 %v16350_v5  ;;  %v16404_v5 = vcombine.high %v11207_v17, %v11211_v18 }
 0x772   :  { %13956 = vmatpush1.bf16.msra.mxu0 %v16347_v16  ;;  %v11220_v16 = vld [vmem:[%s24993_s3 + $0xd78] sm:$0xff] }
 0x773   :  { %14120 = vmatpush1.bf16.msra.mxu1 %v16349_v38  ;;  %13957 = vmatprep.subr.bf16.mxu0 %v16356_v34  ;;  %v16403_v38 = vcombine.low %v11207_v17, %v11211_v18  ;;  %v24814_v34 = vld [vmem:[%s24995_s4] sm:$0xff]  ;;  %v16414_v9 = vcombine.high %v11216_v27, %v11220_v16  ;;  %v18857_v17 = vld [vmem:[%s24994_s5 + $0x48] sm:$0xff]  }
 0x774   :  { %14121 = vmatprep.subr.bf16.mxu1 %v16358_v41  ;;  %v11246_v61 = vrot.slane %v24814_v34, %v20226_v21  ;;  %v11254_v36 = vrot.slane %v24814_v34, %v21569_v39  ;;  %v11235_v21 = vld [vmem:[%s24993_s3 + $0xdf0] sm:$0xff]  ;;  %v18858_v18 = vld [vmem:[%s24994_s5 + $0x8] sm:$0xff]  }
 0x776   :  { %13958 = vmatpush1.bf16.msra.mxu0 %v16355_v29  ;;  %v11242_v29 = vrot.slane %v24814_v34, %v20220_v19  ;;  %v16413_v19 = vcombine.low %v11216_v27, %v11220_v16  ;;  %v18868_v27 = vld [vmem:[%s24994_s5 + $0x30] sm:$0xff]   ;;  %v18869_v16 = vld [vmem:[%s24994_s5 + $0x78] sm:$0xff]  }
 0x777   :  { %14122 = vmatpush1.bf16.msra.mxu1 %v16357_v45  ;;  %13959 = vmatprep.subr.bf16.mxu0 %v16364_v59  ;;  %v11250_v45 = vrot.slane %v24814_v34, %v21443_v23  ;;  %v11224_v59 = vld [vmem:[%s24993_s3 + $0xd98] sm:$0xff]  ;;  %v16420_v23 = vcombine.high %v11223_v20, %v11227_v22  ;;  %v18873_v20 = vld [vmem:[%s24996_s7 + $0x10] sm:$0xff]  }
 0x778   :  { %14123 = vmatprep.subr.bf16.mxu1 %v16366_v25  ;;  %v11228_v25 = vld [vmem:[%s24993_s3 + $0xdb8] sm:$0xff] }
 0x779   :  { %v18874_v22 = vld [vmem:[%s24996_s7 + $0x18] sm:$0xff]  }
 0x77a   :  { %13960 = vmatpush1.bf16.msra.mxu0 %v16363_v13 }
 0x77b   :  { %14124 = vmatpush1.bf16.msra.mxu1 %v16365_v8  ;;  %13970 = vmatprep.subr.bf16.mxu0 %v16372_v46  ;;  %v16422_v8 = vcombine.high %v11224_v59, %v11228_v25  ;;  %v11231_v46 = vld [vmem:[%s24993_s3 + $0xdd0] sm:$0xff] }
 0x77c   :  { %14134 = vmatprep.subr.bf16.mxu1 %v16374_v32 }
 0x77d   :  { %13962 = vmatmul.mubr.bf16.vlgmr.msra.gmra.mrb[32].mxu0 %v24065_v63 }
 0x77e   :  { %14126 = vmatmul.mubr.bf16.vlgmr.msra.gmra.mrb[40].mxu1 %v24065_v63  ;;  %13971 = vmatpush1.bf16.msra.mxu0 %v16371_v43  ;;  %v11200_v63 = vld [vmem:[%s24993_s3 + $0xcd8] sm:$0xff] }
 0x77f   :  { %14135 = vmatpush1.bf16.msra.mxu1 %v16373_v60  ;;  %13972 = vmatprep.subr.bf16.mxu0 %v16380_v49  ;;  %v16398_v55 = vcombine.high %v11200_v63, %v11204_v53  ;;  %v16397_v6 = vcombine.low %v11200_v63, %v11204_v53 }
 0x780   :  { %14136 = vmatprep.subr.bf16.mxu1 %v16382_v50  ;;  %14002 = vmatprep.mubr.bf16.mxu0 %v18891_v1 }
 0x781   :  { %14166 = vmatprep.mubr.bf16.mxu1 %v18891_v1  ;;  %v11208_v1 = vld [vmem:[%s24993_s3 + $0xd18] sm:$0xff] }
 0x782   :  { %13973 = vmatpush1.bf16.msra.mxu0 %v16379_v40  ;;  %v16406_v24 = vcombine.high %v11208_v1, %v11212_v51  ;;  %v16405_v41 = vcombine.low %v11208_v1, %v11212_v51  ;;  %v18859_v1 = vld [vmem:[%s24994_s5 + $0x50] sm:$0xff]  }
 0x783   :  { %14137 = vmatpush1.bf16.msra.mxu1 %v16381_v4  ;;  %13974 = vmatprep.subr.bf16.mxu0 %v16388_v2  ;;  %v16421_v4 = vcombine.low %v11224_v59, %v11228_v25  ;;  %v16428_v2 = vcombine.high %v11231_v46, %v11235_v21  ;;  %v18860_v51 = vld [vmem:[%s24994_s5 + $0x10] sm:$0xff]   ;;  %v11258_v59 = vrot.slane %v24814_v34, %v20811_v31 }
 0x784   :  { %14138 = vmatprep.subr.bf16.mxu1 %v16390_v58  ;;  %v11266_v25 = vrot.slane %v24814_v34, %v22089_v3 }
 0x786   :  { %13975 = vmatpush1.bf16.msra.mxu0 %v16387_v42  ;;  %v16427_v42 = vcombine.low %v11231_v46, %v11235_v21 }
 0x787   :  { %14139 = vmatpush1.bf16.msra.mxu1 %v16389_v10  ;;  %13976 = vmatprep.subr.bf16.mxu0 %v16396_v44  ;;  %v16429_v10 = vcombine.low %v11232_v48, %v11236_v54  ;;  %v18855_v44 = vld [vmem:[%s24994_s5 + $0x40] sm:$0xff]  }
 0x788   :  { %14140 = vmatprep.subr.bf16.mxu1 %v16398_v55  ;;  %v18856_v55 = vld [vmem:[%s24994_s5] sm:$0xff]  }
 0x78a   :  { %13977 = vmatpush1.bf16.msra.mxu0 %v16395_v12  ;;  %v18862_v12 = vld [vmem:[%s24994_s5 + $0x18] sm:$0xff]  }
 0x78b   :  { %14141 = vmatpush1.bf16.msra.mxu1 %v16397_v6  ;;  %13978 = vmatprep.subr.bf16.mxu0 %v16404_v5  ;;  %v18863_v6 = vld [vmem:[%s24994_s5 + $0x60] sm:$0xff]  }
 0x78c   :  { %14142 = vmatprep.subr.bf16.mxu1 %v16406_v24  ;;  %v18864_v5 = vld [vmem:[%s24994_s5 + $0x20] sm:$0xff]   ;;  %v18865_v24 = vld [vmem:[%s24994_s5 + $0x68] sm:$0xff]  }
 0x78e   :  { %13979 = vmatpush1.bf16.msra.mxu0 %v16403_v38  ;;  %v18870_v38 = vld [vmem:[%s24994_s5 + $0x38] sm:$0xff]  }
 0x78f   :  { %14143 = vmatpush1.bf16.msra.mxu1 %v16405_v41  ;;  %13980 = vmatprep.subr.bf16.mxu0 %v16412_v52  ;;  %v18892_v41 = vmov 0.0   ;;  %v18871_v52 = vld [vmem:[%s24996_s7] sm:$0xff]  }
 0x790   :  { %v13676_v28 = vpop.f32.mrb[28].mxu0  ;;  %v13840_v13 = vpop.f32.mrb[36].mxu1  ;;  %14144 = vmatprep.subr.bf16.mxu1 %v16414_v9  ;;  %v18872_v9 = vld [vmem:[%s24996_s7 + $0x8] sm:$0xff]  }
 0x791   :  { %v16578_v32 = vadd.f32 %v13676_v28, %v11242_v29  ;;  %v16580_v35 = vadd.f32 %v13840_v13, %v11250_v45  ;;  %v13678_v39 = vpop.f32.mrb[29].mxu0  ;;  %v13842_v37 = vpop.f32.mrb[37].mxu1  ;;  %v18875_v29 = vld [vmem:[%s24996_s7 + $0x20] sm:$0xff]   ;;  %v18876_v45 = vld [vmem:[%s24996_s7 + $0x28] sm:$0xff]  }
 0x792   :  { %v16579_v43 = vadd.f32 %v13678_v39, %v11246_v61  ;;  %v16581_v60 = vadd.f32 %v13842_v37, %v11254_v36  ;;  %v13680_v49 = vpop.f32.mrb[30].mxu0  ;;  %v13844_v50 = vpop.f32.mrb[38].mxu1  ;;  %13981 = vmatpush1.bf16.msra.mxu0 %v16411_v26  ;;  %v11262_v61 = vrot.slane %v24814_v34, %v20817_v33  ;;  %v11270_v36 = vrot.slane %v24814_v34, %v20942_v30 }
 0x793   :  { %v14175_v57 = vmax.f32 %v16578_v32, 0.0  ;;  %v14177_v47 = vmax.f32 %v16580_v35, 0.0  ;;  %14145 = vmatpush1.bf16.msra.mxu1 %v16413_v19  ;;  %v13681_v56 = vpop.f32.mrb[31].mxu0  ;;  %v13845_v40 = vpop.f32.mrb[39].mxu1  ;;  %13982 = vmatprep.subr.bf16.mxu0 %v16420_v23  ;;  %v18877_v50 = vld [vmem:[%s24996_s7 + $0x30] sm:$0xff]  }
 0x794   :  { %v14176_v58 = vmax.f32 %v16579_v43, 0.0  ;;  %v14178_v0 = vmax.f32 %v16581_v60, 0.0  ;;  %14146 = vmatprep.subr.bf16.mxu1 %v16422_v8  ;;  %v18881_v56 = vld [vmem:[%s24997_s9 + $0x10] sm:$0xff]   ;;  %v18882_v40 = vld [vmem:[%s24997_s9 + $0x18] sm:$0xff]  }
 0x795   :  { %v24848_v63 = vmax.f32 %v14175_v57, %v14177_v47  ;;  %v18879_v57 = vld [vmem:[%s24997_s9] sm:$0xff]   ;;  %v18880_v47 = vld [vmem:[%s24997_s9 + $0x8] sm:$0xff]  }
 0x796   :  { %v24850_v53 = vmax.f32 %v14176_v58, %v14178_v0  ;;  %13983 = vmatpush1.bf16.msra.mxu0 %v16419_v15  ;;  %v18878_v15 = vld [vmem:[%s24996_s7 + $0x38] sm:$0xff]   ;;  %v16431_v0 = vld [vmem:[%s24998_s6] ss:$0 sm:$0xff] }
 0x797   :  { %14147 = vmatpush1.bf16.msra.mxu1 %v16421_v4  ;;  %13984 = vmatprep.subr.bf16.mxu0 %v16428_v2  ;;  %v18883_v4 = vld [vmem:[%s24997_s9 + $0x20] sm:$0xff]   ;;  %v18884_v2 = vld [vmem:[%s24997_s9 + $0x28] sm:$0xff]  }
 0x798   :  { %14148 = vmatprep.subr.bf16.mxu1 %v16430_v62 }
 0x79a   :  { %13985 = vmatpush1.bf16.msra.mxu0 %v16427_v42 }
 0x79b   :  { %14149 = vmatpush1.bf16.msra.mxu1 %v16429_v10  ;;  %16466 = vmatprep.subr.bf16.mxu0 %v18855_v44 }
 0x79c   :  { %16506 = vmatprep.subr.bf16.mxu1 %v18892_v41 }
 0x79d   :  { %14003 = vmatmul.mubr.bf16.vlgmr.msra.gmra.mrb[32].mxu0 %v24169_v11 }
 0x79e   :  { %14167 = vmatmul.mubr.bf16.vlgmr.msra.gmra.mrb[40].mxu1 %v24169_v11  ;;  %16467 = vmatpush3.bf16.msra.mxu0 %v18856_v55  ;;  %v18861_v11 = vld [vmem:[%s24994_s5 + $0x58] sm:$0xff]  }
 0x79f   :  { %16468 = vmatprep.subr.bf16.mxu0 %v18857_v17  ;;  %16507 = vmatpush3.bf16.msra.mxu1 %v18871_v52  ;;  %v18885_v17 = vld [vmem:[%s24997_s9 + $0x30] sm:$0xff]  }
 0x7a0   :  { %16508 = vmatprep.subr.bf16.mxu1 %v18892_v41  ;;  %16522 = vmatprep.mubr.msk.bf16.mxu1 %vm18893_vm1, %v18892_v41 }
 0x7a2   :  { %16469 = vmatpush3.bf16.msra.mxu0 %v18858_v18  ;;  %v18886_v18 = vld [vmem:[%s24997_s9 + $0x38] sm:$0xff]  }
 0x7a3   :  { %16470 = vmatprep.subr.bf16.mxu0 %v18859_v1  ;;  %16509 = vmatpush3.bf16.msra.mxu1 %v18872_v9  ;;  %v16448_v1 = vld [vmem:[%s24999_s8] ss:$0 sm:$0xff] }
 0x7a4   :  { %16510 = vmatprep.subr.bf16.mxu1 %v18892_v41 }
 0x7a6   :  { %16471 = vmatpush3.bf16.msra.mxu0 %v18860_v51 }
 0x7a7   :  { %16472 = vmatprep.subr.bf16.mxu0 %v18861_v11  ;;  %16511 = vmatpush3.bf16.msra.mxu1 %v18873_v20 }
 0x7a8   :  { %16512 = vmatprep.subr.bf16.mxu1 %v18892_v41 }
 0x7aa   :  { %16473 = vmatpush3.bf16.msra.mxu0 %v18862_v12 }
 0x7ab   :  { %16474 = vmatprep.subr.bf16.mxu0 %v18863_v6  ;;  %16513 = vmatpush3.bf16.msra.mxu1 %v18874_v22 }
 0x7ac   :  { %16514 = vmatprep.subr.bf16.mxu1 %v18892_v41 }
 0x7ae   :  { %16475 = vmatpush3.bf16.msra.mxu0 %v18864_v5 }
 0x7af   :  { %16476 = vmatprep.subr.bf16.mxu0 %v18865_v24  ;;  %16515 = vmatpush3.bf16.msra.mxu1 %v18875_v29 }
 0x7b0   :  { %16516 = vmatprep.subr.bf16.mxu1 %v18892_v41 }
 0x7b2   :  { %16477 = vmatpush3.bf16.msra.mxu0 %v18866_v7 }
 0x7b3   :  { %16478 = vmatprep.subr.bf16.mxu0 %v18867_v14  ;;  %16517 = vmatpush3.bf16.msra.mxu1 %v18876_v45  ;;  %v16457_v14 = vld [vmem:[%s25000_s10] ss:$0 sm:$0xff] }
 0x7b4   :  { %16518 = vmatprep.subr.bf16.mxu1 %v18892_v41 }
 0x7b6   :  { %16479 = vmatpush3.bf16.msra.mxu0 %v18868_v27 }
 0x7b7   :  { %16480 = vmatprep.subr.bf16.mxu0 %v18869_v16  ;;  %16519 = vmatpush3.bf16.msra.mxu1 %v18877_v50 }
 0x7b8   :  { %16520 = vmatprep.subr.bf16.mxu1 %v18892_v41 }
 0x7ba   :  { %16481 = vmatpush3.bf16.msra.mxu0 %v18870_v38 }
 0x7bb   :  { %16526 = vmatprep.subr.bf16.mxu0 %v18892_v41  ;;  %16521 = vmatpush3.bf16.msra.mxu1 %v18878_v15 }
 0x870   :  { %v14004_v26 = vpop.f32.mrb[32].mxu0 }
 0x871   :  { %v16582_v19 = vadd.f32 %v14004_v26, %v11258_v59  ;;  %v14168_v23 = vpop.f32.mrb[40].mxu1  ;;  %v14006_v28 = vpop.f32.mrb[33].mxu0 }
 0x872   :  { %v16584_v13 = vadd.f32 %v14168_v23, %v11266_v25  ;;  %v16583_v8 = vadd.f32 %v14006_v28, %v11262_v61  ;;  %v14170_v46 = vpop.f32.mrb[41].mxu1  ;;  %v14008_v21 = vpop.f32.mrb[34].mxu0 }
 0x873   :  { %v14179_v32 = vmax.f32 %v16582_v19, 0.0  ;;  %v16585_v35 = vadd.f32 %v14170_v46, %v11270_v36  ;;  %v14172_v31 = vpop.f32.mrb[42].mxu1  ;;  %v14009_v39 = vpop.f32.mrb[35].mxu0 }
 0x874   :  { %v14181_v37 = vmax.f32 %v16584_v13, 0.0  ;;  %v14180_v3 = vmax.f32 %v16583_v8, 0.0  ;;  %v14173_v48 = vpop.f32.mrb[43].mxu1 }
 0x875   :  { %v14182_v54 = vmax.f32 %v16585_v35, 0.0 }
 0x876   :  { %v14185_v33 = vmax.f32 %v14179_v32, %v14181_v37 }
 0x877   :  { %v14186_v43 = vmax.f32 %v14180_v3, %v14182_v54 }
 0x878   :  { %v14187_v30 = vmax.f32 %v24848_v63, %v14185_v33 }
 0x879   :  { %v14188_v34 = vmax.f32 %v24850_v53, %v14186_v43 }
 0x87a   :  { %v14189_v49 = vpack.c.bf16 %v14187_v30, %v14187_v30 }
 0x87b   :  { %v14190_v60 = vpack.c.bf16 %v14188_v34, %v14188_v34 }
 0x87d   :  { %14358 = vmatprep.mubr.bf16.mxu0 %v14190_v60 }
 0x87e   :  { %14359 = vmatmul.mubr.bf16.vlgmr.msra.gmra.mrb[36].mxu0 %v14189_v49 }
 0x87f   :  { %16542 = vmatprep.mubr.msk.bf16.mxu0 %vm18893_vm1, %v18892_v41  ;;  %16527 = vmatpush3.bf16.msra.mxu0 %v18879_v57 }
 0x880   :  { %16528 = vmatprep.subr.bf16.mxu0 %v18892_v41 }
 0x883   :  { %16529 = vmatpush3.bf16.msra.mxu0 %v18880_v47 }
 0x884   :  { %16530 = vmatprep.subr.bf16.mxu0 %v18892_v41 }
 0x887   :  { %16531 = vmatpush3.bf16.msra.mxu0 %v18881_v56 }
 0x888   :  { %16532 = vmatprep.subr.bf16.mxu0 %v18892_v41 }
 0x88b   :  { %16533 = vmatpush3.bf16.msra.mxu0 %v18882_v40 }
 0x88c   :  { %16534 = vmatprep.subr.bf16.mxu0 %v18892_v41 }
 0x88f   :  { %16535 = vmatpush3.bf16.msra.mxu0 %v18883_v4 }
 0x890   :  { %16536 = vmatprep.subr.bf16.mxu0 %v18892_v41 }
 0x893   :  { %16537 = vmatpush3.bf16.msra.mxu0 %v18884_v2 }
 0x894   :  { %16538 = vmatprep.subr.bf16.mxu0 %v18892_v41 }
 0x897   :  { %16539 = vmatpush3.bf16.msra.mxu0 %v18885_v17 }
 0x898   :  { %16540 = vmatprep.subr.bf16.mxu0 %v18892_v41 }
 0x89b   :  { %16541 = vmatpush3.bf16.msra.mxu0 %v18886_v18 }
 0x951   :  { %v16482_v58 = vpop.f32.mrb[36].mxu0 }
 0x952   :  { %v16483_v62 = vpop.f32.mrb[37].mxu0 }
 0x953   :  { %v16484_v63 = vadd.f32 %v16483_v62, %v16482_v58  ;;  %v16485_v53 = vpop.f32.mrb[38].mxu0 }
 0x954   :  { %v16486_v42 = vpop.f32.mrb[39].mxu0 }
 0x955   :  { %v14361_v10 = vadd.f32 %v16484_v63, %v16431_v0 }
 0x957   :  { %v14366_v44 = vmax.f32 %v14361_v10, 0.0 }
 0x959   :  { %v14367_v55 = vpack.c.bf16 %v14366_v44, %v14366_v44 }
 0x95b   :  { %16523 = vmatmul.mubr.bf16.vlgmr.msra.gmra.mrb[44].mxu1 %v14367_v55 }
 0xa2e   :  { %v14473_v51 = vpop.f32.mrb[44].mxu1 }
 0xa2f   :  { %v14474_v11 = vadd.f32 %v16448_v1, %v14473_v51  ;;  %v16524_v12 = vpop.f32.mrb[45].mxu1 }
 0xa30   :  { %v14476_v6 = vpop.f32.mrb[46].mxu1 }
 0xa31   :  { %v14479_v5 = vmax.f32 %v14474_v11, 0.0  ;;  %v16525_v24 = vpop.f32.mrb[47].mxu1 }
 0xa33   :  { %v14480_v7 = vpack.c.bf16 %v14479_v5, %v14479_v5 }
 0xa35   :  { %16543 = vmatmul.mubr.bf16.vlgmr.msra.gmra.mrb[40].mxu0 %v14480_v7 }
 0xb08   :  { %v14586_v27 = vpop.f32.mrb[40].mxu0 }
 0xb09   :  { %v14587_v16 = vadd.f32 %v16457_v14, %v14586_v27  ;;  %v16544_v38 = vpop.f32.mrb[41].mxu0 }
 0xb0a   :  { %v14589_v41 = vpop.f32.mrb[42].mxu0 }
 0xb0b   :  { %14592 = vst [vmem:[%s25001_s11] sm:$0xff] %v14587_v16  ;;  %v16545_v52 = vpop.f32.mrb[43].mxu0 }

</bundles_post_ra>
